<compile_context>
chip_gen: v7x
topology: tpu7x:2x2x1
jax: 0.10.0
libtpu: 0.0.40
codegen_flags: <defaults>
</compile_context>

<pallas_src>
import numpy as np
import jax
import jax.numpy as jnp
from jax.experimental import pallas as pl
from jax.experimental.pallas import tpu as pltpu


# ----------------------------------------------------------------------------
# Pallas kernel: fused conv1(5x5)+relu -> conv1_2(3x3), conv2(5x5), add, relu
# ----------------------------------------------------------------------------
def _make_upprojection_kernel(H, W, Cin, Cp):
    HW = H * W

    def kernel(x_ref, wcat_ref, b1_ref, w12_ref, b12_ref, b2_ref,
               o_ref, xpad_ref, act_ref, acc_ref):
        # x_ref   : (1, H, W, Cin)    unpadded input tile (per batch)
        # wcat_ref: (25, Cin, 2*Cp)   conv1 | conv2 weights concatenated on N
        # w12_ref : (9, Cp, Cp)       conv1_2 weights
        # b*_ref  : (1, Cp)           biases
        # o_ref   : (1, H, W, Cp)
        # xpad_ref: (H+4, W+4, Cin)   VMEM scratch, input + 2-px zero halo
        # act_ref : (H+2, W+2, Cp)    VMEM scratch, relu(conv1) + 1-px zero halo
        # acc_ref : (H*W, 2*Cp) f32   VMEM accumulator: [branch1-path | branch2]
        f32 = jnp.float32

        # -- zero only the halo border strips; interiors are overwritten below --
        xpad_ref[0:2, :, :] = jnp.zeros((2, W + 4, Cin), f32)
        xpad_ref[H + 2:H + 4, :, :] = jnp.zeros((2, W + 4, Cin), f32)
        xpad_ref[2:H + 2, 0:2, :] = jnp.zeros((H, 2, Cin), f32)
        xpad_ref[2:H + 2, W + 2:W + 4, :] = jnp.zeros((H, 2, Cin), f32)

        act_ref[0:1, :, :] = jnp.zeros((1, W + 2, Cp), f32)
        act_ref[H + 1:H + 2, :, :] = jnp.zeros((1, W + 2, Cp), f32)
        act_ref[1:H + 1, 0:1, :] = jnp.zeros((H, 1, Cp), f32)
        act_ref[1:H + 1, W + 1:W + 2, :] = jnp.zeros((H, 1, Cp), f32)

        # -- pad the input inside VMEM (no HBM-side jnp.pad in the wrapper) --
        xpad_ref[2:H + 2, 2:W + 2, :] = x_ref[0]

        # -- both 5x5 convs fused: shared patch, one (HW,Cin)x(Cin,2Cp) dot/tap --
        acc_ref[...] = jnp.zeros_like(acc_ref)
        for k in range(25):
            dy, dx = divmod(k, 5)
            patch = xpad_ref[dy:dy + H, dx:dx + W, :].reshape(HW, Cin)
            acc_ref[...] += jnp.dot(patch, wcat_ref[k],
                                    preferred_element_type=f32)

        # -- branch 1 stage 1 epilogue: bias + relu, staged with 1-px halo --
        act_ref[1:H + 1, 1:W + 1, :] = jnp.maximum(
            acc_ref[:, :Cp] + b1_ref[0], 0.0).reshape(H, W, Cp)

        # -- branch 1 stage 2: 3x3 conv accumulated into the freed first half --
        acc_ref[:, :Cp] = jnp.broadcast_to(b12_ref[0], (HW, Cp))
        for k in range(9):
            dy, dx = divmod(k, 3)
            patch = act_ref[dy:dy + H, dx:dx + W, :].reshape(HW, Cp)
            acc_ref[:, :Cp] += jnp.dot(patch, w12_ref[k],
                                       preferred_element_type=f32)

        # -- merge + relu2: single fused epilogue, single lane-dense store --
        res = acc_ref[...]
        out = jnp.maximum(res[:, :Cp] + (res[:, Cp:] + b2_ref[0]), 0.0)
        o_ref[0] = out.reshape(H, W, Cp).astype(o_ref.dtype)

    return kernel


def upprojection_pallas(x_nchw, params, size):
    """x_nchw: (B, Cin, Hin, Win) float32.  Returns (B, Cout, Hout, Wout)."""
    w1, b1, w12, b12, w2, b2 = params
    Cout, Cin = w1.shape[0], w1.shape[1]
    Hout, Wout = size
    B, _, Hin, Win = x_nchw.shape

    # -- bilinear resize (align_corners=True) fused with NCHW->NHWC transpose --
    if (Hin, Win) != (Hout, Wout):
        Mh = jnp.asarray(_interp_matrix(Hout, Hin), jnp.float32)
        Mw = jnp.asarray(_interp_matrix(Wout, Win), jnp.float32)
        x_nhwc = jnp.einsum('oh,bchw,pw->bopc',
                            Mh, x_nchw.astype(jnp.float32), Mw)
    else:
        x_nhwc = jnp.transpose(x_nchw, (0, 2, 3, 1)).astype(jnp.float32)

    # -- lane-dense channel padding: Cout -> Cp (multiple of 128) --
    Cp = ((Cout + 127) // 128) * 128
    pc = Cp - Cout
    w1p = jnp.pad(w1, ((0, pc), (0, 0), (0, 0), (0, 0)))
    w2p = jnp.pad(w2, ((0, pc), (0, 0), (0, 0), (0, 0)))
    w12p = jnp.pad(w12, ((0, pc), (0, pc), (0, 0), (0, 0)))
    b1p = jnp.pad(b1, (0, pc)).reshape(1, Cp)
    b12p = jnp.pad(b12, (0, pc)).reshape(1, Cp)
    b2p = jnp.pad(b2, (0, pc)).reshape(1, Cp)

    # OIHW -> (kh*kw, ci, co); concatenate the two 5x5 convs along N
    w1_r = jnp.transpose(w1p, (2, 3, 1, 0)).reshape(25, Cin, Cp)
    w2_r = jnp.transpose(w2p, (2, 3, 1, 0)).reshape(25, Cin, Cp)
    wcat = jnp.concatenate([w1_r, w2_r], axis=-1)          # (25, Cin, 2*Cp)
    w12_r = jnp.transpose(w12p, (2, 3, 1, 0)).reshape(9, Cp, Cp)

    kernel = _make_upprojection_kernel(Hout, Wout, Cin, Cp)

    out_nhwc = pl.pallas_call(
        kernel,
        out_shape=jax.ShapeDtypeStruct((B, Hout, Wout, Cp), jnp.float32),
        grid_spec=pltpu.PrefetchScalarGridSpec(
            num_scalar_prefetch=0,
            grid=(B,),
            in_specs=[
                pl.BlockSpec((1, Hout, Wout, Cin), lambda b: (b, 0, 0, 0)),
                pl.BlockSpec((25, Cin, 2 * Cp), lambda b: (0, 0, 0)),
                pl.BlockSpec((1, Cp), lambda b: (0, 0)),
                pl.BlockSpec((9, Cp, Cp), lambda b: (0, 0, 0)),
                pl.BlockSpec((1, Cp), lambda b: (0, 0)),
                pl.BlockSpec((1, Cp), lambda b: (0, 0)),
            ],
            out_specs=pl.BlockSpec((1, Hout, Wout, Cp),
                                   lambda b: (b, 0, 0, 0)),
            scratch_shapes=[
                pltpu.VMEM((Hout + 4, Wout + 4, Cin), jnp.float32),
                pltpu.VMEM((Hout + 2, Wout + 2, Cp), jnp.float32),
                pltpu.VMEM((Hout * Wout, 2 * Cp), jnp.float32),
            ],
        ),
        compiler_params=pltpu.CompilerParams(
            dimension_semantics=("parallel",),
            vmem_limit_bytes=32 * 1024 * 1024,
        ),
    )(x_nhwc, wcat, b1p, w12_r, b12p, b2p)

    # back to NCHW, drop lane padding
    return jnp.transpose(out_nhwc[..., :Cout], (0, 3, 1, 2))


# ----------------------------------------------------------------------------
# Helpers: align_corners=True bilinear interpolation matrix + JAX reference
# ----------------------------------------------------------------------------
def _interp_matrix(n_out, n_in):
    M = np.zeros((n_out, n_in), dtype=np.float32)
    if n_out == 1:
        M[0, 0] = 1.0
        return M
    scale = (n_in - 1) / (n_out - 1)
    for j in range(n_out):
        c = j * scale
        i0 = int(np.floor(c))
        i0 = min(i0, n_in - 1)
        i1 = min(i0 + 1, n_in - 1)
        f = c - i0
        M[j, i0] += 1.0 - f
        M[j, i1] += f
    return M


def _reference(x_nchw, params, size):
    w1, b1, w12, b12, w2, b2 = params
    B, Cin, Hin, Win = x_nchw.shape
    Hout, Wout = size
    if (Hin, Win) != (Hout, Wout):
        Mh = jnp.asarray(_interp_matrix(Hout, Hin), jnp.float32)
        Mw = jnp.asarray(_interp_matrix(Wout, Win), jnp.float32)
        x_nchw = jnp.einsum('oh,bchw,pw->bcop', Mh, x_nchw, Mw)

    dn = ('NCHW', 'OIHW', 'NCHW')

    def conv(x, w, b, pad):
        y = jax.lax.conv_general_dilated(x, w, (1, 1),
                                         [(pad, pad), (pad, pad)],
                                         dimension_numbers=dn)
        return y + b[None, :, None, None]

    a = jax.nn.relu(conv(x_nchw, w1, b1, 2))
    bran1 = conv(a, w12, b12, 1)
    bran2 = conv(x_nchw, w2, b2, 2)
    return jax.nn.relu(bran1 + bran2)


# ----------------------------------------------------------------------------
if __name__ == "__main__":
    B, Cin, Cout = 2, 4, 8
    Hin = Win = 8
    size = (16, 16)

    key = jax.random.PRNGKey(0)
    kx, k1, k2, k3, k4, k5, k6 = jax.random.split(key, 7)

    x = jax.random.normal(kx, (B, Cin, Hin, Win), jnp.float32)

    # deterministic synthetic parameters (PyTorch-like small init)
    w1 = 0.1 * jax.random.normal(k1, (Cout, Cin, 5, 5), jnp.float32)
    b1 = 0.1 * jax.random.normal(k2, (Cout,), jnp.float32)
    w12 = 0.1 * jax.random.normal(k3, (Cout, Cout, 3, 3), jnp.float32)
    b12 = 0.1 * jax.random.normal(k4, (Cout,), jnp.float32)
    w2 = 0.1 * jax.random.normal(k5, (Cout, Cin, 5, 5), jnp.float32)
    b2 = 0.1 * jax.random.normal(k6, (Cout,), jnp.float32)
    params = (w1, b1, w12, b12, w2, b2)

    out = upprojection_pallas(x, params, size)
    out = jax.block_until_ready(out)

    ref = jax.block_until_ready(_reference(x, params, size))
    np.testing.assert_allclose(np.asarray(out), np.asarray(ref),
                               rtol=1e-4, atol=1e-4)

    print("KERNEL_OK")
</pallas_src>

<mosaic_0001>
module attributes {stable_mosaic.version = 11 : i64} {
  func.func @kernel(%arg0: i32, %arg1: memref<1x16x16x4xf32, #tpu.memory_space<vmem>>, %arg2: memref<25x4x256xf32, #tpu.memory_space<vmem>>, %arg3: memref<1x128xf32, #tpu.memory_space<vmem>>, %arg4: memref<9x128x128xf32, #tpu.memory_space<vmem>>, %arg5: memref<1x128xf32, #tpu.memory_space<vmem>>, %arg6: memref<1x128xf32, #tpu.memory_space<vmem>>, %arg7: memref<1x16x16x128xf32, #tpu.memory_space<vmem>>, %arg8: memref<20x20x4xf32, #tpu.memory_space<vmem>>, %arg9: memref<18x18x128xf32, #tpu.memory_space<vmem>>, %arg10: memref<256x256xf32, #tpu.memory_space<vmem>>) attributes {dimension_semantics = [#tpu.dimension_semantics<parallel>], iteration_bounds = array<i64: 2>, scalar_prefetch = 0 : i64, scratch_operands = 3 : i64, tpu.core_type = #tpu.core_type<tc>, window_params = [{transform_indices = @transform_0, window_bounds = array<i64: 1, 16, 16, 4>}, {pipeline_mode = #tpu.pipeline_mode<synchronous>, transform_indices = @transform_1, window_bounds = array<i64: 25, 4, 256>}, {pipeline_mode = #tpu.pipeline_mode<synchronous>, transform_indices = @transform_2, window_bounds = array<i64: 1, 128>}, {pipeline_mode = #tpu.pipeline_mode<synchronous>, transform_indices = @transform_3, window_bounds = array<i64: 9, 128, 128>}, {pipeline_mode = #tpu.pipeline_mode<synchronous>, transform_indices = @transform_4, window_bounds = array<i64: 1, 128>}, {pipeline_mode = #tpu.pipeline_mode<synchronous>, transform_indices = @transform_5, window_bounds = array<i64: 1, 128>}, {transform_indices = @transform_6, window_bounds = array<i64: 1, 16, 16, 128>}]} {
    %cst = arith.constant 0.000000e+00 : f32
    %0 = vector.broadcast %cst : f32 to vector<2x20x4xf32>
    %c0 = arith.constant 0 : index
    %c0_0 = arith.constant 0 : index
    %c0_1 = arith.constant 0 : index
    %1 = vector.load %arg8[%c0, %c0_0, %c0_1] : memref<20x20x4xf32, #tpu.memory_space<vmem>>, vector<2x20x4xf32>
    tpu.vector_store %arg8[%c0, %c0_0, %c0_1], %0 {strides = array<i32>} : memref<20x20x4xf32, #tpu.memory_space<vmem>>, vector<2x20x4xf32>,
    %cst_2 = arith.constant 0.000000e+00 : f32
    %2 = vector.broadcast %cst_2 : f32 to vector<2x20x4xf32>
    %c18 = arith.constant 18 : index
    %c0_3 = arith.constant 0 : index
    %c0_4 = arith.constant 0 : index
    %3 = vector.load %arg8[%c18, %c0_3, %c0_4] : memref<20x20x4xf32, #tpu.memory_space<vmem>>, vector<2x20x4xf32>
    tpu.vector_store %arg8[%c18, %c0_3, %c0_4], %2 {strides = array<i32>} : memref<20x20x4xf32, #tpu.memory_space<vmem>>, vector<2x20x4xf32>,
    %cst_5 = arith.constant 0.000000e+00 : f32
    %4 = vector.broadcast %cst_5 : f32 to vector<16x2x4xf32>
    %c2 = arith.constant 2 : index
    %c0_6 = arith.constant 0 : index
    %c0_7 = arith.constant 0 : index
    %5 = vector.load %arg8[%c2, %c0_6, %c0_7] : memref<20x20x4xf32, #tpu.memory_space<vmem>>, vector<16x2x4xf32>
    tpu.vector_store %arg8[%c2, %c0_6, %c0_7], %4 {strides = array<i32>} : memref<20x20x4xf32, #tpu.memory_space<vmem>>, vector<16x2x4xf32>,
    %cst_8 = arith.constant 0.000000e+00 : f32
    %6 = vector.broadcast %cst_8 : f32 to vector<16x2x4xf32>
    %c2_9 = arith.constant 2 : index
    %c18_10 = arith.constant 18 : index
    %c0_11 = arith.constant 0 : index
    %7 = vector.load %arg8[%c2_9, %c18_10, %c0_11] : memref<20x20x4xf32, #tpu.memory_space<vmem>>, vector<16x2x4xf32>
    tpu.vector_store %arg8[%c2_9, %c18_10, %c0_11], %6 {strides = array<i32>} : memref<20x20x4xf32, #tpu.memory_space<vmem>>, vector<16x2x4xf32>,
    %cst_12 = arith.constant 0.000000e+00 : f32
    %8 = vector.broadcast %cst_12 : f32 to vector<1x18x128xf32>
    %c0_13 = arith.constant 0 : index
    %c0_14 = arith.constant 0 : index
    %c0_15 = arith.constant 0 : index
    %9 = vector.load %arg9[%c0_13, %c0_14, %c0_15] : memref<18x18x128xf32, #tpu.memory_space<vmem>>, vector<1x18x128xf32>
    tpu.vector_store %arg9[%c0_13, %c0_14, %c0_15], %8 {strides = array<i32>} : memref<18x18x128xf32, #tpu.memory_space<vmem>>, vector<1x18x128xf32>,
    %cst_16 = arith.constant 0.000000e+00 : f32
    %10 = vector.broadcast %cst_16 : f32 to vector<1x18x128xf32>
    %c17 = arith.constant 17 : index
    %c0_17 = arith.constant 0 : index
    %c0_18 = arith.constant 0 : index
    %11 = vector.load %arg9[%c17, %c0_17, %c0_18] : memref<18x18x128xf32, #tpu.memory_space<vmem>>, vector<1x18x128xf32>
    tpu.vector_store %arg9[%c17, %c0_17, %c0_18], %10 {strides = array<i32>} : memref<18x18x128xf32, #tpu.memory_space<vmem>>, vector<1x18x128xf32>,
    %cst_19 = arith.constant 0.000000e+00 : f32
    %12 = vector.broadcast %cst_19 : f32 to vector<16x1x128xf32>
    %c1 = arith.constant 1 : index
    %c0_20 = arith.constant 0 : index
    %c0_21 = arith.constant 0 : index
    %13 = vector.load %arg9[%c1, %c0_20, %c0_21] : memref<18x18x128xf32, #tpu.memory_space<vmem>>, vector<16x1x128xf32>
    tpu.vector_store %arg9[%c1, %c0_20, %c0_21], %12 {strides = array<i32>} : memref<18x18x128xf32, #tpu.memory_space<vmem>>, vector<16x1x128xf32>,
    %cst_22 = arith.constant 0.000000e+00 : f32
    %14 = vector.broadcast %cst_22 : f32 to vector<16x1x128xf32>
    %c1_23 = arith.constant 1 : index
    %c17_24 = arith.constant 17 : index
    %c0_25 = arith.constant 0 : index
    %15 = vector.load %arg9[%c1_23, %c17_24, %c0_25] : memref<18x18x128xf32, #tpu.memory_space<vmem>>, vector<16x1x128xf32>
    tpu.vector_store %arg9[%c1_23, %c17_24, %c0_25], %14 {strides = array<i32>} : memref<18x18x128xf32, #tpu.memory_space<vmem>>, vector<16x1x128xf32>,
    %c0_26 = arith.constant 0 : index
    %c0_27 = arith.constant 0 : index
    %c0_28 = arith.constant 0 : index
    %c0_29 = arith.constant 0 : index
    %16 = vector.load %arg1[%c0_26, %c0_27, %c0_28, %c0_29] : memref<1x16x16x4xf32, #tpu.memory_space<vmem>>, vector<1x16x16x4xf32>
    %17 = vector.shape_cast %16 : vector<1x16x16x4xf32> to vector<16x16x4xf32>
    %c2_30 = arith.constant 2 : index
    %c2_31 = arith.constant 2 : index
    %c0_32 = arith.constant 0 : index
    %18 = vector.load %arg8[%c2_30, %c2_31, %c0_32] : memref<20x20x4xf32, #tpu.memory_space<vmem>>, vector<16x16x4xf32>
    tpu.vector_store %arg8[%c2_30, %c2_31, %c0_32], %17 {strides = array<i32>} : memref<20x20x4xf32, #tpu.memory_space<vmem>>, vector<16x16x4xf32>,
    %cst_33 = arith.constant 0.000000e+00 : f32
    %19 = vector.broadcast %cst_33 : f32 to vector<256x256xf32>
    %c0_34 = arith.constant 0 : index
    %c0_35 = arith.constant 0 : index
    %20 = vector.load %arg10[%c0_34, %c0_35] : memref<256x256xf32, #tpu.memory_space<vmem>>, vector<256x256xf32>
    tpu.vector_store %arg10[%c0_34, %c0_35], %19 {strides = array<i32>} : memref<256x256xf32, #tpu.memory_space<vmem>>, vector<256x256xf32>,
    %c0_36 = arith.constant 0 : index
    %c0_37 = arith.constant 0 : index
    %c0_38 = arith.constant 0 : index
    %21 = vector.load %arg8[%c0_36, %c0_37, %c0_38] : memref<20x20x4xf32, #tpu.memory_space<vmem>>, vector<16x16x4xf32>
    %22 = vector.shape_cast %21 : vector<16x16x4xf32> to vector<256x4xf32>
    %c0_39 = arith.constant 0 : index
    %c0_40 = arith.constant 0 : index
    %23 = vector.load %arg10[%c0_39, %c0_40] : memref<256x256xf32, #tpu.memory_space<vmem>>, vector<256x256xf32>
    %c0_41 = arith.constant 0 : index
    %c0_42 = arith.constant 0 : index
    %c0_43 = arith.constant 0 : index
    %24 = vector.load %arg2[%c0_41, %c0_42, %c0_43] : memref<25x4x256xf32, #tpu.memory_space<vmem>>, vector<1x4x256xf32>
    %25 = vector.shape_cast %24 : vector<1x4x256xf32> to vector<4x256xf32>
    %cst_44 = arith.constant dense<0.000000e+00> : vector<256x256xf32>
    %26 = tpu.matmul %22, %25, %cst_44 {dimension_numbers = #tpu.dot_dimension_numbers<[1], [0], [0], [1], [0, 0, 1, 1], [], []>} : vector<256x4xf32>, vector<4x256xf32>, vector<256x256xf32> -> vector<256x256xf32>
    %27 = arith.addf %23, %26 : vector<256x256xf32>
    %c0_45 = arith.constant 0 : index
    %c0_46 = arith.constant 0 : index
    %28 = vector.load %arg10[%c0_45, %c0_46] : memref<256x256xf32, #tpu.memory_space<vmem>>, vector<256x256xf32>
    tpu.vector_store %arg10[%c0_45, %c0_46], %27 {strides = array<i32>} : memref<256x256xf32, #tpu.memory_space<vmem>>, vector<256x256xf32>,
    %c0_47 = arith.constant 0 : index
    %c1_48 = arith.constant 1 : index
    %c0_49 = arith.constant 0 : index
    %29 = vector.load %arg8[%c0_47, %c1_48, %c0_49] : memref<20x20x4xf32, #tpu.memory_space<vmem>>, vector<16x16x4xf32>
    %30 = vector.shape_cast %29 : vector<16x16x4xf32> to vector<256x4xf32>
    %c0_50 = arith.constant 0 : index
    %c0_51 = arith.constant 0 : index
    %31 = vector.load %arg10[%c0_50, %c0_51] : memref<256x256xf32, #tpu.memory_space<vmem>>, vector<256x256xf32>
    %c1_52 = arith.constant 1 : index
    %c0_53 = arith.constant 0 : index
    %c0_54 = arith.constant 0 : index
    %32 = vector.load %arg2[%c1_52, %c0_53, %c0_54] : memref<25x4x256xf32, #tpu.memory_space<vmem>>, vector<1x4x256xf32>
    %33 = vector.shape_cast %32 : vector<1x4x256xf32> to vector<4x256xf32>
    %cst_55 = arith.constant dense<0.000000e+00> : vector<256x256xf32>
    %34 = tpu.matmul %30, %33, %cst_55 {dimension_numbers = #tpu.dot_dimension_numbers<[1], [0], [0], [1], [0, 0, 1, 1], [], []>} : vector<256x4xf32>, vector<4x256xf32>, vector<256x256xf32> -> vector<256x256xf32>
    %35 = arith.addf %31, %34 : vector<256x256xf32>
    %c0_56 = arith.constant 0 : index
    %c0_57 = arith.constant 0 : index
    %36 = vector.load %arg10[%c0_56, %c0_57] : memref<256x256xf32, #tpu.memory_space<vmem>>, vector<256x256xf32>
    tpu.vector_store %arg10[%c0_56, %c0_57], %35 {strides = array<i32>} : memref<256x256xf32, #tpu.memory_space<vmem>>, vector<256x256xf32>,
    %c0_58 = arith.constant 0 : index
    %c2_59 = arith.constant 2 : index
    %c0_60 = arith.constant 0 : index
    %37 = vector.load %arg8[%c0_58, %c2_59, %c0_60] : memref<20x20x4xf32, #tpu.memory_space<vmem>>, vector<16x16x4xf32>
    %38 = vector.shape_cast %37 : vector<16x16x4xf32> to vector<256x4xf32>
    %c0_61 = arith.constant 0 : index
    %c0_62 = arith.constant 0 : index
    %39 = vector.load %arg10[%c0_61, %c0_62] : memref<256x256xf32, #tpu.memory_space<vmem>>, vector<256x256xf32>
    %c2_63 = arith.constant 2 : index
    %c0_64 = arith.constant 0 : index
    %c0_65 = arith.constant 0 : index
    %40 = vector.load %arg2[%c2_63, %c0_64, %c0_65] : memref<25x4x256xf32, #tpu.memory_space<vmem>>, vector<1x4x256xf32>
    %41 = vector.shape_cast %40 : vector<1x4x256xf32> to vector<4x256xf32>
    %cst_66 = arith.constant dense<0.000000e+00> : vector<256x256xf32>
    %42 = tpu.matmul %38, %41, %cst_66 {dimension_numbers = #tpu.dot_dimension_numbers<[1], [0], [0], [1], [0, 0, 1, 1], [], []>} : vector<256x4xf32>, vector<4x256xf32>, vector<256x256xf32> -> vector<256x256xf32>
    %43 = arith.addf %39, %42 : vector<256x256xf32>
    %c0_67 = arith.constant 0 : index
    %c0_68 = arith.constant 0 : index
    %44 = vector.load %arg10[%c0_67, %c0_68] : memref<256x256xf32, #tpu.memory_space<vmem>>, vector<256x256xf32>
    tpu.vector_store %arg10[%c0_67, %c0_68], %43 {strides = array<i32>} : memref<256x256xf32, #tpu.memory_space<vmem>>, vector<256x256xf32>,
    %c0_69 = arith.constant 0 : index
    %c3 = arith.constant 3 : index
    %c0_70 = arith.constant 0 : index
    %45 = vector.load %arg8[%c0_69, %c3, %c0_70] : memref<20x20x4xf32, #tpu.memory_space<vmem>>, vector<16x16x4xf32>
    %46 = vector.shape_cast %45 : vector<16x16x4xf32> to vector<256x4xf32>
    %c0_71 = arith.constant 0 : index
    %c0_72 = arith.constant 0 : index
    %47 = vector.load %arg10[%c0_71, %c0_72] : memref<256x256xf32, #tpu.memory_space<vmem>>, vector<256x256xf32>
    %c3_73 = arith.constant 3 : index
    %c0_74 = arith.constant 0 : index
    %c0_75 = arith.constant 0 : index
    %48 = vector.load %arg2[%c3_73, %c0_74, %c0_75] : memref<25x4x256xf32, #tpu.memory_space<vmem>>, vector<1x4x256xf32>
    %49 = vector.shape_cast %48 : vector<1x4x256xf32> to vector<4x256xf32>
    %cst_76 = arith.constant dense<0.000000e+00> : vector<256x256xf32>
    %50 = tpu.matmul %46, %49, %cst_76 {dimension_numbers = #tpu.dot_dimension_numbers<[1], [0], [0], [1], [0, 0, 1, 1], [], []>} : vector<256x4xf32>, vector<4x256xf32>, vector<256x256xf32> -> vector<256x256xf32>
    %51 = arith.addf %47, %50 : vector<256x256xf32>
    %c0_77 = arith.constant 0 : index
    %c0_78 = arith.constant 0 : index
    %52 = vector.load %arg10[%c0_77, %c0_78] : memref<256x256xf32, #tpu.memory_space<vmem>>, vector<256x256xf32>
    tpu.vector_store %arg10[%c0_77, %c0_78], %51 {strides = array<i32>} : memref<256x256xf32, #tpu.memory_space<vmem>>, vector<256x256xf32>,
    %c0_79 = arith.constant 0 : index
    %c4 = arith.constant 4 : index
    %c0_80 = arith.constant 0 : index
    %53 = vector.load %arg8[%c0_79, %c4, %c0_80] : memref<20x20x4xf32, #tpu.memory_space<vmem>>, vector<16x16x4xf32>
    %54 = vector.shape_cast %53 : vector<16x16x4xf32> to vector<256x4xf32>
    %c0_81 = arith.constant 0 : index
    %c0_82 = arith.constant 0 : index
    %55 = vector.load %arg10[%c0_81, %c0_82] : memref<256x256xf32, #tpu.memory_space<vmem>>, vector<256x256xf32>
    %c4_83 = arith.constant 4 : index
    %c0_84 = arith.constant 0 : index
    %c0_85 = arith.constant 0 : index
    %56 = vector.load %arg2[%c4_83, %c0_84, %c0_85] : memref<25x4x256xf32, #tpu.memory_space<vmem>>, vector<1x4x256xf32>
    %57 = vector.shape_cast %56 : vector<1x4x256xf32> to vector<4x256xf32>
    %cst_86 = arith.constant dense<0.000000e+00> : vector<256x256xf32>
    %58 = tpu.matmul %54, %57, %cst_86 {dimension_numbers = #tpu.dot_dimension_numbers<[1], [0], [0], [1], [0, 0, 1, 1], [], []>} : vector<256x4xf32>, vector<4x256xf32>, vector<256x256xf32> -> vector<256x256xf32>
    %59 = arith.addf %55, %58 : vector<256x256xf32>
    %c0_87 = arith.constant 0 : index
    %c0_88 = arith.constant 0 : index
    %60 = vector.load %arg10[%c0_87, %c0_88] : memref<256x256xf32, #tpu.memory_space<vmem>>, vector<256x256xf32>
    tpu.vector_store %arg10[%c0_87, %c0_88], %59 {strides = array<i32>} : memref<256x256xf32, #tpu.memory_space<vmem>>, vector<256x256xf32>,
    %c1_89 = arith.constant 1 : index
    %c0_90 = arith.constant 0 : index
    %c0_91 = arith.constant 0 : index
    %61 = vector.load %arg8[%c1_89, %c0_90, %c0_91] : memref<20x20x4xf32, #tpu.memory_space<vmem>>, vector<16x16x4xf32>
    %62 = vector.shape_cast %61 : vector<16x16x4xf32> to vector<256x4xf32>
    %c0_92 = arith.constant 0 : index
    %c0_93 = arith.constant 0 : index
    %63 = vector.load %arg10[%c0_92, %c0_93] : memref<256x256xf32, #tpu.memory_space<vmem>>, vector<256x256xf32>
    %c5 = arith.constant 5 : index
    %c0_94 = arith.constant 0 : index
    %c0_95 = arith.constant 0 : index
    %64 = vector.load %arg2[%c5, %c0_94, %c0_95] : memref<25x4x256xf32, #tpu.memory_space<vmem>>, vector<1x4x256xf32>
    %65 = vector.shape_cast %64 : vector<1x4x256xf32> to vector<4x256xf32>
    %cst_96 = arith.constant dense<0.000000e+00> : vector<256x256xf32>
    %66 = tpu.matmul %62, %65, %cst_96 {dimension_numbers = #tpu.dot_dimension_numbers<[1], [0], [0], [1], [0, 0, 1, 1], [], []>} : vector<256x4xf32>, vector<4x256xf32>, vector<256x256xf32> -> vector<256x256xf32>
    %67 = arith.addf %63, %66 : vector<256x256xf32>
    %c0_97 = arith.constant 0 : index
    %c0_98 = arith.constant 0 : index
    %68 = vector.load %arg10[%c0_97, %c0_98] : memref<256x256xf32, #tpu.memory_space<vmem>>, vector<256x256xf32>
    tpu.vector_store %arg10[%c0_97, %c0_98], %67 {strides = array<i32>} : memref<256x256xf32, #tpu.memory_space<vmem>>, vector<256x256xf32>,
    %c1_99 = arith.constant 1 : index
    %c1_100 = arith.constant 1 : index
    %c0_101 = arith.constant 0 : index
    %69 = vector.load %arg8[%c1_99, %c1_100, %c0_101] : memref<20x20x4xf32, #tpu.memory_space<vmem>>, vector<16x16x4xf32>
    %70 = vector.shape_cast %69 : vector<16x16x4xf32> to vector<256x4xf32>
    %c0_102 = arith.constant 0 : index
    %c0_103 = arith.constant 0 : index
    %71 = vector.load %arg10[%c0_102, %c0_103] : memref<256x256xf32, #tpu.memory_space<vmem>>, vector<256x256xf32>
    %c6 = arith.constant 6 : index
    %c0_104 = arith.constant 0 : index
    %c0_105 = arith.constant 0 : index
    %72 = vector.load %arg2[%c6, %c0_104, %c0_105] : memref<25x4x256xf32, #tpu.memory_space<vmem>>, vector<1x4x256xf32>
    %73 = vector.shape_cast %72 : vector<1x4x256xf32> to vector<4x256xf32>
    %cst_106 = arith.constant dense<0.000000e+00> : vector<256x256xf32>
    %74 = tpu.matmul %70, %73, %cst_106 {dimension_numbers = #tpu.dot_dimension_numbers<[1], [0], [0], [1], [0, 0, 1, 1], [], []>} : vector<256x4xf32>, vector<4x256xf32>, vector<256x256xf32> -> vector<256x256xf32>
    %75 = arith.addf %71, %74 : vector<256x256xf32>
    %c0_107 = arith.constant 0 : index
    %c0_108 = arith.constant 0 : index
    %76 = vector.load %arg10[%c0_107, %c0_108] : memref<256x256xf32, #tpu.memory_space<vmem>>, vector<256x256xf32>
    tpu.vector_store %arg10[%c0_107, %c0_108], %75 {strides = array<i32>} : memref<256x256xf32, #tpu.memory_space<vmem>>, vector<256x256xf32>,
    %c1_109 = arith.constant 1 : index
    %c2_110 = arith.constant 2 : index
    %c0_111 = arith.constant 0 : index
    %77 = vector.load %arg8[%c1_109, %c2_110, %c0_111] : memref<20x20x4xf32, #tpu.memory_space<vmem>>, vector<16x16x4xf32>
    %78 = vector.shape_cast %77 : vector<16x16x4xf32> to vector<256x4xf32>
    %c0_112 = arith.constant 0 : index
    %c0_113 = arith.constant 0 : index
    %79 = vector.load %arg10[%c0_112, %c0_113] : memref<256x256xf32, #tpu.memory_space<vmem>>, vector<256x256xf32>
    %c7 = arith.constant 7 : index
    %c0_114 = arith.constant 0 : index
    %c0_115 = arith.constant 0 : index
    %80 = vector.load %arg2[%c7, %c0_114, %c0_115] : memref<25x4x256xf32, #tpu.memory_space<vmem>>, vector<1x4x256xf32>
    %81 = vector.shape_cast %80 : vector<1x4x256xf32> to vector<4x256xf32>
    %cst_116 = arith.constant dense<0.000000e+00> : vector<256x256xf32>
    %82 = tpu.matmul %78, %81, %cst_116 {dimension_numbers = #tpu.dot_dimension_numbers<[1], [0], [0], [1], [0, 0, 1, 1], [], []>} : vector<256x4xf32>, vector<4x256xf32>, vector<256x256xf32> -> vector<256x256xf32>
    %83 = arith.addf %79, %82 : vector<256x256xf32>
    %c0_117 = arith.constant 0 : index
    %c0_118 = arith.constant 0 : index
    %84 = vector.load %arg10[%c0_117, %c0_118] : memref<256x256xf32, #tpu.memory_space<vmem>>, vector<256x256xf32>
    tpu.vector_store %arg10[%c0_117, %c0_118], %83 {strides = array<i32>} : memref<256x256xf32, #tpu.memory_space<vmem>>, vector<256x256xf32>,
    %c1_119 = arith.constant 1 : index
    %c3_120 = arith.constant 3 : index
    %c0_121 = arith.constant 0 : index
    %85 = vector.load %arg8[%c1_119, %c3_120, %c0_121] : memref<20x20x4xf32, #tpu.memory_space<vmem>>, vector<16x16x4xf32>
    %86 = vector.shape_cast %85 : vector<16x16x4xf32> to vector<256x4xf32>
    %c0_122 = arith.constant 0 : index
    %c0_123 = arith.constant 0 : index
    %87 = vector.load %arg10[%c0_122, %c0_123] : memref<256x256xf32, #tpu.memory_space<vmem>>, vector<256x256xf32>
    %c8 = arith.constant 8 : index
    %c0_124 = arith.constant 0 : index
    %c0_125 = arith.constant 0 : index
    %88 = vector.load %arg2[%c8, %c0_124, %c0_125] : memref<25x4x256xf32, #tpu.memory_space<vmem>>, vector<1x4x256xf32>
    %89 = vector.shape_cast %88 : vector<1x4x256xf32> to vector<4x256xf32>
    %cst_126 = arith.constant dense<0.000000e+00> : vector<256x256xf32>
    %90 = tpu.matmul %86, %89, %cst_126 {dimension_numbers = #tpu.dot_dimension_numbers<[1], [0], [0], [1], [0, 0, 1, 1], [], []>} : vector<256x4xf32>, vector<4x256xf32>, vector<256x256xf32> -> vector<256x256xf32>
    %91 = arith.addf %87, %90 : vector<256x256xf32>
    %c0_127 = arith.constant 0 : index
    %c0_128 = arith.constant 0 : index
    %92 = vector.load %arg10[%c0_127, %c0_128] : memref<256x256xf32, #tpu.memory_space<vmem>>, vector<256x256xf32>
    tpu.vector_store %arg10[%c0_127, %c0_128], %91 {strides = array<i32>} : memref<256x256xf32, #tpu.memory_space<vmem>>, vector<256x256xf32>,
    %c1_129 = arith.constant 1 : index
    %c4_130 = arith.constant 4 : index
    %c0_131 = arith.constant 0 : index
    %93 = vector.load %arg8[%c1_129, %c4_130, %c0_131] : memref<20x20x4xf32, #tpu.memory_space<vmem>>, vector<16x16x4xf32>
    %94 = vector.shape_cast %93 : vector<16x16x4xf32> to vector<256x4xf32>
    %c0_132 = arith.constant 0 : index
    %c0_133 = arith.constant 0 : index
    %95 = vector.load %arg10[%c0_132, %c0_133] : memref<256x256xf32, #tpu.memory_space<vmem>>, vector<256x256xf32>
    %c9 = arith.constant 9 : index
    %c0_134 = arith.constant 0 : index
    %c0_135 = arith.constant 0 : index
    %96 = vector.load %arg2[%c9, %c0_134, %c0_135] : memref<25x4x256xf32, #tpu.memory_space<vmem>>, vector<1x4x256xf32>
    %97 = vector.shape_cast %96 : vector<1x4x256xf32> to vector<4x256xf32>
    %cst_136 = arith.constant dense<0.000000e+00> : vector<256x256xf32>
    %98 = tpu.matmul %94, %97, %cst_136 {dimension_numbers = #tpu.dot_dimension_numbers<[1], [0], [0], [1], [0, 0, 1, 1], [], []>} : vector<256x4xf32>, vector<4x256xf32>, vector<256x256xf32> -> vector<256x256xf32>
    %99 = arith.addf %95, %98 : vector<256x256xf32>
    %c0_137 = arith.constant 0 : index
    %c0_138 = arith.constant 0 : index
    %100 = vector.load %arg10[%c0_137, %c0_138] : memref<256x256xf32, #tpu.memory_space<vmem>>, vector<256x256xf32>
    tpu.vector_store %arg10[%c0_137, %c0_138], %99 {strides = array<i32>} : memref<256x256xf32, #tpu.memory_space<vmem>>, vector<256x256xf32>,
    %c2_139 = arith.constant 2 : index
    %c0_140 = arith.constant 0 : index
    %c0_141 = arith.constant 0 : index
    %101 = vector.load %arg8[%c2_139, %c0_140, %c0_141] : memref<20x20x4xf32, #tpu.memory_space<vmem>>, vector<16x16x4xf32>
    %102 = vector.shape_cast %101 : vector<16x16x4xf32> to vector<256x4xf32>
    %c0_142 = arith.constant 0 : index
    %c0_143 = arith.constant 0 : index
    %103 = vector.load %arg10[%c0_142, %c0_143] : memref<256x256xf32, #tpu.memory_space<vmem>>, vector<256x256xf32>
    %c10 = arith.constant 10 : index
    %c0_144 = arith.constant 0 : index
    %c0_145 = arith.constant 0 : index
    %104 = vector.load %arg2[%c10, %c0_144, %c0_145] : memref<25x4x256xf32, #tpu.memory_space<vmem>>, vector<1x4x256xf32>
    %105 = vector.shape_cast %104 : vector<1x4x256xf32> to vector<4x256xf32>
    %cst_146 = arith.constant dense<0.000000e+00> : vector<256x256xf32>
    %106 = tpu.matmul %102, %105, %cst_146 {dimension_numbers = #tpu.dot_dimension_numbers<[1], [0], [0], [1], [0, 0, 1, 1], [], []>} : vector<256x4xf32>, vector<4x256xf32>, vector<256x256xf32> -> vector<256x256xf32>
    %107 = arith.addf %103, %106 : vector<256x256xf32>
    %c0_147 = arith.constant 0 : index
    %c0_148 = arith.constant 0 : index
    %108 = vector.load %arg10[%c0_147, %c0_148] : memref<256x256xf32, #tpu.memory_space<vmem>>, vector<256x256xf32>
    tpu.vector_store %arg10[%c0_147, %c0_148], %107 {strides = array<i32>} : memref<256x256xf32, #tpu.memory_space<vmem>>, vector<256x256xf32>,
    %c2_149 = arith.constant 2 : index
    %c1_150 = arith.constant 1 : index
    %c0_151 = arith.constant 0 : index
    %109 = vector.load %arg8[%c2_149, %c1_150, %c0_151] : memref<20x20x4xf32, #tpu.memory_space<vmem>>, vector<16x16x4xf32>
    %110 = vector.shape_cast %109 : vector<16x16x4xf32> to vector<256x4xf32>
    %c0_152 = arith.constant 0 : index
    %c0_153 = arith.constant 0 : index
    %111 = vector.load %arg10[%c0_152, %c0_153] : memref<256x256xf32, #tpu.memory_space<vmem>>, vector<256x256xf32>
    %c11 = arith.constant 11 : index
    %c0_154 = arith.constant 0 : index
    %c0_155 = arith.constant 0 : index
    %112 = vector.load %arg2[%c11, %c0_154, %c0_155] : memref<25x4x256xf32, #tpu.memory_space<vmem>>, vector<1x4x256xf32>
    %113 = vector.shape_cast %112 : vector<1x4x256xf32> to vector<4x256xf32>
    %cst_156 = arith.constant dense<0.000000e+00> : vector<256x256xf32>
    %114 = tpu.matmul %110, %113, %cst_156 {dimension_numbers = #tpu.dot_dimension_numbers<[1], [0], [0], [1], [0, 0, 1, 1], [], []>} : vector<256x4xf32>, vector<4x256xf32>, vector<256x256xf32> -> vector<256x256xf32>
    %115 = arith.addf %111, %114 : vector<256x256xf32>
    %c0_157 = arith.constant 0 : index
    %c0_158 = arith.constant 0 : index
    %116 = vector.load %arg10[%c0_157, %c0_158] : memref<256x256xf32, #tpu.memory_space<vmem>>, vector<256x256xf32>
    tpu.vector_store %arg10[%c0_157, %c0_158], %115 {strides = array<i32>} : memref<256x256xf32, #tpu.memory_space<vmem>>, vector<256x256xf32>,
    %c2_159 = arith.constant 2 : index
    %c2_160 = arith.constant 2 : index
    %c0_161 = arith.constant 0 : index
    %117 = vector.load %arg8[%c2_159, %c2_160, %c0_161] : memref<20x20x4xf32, #tpu.memory_space<vmem>>, vector<16x16x4xf32>
    %118 = vector.shape_cast %117 : vector<16x16x4xf32> to vector<256x4xf32>
    %c0_162 = arith.constant 0 : index
    %c0_163 = arith.constant 0 : index
    %119 = vector.load %arg10[%c0_162, %c0_163] : memref<256x256xf32, #tpu.memory_space<vmem>>, vector<256x256xf32>
    %c12 = arith.constant 12 : index
    %c0_164 = arith.constant 0 : index
    %c0_165 = arith.constant 0 : index
    %120 = vector.load %arg2[%c12, %c0_164, %c0_165] : memref<25x4x256xf32, #tpu.memory_space<vmem>>, vector<1x4x256xf32>
    %121 = vector.shape_cast %120 : vector<1x4x256xf32> to vector<4x256xf32>
    %cst_166 = arith.constant dense<0.000000e+00> : vector<256x256xf32>
    %122 = tpu.matmul %118, %121, %cst_166 {dimension_numbers = #tpu.dot_dimension_numbers<[1], [0], [0], [1], [0, 0, 1, 1], [], []>} : vector<256x4xf32>, vector<4x256xf32>, vector<256x256xf32> -> vector<256x256xf32>
    %123 = arith.addf %119, %122 : vector<256x256xf32>
    %c0_167 = arith.constant 0 : index
    %c0_168 = arith.constant 0 : index
    %124 = vector.load %arg10[%c0_167, %c0_168] : memref<256x256xf32, #tpu.memory_space<vmem>>, vector<256x256xf32>
    tpu.vector_store %arg10[%c0_167, %c0_168], %123 {strides = array<i32>} : memref<256x256xf32, #tpu.memory_space<vmem>>, vector<256x256xf32>,
    %c2_169 = arith.constant 2 : index
    %c3_170 = arith.constant 3 : index
    %c0_171 = arith.constant 0 : index
    %125 = vector.load %arg8[%c2_169, %c3_170, %c0_171] : memref<20x20x4xf32, #tpu.memory_space<vmem>>, vector<16x16x4xf32>
    %126 = vector.shape_cast %125 : vector<16x16x4xf32> to vector<256x4xf32>
    %c0_172 = arith.constant 0 : index
    %c0_173 = arith.constant 0 : index
    %127 = vector.load %arg10[%c0_172, %c0_173] : memref<256x256xf32, #tpu.memory_space<vmem>>, vector<256x256xf32>
    %c13 = arith.constant 13 : index
    %c0_174 = arith.constant 0 : index
    %c0_175 = arith.constant 0 : index
    %128 = vector.load %arg2[%c13, %c0_174, %c0_175] : memref<25x4x256xf32, #tpu.memory_space<vmem>>, vector<1x4x256xf32>
    %129 = vector.shape_cast %128 : vector<1x4x256xf32> to vector<4x256xf32>
    %cst_176 = arith.constant dense<0.000000e+00> : vector<256x256xf32>
    %130 = tpu.matmul %126, %129, %cst_176 {dimension_numbers = #tpu.dot_dimension_numbers<[1], [0], [0], [1], [0, 0, 1, 1], [], []>} : vector<256x4xf32>, vector<4x256xf32>, vector<256x256xf32> -> vector<256x256xf32>
    %131 = arith.addf %127, %130 : vector<256x256xf32>
    %c0_177 = arith.constant 0 : index
    %c0_178 = arith.constant 0 : index
    %132 = vector.load %arg10[%c0_177, %c0_178] : memref<256x256xf32, #tpu.memory_space<vmem>>, vector<256x256xf32>
    tpu.vector_store %arg10[%c0_177, %c0_178], %131 {strides = array<i32>} : memref<256x256xf32, #tpu.memory_space<vmem>>, vector<256x256xf32>,
    %c2_179 = arith.constant 2 : index
    %c4_180 = arith.constant 4 : index
    %c0_181 = arith.constant 0 : index
    %133 = vector.load %arg8[%c2_179, %c4_180, %c0_181] : memref<20x20x4xf32, #tpu.memory_space<vmem>>, vector<16x16x4xf32>
    %134 = vector.shape_cast %133 : vector<16x16x4xf32> to vector<256x4xf32>
    %c0_182 = arith.constant 0 : index
    %c0_183 = arith.constant 0 : index
    %135 = vector.load %arg10[%c0_182, %c0_183] : memref<256x256xf32, #tpu.memory_space<vmem>>, vector<256x256xf32>
    %c14 = arith.constant 14 : index
    %c0_184 = arith.constant 0 : index
    %c0_185 = arith.constant 0 : index
    %136 = vector.load %arg2[%c14, %c0_184, %c0_185] : memref<25x4x256xf32, #tpu.memory_space<vmem>>, vector<1x4x256xf32>
    %137 = vector.shape_cast %136 : vector<1x4x256xf32> to vector<4x256xf32>
    %cst_186 = arith.constant dense<0.000000e+00> : vector<256x256xf32>
    %138 = tpu.matmul %134, %137, %cst_186 {dimension_numbers = #tpu.dot_dimension_numbers<[1], [0], [0], [1], [0, 0, 1, 1], [], []>} : vector<256x4xf32>, vector<4x256xf32>, vector<256x256xf32> -> vector<256x256xf32>
    %139 = arith.addf %135, %138 : vector<256x256xf32>
    %c0_187 = arith.constant 0 : index
    %c0_188 = arith.constant 0 : index
    %140 = vector.load %arg10[%c0_187, %c0_188] : memref<256x256xf32, #tpu.memory_space<vmem>>, vector<256x256xf32>
    tpu.vector_store %arg10[%c0_187, %c0_188], %139 {strides = array<i32>} : memref<256x256xf32, #tpu.memory_space<vmem>>, vector<256x256xf32>,
    %c3_189 = arith.constant 3 : index
    %c0_190 = arith.constant 0 : index
    %c0_191 = arith.constant 0 : index
    %141 = vector.load %arg8[%c3_189, %c0_190, %c0_191] : memref<20x20x4xf32, #tpu.memory_space<vmem>>, vector<16x16x4xf32>
    %142 = vector.shape_cast %141 : vector<16x16x4xf32> to vector<256x4xf32>
    %c0_192 = arith.constant 0 : index
    %c0_193 = arith.constant 0 : index
    %143 = vector.load %arg10[%c0_192, %c0_193] : memref<256x256xf32, #tpu.memory_space<vmem>>, vector<256x256xf32>
    %c15 = arith.constant 15 : index
    %c0_194 = arith.constant 0 : index
    %c0_195 = arith.constant 0 : index
    %144 = vector.load %arg2[%c15, %c0_194, %c0_195] : memref<25x4x256xf32, #tpu.memory_space<vmem>>, vector<1x4x256xf32>
    %145 = vector.shape_cast %144 : vector<1x4x256xf32> to vector<4x256xf32>
    %cst_196 = arith.constant dense<0.000000e+00> : vector<256x256xf32>
    %146 = tpu.matmul %142, %145, %cst_196 {dimension_numbers = #tpu.dot_dimension_numbers<[1], [0], [0], [1], [0, 0, 1, 1], [], []>} : vector<256x4xf32>, vector<4x256xf32>, vector<256x256xf32> -> vector<256x256xf32>
    %147 = arith.addf %143, %146 : vector<256x256xf32>
    %c0_197 = arith.constant 0 : index
    %c0_198 = arith.constant 0 : index
    %148 = vector.load %arg10[%c0_197, %c0_198] : memref<256x256xf32, #tpu.memory_space<vmem>>, vector<256x256xf32>
    tpu.vector_store %arg10[%c0_197, %c0_198], %147 {strides = array<i32>} : memref<256x256xf32, #tpu.memory_space<vmem>>, vector<256x256xf32>,
    %c3_199 = arith.constant 3 : index
    %c1_200 = arith.constant 1 : index
    %c0_201 = arith.constant 0 : index
    %149 = vector.load %arg8[%c3_199, %c1_200, %c0_201] : memref<20x20x4xf32, #tpu.memory_space<vmem>>, vector<16x16x4xf32>
    %150 = vector.shape_cast %149 : vector<16x16x4xf32> to vector<256x4xf32>
    %c0_202 = arith.constant 0 : index
    %c0_203 = arith.constant 0 : index
    %151 = vector.load %arg10[%c0_202, %c0_203] : memref<256x256xf32, #tpu.memory_space<vmem>>, vector<256x256xf32>
    %c16 = arith.constant 16 : index
    %c0_204 = arith.constant 0 : index
    %c0_205 = arith.constant 0 : index
    %152 = vector.load %arg2[%c16, %c0_204, %c0_205] : memref<25x4x256xf32, #tpu.memory_space<vmem>>, vector<1x4x256xf32>
    %153 = vector.shape_cast %152 : vector<1x4x256xf32> to vector<4x256xf32>
    %cst_206 = arith.constant dense<0.000000e+00> : vector<256x256xf32>
    %154 = tpu.matmul %150, %153, %cst_206 {dimension_numbers = #tpu.dot_dimension_numbers<[1], [0], [0], [1], [0, 0, 1, 1], [], []>} : vector<256x4xf32>, vector<4x256xf32>, vector<256x256xf32> -> vector<256x256xf32>
    %155 = arith.addf %151, %154 : vector<256x256xf32>
    %c0_207 = arith.constant 0 : index
    %c0_208 = arith.constant 0 : index
    %156 = vector.load %arg10[%c0_207, %c0_208] : memref<256x256xf32, #tpu.memory_space<vmem>>, vector<256x256xf32>
    tpu.vector_store %arg10[%c0_207, %c0_208], %155 {strides = array<i32>} : memref<256x256xf32, #tpu.memory_space<vmem>>, vector<256x256xf32>,
    %c3_209 = arith.constant 3 : index
    %c2_210 = arith.constant 2 : index
    %c0_211 = arith.constant 0 : index
    %157 = vector.load %arg8[%c3_209, %c2_210, %c0_211] : memref<20x20x4xf32, #tpu.memory_space<vmem>>, vector<16x16x4xf32>
    %158 = vector.shape_cast %157 : vector<16x16x4xf32> to vector<256x4xf32>
    %c0_212 = arith.constant 0 : index
    %c0_213 = arith.constant 0 : index
    %159 = vector.load %arg10[%c0_212, %c0_213] : memref<256x256xf32, #tpu.memory_space<vmem>>, vector<256x256xf32>
    %c17_214 = arith.constant 17 : index
    %c0_215 = arith.constant 0 : index
    %c0_216 = arith.constant 0 : index
    %160 = vector.load %arg2[%c17_214, %c0_215, %c0_216] : memref<25x4x256xf32, #tpu.memory_space<vmem>>, vector<1x4x256xf32>
    %161 = vector.shape_cast %160 : vector<1x4x256xf32> to vector<4x256xf32>
    %cst_217 = arith.constant dense<0.000000e+00> : vector<256x256xf32>
    %162 = tpu.matmul %158, %161, %cst_217 {dimension_numbers = #tpu.dot_dimension_numbers<[1], [0], [0], [1], [0, 0, 1, 1], [], []>} : vector<256x4xf32>, vector<4x256xf32>, vector<256x256xf32> -> vector<256x256xf32>
    %163 = arith.addf %159, %162 : vector<256x256xf32>
    %c0_218 = arith.constant 0 : index
    %c0_219 = arith.constant 0 : index
    %164 = vector.load %arg10[%c0_218, %c0_219] : memref<256x256xf32, #tpu.memory_space<vmem>>, vector<256x256xf32>
    tpu.vector_store %arg10[%c0_218, %c0_219], %163 {strides = array<i32>} : memref<256x256xf32, #tpu.memory_space<vmem>>, vector<256x256xf32>,
    %c3_220 = arith.constant 3 : index
    %c3_221 = arith.constant 3 : index
    %c0_222 = arith.constant 0 : index
    %165 = vector.load %arg8[%c3_220, %c3_221, %c0_222] : memref<20x20x4xf32, #tpu.memory_space<vmem>>, vector<16x16x4xf32>
    %166 = vector.shape_cast %165 : vector<16x16x4xf32> to vector<256x4xf32>
    %c0_223 = arith.constant 0 : index
    %c0_224 = arith.constant 0 : index
    %167 = vector.load %arg10[%c0_223, %c0_224] : memref<256x256xf32, #tpu.memory_space<vmem>>, vector<256x256xf32>
    %c18_225 = arith.constant 18 : index
    %c0_226 = arith.constant 0 : index
    %c0_227 = arith.constant 0 : index
    %168 = vector.load %arg2[%c18_225, %c0_226, %c0_227] : memref<25x4x256xf32, #tpu.memory_space<vmem>>, vector<1x4x256xf32>
    %169 = vector.shape_cast %168 : vector<1x4x256xf32> to vector<4x256xf32>
    %cst_228 = arith.constant dense<0.000000e+00> : vector<256x256xf32>
    %170 = tpu.matmul %166, %169, %cst_228 {dimension_numbers = #tpu.dot_dimension_numbers<[1], [0], [0], [1], [0, 0, 1, 1], [], []>} : vector<256x4xf32>, vector<4x256xf32>, vector<256x256xf32> -> vector<256x256xf32>
    %171 = arith.addf %167, %170 : vector<256x256xf32>
    %c0_229 = arith.constant 0 : index
    %c0_230 = arith.constant 0 : index
    %172 = vector.load %arg10[%c0_229, %c0_230] : memref<256x256xf32, #tpu.memory_space<vmem>>, vector<256x256xf32>
    tpu.vector_store %arg10[%c0_229, %c0_230], %171 {strides = array<i32>} : memref<256x256xf32, #tpu.memory_space<vmem>>, vector<256x256xf32>,
    %c3_231 = arith.constant 3 : index
    %c4_232 = arith.constant 4 : index
    %c0_233 = arith.constant 0 : index
    %173 = vector.load %arg8[%c3_231, %c4_232, %c0_233] : memref<20x20x4xf32, #tpu.memory_space<vmem>>, vector<16x16x4xf32>
    %174 = vector.shape_cast %173 : vector<16x16x4xf32> to vector<256x4xf32>
    %c0_234 = arith.constant 0 : index
    %c0_235 = arith.constant 0 : index
    %175 = vector.load %arg10[%c0_234, %c0_235] : memref<256x256xf32, #tpu.memory_space<vmem>>, vector<256x256xf32>
    %c19 = arith.constant 19 : index
    %c0_236 = arith.constant 0 : index
    %c0_237 = arith.constant 0 : index
    %176 = vector.load %arg2[%c19, %c0_236, %c0_237] : memref<25x4x256xf32, #tpu.memory_space<vmem>>, vector<1x4x256xf32>
    %177 = vector.shape_cast %176 : vector<1x4x256xf32> to vector<4x256xf32>
    %cst_238 = arith.constant dense<0.000000e+00> : vector<256x256xf32>
    %178 = tpu.matmul %174, %177, %cst_238 {dimension_numbers = #tpu.dot_dimension_numbers<[1], [0], [0], [1], [0, 0, 1, 1], [], []>} : vector<256x4xf32>, vector<4x256xf32>, vector<256x256xf32> -> vector<256x256xf32>
    %179 = arith.addf %175, %178 : vector<256x256xf32>
    %c0_239 = arith.constant 0 : index
    %c0_240 = arith.constant 0 : index
    %180 = vector.load %arg10[%c0_239, %c0_240] : memref<256x256xf32, #tpu.memory_space<vmem>>, vector<256x256xf32>
    tpu.vector_store %arg10[%c0_239, %c0_240], %179 {strides = array<i32>} : memref<256x256xf32, #tpu.memory_space<vmem>>, vector<256x256xf32>,
    %c4_241 = arith.constant 4 : index
    %c0_242 = arith.constant 0 : index
    %c0_243 = arith.constant 0 : index
    %181 = vector.load %arg8[%c4_241, %c0_242, %c0_243] : memref<20x20x4xf32, #tpu.memory_space<vmem>>, vector<16x16x4xf32>
    %182 = vector.shape_cast %181 : vector<16x16x4xf32> to vector<256x4xf32>
    %c0_244 = arith.constant 0 : index
    %c0_245 = arith.constant 0 : index
    %183 = vector.load %arg10[%c0_244, %c0_245] : memref<256x256xf32, #tpu.memory_space<vmem>>, vector<256x256xf32>
    %c20 = arith.constant 20 : index
    %c0_246 = arith.constant 0 : index
    %c0_247 = arith.constant 0 : index
    %184 = vector.load %arg2[%c20, %c0_246, %c0_247] : memref<25x4x256xf32, #tpu.memory_space<vmem>>, vector<1x4x256xf32>
    %185 = vector.shape_cast %184 : vector<1x4x256xf32> to vector<4x256xf32>
    %cst_248 = arith.constant dense<0.000000e+00> : vector<256x256xf32>
    %186 = tpu.matmul %182, %185, %cst_248 {dimension_numbers = #tpu.dot_dimension_numbers<[1], [0], [0], [1], [0, 0, 1, 1], [], []>} : vector<256x4xf32>, vector<4x256xf32>, vector<256x256xf32> -> vector<256x256xf32>
    %187 = arith.addf %183, %186 : vector<256x256xf32>
    %c0_249 = arith.constant 0 : index
    %c0_250 = arith.constant 0 : index
    %188 = vector.load %arg10[%c0_249, %c0_250] : memref<256x256xf32, #tpu.memory_space<vmem>>, vector<256x256xf32>
    tpu.vector_store %arg10[%c0_249, %c0_250], %187 {strides = array<i32>} : memref<256x256xf32, #tpu.memory_space<vmem>>, vector<256x256xf32>,
    %c4_251 = arith.constant 4 : index
    %c1_252 = arith.constant 1 : index
    %c0_253 = arith.constant 0 : index
    %189 = vector.load %arg8[%c4_251, %c1_252, %c0_253] : memref<20x20x4xf32, #tpu.memory_space<vmem>>, vector<16x16x4xf32>
    %190 = vector.shape_cast %189 : vector<16x16x4xf32> to vector<256x4xf32>
    %c0_254 = arith.constant 0 : index
    %c0_255 = arith.constant 0 : index
    %191 = vector.load %arg10[%c0_254, %c0_255] : memref<256x256xf32, #tpu.memory_space<vmem>>, vector<256x256xf32>
    %c21 = arith.constant 21 : index
    %c0_256 = arith.constant 0 : index
    %c0_257 = arith.constant 0 : index
    %192 = vector.load %arg2[%c21, %c0_256, %c0_257] : memref<25x4x256xf32, #tpu.memory_space<vmem>>, vector<1x4x256xf32>
    %193 = vector.shape_cast %192 : vector<1x4x256xf32> to vector<4x256xf32>
    %cst_258 = arith.constant dense<0.000000e+00> : vector<256x256xf32>
    %194 = tpu.matmul %190, %193, %cst_258 {dimension_numbers = #tpu.dot_dimension_numbers<[1], [0], [0], [1], [0, 0, 1, 1], [], []>} : vector<256x4xf32>, vector<4x256xf32>, vector<256x256xf32> -> vector<256x256xf32>
    %195 = arith.addf %191, %194 : vector<256x256xf32>
    %c0_259 = arith.constant 0 : index
    %c0_260 = arith.constant 0 : index
    %196 = vector.load %arg10[%c0_259, %c0_260] : memref<256x256xf32, #tpu.memory_space<vmem>>, vector<256x256xf32>
    tpu.vector_store %arg10[%c0_259, %c0_260], %195 {strides = array<i32>} : memref<256x256xf32, #tpu.memory_space<vmem>>, vector<256x256xf32>,
    %c4_261 = arith.constant 4 : index
    %c2_262 = arith.constant 2 : index
    %c0_263 = arith.constant 0 : index
    %197 = vector.load %arg8[%c4_261, %c2_262, %c0_263] : memref<20x20x4xf32, #tpu.memory_space<vmem>>, vector<16x16x4xf32>
    %198 = vector.shape_cast %197 : vector<16x16x4xf32> to vector<256x4xf32>
    %c0_264 = arith.constant 0 : index
    %c0_265 = arith.constant 0 : index
    %199 = vector.load %arg10[%c0_264, %c0_265] : memref<256x256xf32, #tpu.memory_space<vmem>>, vector<256x256xf32>
    %c22 = arith.constant 22 : index
    %c0_266 = arith.constant 0 : index
    %c0_267 = arith.constant 0 : index
    %200 = vector.load %arg2[%c22, %c0_266, %c0_267] : memref<25x4x256xf32, #tpu.memory_space<vmem>>, vector<1x4x256xf32>
    %201 = vector.shape_cast %200 : vector<1x4x256xf32> to vector<4x256xf32>
    %cst_268 = arith.constant dense<0.000000e+00> : vector<256x256xf32>
    %202 = tpu.matmul %198, %201, %cst_268 {dimension_numbers = #tpu.dot_dimension_numbers<[1], [0], [0], [1], [0, 0, 1, 1], [], []>} : vector<256x4xf32>, vector<4x256xf32>, vector<256x256xf32> -> vector<256x256xf32>
    %203 = arith.addf %199, %202 : vector<256x256xf32>
    %c0_269 = arith.constant 0 : index
    %c0_270 = arith.constant 0 : index
    %204 = vector.load %arg10[%c0_269, %c0_270] : memref<256x256xf32, #tpu.memory_space<vmem>>, vector<256x256xf32>
    tpu.vector_store %arg10[%c0_269, %c0_270], %203 {strides = array<i32>} : memref<256x256xf32, #tpu.memory_space<vmem>>, vector<256x256xf32>,
    %c4_271 = arith.constant 4 : index
    %c3_272 = arith.constant 3 : index
    %c0_273 = arith.constant 0 : index
    %205 = vector.load %arg8[%c4_271, %c3_272, %c0_273] : memref<20x20x4xf32, #tpu.memory_space<vmem>>, vector<16x16x4xf32>
    %206 = vector.shape_cast %205 : vector<16x16x4xf32> to vector<256x4xf32>
    %c0_274 = arith.constant 0 : index
    %c0_275 = arith.constant 0 : index
    %207 = vector.load %arg10[%c0_274, %c0_275] : memref<256x256xf32, #tpu.memory_space<vmem>>, vector<256x256xf32>
    %c23 = arith.constant 23 : index
    %c0_276 = arith.constant 0 : index
    %c0_277 = arith.constant 0 : index
    %208 = vector.load %arg2[%c23, %c0_276, %c0_277] : memref<25x4x256xf32, #tpu.memory_space<vmem>>, vector<1x4x256xf32>
    %209 = vector.shape_cast %208 : vector<1x4x256xf32> to vector<4x256xf32>
    %cst_278 = arith.constant dense<0.000000e+00> : vector<256x256xf32>
    %210 = tpu.matmul %206, %209, %cst_278 {dimension_numbers = #tpu.dot_dimension_numbers<[1], [0], [0], [1], [0, 0, 1, 1], [], []>} : vector<256x4xf32>, vector<4x256xf32>, vector<256x256xf32> -> vector<256x256xf32>
    %211 = arith.addf %207, %210 : vector<256x256xf32>
    %c0_279 = arith.constant 0 : index
    %c0_280 = arith.constant 0 : index
    %212 = vector.load %arg10[%c0_279, %c0_280] : memref<256x256xf32, #tpu.memory_space<vmem>>, vector<256x256xf32>
    tpu.vector_store %arg10[%c0_279, %c0_280], %211 {strides = array<i32>} : memref<256x256xf32, #tpu.memory_space<vmem>>, vector<256x256xf32>,
    %c4_281 = arith.constant 4 : index
    %c4_282 = arith.constant 4 : index
    %c0_283 = arith.constant 0 : index
    %213 = vector.load %arg8[%c4_281, %c4_282, %c0_283] : memref<20x20x4xf32, #tpu.memory_space<vmem>>, vector<16x16x4xf32>
    %214 = vector.shape_cast %213 : vector<16x16x4xf32> to vector<256x4xf32>
    %c0_284 = arith.constant 0 : index
    %c0_285 = arith.constant 0 : index
    %215 = vector.load %arg10[%c0_284, %c0_285] : memref<256x256xf32, #tpu.memory_space<vmem>>, vector<256x256xf32>
    %c24 = arith.constant 24 : index
    %c0_286 = arith.constant 0 : index
    %c0_287 = arith.constant 0 : index
    %216 = vector.load %arg2[%c24, %c0_286, %c0_287] : memref<25x4x256xf32, #tpu.memory_space<vmem>>, vector<1x4x256xf32>
    %217 = vector.shape_cast %216 : vector<1x4x256xf32> to vector<4x256xf32>
    %cst_288 = arith.constant dense<0.000000e+00> : vector<256x256xf32>
    %218 = tpu.matmul %214, %217, %cst_288 {dimension_numbers = #tpu.dot_dimension_numbers<[1], [0], [0], [1], [0, 0, 1, 1], [], []>} : vector<256x4xf32>, vector<4x256xf32>, vector<256x256xf32> -> vector<256x256xf32>
    %219 = arith.addf %215, %218 : vector<256x256xf32>
    %c0_289 = arith.constant 0 : index
    %c0_290 = arith.constant 0 : index
    %220 = vector.load %arg10[%c0_289, %c0_290] : memref<256x256xf32, #tpu.memory_space<vmem>>, vector<256x256xf32>
    tpu.vector_store %arg10[%c0_289, %c0_290], %219 {strides = array<i32>} : memref<256x256xf32, #tpu.memory_space<vmem>>, vector<256x256xf32>,
    %c0_291 = arith.constant 0 : index
    %c0_292 = arith.constant 0 : index
    %221 = vector.load %arg10[%c0_291, %c0_292] : memref<256x256xf32, #tpu.memory_space<vmem>>, vector<256x128xf32>
    %c0_293 = arith.constant 0 : index
    %c0_294 = arith.constant 0 : index
    %222 = vector.load %arg3[%c0_293, %c0_294] : memref<1x128xf32, #tpu.memory_space<vmem>>, vector<1x128xf32>
    %223 = vector.shape_cast %222 : vector<1x128xf32> to vector<128xf32>
    %224 = vector.shape_cast %223 : vector<128xf32> to vector<1x128xf32>
    %225 = vector.broadcast %224 : vector<1x128xf32> to vector<256x128xf32>
    %226 = arith.addf %221, %225 : vector<256x128xf32>
    %cst_295 = arith.constant 0.000000e+00 : f32
    %227 = vector.broadcast %cst_295 : f32 to vector<256x128xf32>
    %228 = arith.maximumf %226, %227 : vector<256x128xf32>
    %229 = vector.shape_cast %228 : vector<256x128xf32> to vector<16x16x128xf32>
    %c1_296 = arith.constant 1 : index
    %c1_297 = arith.constant 1 : index
    %c0_298 = arith.constant 0 : index
    %230 = vector.load %arg9[%c1_296, %c1_297, %c0_298] : memref<18x18x128xf32, #tpu.memory_space<vmem>>, vector<16x16x128xf32>
    tpu.vector_store %arg9[%c1_296, %c1_297, %c0_298], %229 {strides = array<i32>} : memref<18x18x128xf32, #tpu.memory_space<vmem>>, vector<16x16x128xf32>,
    %c0_299 = arith.constant 0 : index
    %c0_300 = arith.constant 0 : index
    %231 = vector.load %arg5[%c0_299, %c0_300] : memref<1x128xf32, #tpu.memory_space<vmem>>, vector<1x128xf32>
    %232 = vector.shape_cast %231 : vector<1x128xf32> to vector<128xf32>
    %233 = vector.shape_cast %232 : vector<128xf32> to vector<1x128xf32>
    %234 = vector.broadcast %233 : vector<1x128xf32> to vector<256x128xf32>
    %c0_301 = arith.constant 0 : index
    %c0_302 = arith.constant 0 : index
    %235 = vector.load %arg10[%c0_301, %c0_302] : memref<256x256xf32, #tpu.memory_space<vmem>>, vector<256x128xf32>
    tpu.vector_store %arg10[%c0_301, %c0_302], %234 {strides = array<i32>} : memref<256x256xf32, #tpu.memory_space<vmem>>, vector<256x128xf32>,
    %c0_303 = arith.constant 0 : index
    %c0_304 = arith.constant 0 : index
    %c0_305 = arith.constant 0 : index
    %236 = vector.load %arg9[%c0_303, %c0_304, %c0_305] : memref<18x18x128xf32, #tpu.memory_space<vmem>>, vector<16x16x128xf32>
    %237 = vector.shape_cast %236 : vector<16x16x128xf32> to vector<256x128xf32>
    %c0_306 = arith.constant 0 : index
    %c0_307 = arith.constant 0 : index
    %238 = vector.load %arg10[%c0_306, %c0_307] : memref<256x256xf32, #tpu.memory_space<vmem>>, vector<256x128xf32>
    %c0_308 = arith.constant 0 : index
    %c0_309 = arith.constant 0 : index
    %c0_310 = arith.constant 0 : index
    %239 = vector.load %arg4[%c0_308, %c0_309, %c0_310] : memref<9x128x128xf32, #tpu.memory_space<vmem>>, vector<1x128x128xf32>
    %240 = vector.shape_cast %239 : vector<1x128x128xf32> to vector<128x128xf32>
    %cst_311 = arith.constant dense<0.000000e+00> : vector<256x128xf32>
    %241 = tpu.matmul %237, %240, %cst_311 {dimension_numbers = #tpu.dot_dimension_numbers<[1], [0], [0], [1], [0, 0, 1, 1], [], []>} : vector<256x128xf32>, vector<128x128xf32>, vector<256x128xf32> -> vector<256x128xf32>
    %242 = arith.addf %238, %241 : vector<256x128xf32>
    %c0_312 = arith.constant 0 : index
    %c0_313 = arith.constant 0 : index
    %243 = vector.load %arg10[%c0_312, %c0_313] : memref<256x256xf32, #tpu.memory_space<vmem>>, vector<256x128xf32>
    tpu.vector_store %arg10[%c0_312, %c0_313], %242 {strides = array<i32>} : memref<256x256xf32, #tpu.memory_space<vmem>>, vector<256x128xf32>,
    %c0_314 = arith.constant 0 : index
    %c1_315 = arith.constant 1 : index
    %c0_316 = arith.constant 0 : index
    %244 = vector.load %arg9[%c0_314, %c1_315, %c0_316] : memref<18x18x128xf32, #tpu.memory_space<vmem>>, vector<16x16x128xf32>
    %245 = vector.shape_cast %244 : vector<16x16x128xf32> to vector<256x128xf32>
    %c0_317 = arith.constant 0 : index
    %c0_318 = arith.constant 0 : index
    %246 = vector.load %arg10[%c0_317, %c0_318] : memref<256x256xf32, #tpu.memory_space<vmem>>, vector<256x128xf32>
    %c1_319 = arith.constant 1 : index
    %c0_320 = arith.constant 0 : index
    %c0_321 = arith.constant 0 : index
    %247 = vector.load %arg4[%c1_319, %c0_320, %c0_321] : memref<9x128x128xf32, #tpu.memory_space<vmem>>, vector<1x128x128xf32>
    %248 = vector.shape_cast %247 : vector<1x128x128xf32> to vector<128x128xf32>
    %cst_322 = arith.constant dense<0.000000e+00> : vector<256x128xf32>
    %249 = tpu.matmul %245, %248, %cst_322 {dimension_numbers = #tpu.dot_dimension_numbers<[1], [0], [0], [1], [0, 0, 1, 1], [], []>} : vector<256x128xf32>, vector<128x128xf32>, vector<256x128xf32> -> vector<256x128xf32>
    %250 = arith.addf %246, %249 : vector<256x128xf32>
    %c0_323 = arith.constant 0 : index
    %c0_324 = arith.constant 0 : index
    %251 = vector.load %arg10[%c0_323, %c0_324] : memref<256x256xf32, #tpu.memory_space<vmem>>, vector<256x128xf32>
    tpu.vector_store %arg10[%c0_323, %c0_324], %250 {strides = array<i32>} : memref<256x256xf32, #tpu.memory_space<vmem>>, vector<256x128xf32>,
    %c0_325 = arith.constant 0 : index
    %c2_326 = arith.constant 2 : index
    %c0_327 = arith.constant 0 : index
    %252 = vector.load %arg9[%c0_325, %c2_326, %c0_327] : memref<18x18x128xf32, #tpu.memory_space<vmem>>, vector<16x16x128xf32>
    %253 = vector.shape_cast %252 : vector<16x16x128xf32> to vector<256x128xf32>
    %c0_328 = arith.constant 0 : index
    %c0_329 = arith.constant 0 : index
    %254 = vector.load %arg10[%c0_328, %c0_329] : memref<256x256xf32, #tpu.memory_space<vmem>>, vector<256x128xf32>
    %c2_330 = arith.constant 2 : index
    %c0_331 = arith.constant 0 : index
    %c0_332 = arith.constant 0 : index
    %255 = vector.load %arg4[%c2_330, %c0_331, %c0_332] : memref<9x128x128xf32, #tpu.memory_space<vmem>>, vector<1x128x128xf32>
    %256 = vector.shape_cast %255 : vector<1x128x128xf32> to vector<128x128xf32>
    %cst_333 = arith.constant dense<0.000000e+00> : vector<256x128xf32>
    %257 = tpu.matmul %253, %256, %cst_333 {dimension_numbers = #tpu.dot_dimension_numbers<[1], [0], [0], [1], [0, 0, 1, 1], [], []>} : vector<256x128xf32>, vector<128x128xf32>, vector<256x128xf32> -> vector<256x128xf32>
    %258 = arith.addf %254, %257 : vector<256x128xf32>
    %c0_334 = arith.constant 0 : index
    %c0_335 = arith.constant 0 : index
    %259 = vector.load %arg10[%c0_334, %c0_335] : memref<256x256xf32, #tpu.memory_space<vmem>>, vector<256x128xf32>
    tpu.vector_store %arg10[%c0_334, %c0_335], %258 {strides = array<i32>} : memref<256x256xf32, #tpu.memory_space<vmem>>, vector<256x128xf32>,
    %c1_336 = arith.constant 1 : index
    %c0_337 = arith.constant 0 : index
    %c0_338 = arith.constant 0 : index
    %260 = vector.load %arg9[%c1_336, %c0_337, %c0_338] : memref<18x18x128xf32, #tpu.memory_space<vmem>>, vector<16x16x128xf32>
    %261 = vector.shape_cast %260 : vector<16x16x128xf32> to vector<256x128xf32>
    %c0_339 = arith.constant 0 : index
    %c0_340 = arith.constant 0 : index
    %262 = vector.load %arg10[%c0_339, %c0_340] : memref<256x256xf32, #tpu.memory_space<vmem>>, vector<256x128xf32>
    %c3_341 = arith.constant 3 : index
    %c0_342 = arith.constant 0 : index
    %c0_343 = arith.constant 0 : index
    %263 = vector.load %arg4[%c3_341, %c0_342, %c0_343] : memref<9x128x128xf32, #tpu.memory_space<vmem>>, vector<1x128x128xf32>
    %264 = vector.shape_cast %263 : vector<1x128x128xf32> to vector<128x128xf32>
    %cst_344 = arith.constant dense<0.000000e+00> : vector<256x128xf32>
    %265 = tpu.matmul %261, %264, %cst_344 {dimension_numbers = #tpu.dot_dimension_numbers<[1], [0], [0], [1], [0, 0, 1, 1], [], []>} : vector<256x128xf32>, vector<128x128xf32>, vector<256x128xf32> -> vector<256x128xf32>
    %266 = arith.addf %262, %265 : vector<256x128xf32>
    %c0_345 = arith.constant 0 : index
    %c0_346 = arith.constant 0 : index
    %267 = vector.load %arg10[%c0_345, %c0_346] : memref<256x256xf32, #tpu.memory_space<vmem>>, vector<256x128xf32>
    tpu.vector_store %arg10[%c0_345, %c0_346], %266 {strides = array<i32>} : memref<256x256xf32, #tpu.memory_space<vmem>>, vector<256x128xf32>,
    %c1_347 = arith.constant 1 : index
    %c1_348 = arith.constant 1 : index
    %c0_349 = arith.constant 0 : index
    %268 = vector.load %arg9[%c1_347, %c1_348, %c0_349] : memref<18x18x128xf32, #tpu.memory_space<vmem>>, vector<16x16x128xf32>
    %269 = vector.shape_cast %268 : vector<16x16x128xf32> to vector<256x128xf32>
    %c0_350 = arith.constant 0 : index
    %c0_351 = arith.constant 0 : index
    %270 = vector.load %arg10[%c0_350, %c0_351] : memref<256x256xf32, #tpu.memory_space<vmem>>, vector<256x128xf32>
    %c4_352 = arith.constant 4 : index
    %c0_353 = arith.constant 0 : index
    %c0_354 = arith.constant 0 : index
    %271 = vector.load %arg4[%c4_352, %c0_353, %c0_354] : memref<9x128x128xf32, #tpu.memory_space<vmem>>, vector<1x128x128xf32>
    %272 = vector.shape_cast %271 : vector<1x128x128xf32> to vector<128x128xf32>
    %cst_355 = arith.constant dense<0.000000e+00> : vector<256x128xf32>
    %273 = tpu.matmul %269, %272, %cst_355 {dimension_numbers = #tpu.dot_dimension_numbers<[1], [0], [0], [1], [0, 0, 1, 1], [], []>} : vector<256x128xf32>, vector<128x128xf32>, vector<256x128xf32> -> vector<256x128xf32>
    %274 = arith.addf %270, %273 : vector<256x128xf32>
    %c0_356 = arith.constant 0 : index
    %c0_357 = arith.constant 0 : index
    %275 = vector.load %arg10[%c0_356, %c0_357] : memref<256x256xf32, #tpu.memory_space<vmem>>, vector<256x128xf32>
    tpu.vector_store %arg10[%c0_356, %c0_357], %274 {strides = array<i32>} : memref<256x256xf32, #tpu.memory_space<vmem>>, vector<256x128xf32>,
    %c1_358 = arith.constant 1 : index
    %c2_359 = arith.constant 2 : index
    %c0_360 = arith.constant 0 : index
    %276 = vector.load %arg9[%c1_358, %c2_359, %c0_360] : memref<18x18x128xf32, #tpu.memory_space<vmem>>, vector<16x16x128xf32>
    %277 = vector.shape_cast %276 : vector<16x16x128xf32> to vector<256x128xf32>
    %c0_361 = arith.constant 0 : index
    %c0_362 = arith.constant 0 : index
    %278 = vector.load %arg10[%c0_361, %c0_362] : memref<256x256xf32, #tpu.memory_space<vmem>>, vector<256x128xf32>
    %c5_363 = arith.constant 5 : index
    %c0_364 = arith.constant 0 : index
    %c0_365 = arith.constant 0 : index
    %279 = vector.load %arg4[%c5_363, %c0_364, %c0_365] : memref<9x128x128xf32, #tpu.memory_space<vmem>>, vector<1x128x128xf32>
    %280 = vector.shape_cast %279 : vector<1x128x128xf32> to vector<128x128xf32>
    %cst_366 = arith.constant dense<0.000000e+00> : vector<256x128xf32>
    %281 = tpu.matmul %277, %280, %cst_366 {dimension_numbers = #tpu.dot_dimension_numbers<[1], [0], [0], [1], [0, 0, 1, 1], [], []>} : vector<256x128xf32>, vector<128x128xf32>, vector<256x128xf32> -> vector<256x128xf32>
    %282 = arith.addf %278, %281 : vector<256x128xf32>
    %c0_367 = arith.constant 0 : index
    %c0_368 = arith.constant 0 : index
    %283 = vector.load %arg10[%c0_367, %c0_368] : memref<256x256xf32, #tpu.memory_space<vmem>>, vector<256x128xf32>
    tpu.vector_store %arg10[%c0_367, %c0_368], %282 {strides = array<i32>} : memref<256x256xf32, #tpu.memory_space<vmem>>, vector<256x128xf32>,
    %c2_369 = arith.constant 2 : index
    %c0_370 = arith.constant 0 : index
    %c0_371 = arith.constant 0 : index
    %284 = vector.load %arg9[%c2_369, %c0_370, %c0_371] : memref<18x18x128xf32, #tpu.memory_space<vmem>>, vector<16x16x128xf32>
    %285 = vector.shape_cast %284 : vector<16x16x128xf32> to vector<256x128xf32>
    %c0_372 = arith.constant 0 : index
    %c0_373 = arith.constant 0 : index
    %286 = vector.load %arg10[%c0_372, %c0_373] : memref<256x256xf32, #tpu.memory_space<vmem>>, vector<256x128xf32>
    %c6_374 = arith.constant 6 : index
    %c0_375 = arith.constant 0 : index
    %c0_376 = arith.constant 0 : index
    %287 = vector.load %arg4[%c6_374, %c0_375, %c0_376] : memref<9x128x128xf32, #tpu.memory_space<vmem>>, vector<1x128x128xf32>
    %288 = vector.shape_cast %287 : vector<1x128x128xf32> to vector<128x128xf32>
    %cst_377 = arith.constant dense<0.000000e+00> : vector<256x128xf32>
    %289 = tpu.matmul %285, %288, %cst_377 {dimension_numbers = #tpu.dot_dimension_numbers<[1], [0], [0], [1], [0, 0, 1, 1], [], []>} : vector<256x128xf32>, vector<128x128xf32>, vector<256x128xf32> -> vector<256x128xf32>
    %290 = arith.addf %286, %289 : vector<256x128xf32>
    %c0_378 = arith.constant 0 : index
    %c0_379 = arith.constant 0 : index
    %291 = vector.load %arg10[%c0_378, %c0_379] : memref<256x256xf32, #tpu.memory_space<vmem>>, vector<256x128xf32>
    tpu.vector_store %arg10[%c0_378, %c0_379], %290 {strides = array<i32>} : memref<256x256xf32, #tpu.memory_space<vmem>>, vector<256x128xf32>,
    %c2_380 = arith.constant 2 : index
    %c1_381 = arith.constant 1 : index
    %c0_382 = arith.constant 0 : index
    %292 = vector.load %arg9[%c2_380, %c1_381, %c0_382] : memref<18x18x128xf32, #tpu.memory_space<vmem>>, vector<16x16x128xf32>
    %293 = vector.shape_cast %292 : vector<16x16x128xf32> to vector<256x128xf32>
    %c0_383 = arith.constant 0 : index
    %c0_384 = arith.constant 0 : index
    %294 = vector.load %arg10[%c0_383, %c0_384] : memref<256x256xf32, #tpu.memory_space<vmem>>, vector<256x128xf32>
    %c7_385 = arith.constant 7 : index
    %c0_386 = arith.constant 0 : index
    %c0_387 = arith.constant 0 : index
    %295 = vector.load %arg4[%c7_385, %c0_386, %c0_387] : memref<9x128x128xf32, #tpu.memory_space<vmem>>, vector<1x128x128xf32>
    %296 = vector.shape_cast %295 : vector<1x128x128xf32> to vector<128x128xf32>
    %cst_388 = arith.constant dense<0.000000e+00> : vector<256x128xf32>
    %297 = tpu.matmul %293, %296, %cst_388 {dimension_numbers = #tpu.dot_dimension_numbers<[1], [0], [0], [1], [0, 0, 1, 1], [], []>} : vector<256x128xf32>, vector<128x128xf32>, vector<256x128xf32> -> vector<256x128xf32>
    %298 = arith.addf %294, %297 : vector<256x128xf32>
    %c0_389 = arith.constant 0 : index
    %c0_390 = arith.constant 0 : index
    %299 = vector.load %arg10[%c0_389, %c0_390] : memref<256x256xf32, #tpu.memory_space<vmem>>, vector<256x128xf32>
    tpu.vector_store %arg10[%c0_389, %c0_390], %298 {strides = array<i32>} : memref<256x256xf32, #tpu.memory_space<vmem>>, vector<256x128xf32>,
    %c2_391 = arith.constant 2 : index
    %c2_392 = arith.constant 2 : index
    %c0_393 = arith.constant 0 : index
    %300 = vector.load %arg9[%c2_391, %c2_392, %c0_393] : memref<18x18x128xf32, #tpu.memory_space<vmem>>, vector<16x16x128xf32>
    %301 = vector.shape_cast %300 : vector<16x16x128xf32> to vector<256x128xf32>
    %c0_394 = arith.constant 0 : index
    %c0_395 = arith.constant 0 : index
    %302 = vector.load %arg10[%c0_394, %c0_395] : memref<256x256xf32, #tpu.memory_space<vmem>>, vector<256x128xf32>
    %c8_396 = arith.constant 8 : index
    %c0_397 = arith.constant 0 : index
    %c0_398 = arith.constant 0 : index
    %303 = vector.load %arg4[%c8_396, %c0_397, %c0_398] : memref<9x128x128xf32, #tpu.memory_space<vmem>>, vector<1x128x128xf32>
    %304 = vector.shape_cast %303 : vector<1x128x128xf32> to vector<128x128xf32>
    %cst_399 = arith.constant dense<0.000000e+00> : vector<256x128xf32>
    %305 = tpu.matmul %301, %304, %cst_399 {dimension_numbers = #tpu.dot_dimension_numbers<[1], [0], [0], [1], [0, 0, 1, 1], [], []>} : vector<256x128xf32>, vector<128x128xf32>, vector<256x128xf32> -> vector<256x128xf32>
    %306 = arith.addf %302, %305 : vector<256x128xf32>
    %c0_400 = arith.constant 0 : index
    %c0_401 = arith.constant 0 : index
    %307 = vector.load %arg10[%c0_400, %c0_401] : memref<256x256xf32, #tpu.memory_space<vmem>>, vector<256x128xf32>
    tpu.vector_store %arg10[%c0_400, %c0_401], %306 {strides = array<i32>} : memref<256x256xf32, #tpu.memory_space<vmem>>, vector<256x128xf32>,
    %c0_402 = arith.constant 0 : index
    %c0_403 = arith.constant 0 : index
    %308 = vector.load %arg10[%c0_402, %c0_403] : memref<256x256xf32, #tpu.memory_space<vmem>>, vector<256x256xf32>
    %309 = vector.extract_strided_slice %308 {offsets = [0, 0], sizes = [256, 128], strides = [1, 1]} : vector<256x256xf32> to vector<256x128xf32>
    %310 = vector.extract_strided_slice %308 {offsets = [0, 128], sizes = [256, 128], strides = [1, 1]} : vector<256x256xf32> to vector<256x128xf32>
    %c0_404 = arith.constant 0 : index
    %c0_405 = arith.constant 0 : index
    %311 = vector.load %arg6[%c0_404, %c0_405] : memref<1x128xf32, #tpu.memory_space<vmem>>, vector<1x128xf32>
    %312 = vector.shape_cast %311 : vector<1x128xf32> to vector<128xf32>
    %313 = vector.shape_cast %312 : vector<128xf32> to vector<1x128xf32>
    %314 = vector.broadcast %313 : vector<1x128xf32> to vector<256x128xf32>
    %315 = arith.addf %310, %314 : vector<256x128xf32>
    %316 = arith.addf %309, %315 : vector<256x128xf32>
    %cst_406 = arith.constant 0.000000e+00 : f32
    %317 = vector.broadcast %cst_406 : f32 to vector<256x128xf32>
    %318 = arith.maximumf %316, %317 : vector<256x128xf32>
    %319 = vector.shape_cast %318 : vector<256x128xf32> to vector<16x16x128xf32>
    %c0_407 = arith.constant 0 : index
    %c0_408 = arith.constant 0 : index
    %c0_409 = arith.constant 0 : index
    %c0_410 = arith.constant 0 : index
    %320 = vector.load %arg7[%c0_407, %c0_408, %c0_409, %c0_410] : memref<1x16x16x128xf32, #tpu.memory_space<vmem>>, vector<1x16x16x128xf32>
    %321 = vector.shape_cast %320 : vector<1x16x16x128xf32> to vector<16x16x128xf32>
    %322 = vector.shape_cast %319 : vector<16x16x128xf32> to vector<1x16x16x128xf32>
    tpu.vector_store %arg7[%c0_407, %c0_408, %c0_409, %c0_410], %322 {strides = array<i32>} : memref<1x16x16x128xf32, #tpu.memory_space<vmem>>, vector<1x16x16x128xf32>,
    return
  }
  func.func @transform_0(%arg0: i32) -> (i32, i32, i32, i32) {
    %c0_i32 = arith.constant 0 : i32
    %c0_i32_0 = arith.constant 0 : i32
    %c0_i32_1 = arith.constant 0 : i32
    %c0_i32_2 = arith.constant 0 : i32
    return %arg0, %c0_i32, %c0_i32_0, %c0_i32_1 : i32, i32, i32, i32
  }
  func.func @transform_1(%arg0: i32) -> (i32, i32, i32) {
    %c0_i32 = arith.constant 0 : i32
    %c0_i32_0 = arith.constant 0 : i32
    %c0_i32_1 = arith.constant 0 : i32
    %c0_i32_2 = arith.constant 0 : i32
    return %c0_i32, %c0_i32_0, %c0_i32_1 : i32, i32, i32
  }
  func.func @transform_2(%arg0: i32) -> (i32, i32) {
    %c0_i32 = arith.constant 0 : i32
    %c0_i32_0 = arith.constant 0 : i32
    %c0_i32_1 = arith.constant 0 : i32
    return %c0_i32, %c0_i32_0 : i32, i32
  }
  func.func @transform_3(%arg0: i32) -> (i32, i32, i32) {
    %c0_i32 = arith.constant 0 : i32
    %c0_i32_0 = arith.constant 0 : i32
    %c0_i32_1 = arith.constant 0 : i32
    %c0_i32_2 = arith.constant 0 : i32
    return %c0_i32, %c0_i32_0, %c0_i32_1 : i32, i32, i32
  }
  func.func @transform_4(%arg0: i32) -> (i32, i32) {
    %c0_i32 = arith.constant 0 : i32
    %c0_i32_0 = arith.constant 0 : i32
    %c0_i32_1 = arith.constant 0 : i32
    return %c0_i32, %c0_i32_0 : i32, i32
  }
  func.func @transform_5(%arg0: i32) -> (i32, i32) {
    %c0_i32 = arith.constant 0 : i32
    %c0_i32_0 = arith.constant 0 : i32
    %c0_i32_1 = arith.constant 0 : i32
    return %c0_i32, %c0_i32_0 : i32, i32
  }
  func.func @transform_6(%arg0: i32) -> (i32, i32, i32, i32) {
    %c0_i32 = arith.constant 0 : i32
    %c0_i32_0 = arith.constant 0 : i32
    %c0_i32_1 = arith.constant 0 : i32
    %c0_i32_2 = arith.constant 0 : i32
    return %arg0, %c0_i32, %c0_i32_0, %c0_i32_1 : i32, i32, i32, i32
  }
}

</mosaic_0001>

<bundles_post_ra>
// kernel: tpu_custom_call.1
= control target key start
LH: loop header
LB: loop body
LE: loop exit
PB: predicated region body
PF: predicated region fallthrough
CT: control target
= control target key end

     0   :  { %11 = vsyncpa [#allocation6], 0  ;;  %s26643_s0 = inlined_call_operand.vmem [shape: f32[2,16,16,4], index: 0, kind: input, shape index: {}]   ;;  %s26644_s1 = inlined_call_operand.vmem [shape: f32[25,4,256], index: 1, kind: input, shape index: {}]   ;;  %s26645_s2 = inlined_call_operand.vmem [shape: f32[1,128], index: 2, kind: input, shape index: {}]   ;;  %s26646_s3 = inlined_call_operand.hbm [shape: f32[9,128,128], index: 3, kind: input, shape index: {}]   ;;  %s26647_s4 = inlined_call_operand.vmem [shape: f32[1,128], index: 4, kind: input, shape index: {}]   ;;  %s26648_s5 = inlined_call_operand.vmem [shape: f32[1,128], index: 5, kind: input, shape index: {}]   ;;  %s26649_s6 = inlined_call_operand.hbm [shape: f32[2,16,16,128], index: 6, kind: output, shape index: {}]  }
   0x1   :  { %12 = vsyncpa [#allocation7], 0 }
   0x2   :  { %14 = vsyncpa [#allocation7 + $0x1], 0  ;;  %s23284_s21 = smov 0   ;;  %s23286_s22 = smov 0  }
   0x3   :  { %s23288_s23 = smov 0   ;;  %s23290_s24 = smov 0  }
   0x4 LB: > { %s23305_s25 = sadd.s32 4294967295, %s23240_s24   ;;  %s18901_s26 = sadd.s32 4294967294, %s23240_s24   ;;  %s23240_s24 = sphi %s23290_s24, %s26854_s24   ;;  %s23236_s23 = sphi %s23288_s23, %s26853_s23   ;;  %s23232_s22 = sphi %s23286_s22, %s26852_s22   ;;  %s23228_s21 = sphi %s23284_s21, %s26851_s21  }
   0x5   : > { %s23309_s27 = sadd.s32 1, %s23240_s24   ;;  %s158_s28 = sadd.s32 1, %s23236_s23 }
   0x6   : > { %s155_s29 = ssub.s32 %s23240_s24, %s23309_s27  ;;  %p168_p0 = scmp.ne.s32.totalorder %s23236_s23, %s23232_s22 }
   0x7   : > { %p156_p1 = scmp.eq.s32.totalorder %s155_s29, 0  ;;  %p169_p2 = scmp.eq.s32.totalorder %s23305_s25, 1 }
   0x8   : > { %p174_p3 = scmp.ne.s32.totalorder %s23232_s22, %s23228_s21  ;;  %p175_p4 = scmp.eq.s32.totalorder %s18901_s26, 1 }
   0x9   : > { %s23320_s30 = scalar_select %p156_p1, %s23236_s23, %s158_s28  }
   0xa   : > { %p23322_p5 = por %p169_p2, %p168_p0  ;;  %p23326_p6 = por %p175_p4, %p174_p3 }
   0xb   : > { %p18902_p7 = scmp.ge.s32.totalorder %s23240_s24, 1  ;;  %p182_p8 = scmp.lt.s32.totalorder %s23240_s24, 3 }
   0xc   : > { %s26692_s7 = scalar_select %p23322_p5, 1, 0 }
   0xd   : > { %s26693_s8 = scalar_select %p23326_p6, 1, 0 }
   0xe   : > { %p26650_p9 = scmp.eq.s32.totalorder %s23305_s25, 0  ;;  %p23333_p10 = pnand %p18902_p7, %p182_p8 }
   0xf   : > { %s23242_s10 = smov [#allocation5]   ;;  %s23146_s15 = scalar_lea.hbm %s26646_s3, 18432 }
  0x10   : > { %s26694_s9 = scalar_select %p23333_p10, 1, 0 }
  0x11   : > { %s200_s11 = sshll.u32 %s23242_s10, 4  ;;  %p23066_p11 = pneg %p23333_p10  ;;  %s201_s11 = int_to_ptr.vmem [resolvable:$true] %s200_s11 }
  0x12   : > { %p23147_p13 = scmp.ne.s32.totalorder %s26646_s3, %s23146_s15  ;;  %p23153_p3 = scmp.lt.u32.totalorder %s23146_s15, %s26646_s3 }
  0x13   : > { %p23341_p12 = pnand %p26650_p9, %p23066_p11 }
  0x15   : > { %p23148_p0 = pneg %p23341_p12 }
  0x17   : > { %p23149_p1 = pnand %p23148_p0, %p23147_p13 }
  0x19   : > { %p23150_p2 = pneg %p23149_p1 }
  0x1b   : > { %p23155_p4 = pnand %p23153_p3, %p23150_p2 }
  0x1d   : > { %23158 = shalt.err (!%p23155_p4)
}
  0x1e   : > { %s23159_s20 = scalar_lea.vmem %s201_s11, 18432  ;;  %p23167_p9 = scmp.lt.s32.totalorder %s201_s11, %s201_s11 }
  0x1f   : > { %p23160_p7 = scmp.ne.s32.totalorder %s201_s11, %s23159_s20  ;;  %p23168_p6 = scmp.lt.s32.totalorder %s23159_s20, %s23159_s20 }
  0x21   : > { %p23162_p8 = pnand %p23160_p7, %p23148_p0  ;;  %p23169_p5 = por %p23168_p6, %p23167_p9 }
  0x23   : > { %p23163_p11 = pneg %p23162_p8 }
  0x25   : > { %p23170_p10 = pnand %p23169_p5, %p23163_p11 }
  0x27   : > { %23173 = shalt.err (!%p23170_p10)
}
  0x28   : > { %s23243_s26 = smov 128   ;;  %s23244_s28 = smov 8  }
  0x29   : > { %23069 = dma.hbm_to_vmem [thread:$0]  (!%p23341_p12), %s26646_s3, 18432, %s201_s11, [#allocation6], %s23243_s26, %s23243_s26, %s23244_s28  }
  0x2a   : > { %p26696_p13 = scmp.ne.s32.totalorder %s26694_s9, 0 }
  0x2c   : > { %230 = sbr.rel (%p26696_p13) target bundleno = 2949 (0xb85), region = 44 }
  0x33   : > { %p26697_p1 = scmp.eq.s32.totalorder %s23305_s25, 0 }
  0x35   : > { %23219 = dma.done.wait (%p26697_p1), [#allocation6], 18432   ;;  %p26698_p0 = pmov %p26697_p1 }
  0x36   : > { %vm265_vm0 = vcmask 31744   ;;  %p260_p5 = scmp.lt.s32.totalorder %s23305_s25, 1  ;;  %v23245_v0 = vmov 0.0   ;;  %vm281_vm1 = vcmask 25600   ;;  %v578_v1 = vld [vmem:[%s26644_s1] sm:$0xff]  ;;  %vm677_vm2 = vcmask 1043456  }
  0x37   : > { %23221 = vsyncadd (%p26698_p0), [#allocation6], 4294948864  ;;  %746 = vmatprep.mubr.f32.mxu1 %v23245_v0  ;;  %314 = vst [vmem:[#allocation3] sm:$0xff] %v23245_v0  ;;  %6597 = vmatprep.mubr.f32.mxu0 %v23245_v0  ;;  %v19259_v2 = vld [vmem:[%s26644_s1 + $0x50] sm:$0xff]  ;;  %v23508_v3 = vld [vmem:[%s26644_s1 + $0x58] sm:$0xff]  ;;  %v580_v4 = vcombine.high %v578_v1, %v578_v1  ;;  %vm268_vm3 = vcmask 27648  }
  0x38   : > { %315 = vst [vmem:[#allocation3 + $0x8] sm:$0xff] %v23245_v0  ;;  %316 = vst [vmem:[#allocation3 + $0x10] sm:$0x3] %v23245_v0  ;;  %s23427_s9 = scalar_select %p260_p5, %s23305_s25, 1  ;;  %v23510_v5 = vcombine.high %v19259_v2, %v19259_v2  ;;  %v7017_v6 = vcombine.high %v23508_v3, %v23508_v3  ;;  %v23588_v38 = vld [vmem:[%s26644_s1 + $0x60] sm:$0xff]  ;;  %v18944_v45 = vld [vmem:[%s26644_s1 + $0x8] sm:$0xff] }
  0x39   : > { %318 = vst [vmem:[#allocation3 + $0x198] sm:$0xff] %v23245_v0  ;;  %319 = vst [vmem:[#allocation3 + $0x1a0] sm:$0xff] %v23245_v0  ;;  %18910 = vmatprep.subr.msk.mxu1 %vm677_vm2, %v580_v4  ;;  %v7602_v39 = vcombine.high %v23588_v38, %v23588_v38  ;;  %v1166_v47 = vcombine.high %v18944_v45, %v18944_v45  ;;  %s257_s10 = sand.u32 1, %s23232_s22   ;;  %s19793_s16 = sshll.u32 %s23305_s25, 12 }
  0x3a   : > { %320 = vst [vmem:[#allocation3 + $0x1a8] sm:$0x3] %v23245_v0  ;;  %322 = vst [vmem:[#allocation3 + $0x18] sm:$0x1] %v23245_v0  ;;  %s19792_s11 = sshll.u32 %s23427_s9, 8  ;;  %19260 = vmatprep.subr.msk.mxu0 %vm677_vm2, %v23510_v5  ;;  %18911 = vmatpush1.msk.msra.mxu1 %vm677_vm2, %v578_v1  ;;  %s26594_s20 = scalar_lea.hbm %s26649_s6, %s19793_s16 }
  0x3b   : > { %323 = vst [vmem:[#allocation3 + $0x30] sm:$0x1] %v23245_v0  ;;  %324 = vst [vmem:[#allocation3 + $0x48] sm:$0x1] %v23245_v0  ;;  %s23497_s14 = scalar_lea.vmem %s26643_s0, %s19792_s11  ;;  %19261 = vmatpush1.msk.msra.mxu0 %vm677_vm2, %v19259_v2  ;;  %18945 = vmatprep.subr.msk.mxu1 %vm677_vm2, %v1166_v47  ;;  %s26602_s25 = scalar_lea.sflag [#allocation7], %s257_s10 }
  0x3c   : > { %325 = vst [vmem:[#allocation3 + $0x60] sm:$0x1] %v23245_v0  ;;  %326 = vst [vmem:[#allocation3 + $0x78] sm:$0x1] %v23245_v0  ;;  %v354_v7 = vld [vmem:[%s23497_s14] sm:$0xff]  ;;  %v355_v9 = vld [vmem:[%s23497_s14 + $0x8] sm:$0xff]  ;;  %19295 = vmatprep.subr.msk.mxu0 %vm677_vm2, %v7017_v6 }
  0x3d   : > { %327 = vst [vmem:[#allocation3 + $0x90] sm:$0x1] %v23245_v0  ;;  %328 = vst [vmem:[#allocation3 + $0xa8] sm:$0x1] %v23245_v0  ;;  %v356_v10 = vld [vmem:[%s23497_s14 + $0x10] sm:$0xff]  ;;  %v357_v11 = vld [vmem:[%s23497_s14 + $0x18] sm:$0xff] }
  0x3e   : > { %329 = vst [vmem:[#allocation3 + $0xc0] sm:$0x1] %v23245_v0  ;;  %330 = vst [vmem:[#allocation3 + $0xd8] sm:$0x1] %v23245_v0  ;;  %v358_v12 = vld [vmem:[%s23497_s14 + $0x20] sm:$0xff]  ;;  %v359_v14 = vld [vmem:[%s23497_s14 + $0x28] sm:$0xff] }
  0x3f   : > { %331 = vst [vmem:[#allocation3 + $0xf0] sm:$0x1] %v23245_v0  ;;  %332 = vst [vmem:[#allocation3 + $0x108] sm:$0x1] %v23245_v0  ;;  %v360_v15 = vld [vmem:[%s23497_s14 + $0x30] sm:$0xff]  ;;  %v361_v16 = vld [vmem:[%s23497_s14 + $0x38] sm:$0xff] }
  0x40   : > { %333 = vst [vmem:[#allocation3 + $0x120] sm:$0x1] %v23245_v0  ;;  %334 = vst [vmem:[#allocation3 + $0x138] sm:$0x1] %v23245_v0  ;;  %v362_v17 = vld [vmem:[%s23497_s14 + $0x40] sm:$0xff]  ;;  %v363_v18 = vld [vmem:[%s23497_s14 + $0x48] sm:$0xff] }
  0x41   : > { %335 = vst [vmem:[#allocation3 + $0x150] sm:$0x1] %v23245_v0  ;;  %336 = vst [vmem:[#allocation3 + $0x168] sm:$0x1] %v23245_v0  ;;  %v364_v19 = vld [vmem:[%s23497_s14 + $0x50] sm:$0xff]  ;;  %v365_v20 = vld [vmem:[%s23497_s14 + $0x58] sm:$0xff] }
  0x42   : > { %337 = vst [vmem:[#allocation3 + $0x180] sm:$0x1] %v23245_v0  ;;  %338 = vst [vmem:[#allocation3 + $0x29] sm:$0x1] %v23245_v0  ;;  %v366_v21 = vld [vmem:[%s23497_s14 + $0x60] sm:$0xff]  ;;  %v367_v22 = vld [vmem:[%s23497_s14 + $0x68] sm:$0xff] }
  0x43   : > { %339 = vst [vmem:[#allocation3 + $0x41] sm:$0x1] %v23245_v0  ;;  %340 = vst [vmem:[#allocation3 + $0x59] sm:$0x1] %v23245_v0  ;;  %v368_v23 = vld [vmem:[%s23497_s14 + $0x70] sm:$0xff]  ;;  %v369_v24 = vld [vmem:[%s23497_s14 + $0x78] sm:$0xff] }
  0x44   : > { %341 = vst [vmem:[#allocation3 + $0x71] sm:$0x1] %v23245_v0  ;;  %342 = vst [vmem:[#allocation3 + $0x89] sm:$0x1] %v23245_v0  ;;  %v370_v25 = vld [vmem:[%s23497_s14 + $0x80] sm:$0xff]  ;;  %v371_v26 = vld [vmem:[%s23497_s14 + $0x88] sm:$0xff] }
  0x45   : > { %343 = vst [vmem:[#allocation3 + $0xa1] sm:$0x1] %v23245_v0  ;;  %344 = vst [vmem:[#allocation3 + $0xb9] sm:$0x1] %v23245_v0  ;;  %v372_v27 = vld [vmem:[%s23497_s14 + $0x90] sm:$0xff]  ;;  %v373_v28 = vld [vmem:[%s23497_s14 + $0x98] sm:$0xff] }
  0x46   : > { %345 = vst [vmem:[#allocation3 + $0xd1] sm:$0x1] %v23245_v0  ;;  %346 = vst [vmem:[#allocation3 + $0xe9] sm:$0x1] %v23245_v0  ;;  %v374_v30 = vld [vmem:[%s23497_s14 + $0xa0] sm:$0xff]  ;;  %v375_v31 = vld [vmem:[%s23497_s14 + $0xa8] sm:$0xff] }
  0x47   : > { %347 = vst [vmem:[#allocation3 + $0x101] sm:$0x1] %v23245_v0  ;;  %348 = vst [vmem:[#allocation3 + $0x119] sm:$0x1] %v23245_v0  ;;  %v376_v33 = vld [vmem:[%s23497_s14 + $0xb0] sm:$0xff]  ;;  %v377_v34 = vld [vmem:[%s23497_s14 + $0xb8] sm:$0xff] }
  0x48   : > { %349 = vst [vmem:[#allocation3 + $0x131] sm:$0x1] %v23245_v0  ;;  %350 = vst [vmem:[#allocation3 + $0x149] sm:$0x1] %v23245_v0  ;;  %v378_v41 = vld [vmem:[%s23497_s14 + $0xc0] sm:$0xff]  ;;  %v379_v42 = vld [vmem:[%s23497_s14 + $0xc8] sm:$0xff] }
  0x49   : > { %351 = vst [vmem:[#allocation3 + $0x161] sm:$0x1] %v23245_v0  ;;  %352 = vst [vmem:[#allocation3 + $0x179] sm:$0x1] %v23245_v0  ;;  %v380_v43 = vld [vmem:[%s23497_s14 + $0xd0] sm:$0xff]  ;;  %v381_v44 = vld [vmem:[%s23497_s14 + $0xd8] sm:$0xff] }
  0x4a   : > { %353 = vst [vmem:[#allocation3 + $0x191] sm:$0x1] %v23245_v0  ;;  %266 = vst.msk [vmem:[#allocation2] sm:$0xff] %vm265_vm0, %v23245_v0  ;;  %v382_v62 = vld [vmem:[%s23497_s14 + $0xe0] sm:$0xff]  ;;  %v383_v1 = vld [vmem:[%s23497_s14 + $0xe8] sm:$0xff]  ;;  %p26849_p9 = scmp.ne.s32.totalorder %s26692_s7, 0 }
  0x4b   : > { %267 = vst.msk [vmem:[#allocation2 + $0x8] sm:$0xff] %vm265_vm0, %v23245_v0  ;;  %270 = vst.msk [vmem:[#allocation2 + $0x18] sm:$0xff] %vm265_vm0, %v23245_v0  ;;  %v385_v6 = vld [vmem:[%s23497_s14 + $0xf8] sm:$0xff]  ;;  %s23246_s28 = smov [#allocation8]  }
  0x4c   : > { %271 = vst.msk [vmem:[#allocation2 + $0x20] sm:$0xff] %vm265_vm0, %v23245_v0  ;;  %274 = vst.msk [vmem:[#allocation2 + $0x1b0] sm:$0xff] %vm265_vm0, %v23245_v0  ;;  %s23178_s29 = sshll.u32 %s23246_s28, 4  ;;  %s23179_s29 = int_to_ptr.vmem [resolvable:$false] %s23178_s29 }
  0x4d   : > { %275 = vst.msk [vmem:[#allocation2 + $0x1b8] sm:$0xff] %vm265_vm0, %v23245_v0  ;;  %277 = vst.msk [vmem:[#allocation2 + $0x1c8] sm:$0xff] %vm265_vm0, %v23245_v0  ;;  %s23180_s9 = scalar_lea.vmem %s23179_s29, 8192 }
  0x4e   : > { %278 = vst.msk [vmem:[#allocation2 + $0x1d0] sm:$0xff] %vm265_vm0, %v23245_v0  ;;  %386 = vst.msk [vmem:[#allocation2 + $0x32] sm:$0xff] %vm265_vm0, %v354_v7 }
  0x4f   : > { %282 = vst.msk [vmem:[#allocation2 + $0x30] sm:$0x3] %vm281_vm1, %v23245_v0  ;;  %283 = vst.msk [vmem:[#allocation2 + $0x48] sm:$0x3] %vm281_vm1, %v23245_v0 }
  0x50   : > { %284 = vst.msk [vmem:[#allocation2 + $0x60] sm:$0x3] %vm281_vm1, %v23245_v0  ;;  %285 = vst.msk [vmem:[#allocation2 + $0x78] sm:$0x3] %vm281_vm1, %v23245_v0 }
  0x51   : > { %286 = vst.msk [vmem:[#allocation2 + $0x90] sm:$0x3] %vm281_vm1, %v23245_v0  ;;  %287 = vst.msk [vmem:[#allocation2 + $0xa8] sm:$0x3] %vm281_vm1, %v23245_v0  ;;  %v482_v8 = vld [vmem:[#allocation2] sm:$0xff] }
  0x52   : > { %288 = vst.msk [vmem:[#allocation2 + $0xc0] sm:$0x3] %vm281_vm1, %v23245_v0  ;;  %289 = vst.msk [vmem:[#allocation2 + $0xd8] sm:$0x3] %vm281_vm1, %v23245_v0  ;;  %v483_v13 = vld [vmem:[#allocation2 + $0x8] sm:$0xff]  ;;  %18912 = vmatmul.mubr.msk.f32.vlgmr.msra.gmra.mrb[0].mxu1 %vm265_vm0, %v482_v8  ;;  %v484_v32 = vld [vmem:[#allocation2 + $0x18] sm:$0xff] }
  0x53   : > { %290 = vst.msk [vmem:[#allocation2 + $0xf0] sm:$0x3] %vm281_vm1, %v23245_v0  ;;  %291 = vst.msk [vmem:[#allocation2 + $0x108] sm:$0x3] %vm281_vm1, %v23245_v0  ;;  %752 = vmatprep.mubr.f32.mxu1 %v23245_v0  ;;  %v485_v36 = vld [vmem:[#allocation2 + $0x20] sm:$0xff]  ;;  %18946 = vmatpush1.msk.msra.mxu1 %vm677_vm2, %v18944_v45 }
  0x54   : > { %292 = vst.msk [vmem:[#allocation2 + $0x120] sm:$0x3] %vm281_vm1, %v23245_v0  ;;  %293 = vst.msk [vmem:[#allocation2 + $0x138] sm:$0x3] %vm281_vm1, %v23245_v0 }
  0x55   : > { %294 = vst.msk [vmem:[#allocation2 + $0x150] sm:$0x3] %vm281_vm1, %v23245_v0  ;;  %295 = vst.msk [vmem:[#allocation2 + $0x168] sm:$0x3] %vm281_vm1, %v23245_v0 }
  0x56   : > { %296 = vst.msk [vmem:[#allocation2 + $0x180] sm:$0x3] %vm281_vm1, %v23245_v0  ;;  %297 = vst.msk [vmem:[#allocation2 + $0x198] sm:$0x3] %vm281_vm1, %v23245_v0  ;;  %18913 = vmatmul.mubr.msk.f32.gmra.mrb[2].mxu1 %vm265_vm0, %v483_v13  ;;  %v6333_v29 = vld [vmem:[#allocation2 + $0x30] sm:$0xff] }
  0x57   : > { %298 = vst.msk [vmem:[#allocation2 + $0x42] sm:$0x3] %vm281_vm1, %v23245_v0  ;;  %299 = vst.msk [vmem:[#allocation2 + $0x5a] sm:$0x3] %vm281_vm1, %v23245_v0  ;;  %19262 = vmatmul.mubr.msk.f32.vlgmr.msra.gmra.mrb[0].mxu0 %vm265_vm0, %v6333_v29  ;;  %758 = vmatprep.mubr.f32.mxu1 %v23245_v0 }
  0x58   : > { %300 = vst.msk [vmem:[#allocation2 + $0x72] sm:$0x3] %vm281_vm1, %v23245_v0  ;;  %301 = vst.msk [vmem:[#allocation2 + $0x8a] sm:$0x3] %vm281_vm1, %v23245_v0  ;;  %19296 = vmatpush1.msk.msra.mxu0 %vm677_vm2, %v23508_v3  ;;  %6603 = vmatprep.mubr.f32.mxu0 %v23245_v0  ;;  %v384_v3 = vld [vmem:[%s23497_s14 + $0xf0] sm:$0xff]  ;;  %s18907_s14 = sshll.u32 %s257_s10, 8 }
  0x59   : > { %302 = vst.msk [vmem:[#allocation2 + $0xa2] sm:$0x3] %vm281_vm1, %v23245_v0  ;;  %303 = vst.msk [vmem:[#allocation2 + $0xba] sm:$0x3] %vm281_vm1, %v23245_v0  ;;  %19330 = vmatprep.subr.msk.mxu0 %vm677_vm2, %v7602_v39  ;;  %s26473_s15 = scalar_lea.vmem [#allocation8], %s18907_s14 }
  0x5a   : > { %304 = vst.msk [vmem:[#allocation2 + $0xd2] sm:$0x3] %vm281_vm1, %v23245_v0  ;;  %305 = vst.msk [vmem:[#allocation2 + $0xea] sm:$0x3] %vm281_vm1, %v23245_v0  ;;  %18914 = vmatmul.mubr.msk.f32.gmra.mrb[4].mxu1 %vm265_vm0, %v484_v32  ;;  %s18827_s17 = sshll.u32 %s26473_s15, 4  ;;  %s26596_s17 = int_to_ptr.vmem [resolvable:$true] %s18827_s17 }
  0x5b   : > { %306 = vst.msk [vmem:[#allocation2 + $0x102] sm:$0x3] %vm281_vm1, %v23245_v0  ;;  %307 = vst.msk [vmem:[#allocation2 + $0x11a] sm:$0x3] %vm281_vm1, %v23245_v0  ;;  %764 = vmatprep.mubr.f32.mxu1 %v23245_v0  ;;  %s23174_s26 = scalar_lea.vmem %s26596_s17, 4096  ;;  %p23181_p2 = scmp.lt.s32.totalorder %s26596_s17, %s23179_s29 }
  0x5c   : > { %308 = vst.msk [vmem:[#allocation2 + $0x132] sm:$0x3] %vm281_vm1, %v23245_v0  ;;  %309 = vst.msk [vmem:[#allocation2 + $0x14a] sm:$0x3] %vm281_vm1, %v23245_v0  ;;  %p23175_p6 = scmp.ne.s32.totalorder %s26596_s17, %s23174_s26  ;;  %p23182_p3 = scmp.lt.s32.totalorder %s23180_s9, %s23174_s26 }
  0x5d   : > { %310 = vst.msk [vmem:[#allocation2 + $0x162] sm:$0x3] %vm281_vm1, %v23245_v0  ;;  %311 = vst.msk [vmem:[#allocation2 + $0x17a] sm:$0x3] %vm281_vm1, %v23245_v0 }
  0x5e   : > { %312 = vst.msk [vmem:[#allocation2 + $0x192] sm:$0x3] %vm281_vm1, %v23245_v0  ;;  %313 = vst.msk [vmem:[#allocation2 + $0x1aa] sm:$0x3] %vm281_vm1, %v23245_v0  ;;  %18915 = vmatmul.mubr.msk.f32.gmra.mrb[6].mxu1 %vm265_vm0, %v485_v36  ;;  %p23176_p10 = pnand %p23175_p6, %p26849_p9  ;;  %p23183_p4 = por %p23182_p3, %p23181_p2 }
  0x5f   : > { %269 = vst.msk [vmem:[#allocation2 + $0x10] sm:$0xf] %vm268_vm3, %v23245_v0  ;;  %272 = vst.msk [vmem:[#allocation2 + $0x28] sm:$0xf] %vm268_vm3, %v23245_v0  ;;  %770 = vmatprep.mubr.f32.mxu1 %v23245_v0 }
  0x60   : > { %276 = vst.msk [vmem:[#allocation2 + $0x1c0] sm:$0xf] %vm268_vm3, %v23245_v0  ;;  %279 = vst.msk [vmem:[#allocation2 + $0x1d8] sm:$0xf] %vm268_vm3, %v23245_v0  ;;  %p23177_p12 = pneg %p23176_p10 }
  0x61   : > { %387 = vst.msk [vmem:[#allocation2 + $0x3a] sm:$0xff] %vm265_vm0, %v355_v9  ;;  %388 = vst.msk [vmem:[#allocation2 + $0x4a] sm:$0xff] %vm265_vm0, %v356_v10  ;;  %v23701_v9 = vld [vmem:[#allocation2 + $0x31] sm:$0xff]  ;;  %v23706_v10 = vld [vmem:[%s26644_s1 + $0x68] sm:$0xff] }
  0x62   : > { %389 = vst.msk [vmem:[#allocation2 + $0x52] sm:$0xff] %vm265_vm0, %v357_v11  ;;  %390 = vst.msk [vmem:[#allocation2 + $0x62] sm:$0xff] %vm265_vm0, %v358_v12  ;;  %18916 = vmatmul.mubr.msk.f32.gmra.mrb[8].mxu1 %vm265_vm0, %v6333_v29  ;;  %v8187_v11 = vcombine.high %v23706_v10, %v23706_v10  ;;  %p23184_p7 = pnand %p23183_p4, %p23177_p12 }
  0x63   : > { %391 = vst.msk [vmem:[#allocation2 + $0x6a] sm:$0xff] %vm265_vm0, %v359_v14  ;;  %392 = vst.msk [vmem:[#allocation2 + $0x7a] sm:$0xff] %vm265_vm0, %v360_v15  ;;  %776 = vmatprep.mubr.f32.mxu1 %v23245_v0 }
  0x64   : > { %393 = vst.msk [vmem:[#allocation2 + $0x82] sm:$0xff] %vm265_vm0, %v361_v16  ;;  %394 = vst.msk [vmem:[#allocation2 + $0x92] sm:$0xff] %vm265_vm0, %v362_v17 }
  0x65   : > { %395 = vst.msk [vmem:[#allocation2 + $0x9a] sm:$0xff] %vm265_vm0, %v363_v18  ;;  %396 = vst.msk [vmem:[#allocation2 + $0xaa] sm:$0xff] %vm265_vm0, %v364_v19 }
  0x66   : > { %397 = vst.msk [vmem:[#allocation2 + $0xb2] sm:$0xff] %vm265_vm0, %v365_v20  ;;  %398 = vst.msk [vmem:[#allocation2 + $0xc2] sm:$0xff] %vm265_vm0, %v366_v21 }
  0x67   : > { %399 = vst.msk [vmem:[#allocation2 + $0xca] sm:$0xff] %vm265_vm0, %v367_v22  ;;  %400 = vst.msk [vmem:[#allocation2 + $0xda] sm:$0xff] %vm265_vm0, %v368_v23  ;;  %v18979_v22 = vld [vmem:[%s26644_s1 + $0x10] sm:$0xff]  ;;  %v1067_v23 = vld [vmem:[#allocation2 + $0x1] sm:$0xff] }
  0x68   : > { %401 = vst.msk [vmem:[#allocation2 + $0xe2] sm:$0xff] %vm265_vm0, %v369_v24  ;;  %402 = vst.msk [vmem:[#allocation2 + $0xf2] sm:$0xff] %vm265_vm0, %v370_v25  ;;  %v6334_v35 = vld [vmem:[#allocation2 + $0x38] sm:$0xff]  ;;  %v6335_v37 = vld [vmem:[#allocation2 + $0x48] sm:$0xff]  ;;  %v1751_v24 = vcombine.high %v18979_v22, %v18979_v22 }
  0x69   : > { %403 = vst.msk [vmem:[#allocation2 + $0xfa] sm:$0xff] %vm265_vm0, %v371_v26  ;;  %404 = vst.msk [vmem:[#allocation2 + $0x10a] sm:$0xff] %vm265_vm0, %v372_v27  ;;  %19263 = vmatmul.mubr.msk.f32.gmra.mrb[2].mxu0 %vm265_vm0, %v6334_v35  ;;  %v6336_v40 = vld [vmem:[#allocation2 + $0x50] sm:$0xff]  ;;  %v6337_v46 = vld [vmem:[#allocation2 + $0x60] sm:$0xff]  ;;  %18917 = vmatmul.mubr.msk.f32.gmra.mrb[10].mxu1 %vm265_vm0, %v6334_v35 }
  0x6a   : > { %405 = vst.msk [vmem:[#allocation2 + $0x112] sm:$0xff] %vm265_vm0, %v373_v28  ;;  %406 = vst.msk [vmem:[#allocation2 + $0x122] sm:$0xff] %vm265_vm0, %v374_v30  ;;  %6609 = vmatprep.mubr.f32.mxu0 %v23245_v0  ;;  %782 = vmatprep.mubr.f32.mxu1 %v23245_v0  ;;  %v6338_v48 = vld [vmem:[#allocation2 + $0x68] sm:$0xff]  ;;  %v6339_v49 = vld [vmem:[#allocation2 + $0x78] sm:$0xff] }
  0x6b   : > { %407 = vst.msk [vmem:[#allocation2 + $0x12a] sm:$0xff] %vm265_vm0, %v375_v31  ;;  %408 = vst.msk [vmem:[#allocation2 + $0x13a] sm:$0xff] %vm265_vm0, %v376_v33  ;;  %v6340_v50 = vld [vmem:[#allocation2 + $0x80] sm:$0xff]  ;;  %v6341_v51 = vld [vmem:[#allocation2 + $0x90] sm:$0xff]  ;;  %18980 = vmatprep.subr.msk.mxu1 %vm677_vm2, %v1751_v24 }
  0x6c   : > { %409 = vst.msk [vmem:[#allocation2 + $0x142] sm:$0xff] %vm265_vm0, %v377_v34  ;;  %410 = vst.msk [vmem:[#allocation2 + $0x152] sm:$0xff] %vm265_vm0, %v378_v41  ;;  %v6342_v52 = vld [vmem:[#allocation2 + $0x98] sm:$0xff]  ;;  %v6343_v53 = vld [vmem:[#allocation2 + $0xa8] sm:$0xff] }
  0x6d   : > { %19264 = vmatmul.mubr.msk.f32.gmra.mrb[4].mxu0 %vm265_vm0, %v6335_v37  ;;  %411 = vst.msk [vmem:[#allocation2 + $0x15a] sm:$0xff] %vm265_vm0, %v379_v42  ;;  %412 = vst.msk [vmem:[#allocation2 + $0x16a] sm:$0xff] %vm265_vm0, %v380_v43  ;;  %18918 = vmatmul.mubr.msk.f32.gmra.mrb[12].mxu1 %vm265_vm0, %v6335_v37  ;;  %v6344_v54 = vld [vmem:[#allocation2 + $0xb0] sm:$0xff]  ;;  %v6345_v55 = vld [vmem:[#allocation2 + $0xc0] sm:$0xff] }
  0x6e   : > { %6615 = vmatprep.mubr.f32.mxu0 %v23245_v0  ;;  %413 = vst.msk [vmem:[#allocation2 + $0x172] sm:$0xff] %vm265_vm0, %v381_v44  ;;  %788 = vmatprep.mubr.f32.mxu1 %v23245_v0  ;;  %v6346_v56 = vld [vmem:[#allocation2 + $0xc8] sm:$0xff]  ;;  %v6347_v57 = vld [vmem:[#allocation2 + $0xd8] sm:$0xff]  ;;  %414 = vst.msk [vmem:[#allocation2 + $0x182] sm:$0xff] %vm265_vm0, %v382_v62 }
  0x6f   : > { %v6348_v58 = vld [vmem:[#allocation2 + $0xe0] sm:$0xff]  ;;  %v6349_v59 = vld [vmem:[#allocation2 + $0xf0] sm:$0xff]  ;;  %415 = vst.msk [vmem:[#allocation2 + $0x18a] sm:$0xff] %vm265_vm0, %v383_v1  ;;  %416 = vst.msk [vmem:[#allocation2 + $0x19a] sm:$0xff] %vm265_vm0, %v384_v3 }
  0x70   : > { %v6350_v60 = vld [vmem:[#allocation2 + $0xf8] sm:$0xff]  ;;  %v6351_v61 = vld [vmem:[#allocation2 + $0x108] sm:$0xff]  ;;  %417 = vst.msk [vmem:[#allocation2 + $0x1a2] sm:$0xff] %vm265_vm0, %v385_v6 }
  0x71   : > { %19265 = vmatmul.mubr.msk.f32.gmra.mrb[6].mxu0 %vm265_vm0, %v6336_v40  ;;  %18919 = vmatmul.mubr.msk.f32.gmra.mrb[14].mxu1 %vm265_vm0, %v6336_v40  ;;  %v6352_v63 = vld [vmem:[#allocation2 + $0x110] sm:$0xff]  ;;  %v6353_v2 = vld [vmem:[#allocation2 + $0x120] sm:$0xff]  ;;  %v19014_v62 = vld [vmem:[%s26644_s1 + $0x18] sm:$0xff] }
  0x72   : > { %6621 = vmatprep.mubr.f32.mxu0 %v23245_v0  ;;  %794 = vmatprep.mubr.f32.mxu1 %v23245_v0  ;;  %v6354_v4 = vld [vmem:[#allocation2 + $0x128] sm:$0xff]  ;;  %v6355_v7 = vld [vmem:[#allocation2 + $0x138] sm:$0xff] }
  0x73   : > { %v6356_v8 = vld [vmem:[#allocation2 + $0x140] sm:$0xff]  ;;  %v23725_v13 = vld [vmem:[#allocation2 + $0x49] sm:$0xff]  ;;  %v23732_v15 = vld [vmem:[#allocation2 + $0x51] sm:$0xff] }
  0x74   : > { %v23717_v12 = vld [vmem:[#allocation2 + $0x39] sm:$0xff]  ;;  %v510_v14 = vld [vmem:[#allocation2 + $0x150] sm:$0xff]  ;;  %v23739_v17 = vld [vmem:[#allocation2 + $0x61] sm:$0xff] }
  0x75   : > { %19266 = vmatmul.mubr.msk.f32.gmra.mrb[8].mxu0 %vm265_vm0, %v6337_v46  ;;  %18920 = vmatmul.mubr.msk.f32.gmra.mrb[16].mxu1 %vm265_vm0, %v6337_v46  ;;  %v511_v16 = vld [vmem:[#allocation2 + $0x158] sm:$0xff]  ;;  %v512_v18 = vld [vmem:[#allocation2 + $0x168] sm:$0xff]  ;;  %v513_v20 = vld [vmem:[#allocation2 + $0x170] sm:$0xff] }
  0x76   : > { %6627 = vmatprep.mubr.f32.mxu0 %v23245_v0  ;;  %800 = vmatprep.mubr.f32.mxu1 %v23245_v0  ;;  %v23746_v19 = vld [vmem:[#allocation2 + $0x69] sm:$0xff]  ;;  %v23753_v21 = vld [vmem:[#allocation2 + $0x79] sm:$0xff]  ;;  %v6925_v25 = vld [vmem:[#allocation2 + $0x81] sm:$0xff] }
  0x77   : > { %v1068_v26 = vld [vmem:[#allocation2 + $0x9] sm:$0xff]  ;;  %v6926_v27 = vld [vmem:[#allocation2 + $0x91] sm:$0xff]  ;;  %v1069_v28 = vld [vmem:[#allocation2 + $0x19] sm:$0xff] }
  0x78   : > { %v6927_v29 = vld [vmem:[#allocation2 + $0x99] sm:$0xff]  ;;  %v1070_v30 = vld [vmem:[#allocation2 + $0x21] sm:$0xff]  ;;  %v6928_v31 = vld [vmem:[#allocation2 + $0xa9] sm:$0xff] }
  0x79   : > { %19267 = vmatmul.mubr.msk.f32.gmra.mrb[10].mxu0 %vm265_vm0, %v6338_v48  ;;  %18921 = vmatmul.mubr.msk.f32.gmra.mrb[18].mxu1 %vm265_vm0, %v6338_v48  ;;  %v6929_v32 = vld [vmem:[#allocation2 + $0xb1] sm:$0xff]  ;;  %v6930_v33 = vld [vmem:[#allocation2 + $0xc1] sm:$0xff]  ;;  %v6931_v34 = vld [vmem:[#allocation2 + $0xc9] sm:$0xff] }
  0x7a   : > { %6633 = vmatprep.mubr.f32.mxu0 %v23245_v0  ;;  %806 = vmatprep.mubr.f32.mxu1 %v23245_v0  ;;  %v6932_v35 = vld [vmem:[#allocation2 + $0xd9] sm:$0xff]  ;;  %v6933_v36 = vld [vmem:[#allocation2 + $0xe1] sm:$0xff]  ;;  %v6934_v37 = vld [vmem:[#allocation2 + $0xf1] sm:$0xff] }
  0x7b   : > { %v6936_v39 = vld [vmem:[#allocation2 + $0x109] sm:$0xff]  ;;  %v6937_v40 = vld [vmem:[#allocation2 + $0x111] sm:$0xff]  ;;  %v6938_v41 = vld [vmem:[#allocation2 + $0x121] sm:$0xff] }
  0x7c   : > { %v6939_v42 = vld [vmem:[#allocation2 + $0x129] sm:$0xff]  ;;  %v6940_v43 = vld [vmem:[#allocation2 + $0x139] sm:$0xff]  ;;  %v6941_v44 = vld [vmem:[#allocation2 + $0x141] sm:$0xff] }
  0x7d   : > { %19268 = vmatmul.mubr.msk.f32.gmra.mrb[12].mxu0 %vm265_vm0, %v6339_v49  ;;  %18922 = vmatmul.mubr.msk.f32.gmra.mrb[20].mxu1 %vm265_vm0, %v6339_v49  ;;  %v6942_v45 = vld [vmem:[#allocation2 + $0x151] sm:$0xff]  ;;  %v6943_v46 = vld [vmem:[#allocation2 + $0x159] sm:$0xff]  ;;  %v6944_v47 = vld [vmem:[#allocation2 + $0x169] sm:$0xff] }
  0x7e   : > { %6639 = vmatprep.mubr.f32.mxu0 %v23245_v0  ;;  %812 = vmatprep.mubr.f32.mxu1 %v23245_v0  ;;  %v6945_v48 = vld [vmem:[#allocation2 + $0x171] sm:$0xff]  ;;  %v6946_v49 = vld [vmem:[#allocation2 + $0x181] sm:$0xff] }
  0x7f   : > { %v1652_v1 = vld [vmem:[#allocation2 + $0x2] sm:$0xff]  ;;  %v1653_v3 = vld [vmem:[#allocation2 + $0xa] sm:$0xff]  ;;  %v1654_v6 = vld [vmem:[#allocation2 + $0x1a] sm:$0xff] }
  0x80   : > { %v7528_v24 = vld [vmem:[#allocation2 + $0x15a] sm:$0xff] }
  0x81   : > { %19269 = vmatmul.mubr.msk.f32.gmra.mrb[14].mxu0 %vm265_vm0, %v6340_v50  ;;  %18923 = vmatmul.mubr.msk.f32.gmra.mrb[22].mxu1 %vm265_vm0, %v6340_v50  ;;  %v6947_v50 = vld [vmem:[#allocation2 + $0x189] sm:$0xff] }
  0x82   : > { %6645 = vmatprep.mubr.f32.mxu0 %v23245_v0  ;;  %818 = vmatprep.mubr.f32.mxu1 %v23245_v0 }
  0x85   : > { %19270 = vmatmul.mubr.msk.f32.gmra.mrb[16].mxu0 %vm265_vm0, %v6341_v51  ;;  %18924 = vmatmul.mubr.msk.f32.gmra.mrb[24].mxu1 %vm265_vm0, %v6341_v51  ;;  %v6948_v51 = vld [vmem:[#allocation2 + $0x199] sm:$0xff] }
  0x86   : > { %6651 = vmatprep.mubr.f32.mxu0 %v23245_v0  ;;  %824 = vmatprep.mubr.f32.mxu1 %v23245_v0 }
  0x89   : > { %19271 = vmatmul.mubr.msk.f32.gmra.mrb[18].mxu0 %vm265_vm0, %v6342_v52  ;;  %18925 = vmatmul.mubr.msk.f32.gmra.mrb[26].mxu1 %vm265_vm0, %v6342_v52  ;;  %v6949_v52 = vld [vmem:[#allocation2 + $0x1a1] sm:$0xff] }
  0x8a   : > { %6657 = vmatprep.mubr.f32.mxu0 %v23245_v0  ;;  %830 = vmatprep.mubr.f32.mxu1 %v23245_v0 }
  0x8d   : > { %19272 = vmatmul.mubr.msk.f32.gmra.mrb[20].mxu0 %vm265_vm0, %v6343_v53  ;;  %18926 = vmatmul.mubr.msk.f32.gmra.mrb[28].mxu1 %vm265_vm0, %v6343_v53  ;;  %v23872_v53 = vld [vmem:[#allocation2 + $0x32] sm:$0xff] }
  0x8e   : > { %6663 = vmatprep.mubr.f32.mxu0 %v23245_v0  ;;  %836 = vmatprep.mubr.f32.mxu1 %v23245_v0 }
  0x91   : > { %19273 = vmatmul.mubr.msk.f32.gmra.mrb[22].mxu0 %vm265_vm0, %v6344_v54  ;;  %18927 = vmatmul.mubr.msk.f32.gmra.mrb[30].mxu1 %vm265_vm0, %v6344_v54  ;;  %v23877_v54 = vld [vmem:[%s26644_s1 + $0x70] sm:$0xff] }
  0x92   : > { %6669 = vmatprep.mubr.f32.mxu0 %v23245_v0  ;;  %842 = vmatprep.mubr.f32.mxu1 %v23245_v0 }
  0x95   : > { %19274 = vmatmul.mubr.msk.f32.gmra.mrb[24].mxu0 %vm265_vm0, %v6345_v55  ;;  %18928 = vmatmul.mubr.msk.f32.gmra.mrb[32].mxu1 %vm265_vm0, %v6345_v55  ;;  %v8772_v55 = vcombine.high %v23877_v54, %v23877_v54 }
  0x96   : > { %6675 = vmatprep.mubr.f32.mxu0 %v23245_v0  ;;  %848 = vmatprep.mubr.f32.mxu1 %v23245_v0 }
  0x99   : > { %19275 = vmatmul.mubr.msk.f32.gmra.mrb[26].mxu0 %vm265_vm0, %v6346_v56  ;;  %18929 = vmatmul.mubr.msk.f32.gmra.mrb[34].mxu1 %vm265_vm0, %v6346_v56  ;;  %v23888_v56 = vld [vmem:[#allocation2 + $0x3a] sm:$0xff] }
  0x9a   : > { %6681 = vmatprep.mubr.f32.mxu0 %v23245_v0  ;;  %854 = vmatprep.mubr.f32.mxu1 %v23245_v0 }
  0x9d   : > { %19276 = vmatmul.mubr.msk.f32.gmra.mrb[28].mxu0 %vm265_vm0, %v6347_v57  ;;  %18930 = vmatmul.mubr.msk.f32.gmra.mrb[36].mxu1 %vm265_vm0, %v6347_v57  ;;  %v23896_v57 = vld [vmem:[#allocation2 + $0x4a] sm:$0xff] }
  0x9e   : > { %6687 = vmatprep.mubr.f32.mxu0 %v23245_v0  ;;  %860 = vmatprep.mubr.f32.mxu1 %v23245_v0 }
  0xa1   : > { %19277 = vmatmul.mubr.msk.f32.gmra.mrb[30].mxu0 %vm265_vm0, %v6348_v58  ;;  %18931 = vmatmul.mubr.msk.f32.gmra.mrb[38].mxu1 %vm265_vm0, %v6348_v58  ;;  %v23903_v58 = vld [vmem:[#allocation2 + $0x52] sm:$0xff] }
  0xa2   : > { %6693 = vmatprep.mubr.f32.mxu0 %v23245_v0  ;;  %866 = vmatprep.mubr.f32.mxu1 %v23245_v0 }
  0xa5   : > { %19278 = vmatmul.mubr.msk.f32.gmra.mrb[32].mxu0 %vm265_vm0, %v6349_v59  ;;  %18932 = vmatmul.mubr.msk.f32.gmra.mrb[40].mxu1 %vm265_vm0, %v6349_v59  ;;  %v23910_v59 = vld [vmem:[#allocation2 + $0x62] sm:$0xff] }
  0xa6   : > { %6699 = vmatprep.mubr.f32.mxu0 %v23245_v0  ;;  %872 = vmatprep.mubr.f32.mxu1 %v23245_v0 }
  0xa9   : > { %19279 = vmatmul.mubr.msk.f32.gmra.mrb[34].mxu0 %vm265_vm0, %v6350_v60  ;;  %18933 = vmatmul.mubr.msk.f32.gmra.mrb[42].mxu1 %vm265_vm0, %v6350_v60  ;;  %v23917_v60 = vld [vmem:[#allocation2 + $0x6a] sm:$0xff] }
  0xaa   : > { %6705 = vmatprep.mubr.f32.mxu0 %v23245_v0  ;;  %878 = vmatprep.mubr.f32.mxu1 %v23245_v0 }
  0xad   : > { %19280 = vmatmul.mubr.msk.f32.gmra.mrb[36].mxu0 %vm265_vm0, %v6351_v61  ;;  %18934 = vmatmul.mubr.msk.f32.gmra.mrb[44].mxu1 %vm265_vm0, %v6351_v61  ;;  %v23924_v61 = vld [vmem:[#allocation2 + $0x7a] sm:$0xff] }
  0xae   : > { %6711 = vmatprep.mubr.f32.mxu0 %v23245_v0  ;;  %884 = vmatprep.mubr.f32.mxu1 %v23245_v0 }
  0xb1   : > { %19281 = vmatmul.mubr.msk.f32.gmra.mrb[38].mxu0 %vm265_vm0, %v6352_v63  ;;  %18935 = vmatmul.mubr.msk.f32.gmra.mrb[46].mxu1 %vm265_vm0, %v6352_v63  ;;  %v23932_v63 = vld [vmem:[#allocation3] sm:$0xff] }
  0xb2   : > { %6717 = vmatprep.mubr.f32.mxu0 %v23245_v0  ;;  %890 = vmatprep.mubr.f32.mxu1 %v23245_v0 }
  0xb5   : > { %19282 = vmatmul.mubr.msk.f32.gmra.mrb[40].mxu0 %vm265_vm0, %v6353_v2  ;;  %18936 = vmatmul.mubr.msk.f32.gmra.mrb[48].mxu1 %vm265_vm0, %v6353_v2  ;;  %v2336_v2 = vcombine.high %v19014_v62, %v19014_v62 }
  0xb6   : > { %6723 = vmatprep.mubr.f32.mxu0 %v23245_v0  ;;  %896 = vmatprep.mubr.f32.mxu1 %v23245_v0 }
  0xb9   : > { %19283 = vmatmul.mubr.msk.f32.gmra.mrb[42].mxu0 %vm265_vm0, %v6354_v4  ;;  %18937 = vmatmul.mubr.msk.f32.gmra.mrb[50].mxu1 %vm265_vm0, %v6354_v4  ;;  %v7511_v4 = vld [vmem:[#allocation2 + $0x92] sm:$0xff] }
  0xba   : > { %6729 = vmatprep.mubr.f32.mxu0 %v23245_v0  ;;  %902 = vmatprep.mubr.f32.mxu1 %v23245_v0 }
  0xbd   : > { %19284 = vmatmul.mubr.msk.f32.gmra.mrb[44].mxu0 %vm265_vm0, %v6355_v7  ;;  %18938 = vmatmul.mubr.msk.f32.gmra.mrb[52].mxu1 %vm265_vm0, %v6355_v7  ;;  %v7512_v7 = vld [vmem:[#allocation2 + $0x9a] sm:$0xff] }
  0xbe   : > { %6735 = vmatprep.mubr.f32.mxu0 %v23245_v0  ;;  %908 = vmatprep.mubr.f32.mxu1 %v23245_v0 }
  0xc1   : > { %19285 = vmatmul.mubr.msk.f32.gmra.mrb[46].mxu0 %vm265_vm0, %v6356_v8  ;;  %18939 = vmatmul.mubr.msk.f32.gmra.mrb[54].mxu1 %vm265_vm0, %v6356_v8  ;;  %v1655_v8 = vld [vmem:[#allocation2 + $0x22] sm:$0xff] }
  0xc2   : > { %7182 = vmatprep.mubr.f32.mxu0 %v23245_v0  ;;  %914 = vmatprep.mubr.f32.mxu1 %v23245_v0 }
  0xc5   : > { %19297 = vmatmul.mubr.msk.f32.vlgmr.msra.gmra.mrb[0].mxu0 %vm265_vm0, %v23701_v9  ;;  %18940 = vmatmul.mubr.msk.f32.gmra.mrb[56].mxu1 %vm265_vm0, %v510_v14  ;;  %v7518_v14 = vld [vmem:[#allocation2 + $0xe2] sm:$0xff] }
  0xc6   : > { %19331 = vmatpush1.msk.msra.mxu0 %vm677_vm2, %v23588_v38  ;;  %7188 = vmatprep.mubr.f32.mxu0 %v23245_v0  ;;  %v6935_v38 = vld [vmem:[#allocation2 + $0xf9] sm:$0xff] }
  0xc7   : > { %19365 = vmatprep.subr.msk.mxu0 %vm677_vm2, %v8187_v11  ;;  %920 = vmatprep.mubr.f32.mxu1 %v23245_v0  ;;  %v7515_v11 = vld [vmem:[#allocation2 + $0xc2] sm:$0xff] }
  0xc9   : > { %19298 = vmatmul.mubr.msk.f32.gmra.mrb[2].mxu0 %vm265_vm0, %v23717_v12  ;;  %18941 = vmatmul.mubr.msk.f32.gmra.mrb[58].mxu1 %vm265_vm0, %v511_v16  ;;  %v7520_v16 = vld [vmem:[#allocation2 + $0xfa] sm:$0xff] }
  0xca   : > { %7194 = vmatprep.mubr.f32.mxu0 %v23245_v0  ;;  %926 = vmatprep.mubr.f32.mxu1 %v23245_v0 }
  0xcd   : > { %19299 = vmatmul.mubr.msk.f32.gmra.mrb[4].mxu0 %vm265_vm0, %v23725_v13  ;;  %18942 = vmatmul.mubr.msk.f32.gmra.mrb[60].mxu1 %vm265_vm0, %v512_v18  ;;  %v7522_v18 = vld [vmem:[#allocation2 + $0x112] sm:$0xff] }
  0xce   : > { %7200 = vmatprep.mubr.f32.mxu0 %v23245_v0  ;;  %932 = vmatprep.mubr.f32.mxu1 %v23245_v0 }
  0xd1   : > { %19300 = vmatmul.mubr.msk.f32.gmra.mrb[6].mxu0 %vm265_vm0, %v23732_v15  ;;  %18943 = vmatmul.mubr.msk.f32.gmra.mrb[62].mxu1 %vm265_vm0, %v513_v20  ;;  %v7524_v20 = vld [vmem:[#allocation2 + $0x12a] sm:$0xff] }
  0xd2   : > { %7206 = vmatprep.mubr.f32.mxu0 %v23245_v0  ;;  %1331 = vmatprep.mubr.f32.mxu1 %v23245_v0 }
  0xd5   : > { %19301 = vmatmul.mubr.msk.f32.gmra.mrb[8].mxu0 %vm265_vm0, %v23739_v17  ;;  %18947 = vmatmul.mubr.msk.f32.vlgmr.msra.gmra.mrb[0].mxu1 %vm265_vm0, %v1067_v23  ;;  %v7527_v23 = vld [vmem:[#allocation2 + $0x152] sm:$0xff] }
  0xd6   : > { %7212 = vmatprep.mubr.f32.mxu0 %v23245_v0  ;;  %1337 = vmatprep.mubr.f32.mxu1 %v23245_v0 }
  0xd7   : > { %18981 = vmatpush1.msk.msra.mxu1 %vm677_vm2, %v18979_v22  ;;  %v7526_v22 = vld [vmem:[#allocation2 + $0x142] sm:$0xff] }
  0xd8   : > { %19015 = vmatprep.subr.msk.mxu1 %vm677_vm2, %v2336_v2  ;;  %v8113_v2 = vld [vmem:[#allocation2 + $0x15b] sm:$0xff] }
  0xd9   : > { %19302 = vmatmul.mubr.msk.f32.gmra.mrb[10].mxu0 %vm265_vm0, %v23746_v19  ;;  %18948 = vmatmul.mubr.msk.f32.gmra.mrb[2].mxu1 %vm265_vm0, %v1068_v26  ;;  %v7530_v26 = vld [vmem:[#allocation2 + $0x172] sm:$0xff] }
  0xda   : > { %7218 = vmatprep.mubr.f32.mxu0 %v23245_v0  ;;  %1343 = vmatprep.mubr.f32.mxu1 %v23245_v0 }
  0xdd   : > { %19303 = vmatmul.mubr.msk.f32.gmra.mrb[12].mxu0 %vm265_vm0, %v23753_v21  ;;  %18949 = vmatmul.mubr.msk.f32.gmra.mrb[4].mxu1 %vm265_vm0, %v1069_v28  ;;  %v7532_v28 = vld [vmem:[#allocation2 + $0x18a] sm:$0xff] }
  0xde   : > { %7224 = vmatprep.mubr.f32.mxu0 %v23245_v0  ;;  %1349 = vmatprep.mubr.f32.mxu1 %v23245_v0 }
  0xe1   : > { %19304 = vmatmul.mubr.msk.f32.gmra.mrb[14].mxu0 %vm265_vm0, %v6925_v25  ;;  %18950 = vmatmul.mubr.msk.f32.gmra.mrb[6].mxu1 %vm265_vm0, %v1070_v30  ;;  %v7534_v30 = vld [vmem:[#allocation2 + $0x1a2] sm:$0xff] }
  0xe2   : > { %7230 = vmatprep.mubr.f32.mxu0 %v23245_v0  ;;  %1355 = vmatprep.mubr.f32.mxu1 %v23245_v0 }
  0xe5   : > { %19305 = vmatmul.mubr.msk.f32.gmra.mrb[16].mxu0 %vm265_vm0, %v6926_v27  ;;  %18951 = vmatmul.mubr.msk.f32.gmra.mrb[8].mxu1 %vm265_vm0, %v23701_v9  ;;  %v7513_v9 = vld [vmem:[#allocation2 + $0xaa] sm:$0xff] }
  0xe6   : > { %7236 = vmatprep.mubr.f32.mxu0 %v23245_v0  ;;  %1361 = vmatprep.mubr.f32.mxu1 %v23245_v0 }
  0xe9   : > { %19306 = vmatmul.mubr.msk.f32.gmra.mrb[18].mxu0 %vm265_vm0, %v6927_v29  ;;  %18952 = vmatmul.mubr.msk.f32.gmra.mrb[10].mxu1 %vm265_vm0, %v23717_v12  ;;  %v7516_v12 = vld [vmem:[#allocation2 + $0xca] sm:$0xff] }
  0xea   : > { %7242 = vmatprep.mubr.f32.mxu0 %v23245_v0  ;;  %1367 = vmatprep.mubr.f32.mxu1 %v23245_v0 }
  0xed   : > { %19307 = vmatmul.mubr.msk.f32.gmra.mrb[20].mxu0 %vm265_vm0, %v6928_v31  ;;  %18953 = vmatmul.mubr.msk.f32.gmra.mrb[12].mxu1 %vm265_vm0, %v23725_v13  ;;  %v7517_v13 = vld [vmem:[#allocation2 + $0xda] sm:$0xff] }
  0xee   : > { %7248 = vmatprep.mubr.f32.mxu0 %v23245_v0  ;;  %1373 = vmatprep.mubr.f32.mxu1 %v23245_v0 }
  0xf1   : > { %19308 = vmatmul.mubr.msk.f32.gmra.mrb[22].mxu0 %vm265_vm0, %v6929_v32  ;;  %18954 = vmatmul.mubr.msk.f32.gmra.mrb[14].mxu1 %vm265_vm0, %v23732_v15  ;;  %v7519_v15 = vld [vmem:[#allocation2 + $0xf2] sm:$0xff] }
  0xf2   : > { %7254 = vmatprep.mubr.f32.mxu0 %v23245_v0  ;;  %1379 = vmatprep.mubr.f32.mxu1 %v23245_v0 }
  0xf5   : > { %19309 = vmatmul.mubr.msk.f32.gmra.mrb[24].mxu0 %vm265_vm0, %v6930_v33  ;;  %18955 = vmatmul.mubr.msk.f32.gmra.mrb[16].mxu1 %vm265_vm0, %v23739_v17  ;;  %v7521_v17 = vld [vmem:[#allocation2 + $0x10a] sm:$0xff] }
  0xf6   : > { %7260 = vmatprep.mubr.f32.mxu0 %v23245_v0  ;;  %1385 = vmatprep.mubr.f32.mxu1 %v23245_v0 }
  0xf9   : > { %19310 = vmatmul.mubr.msk.f32.gmra.mrb[26].mxu0 %vm265_vm0, %v6931_v34  ;;  %18956 = vmatmul.mubr.msk.f32.gmra.mrb[18].mxu1 %vm265_vm0, %v23746_v19  ;;  %v7523_v19 = vld [vmem:[#allocation2 + $0x122] sm:$0xff] }
  0xfa   : > { %7266 = vmatprep.mubr.f32.mxu0 %v23245_v0  ;;  %1391 = vmatprep.mubr.f32.mxu1 %v23245_v0 }
  0xfd   : > { %19311 = vmatmul.mubr.msk.f32.gmra.mrb[28].mxu0 %vm265_vm0, %v6932_v35  ;;  %18957 = vmatmul.mubr.msk.f32.gmra.mrb[20].mxu1 %vm265_vm0, %v23753_v21  ;;  %v7525_v21 = vld [vmem:[#allocation2 + $0x13a] sm:$0xff] }
  0xfe   : > { %7272 = vmatprep.mubr.f32.mxu0 %v23245_v0  ;;  %1397 = vmatprep.mubr.f32.mxu1 %v23245_v0 }
 0x101   : > { %19312 = vmatmul.mubr.msk.f32.gmra.mrb[30].mxu0 %vm265_vm0, %v6933_v36  ;;  %18958 = vmatmul.mubr.msk.f32.gmra.mrb[22].mxu1 %vm265_vm0, %v6925_v25  ;;  %v7529_v25 = vld [vmem:[#allocation2 + $0x16a] sm:$0xff] }
 0x102   : > { %7278 = vmatprep.mubr.f32.mxu0 %v23245_v0  ;;  %1403 = vmatprep.mubr.f32.mxu1 %v23245_v0 }
 0x105   : > { %19313 = vmatmul.mubr.msk.f32.gmra.mrb[32].mxu0 %vm265_vm0, %v6934_v37  ;;  %18959 = vmatmul.mubr.msk.f32.gmra.mrb[24].mxu1 %vm265_vm0, %v6926_v27  ;;  %v7531_v27 = vld [vmem:[#allocation2 + $0x182] sm:$0xff] }
 0x106   : > { %7284 = vmatprep.mubr.f32.mxu0 %v23245_v0  ;;  %1409 = vmatprep.mubr.f32.mxu1 %v23245_v0 }
 0x109   : > { %19314 = vmatmul.mubr.msk.f32.gmra.mrb[34].mxu0 %vm265_vm0, %v6935_v38  ;;  %18960 = vmatmul.mubr.msk.f32.gmra.mrb[26].mxu1 %vm265_vm0, %v6927_v29  ;;  %v7533_v29 = vld [vmem:[#allocation2 + $0x19a] sm:$0xff] }
 0x10a   : > { %7290 = vmatprep.mubr.f32.mxu0 %v23245_v0  ;;  %1415 = vmatprep.mubr.f32.mxu1 %v23245_v0 }
 0x10d   : > { %19315 = vmatmul.mubr.msk.f32.gmra.mrb[36].mxu0 %vm265_vm0, %v6936_v39  ;;  %18961 = vmatmul.mubr.msk.f32.gmra.mrb[28].mxu1 %vm265_vm0, %v6928_v31  ;;  %v24045_v31 = vld [vmem:[#allocation2 + $0x33] sm:$0xff] }
 0x10e   : > { %7296 = vmatprep.mubr.f32.mxu0 %v23245_v0  ;;  %1421 = vmatprep.mubr.f32.mxu1 %v23245_v0 }
 0x111   : > { %19316 = vmatmul.mubr.msk.f32.gmra.mrb[38].mxu0 %vm265_vm0, %v6937_v40  ;;  %18962 = vmatmul.mubr.msk.f32.gmra.mrb[30].mxu1 %vm265_vm0, %v6929_v32  ;;  %v24050_v32 = vld [vmem:[%s26644_s1 + $0x78] sm:$0xff] }
 0x112   : > { %7302 = vmatprep.mubr.f32.mxu0 %v23245_v0  ;;  %1427 = vmatprep.mubr.f32.mxu1 %v23245_v0 }
 0x115   : > { %19317 = vmatmul.mubr.msk.f32.gmra.mrb[40].mxu0 %vm265_vm0, %v6938_v41  ;;  %18963 = vmatmul.mubr.msk.f32.gmra.mrb[32].mxu1 %vm265_vm0, %v6930_v33  ;;  %v9358_v33 = vcombine.high %v24050_v32, %v24050_v32 }
 0x116   : > { %7308 = vmatprep.mubr.f32.mxu0 %v23245_v0  ;;  %1433 = vmatprep.mubr.f32.mxu1 %v23245_v0 }
 0x119   : > { %19318 = vmatmul.mubr.msk.f32.gmra.mrb[42].mxu0 %vm265_vm0, %v6939_v42  ;;  %18964 = vmatmul.mubr.msk.f32.gmra.mrb[34].mxu1 %vm265_vm0, %v6931_v34  ;;  %v24061_v34 = vld [vmem:[#allocation2 + $0x3b] sm:$0xff] }
 0x11a   : > { %7314 = vmatprep.mubr.f32.mxu0 %v23245_v0  ;;  %1439 = vmatprep.mubr.f32.mxu1 %v23245_v0 }
 0x11d   : > { %19319 = vmatmul.mubr.msk.f32.gmra.mrb[44].mxu0 %vm265_vm0, %v6940_v43  ;;  %18965 = vmatmul.mubr.msk.f32.gmra.mrb[36].mxu1 %vm265_vm0, %v6932_v35  ;;  %v24069_v35 = vld [vmem:[#allocation2 + $0x4b] sm:$0xff] }
 0x11e   : > { %7320 = vmatprep.mubr.f32.mxu0 %v23245_v0  ;;  %1445 = vmatprep.mubr.f32.mxu1 %v23245_v0 }
 0x121   : > { %19320 = vmatmul.mubr.msk.f32.gmra.mrb[46].mxu0 %vm265_vm0, %v6941_v44  ;;  %18966 = vmatmul.mubr.msk.f32.gmra.mrb[38].mxu1 %vm265_vm0, %v6933_v36  ;;  %v24076_v36 = vld [vmem:[#allocation2 + $0x53] sm:$0xff] }
 0x122   : > { %7326 = vmatprep.mubr.f32.mxu0 %v23245_v0  ;;  %1451 = vmatprep.mubr.f32.mxu1 %v23245_v0 }
 0x125   : > { %19321 = vmatmul.mubr.msk.f32.gmra.mrb[48].mxu0 %vm265_vm0, %v6942_v45  ;;  %18967 = vmatmul.mubr.msk.f32.gmra.mrb[40].mxu1 %vm265_vm0, %v6934_v37  ;;  %v24083_v37 = vld [vmem:[#allocation2 + $0x63] sm:$0xff] }
 0x126   : > { %7332 = vmatprep.mubr.f32.mxu0 %v23245_v0  ;;  %1457 = vmatprep.mubr.f32.mxu1 %v23245_v0 }
 0x129   : > { %19322 = vmatmul.mubr.msk.f32.gmra.mrb[50].mxu0 %vm265_vm0, %v6943_v46  ;;  %18968 = vmatmul.mubr.msk.f32.gmra.mrb[42].mxu1 %vm265_vm0, %v6935_v38  ;;  %v24090_v38 = vld [vmem:[#allocation2 + $0x6b] sm:$0xff] }
 0x12a   : > { %7338 = vmatprep.mubr.f32.mxu0 %v23245_v0  ;;  %1463 = vmatprep.mubr.f32.mxu1 %v23245_v0 }
 0x12d   : > { %19323 = vmatmul.mubr.msk.f32.gmra.mrb[52].mxu0 %vm265_vm0, %v6944_v47  ;;  %18969 = vmatmul.mubr.msk.f32.gmra.mrb[44].mxu1 %vm265_vm0, %v6936_v39  ;;  %v24097_v39 = vld [vmem:[#allocation2 + $0x7b] sm:$0xff] }
 0x12e   : > { %7344 = vmatprep.mubr.f32.mxu0 %v23245_v0  ;;  %1469 = vmatprep.mubr.f32.mxu1 %v23245_v0 }
 0x131   : > { %19324 = vmatmul.mubr.msk.f32.gmra.mrb[54].mxu0 %vm265_vm0, %v6945_v48  ;;  %18970 = vmatmul.mubr.msk.f32.gmra.mrb[46].mxu1 %vm265_vm0, %v6937_v40  ;;  %v19049_v40 = vld [vmem:[%s26644_s1 + $0x20] sm:$0xff] }
 0x132   : > { %7350 = vmatprep.mubr.f32.mxu0 %v23245_v0  ;;  %1475 = vmatprep.mubr.f32.mxu1 %v23245_v0 }
 0x135   : > { %19325 = vmatmul.mubr.msk.f32.gmra.mrb[56].mxu0 %vm265_vm0, %v6946_v49  ;;  %18971 = vmatmul.mubr.msk.f32.gmra.mrb[48].mxu1 %vm265_vm0, %v6938_v41  ;;  %v2237_v41 = vld [vmem:[#allocation2 + $0x3] sm:$0xff]  ;;  %v8098_v49 = vld [vmem:[#allocation2 + $0xab] sm:$0xff] }
 0x136   : > { %7356 = vmatprep.mubr.f32.mxu0 %v23245_v0  ;;  %1481 = vmatprep.mubr.f32.mxu1 %v23245_v0 }
 0x139   : > { %19326 = vmatmul.mubr.msk.f32.gmra.mrb[58].mxu0 %vm265_vm0, %v6947_v50  ;;  %18972 = vmatmul.mubr.msk.f32.gmra.mrb[50].mxu1 %vm265_vm0, %v6939_v42  ;;  %v2921_v42 = vcombine.high %v19049_v40, %v19049_v40  ;;  %v8099_v50 = vld [vmem:[#allocation2 + $0xb3] sm:$0xff] }
 0x13a   : > { %7362 = vmatprep.mubr.f32.mxu0 %v23245_v0  ;;  %1487 = vmatprep.mubr.f32.mxu1 %v23245_v0 }
 0x13d   : > { %19327 = vmatmul.mubr.msk.f32.gmra.mrb[60].mxu0 %vm265_vm0, %v6948_v51  ;;  %18973 = vmatmul.mubr.msk.f32.gmra.mrb[52].mxu1 %vm265_vm0, %v6940_v43  ;;  %v8095_v43 = vld [vmem:[#allocation2 + $0x83] sm:$0xff] }
 0x13e   : > { %7368 = vmatprep.mubr.f32.mxu0 %v23245_v0  ;;  %1493 = vmatprep.mubr.f32.mxu1 %v23245_v0  ;;  %v8100_v51 = vld [vmem:[#allocation2 + $0xc3] sm:$0xff] }
 0x141   : > { %19328 = vmatmul.mubr.msk.f32.gmra.mrb[62].mxu0 %vm265_vm0, %v6949_v52  ;;  %18974 = vmatmul.mubr.msk.f32.gmra.mrb[54].mxu1 %vm265_vm0, %v6941_v44  ;;  %v2238_v44 = vld [vmem:[#allocation2 + $0xb] sm:$0xff] }
 0x142   : > { %7767 = vmatprep.mubr.f32.mxu0 %v23245_v0  ;;  %1499 = vmatprep.mubr.f32.mxu1 %v23245_v0  ;;  %v8101_v52 = vld [vmem:[#allocation2 + $0xcb] sm:$0xff] }
 0x145   : > { %19332 = vmatmul.mubr.msk.f32.vlgmr.msra.gmra.mrb[0].mxu0 %vm265_vm0, %v23872_v53  ;;  %18975 = vmatmul.mubr.msk.f32.gmra.mrb[56].mxu1 %vm265_vm0, %v6942_v45  ;;  %v8096_v45 = vld [vmem:[#allocation2 + $0x93] sm:$0xff] }
 0x146   : > { %19366 = vmatpush1.msk.msra.mxu0 %vm677_vm2, %v23706_v10  ;;  %7773 = vmatprep.mubr.f32.mxu0 %v23245_v0  ;;  %v7514_v10 = vld [vmem:[#allocation2 + $0xb2] sm:$0xff] }
 0x147   : > { %19400 = vmatprep.subr.msk.mxu0 %vm677_vm2, %v8772_v55  ;;  %1505 = vmatprep.mubr.f32.mxu1 %v23245_v0  ;;  %v8104_v55 = vld [vmem:[#allocation2 + $0xf3] sm:$0xff] }
 0x149   : > { %19333 = vmatmul.mubr.msk.f32.gmra.mrb[2].mxu0 %vm265_vm0, %v23888_v56  ;;  %18976 = vmatmul.mubr.msk.f32.gmra.mrb[58].mxu1 %vm265_vm0, %v6943_v46  ;;  %v2239_v46 = vld [vmem:[#allocation2 + $0x1b] sm:$0xff] }
 0x14a   : > { %7779 = vmatprep.mubr.f32.mxu0 %v23245_v0  ;;  %1511 = vmatprep.mubr.f32.mxu1 %v23245_v0 }
 0x14d   : > { %19334 = vmatmul.mubr.msk.f32.gmra.mrb[4].mxu0 %vm265_vm0, %v23896_v57  ;;  %18977 = vmatmul.mubr.msk.f32.gmra.mrb[60].mxu1 %vm265_vm0, %v6944_v47  ;;  %v8097_v47 = vld [vmem:[#allocation2 + $0x9b] sm:$0xff] }
 0x14e   : > { %7785 = vmatprep.mubr.f32.mxu0 %v23245_v0  ;;  %1517 = vmatprep.mubr.f32.mxu1 %v23245_v0 }
 0x151   : > { %19335 = vmatmul.mubr.msk.f32.gmra.mrb[6].mxu0 %vm265_vm0, %v23903_v58  ;;  %18978 = vmatmul.mubr.msk.f32.gmra.mrb[62].mxu1 %vm265_vm0, %v6945_v48  ;;  %v2240_v48 = vld [vmem:[#allocation2 + $0x23] sm:$0xff] }
 0x152   : > { %7791 = vmatprep.mubr.f32.mxu0 %v23245_v0  ;;  %1916 = vmatprep.mubr.f32.mxu1 %v23932_v63 }
 0x155   : > { %19336 = vmatmul.mubr.msk.f32.gmra.mrb[8].mxu0 %vm265_vm0, %v23910_v59  ;;  %18982 = vmatmul.mubr.msk.f32.vlgmr.msra.gmra.mrb[0].mxu1 %vm265_vm0, %v1652_v1  ;;  %v8112_v1 = vld [vmem:[#allocation2 + $0x153] sm:$0xff] }
 0x156   : > { %7797 = vmatprep.mubr.f32.mxu0 %v23245_v0  ;;  %1922 = vmatprep.mubr.f32.mxu1 %v23932_v63 }
 0x157   : > { %19016 = vmatpush1.msk.msra.mxu1 %vm677_vm2, %v19014_v62  ;;  %v8111_v62 = vld [vmem:[#allocation2 + $0x143] sm:$0xff] }
 0x158   : > { %19050 = vmatprep.subr.msk.mxu1 %vm677_vm2, %v2921_v42  ;;  %v8698_v42 = vld [vmem:[#allocation2 + $0x15c] sm:$0xff] }
 0x159   : > { %19337 = vmatmul.mubr.msk.f32.gmra.mrb[10].mxu0 %vm265_vm0, %v23917_v60  ;;  %18983 = vmatmul.mubr.msk.f32.gmra.mrb[2].mxu1 %vm265_vm0, %v1653_v3  ;;  %v8115_v3 = vld [vmem:[#allocation2 + $0x173] sm:$0xff] }
 0x15a   : > { %7803 = vmatprep.mubr.f32.mxu0 %v23245_v0  ;;  %v7510_v0 = vld [vmem:[#allocation2 + $0x82] sm:$0xff]  ;;  %1928 = vmatprep.mubr.f32.mxu1 %v23932_v63 }
 0x15d   : > { %19338 = vmatmul.mubr.msk.f32.gmra.mrb[12].mxu0 %vm265_vm0, %v23924_v61  ;;  %18984 = vmatmul.mubr.msk.f32.gmra.mrb[4].mxu1 %vm265_vm0, %v1654_v6  ;;  %v8117_v6 = vld [vmem:[#allocation2 + $0x18b] sm:$0xff] }
 0x15e   : > { %7809 = vmatprep.mubr.f32.mxu0 %v23932_v63  ;;  %1934 = vmatprep.mubr.f32.mxu1 %v23932_v63 }
 0x161   : > { %19339 = vmatmul.mubr.msk.f32.gmra.mrb[14].mxu0 %vm265_vm0, %v7510_v0  ;;  %18985 = vmatmul.mubr.msk.f32.gmra.mrb[6].mxu1 %vm265_vm0, %v1655_v8  ;;  %v8119_v8 = vld [vmem:[#allocation2 + $0x1a3] sm:$0xff] }
 0x162   : > { %7815 = vmatprep.mubr.f32.mxu0 %v23932_v63  ;;  %1940 = vmatprep.mubr.f32.mxu1 %v23932_v63 }
 0x165   : > { %19340 = vmatmul.mubr.msk.f32.gmra.mrb[16].mxu0 %vm265_vm0, %v7511_v4  ;;  %18986 = vmatmul.mubr.msk.f32.gmra.mrb[8].mxu1 %vm265_vm0, %v23872_v53  ;;  %v8102_v53 = vld [vmem:[#allocation2 + $0xdb] sm:$0xff] }
 0x166   : > { %7821 = vmatprep.mubr.f32.mxu0 %v23932_v63  ;;  %1946 = vmatprep.mubr.f32.mxu1 %v23932_v63 }
 0x169   : > { %19341 = vmatmul.mubr.msk.f32.gmra.mrb[18].mxu0 %vm265_vm0, %v7512_v7  ;;  %18987 = vmatmul.mubr.msk.f32.gmra.mrb[10].mxu1 %vm265_vm0, %v23888_v56  ;;  %v8105_v56 = vld [vmem:[#allocation2 + $0xfb] sm:$0xff] }
 0x16a   : > { %7827 = vmatprep.mubr.f32.mxu0 %v23932_v63  ;;  %1952 = vmatprep.mubr.f32.mxu1 %v23932_v63 }
 0x16d   : > { %19342 = vmatmul.mubr.msk.f32.gmra.mrb[20].mxu0 %vm265_vm0, %v7513_v9  ;;  %18988 = vmatmul.mubr.msk.f32.gmra.mrb[12].mxu1 %vm265_vm0, %v23896_v57  ;;  %v8106_v57 = vld [vmem:[#allocation2 + $0x10b] sm:$0xff] }
 0x16e   : > { %7833 = vmatprep.mubr.f32.mxu0 %v23932_v63  ;;  %1958 = vmatprep.mubr.f32.mxu1 %v23932_v63 }
 0x171   : > { %19343 = vmatmul.mubr.msk.f32.gmra.mrb[22].mxu0 %vm265_vm0, %v7514_v10  ;;  %18989 = vmatmul.mubr.msk.f32.gmra.mrb[14].mxu1 %vm265_vm0, %v23903_v58  ;;  %v8107_v58 = vld [vmem:[#allocation2 + $0x113] sm:$0xff] }
 0x172   : > { %7839 = vmatprep.mubr.f32.mxu0 %v23932_v63  ;;  %1964 = vmatprep.mubr.f32.mxu1 %v23932_v63 }
 0x175   : > { %19344 = vmatmul.mubr.msk.f32.gmra.mrb[24].mxu0 %vm265_vm0, %v7515_v11  ;;  %18990 = vmatmul.mubr.msk.f32.gmra.mrb[16].mxu1 %vm265_vm0, %v23910_v59  ;;  %v8108_v59 = vld [vmem:[#allocation2 + $0x123] sm:$0xff] }
 0x176   : > { %7845 = vmatprep.mubr.f32.mxu0 %v23932_v63  ;;  %1970 = vmatprep.mubr.f32.mxu1 %v23932_v63 }
 0x179   : > { %19345 = vmatmul.mubr.msk.f32.gmra.mrb[26].mxu0 %vm265_vm0, %v7516_v12  ;;  %18991 = vmatmul.mubr.msk.f32.gmra.mrb[18].mxu1 %vm265_vm0, %v23917_v60  ;;  %v8109_v60 = vld [vmem:[#allocation2 + $0x12b] sm:$0xff] }
 0x17a   : > { %7851 = vmatprep.mubr.f32.mxu0 %v23932_v63  ;;  %1976 = vmatprep.mubr.f32.mxu1 %v23932_v63 }
 0x17d   : > { %19346 = vmatmul.mubr.msk.f32.gmra.mrb[28].mxu0 %vm265_vm0, %v7517_v13  ;;  %18992 = vmatmul.mubr.msk.f32.gmra.mrb[20].mxu1 %vm265_vm0, %v23924_v61  ;;  %v8110_v61 = vld [vmem:[#allocation2 + $0x13b] sm:$0xff] }
 0x17e   : > { %7857 = vmatprep.mubr.f32.mxu0 %v23932_v63  ;;  %1982 = vmatprep.mubr.f32.mxu1 %v23932_v63 }
 0x181   : > { %19347 = vmatmul.mubr.msk.f32.gmra.mrb[30].mxu0 %vm265_vm0, %v7518_v14  ;;  %18993 = vmatmul.mubr.msk.f32.gmra.mrb[22].mxu1 %vm265_vm0, %v7510_v0  ;;  %v8114_v0 = vld [vmem:[#allocation2 + $0x16b] sm:$0xff] }
 0x182   : > { %7863 = vmatprep.mubr.f32.mxu0 %v23932_v63  ;;  %1988 = vmatprep.mubr.f32.mxu1 %v23932_v63 }
 0x185   : > { %19348 = vmatmul.mubr.msk.f32.gmra.mrb[32].mxu0 %vm265_vm0, %v7519_v15  ;;  %18994 = vmatmul.mubr.msk.f32.gmra.mrb[24].mxu1 %vm265_vm0, %v7511_v4  ;;  %v8116_v4 = vld [vmem:[#allocation2 + $0x183] sm:$0xff] }
 0x186   : > { %7869 = vmatprep.mubr.f32.mxu0 %v23932_v63  ;;  %1994 = vmatprep.mubr.f32.mxu1 %v23932_v63 }
 0x189   : > { %19349 = vmatmul.mubr.msk.f32.gmra.mrb[34].mxu0 %vm265_vm0, %v7520_v16  ;;  %18995 = vmatmul.mubr.msk.f32.gmra.mrb[26].mxu1 %vm265_vm0, %v7512_v7  ;;  %v8118_v7 = vld [vmem:[#allocation2 + $0x19b] sm:$0xff] }
 0x18a   : > { %7875 = vmatprep.mubr.f32.mxu0 %v23932_v63  ;;  %2000 = vmatprep.mubr.f32.mxu1 %v23932_v63 }
 0x18d   : > { %19350 = vmatmul.mubr.msk.f32.gmra.mrb[36].mxu0 %vm265_vm0, %v7521_v17  ;;  %18996 = vmatmul.mubr.msk.f32.gmra.mrb[28].mxu1 %vm265_vm0, %v7513_v9  ;;  %v24216_v9 = vld [vmem:[#allocation2 + $0x34] sm:$0xff] }
 0x18e   : > { %7881 = vmatprep.mubr.f32.mxu0 %v23932_v63  ;;  %2006 = vmatprep.mubr.f32.mxu1 %v23932_v63 }
 0x191   : > { %19351 = vmatmul.mubr.msk.f32.gmra.mrb[38].mxu0 %vm265_vm0, %v7522_v18  ;;  %18997 = vmatmul.mubr.msk.f32.gmra.mrb[30].mxu1 %vm265_vm0, %v7514_v10  ;;  %v24221_v10 = vld [vmem:[%s26644_s1 + $0x80] sm:$0xff] }
 0x192   : > { %7887 = vmatprep.mubr.f32.mxu0 %v23932_v63  ;;  %2012 = vmatprep.mubr.f32.mxu1 %v23932_v63 }
 0x195   : > { %19352 = vmatmul.mubr.msk.f32.gmra.mrb[40].mxu0 %vm265_vm0, %v7523_v19  ;;  %18998 = vmatmul.mubr.msk.f32.gmra.mrb[32].mxu1 %vm265_vm0, %v7515_v11  ;;  %v9943_v11 = vcombine.high %v24221_v10, %v24221_v10 }
 0x196   : > { %7893 = vmatprep.mubr.f32.mxu0 %v23932_v63  ;;  %2018 = vmatprep.mubr.f32.mxu1 %v23932_v63 }
 0x199   : > { %19353 = vmatmul.mubr.msk.f32.gmra.mrb[42].mxu0 %vm265_vm0, %v7524_v20  ;;  %18999 = vmatmul.mubr.msk.f32.gmra.mrb[34].mxu1 %vm265_vm0, %v7516_v12  ;;  %v24232_v12 = vld [vmem:[#allocation2 + $0x3c] sm:$0xff] }
 0x19a   : > { %7899 = vmatprep.mubr.f32.mxu0 %v23932_v63  ;;  %2024 = vmatprep.mubr.f32.mxu1 %v23932_v63 }
 0x19d   : > { %19354 = vmatmul.mubr.msk.f32.gmra.mrb[44].mxu0 %vm265_vm0, %v7525_v21  ;;  %19000 = vmatmul.mubr.msk.f32.gmra.mrb[36].mxu1 %vm265_vm0, %v7517_v13  ;;  %v24240_v13 = vld [vmem:[#allocation2 + $0x4c] sm:$0xff] }
 0x19e   : > { %7905 = vmatprep.mubr.f32.mxu0 %v23932_v63  ;;  %2030 = vmatprep.mubr.f32.mxu1 %v23932_v63 }
 0x1a1   : > { %19355 = vmatmul.mubr.msk.f32.gmra.mrb[46].mxu0 %vm265_vm0, %v7526_v22  ;;  %19001 = vmatmul.mubr.msk.f32.gmra.mrb[38].mxu1 %vm265_vm0, %v7518_v14  ;;  %v24247_v14 = vld [vmem:[#allocation2 + $0x54] sm:$0xff] }
 0x1a2   : > { %7911 = vmatprep.mubr.f32.mxu0 %v23932_v63  ;;  %2036 = vmatprep.mubr.f32.mxu1 %v23932_v63 }
 0x1a5   : > { %19356 = vmatmul.mubr.msk.f32.gmra.mrb[48].mxu0 %vm265_vm0, %v7527_v23  ;;  %19002 = vmatmul.mubr.msk.f32.gmra.mrb[40].mxu1 %vm265_vm0, %v7519_v15  ;;  %v24254_v15 = vld [vmem:[#allocation2 + $0x64] sm:$0xff] }
 0x1a6   : > { %7917 = vmatprep.mubr.f32.mxu0 %v23932_v63  ;;  %2042 = vmatprep.mubr.f32.mxu1 %v23932_v63 }
 0x1a9   : > { %19357 = vmatmul.mubr.msk.f32.gmra.mrb[50].mxu0 %vm265_vm0, %v7528_v24  ;;  %19003 = vmatmul.mubr.msk.f32.gmra.mrb[42].mxu1 %vm265_vm0, %v7520_v16  ;;  %v24261_v16 = vld [vmem:[#allocation2 + $0x6c] sm:$0xff] }
 0x1aa   : > { %7923 = vmatprep.mubr.f32.mxu0 %v23932_v63  ;;  %2048 = vmatprep.mubr.f32.mxu1 %v23932_v63 }
 0x1ad   : > { %19358 = vmatmul.mubr.msk.f32.gmra.mrb[52].mxu0 %vm265_vm0, %v7529_v25  ;;  %19004 = vmatmul.mubr.msk.f32.gmra.mrb[44].mxu1 %vm265_vm0, %v7521_v17  ;;  %v24268_v17 = vld [vmem:[#allocation2 + $0x7c] sm:$0xff] }
 0x1ae   : > { %7929 = vmatprep.mubr.f32.mxu0 %v23932_v63  ;;  %2054 = vmatprep.mubr.f32.mxu1 %v23932_v63 }
 0x1b1   : > { %19359 = vmatmul.mubr.msk.f32.gmra.mrb[54].mxu0 %vm265_vm0, %v7530_v26  ;;  %19005 = vmatmul.mubr.msk.f32.gmra.mrb[46].mxu1 %vm265_vm0, %v7522_v18  ;;  %v19084_v18 = vld [vmem:[%s26644_s1 + $0x28] sm:$0xff] }
 0x1b2   : > { %7935 = vmatprep.mubr.f32.mxu0 %v23932_v63  ;;  %2060 = vmatprep.mubr.f32.mxu1 %v23932_v63 }
 0x1b5   : > { %19360 = vmatmul.mubr.msk.f32.gmra.mrb[56].mxu0 %vm265_vm0, %v7531_v27  ;;  %19006 = vmatmul.mubr.msk.f32.gmra.mrb[48].mxu1 %vm265_vm0, %v7523_v19  ;;  %v2822_v19 = vld [vmem:[#allocation2 + $0x4] sm:$0xff]  ;;  %v8683_v27 = vld [vmem:[#allocation2 + $0xac] sm:$0xff] }
 0x1b6   : > { %7941 = vmatprep.mubr.f32.mxu0 %v23932_v63  ;;  %2066 = vmatprep.mubr.f32.mxu1 %v23932_v63 }
 0x1b9   : > { %19361 = vmatmul.mubr.msk.f32.gmra.mrb[58].mxu0 %vm265_vm0, %v7532_v28  ;;  %19007 = vmatmul.mubr.msk.f32.gmra.mrb[50].mxu1 %vm265_vm0, %v7524_v20  ;;  %v3507_v20 = vcombine.high %v19084_v18, %v19084_v18  ;;  %v8684_v28 = vld [vmem:[#allocation2 + $0xb4] sm:$0xff] }
 0x1ba   : > { %7947 = vmatprep.mubr.f32.mxu0 %v23932_v63  ;;  %2072 = vmatprep.mubr.f32.mxu1 %v23932_v63 }
 0x1bd   : > { %19362 = vmatmul.mubr.msk.f32.gmra.mrb[60].mxu0 %vm265_vm0, %v7533_v29  ;;  %19008 = vmatmul.mubr.msk.f32.gmra.mrb[52].mxu1 %vm265_vm0, %v7525_v21  ;;  %v8680_v21 = vld [vmem:[#allocation2 + $0x84] sm:$0xff] }
 0x1be   : > { %7953 = vmatprep.mubr.f32.mxu0 %v23932_v63  ;;  %2078 = vmatprep.mubr.f32.mxu1 %v23932_v63  ;;  %v8685_v29 = vld [vmem:[#allocation2 + $0xc4] sm:$0xff] }
 0x1c1   : > { %19363 = vmatmul.mubr.msk.f32.gmra.mrb[62].mxu0 %vm265_vm0, %v7534_v30  ;;  %19009 = vmatmul.mubr.msk.f32.gmra.mrb[54].mxu1 %vm265_vm0, %v7526_v22  ;;  %v2823_v22 = vld [vmem:[#allocation2 + $0xc] sm:$0xff] }
 0x1c2   : > { %8352 = vmatprep.mubr.f32.mxu0 %v23932_v63  ;;  %2084 = vmatprep.mubr.f32.mxu1 %v23932_v63  ;;  %v8686_v30 = vld [vmem:[#allocation2 + $0xcc] sm:$0xff] }
 0x1c5   : > { %19367 = vmatmul.mubr.msk.f32.vlgmr.msra.gmra.mrb[0].mxu0 %vm265_vm0, %v24045_v31  ;;  %19010 = vmatmul.mubr.msk.f32.gmra.mrb[56].mxu1 %vm265_vm0, %v7527_v23  ;;  %v8681_v23 = vld [vmem:[#allocation2 + $0x94] sm:$0xff] }
 0x1c6   : > { %19401 = vmatpush1.msk.msra.mxu0 %vm677_vm2, %v23877_v54  ;;  %8358 = vmatprep.mubr.f32.mxu0 %v23932_v63  ;;  %v8103_v54 = vld [vmem:[#allocation2 + $0xe3] sm:$0xff] }
 0x1c7   : > { %19435 = vmatprep.subr.msk.mxu0 %vm677_vm2, %v9358_v33  ;;  %2090 = vmatprep.mubr.f32.mxu1 %v23932_v63  ;;  %v8689_v33 = vld [vmem:[#allocation2 + $0xf4] sm:$0xff] }
 0x1c9   : > { %19368 = vmatmul.mubr.msk.f32.gmra.mrb[2].mxu0 %vm265_vm0, %v24061_v34  ;;  %19011 = vmatmul.mubr.msk.f32.gmra.mrb[58].mxu1 %vm265_vm0, %v7528_v24  ;;  %v2824_v24 = vld [vmem:[#allocation2 + $0x1c] sm:$0xff] }
 0x1ca   : > { %8364 = vmatprep.mubr.f32.mxu0 %v23932_v63  ;;  %2096 = vmatprep.mubr.f32.mxu1 %v23932_v63 }
 0x1cd   : > { %19369 = vmatmul.mubr.msk.f32.gmra.mrb[4].mxu0 %vm265_vm0, %v24069_v35  ;;  %19012 = vmatmul.mubr.msk.f32.gmra.mrb[60].mxu1 %vm265_vm0, %v7529_v25  ;;  %v8682_v25 = vld [vmem:[#allocation2 + $0x9c] sm:$0xff] }
 0x1ce   : > { %8370 = vmatprep.mubr.f32.mxu0 %v23932_v63  ;;  %2102 = vmatprep.mubr.f32.mxu1 %v23932_v63 }
 0x1d1   : > { %19370 = vmatmul.mubr.msk.f32.gmra.mrb[6].mxu0 %vm265_vm0, %v24076_v36  ;;  %19013 = vmatmul.mubr.msk.f32.gmra.mrb[62].mxu1 %vm265_vm0, %v7530_v26  ;;  %v2825_v26 = vld [vmem:[#allocation2 + $0x24] sm:$0xff] }
 0x1d2   : > { %8376 = vmatprep.mubr.f32.mxu0 %v23932_v63  ;;  %2501 = vmatprep.mubr.f32.mxu1 %v23932_v63 }
 0x1d5   : > { %19371 = vmatmul.mubr.msk.f32.gmra.mrb[8].mxu0 %vm265_vm0, %v24083_v37  ;;  %19017 = vmatmul.mubr.msk.f32.vlgmr.msra.gmra.mrb[0].mxu1 %vm265_vm0, %v2237_v41  ;;  %v8697_v41 = vld [vmem:[#allocation2 + $0x154] sm:$0xff] }
 0x1d6   : > { %8382 = vmatprep.mubr.f32.mxu0 %v23932_v63  ;;  %2507 = vmatprep.mubr.f32.mxu1 %v23932_v63 }
 0x1d7   : > { %19051 = vmatpush1.msk.msra.mxu1 %vm677_vm2, %v19049_v40  ;;  %v8696_v40 = vld [vmem:[#allocation2 + $0x144] sm:$0xff] }
 0x1d8   : > { %19085 = vmatprep.subr.msk.mxu1 %vm677_vm2, %v3507_v20  ;;  %v9284_v20 = vld [vmem:[#allocation2 + $0x170] sm:$0xff] }
 0x1d9   : > { %19372 = vmatmul.mubr.msk.f32.gmra.mrb[10].mxu0 %vm265_vm0, %v24090_v38  ;;  %19018 = vmatmul.mubr.msk.f32.gmra.mrb[2].mxu1 %vm265_vm0, %v2238_v44  ;;  %v8700_v44 = vld [vmem:[#allocation2 + $0x174] sm:$0xff] }
 0x1da   : > { %8388 = vmatprep.mubr.f32.mxu0 %v23932_v63  ;;  %2513 = vmatprep.mubr.f32.mxu1 %v23932_v63 }
 0x1dd   : > { %19373 = vmatmul.mubr.msk.f32.gmra.mrb[12].mxu0 %vm265_vm0, %v24097_v39  ;;  %19019 = vmatmul.mubr.msk.f32.gmra.mrb[4].mxu1 %vm265_vm0, %v2239_v46  ;;  %v8702_v46 = vld [vmem:[#allocation2 + $0x18c] sm:$0xff] }
 0x1de   : > { %8394 = vmatprep.mubr.f32.mxu0 %v23932_v63  ;;  %2519 = vmatprep.mubr.f32.mxu1 %v23932_v63 }
 0x1e1   : > { %19374 = vmatmul.mubr.msk.f32.gmra.mrb[14].mxu0 %vm265_vm0, %v8095_v43  ;;  %19020 = vmatmul.mubr.msk.f32.gmra.mrb[6].mxu1 %vm265_vm0, %v2240_v48  ;;  %v8704_v48 = vld [vmem:[#allocation2 + $0x1a4] sm:$0xff] }
 0x1e2   : > { %8400 = vmatprep.mubr.f32.mxu0 %v23932_v63  ;;  %2525 = vmatprep.mubr.f32.mxu1 %v23932_v63 }
 0x1e5   : > { %19375 = vmatmul.mubr.msk.f32.gmra.mrb[16].mxu0 %vm265_vm0, %v8096_v45  ;;  %19021 = vmatmul.mubr.msk.f32.gmra.mrb[8].mxu1 %vm265_vm0, %v24045_v31  ;;  %v8687_v31 = vld [vmem:[#allocation2 + $0xdc] sm:$0xff] }
 0x1e6   : > { %8406 = vmatprep.mubr.f32.mxu0 %v23932_v63  ;;  %2531 = vmatprep.mubr.f32.mxu1 %v23932_v63 }
 0x1e9   : > { %19376 = vmatmul.mubr.msk.f32.gmra.mrb[18].mxu0 %vm265_vm0, %v8097_v47  ;;  %19022 = vmatmul.mubr.msk.f32.gmra.mrb[10].mxu1 %vm265_vm0, %v24061_v34  ;;  %v8690_v34 = vld [vmem:[#allocation2 + $0xfc] sm:$0xff] }
 0x1ea   : > { %8412 = vmatprep.mubr.f32.mxu0 %v23932_v63  ;;  %2537 = vmatprep.mubr.f32.mxu1 %v23932_v63 }
 0x1ed   : > { %19377 = vmatmul.mubr.msk.f32.gmra.mrb[20].mxu0 %vm265_vm0, %v8098_v49  ;;  %19023 = vmatmul.mubr.msk.f32.gmra.mrb[12].mxu1 %vm265_vm0, %v24069_v35  ;;  %v8691_v35 = vld [vmem:[#allocation2 + $0x10c] sm:$0xff] }
 0x1ee   : > { %8418 = vmatprep.mubr.f32.mxu0 %v23932_v63  ;;  %2543 = vmatprep.mubr.f32.mxu1 %v23932_v63 }
 0x1f1   : > { %19378 = vmatmul.mubr.msk.f32.gmra.mrb[22].mxu0 %vm265_vm0, %v8099_v50  ;;  %19024 = vmatmul.mubr.msk.f32.gmra.mrb[14].mxu1 %vm265_vm0, %v24076_v36  ;;  %v8692_v36 = vld [vmem:[#allocation2 + $0x114] sm:$0xff] }
 0x1f2   : > { %8424 = vmatprep.mubr.f32.mxu0 %v23932_v63  ;;  %2549 = vmatprep.mubr.f32.mxu1 %v23932_v63 }
 0x1f5   : > { %19379 = vmatmul.mubr.msk.f32.gmra.mrb[24].mxu0 %vm265_vm0, %v8100_v51  ;;  %19025 = vmatmul.mubr.msk.f32.gmra.mrb[16].mxu1 %vm265_vm0, %v24083_v37  ;;  %v8693_v37 = vld [vmem:[#allocation2 + $0x124] sm:$0xff] }
 0x1f6   : > { %8430 = vmatprep.mubr.f32.mxu0 %v23932_v63  ;;  %2555 = vmatprep.mubr.f32.mxu1 %v23932_v63 }
 0x1f9   : > { %19380 = vmatmul.mubr.msk.f32.gmra.mrb[26].mxu0 %vm265_vm0, %v8101_v52  ;;  %19026 = vmatmul.mubr.msk.f32.gmra.mrb[18].mxu1 %vm265_vm0, %v24090_v38  ;;  %v8694_v38 = vld [vmem:[#allocation2 + $0x12c] sm:$0xff] }
 0x1fa   : > { %8436 = vmatprep.mubr.f32.mxu0 %v23932_v63  ;;  %2561 = vmatprep.mubr.f32.mxu1 %v23932_v63 }
 0x1fd   : > { %19381 = vmatmul.mubr.msk.f32.gmra.mrb[28].mxu0 %vm265_vm0, %v8102_v53  ;;  %19027 = vmatmul.mubr.msk.f32.gmra.mrb[20].mxu1 %vm265_vm0, %v24097_v39  ;;  %v8695_v39 = vld [vmem:[#allocation2 + $0x13c] sm:$0xff] }
 0x1fe   : > { %8442 = vmatprep.mubr.f32.mxu0 %v23932_v63  ;;  %2567 = vmatprep.mubr.f32.mxu1 %v23932_v63 }
 0x201   : > { %19382 = vmatmul.mubr.msk.f32.gmra.mrb[30].mxu0 %vm265_vm0, %v8103_v54  ;;  %19028 = vmatmul.mubr.msk.f32.gmra.mrb[22].mxu1 %vm265_vm0, %v8095_v43  ;;  %v8699_v43 = vld [vmem:[#allocation2 + $0x16c] sm:$0xff] }
 0x202   : > { %8448 = vmatprep.mubr.f32.mxu0 %v23932_v63  ;;  %2573 = vmatprep.mubr.f32.mxu1 %v23932_v63 }
 0x205   : > { %19383 = vmatmul.mubr.msk.f32.gmra.mrb[32].mxu0 %vm265_vm0, %v8104_v55  ;;  %19029 = vmatmul.mubr.msk.f32.gmra.mrb[24].mxu1 %vm265_vm0, %v8096_v45  ;;  %v8701_v45 = vld [vmem:[#allocation2 + $0x184] sm:$0xff] }
 0x206   : > { %8454 = vmatprep.mubr.f32.mxu0 %v23932_v63  ;;  %2579 = vmatprep.mubr.f32.mxu1 %v23932_v63 }
 0x209   : > { %19384 = vmatmul.mubr.msk.f32.gmra.mrb[34].mxu0 %vm265_vm0, %v8105_v56  ;;  %19030 = vmatmul.mubr.msk.f32.gmra.mrb[26].mxu1 %vm265_vm0, %v8097_v47  ;;  %v8703_v47 = vld [vmem:[#allocation2 + $0x19c] sm:$0xff] }
 0x20a   : > { %8460 = vmatprep.mubr.f32.mxu0 %v23932_v63  ;;  %2585 = vmatprep.mubr.f32.mxu1 %v23932_v63 }
 0x20d   : > { %19385 = vmatmul.mubr.msk.f32.gmra.mrb[36].mxu0 %vm265_vm0, %v8106_v57  ;;  %19031 = vmatmul.mubr.msk.f32.gmra.mrb[28].mxu1 %vm265_vm0, %v8098_v49  ;;  %v24387_v49 = vld [vmem:[#allocation2 + $0x48] sm:$0xff] }
 0x20e   : > { %8466 = vmatprep.mubr.f32.mxu0 %v23932_v63  ;;  %2591 = vmatprep.mubr.f32.mxu1 %v23932_v63 }
 0x211   : > { %19386 = vmatmul.mubr.msk.f32.gmra.mrb[38].mxu0 %vm265_vm0, %v8107_v58  ;;  %19032 = vmatmul.mubr.msk.f32.gmra.mrb[30].mxu1 %vm265_vm0, %v8099_v50  ;;  %v24392_v50 = vld [vmem:[%s26644_s1 + $0x88] sm:$0xff] }
 0x212   : > { %8472 = vmatprep.mubr.f32.mxu0 %v23932_v63  ;;  %2597 = vmatprep.mubr.f32.mxu1 %v23932_v63 }
 0x215   : > { %19387 = vmatmul.mubr.msk.f32.gmra.mrb[40].mxu0 %vm265_vm0, %v8108_v59  ;;  %19033 = vmatmul.mubr.msk.f32.gmra.mrb[32].mxu1 %vm265_vm0, %v8100_v51  ;;  %v10528_v51 = vcombine.high %v24392_v50, %v24392_v50 }
 0x216   : > { %8478 = vmatprep.mubr.f32.mxu0 %v23932_v63  ;;  %2603 = vmatprep.mubr.f32.mxu1 %v23932_v63 }
 0x219   : > { %19388 = vmatmul.mubr.msk.f32.gmra.mrb[42].mxu0 %vm265_vm0, %v8109_v60  ;;  %19034 = vmatmul.mubr.msk.f32.gmra.mrb[34].mxu1 %vm265_vm0, %v8101_v52  ;;  %v24403_v52 = vld [vmem:[#allocation2 + $0x50] sm:$0xff] }
 0x21a   : > { %8484 = vmatprep.mubr.f32.mxu0 %v23932_v63  ;;  %2609 = vmatprep.mubr.f32.mxu1 %v23932_v63 }
 0x21d   : > { %19389 = vmatmul.mubr.msk.f32.gmra.mrb[44].mxu0 %vm265_vm0, %v8110_v61  ;;  %19035 = vmatmul.mubr.msk.f32.gmra.mrb[36].mxu1 %vm265_vm0, %v8102_v53  ;;  %v24411_v53 = vld [vmem:[#allocation2 + $0x60] sm:$0xff] }
 0x21e   : > { %8490 = vmatprep.mubr.f32.mxu0 %v23932_v63  ;;  %2615 = vmatprep.mubr.f32.mxu1 %v23932_v63 }
 0x221   : > { %19390 = vmatmul.mubr.msk.f32.gmra.mrb[46].mxu0 %vm265_vm0, %v8111_v62  ;;  %19036 = vmatmul.mubr.msk.f32.gmra.mrb[38].mxu1 %vm265_vm0, %v8103_v54  ;;  %v24418_v54 = vld [vmem:[#allocation2 + $0x68] sm:$0xff] }
 0x222   : > { %8496 = vmatprep.mubr.f32.mxu0 %v23932_v63  ;;  %2621 = vmatprep.mubr.f32.mxu1 %v23932_v63 }
 0x225   : > { %19391 = vmatmul.mubr.msk.f32.gmra.mrb[48].mxu0 %vm265_vm0, %v8112_v1  ;;  %19037 = vmatmul.mubr.msk.f32.gmra.mrb[40].mxu1 %vm265_vm0, %v8104_v55  ;;  %v24425_v55 = vld [vmem:[#allocation2 + $0x78] sm:$0xff] }
 0x226   : > { %8502 = vmatprep.mubr.f32.mxu0 %v23932_v63  ;;  %2627 = vmatprep.mubr.f32.mxu1 %v23932_v63 }
 0x229   : > { %19392 = vmatmul.mubr.msk.f32.gmra.mrb[50].mxu0 %vm265_vm0, %v8113_v2  ;;  %19038 = vmatmul.mubr.msk.f32.gmra.mrb[42].mxu1 %vm265_vm0, %v8105_v56  ;;  %v24432_v56 = vld [vmem:[#allocation2 + $0x80] sm:$0xff] }
 0x22a   : > { %8508 = vmatprep.mubr.f32.mxu0 %v23932_v63  ;;  %2633 = vmatprep.mubr.f32.mxu1 %v23932_v63 }
 0x22d   : > { %19393 = vmatmul.mubr.msk.f32.gmra.mrb[52].mxu0 %vm265_vm0, %v8114_v0  ;;  %19039 = vmatmul.mubr.msk.f32.gmra.mrb[44].mxu1 %vm265_vm0, %v8106_v57  ;;  %v24439_v57 = vld [vmem:[#allocation2 + $0x90] sm:$0xff] }
 0x22e   : > { %8514 = vmatprep.mubr.f32.mxu0 %v23932_v63  ;;  %2639 = vmatprep.mubr.f32.mxu1 %v23932_v63 }
 0x231   : > { %19394 = vmatmul.mubr.msk.f32.gmra.mrb[54].mxu0 %vm265_vm0, %v8115_v3  ;;  %19040 = vmatmul.mubr.msk.f32.gmra.mrb[46].mxu1 %vm265_vm0, %v8107_v58  ;;  %v19119_v58 = vld [vmem:[%s26644_s1 + $0x30] sm:$0xff] }
 0x232   : > { %8520 = vmatprep.mubr.f32.mxu0 %v23932_v63  ;;  %2645 = vmatprep.mubr.f32.mxu1 %v23932_v63 }
 0x235   : > { %19395 = vmatmul.mubr.msk.f32.gmra.mrb[56].mxu0 %vm265_vm0, %v8116_v4  ;;  %19041 = vmatmul.mubr.msk.f32.gmra.mrb[48].mxu1 %vm265_vm0, %v8108_v59  ;;  %v24447_v59 = vld [vmem:[#allocation3] sm:$0xff] }
 0x236   : > { %8526 = vmatprep.mubr.f32.mxu0 %v23932_v63  ;;  %2651 = vmatprep.mubr.f32.mxu1 %v23932_v63  ;;  %v9269_v4 = vld [vmem:[#allocation2 + $0xc0] sm:$0xff] }
 0x239   : > { %19396 = vmatmul.mubr.msk.f32.gmra.mrb[58].mxu0 %vm265_vm0, %v8117_v6  ;;  %19042 = vmatmul.mubr.msk.f32.gmra.mrb[50].mxu1 %vm265_vm0, %v8109_v60  ;;  %v3408_v60 = vld [vmem:[#allocation2 + $0x18] sm:$0xff]  ;;  %v9270_v6 = vld [vmem:[#allocation2 + $0xc8] sm:$0xff] }
 0x23a   : > { %8532 = vmatprep.mubr.f32.mxu0 %v23932_v63  ;;  %2657 = vmatprep.mubr.f32.mxu1 %v23932_v63 }
 0x23d   : > { %19397 = vmatmul.mubr.msk.f32.gmra.mrb[60].mxu0 %vm265_vm0, %v8118_v7  ;;  %19043 = vmatmul.mubr.msk.f32.gmra.mrb[52].mxu1 %vm265_vm0, %v8110_v61  ;;  %v4092_v61 = vcombine.high %v19119_v58, %v19119_v58  ;;  %v9271_v7 = vld [vmem:[#allocation2 + $0xd8] sm:$0xff] }
 0x23e   : > { %8538 = vmatprep.mubr.f32.mxu0 %v23932_v63  ;;  %2663 = vmatprep.mubr.f32.mxu1 %v23932_v63 }
 0x241   : > { %19398 = vmatmul.mubr.msk.f32.gmra.mrb[62].mxu0 %vm265_vm0, %v8119_v8  ;;  %19044 = vmatmul.mubr.msk.f32.gmra.mrb[54].mxu1 %vm265_vm0, %v8111_v62  ;;  %v3409_v62 = vld [vmem:[#allocation2 + $0x20] sm:$0xff] }
 0x242   : > { %8937 = vmatprep.mubr.f32.mxu0 %v23932_v63  ;;  %2669 = vmatprep.mubr.f32.mxu1 %v23932_v63  ;;  %v9272_v8 = vld [vmem:[#allocation2 + $0xe0] sm:$0xff] }
 0x245   : > { %19402 = vmatmul.mubr.msk.f32.vlgmr.msra.gmra.mrb[0].mxu0 %vm265_vm0, %v24216_v9  ;;  %19045 = vmatmul.mubr.msk.f32.gmra.mrb[56].mxu1 %vm265_vm0, %v8112_v1  ;;  %v9267_v1 = vld [vmem:[#allocation2 + $0xa8] sm:$0xff] }
 0x246   : > { %19436 = vmatpush1.msk.msra.mxu0 %vm677_vm2, %v24050_v32  ;;  %8943 = vmatprep.mubr.f32.mxu0 %v23932_v63  ;;  %v8688_v32 = vld [vmem:[#allocation2 + $0xe4] sm:$0xff] }
 0x247   : > { %19470 = vmatprep.subr.msk.mxu0 %vm677_vm2, %v9943_v11  ;;  %2675 = vmatprep.mubr.f32.mxu1 %v23932_v63  ;;  %v9275_v11 = vld [vmem:[#allocation2 + $0x108] sm:$0xff] }
 0x249   : > { %19403 = vmatmul.mubr.msk.f32.gmra.mrb[2].mxu0 %vm265_vm0, %v24232_v12  ;;  %19046 = vmatmul.mubr.msk.f32.gmra.mrb[58].mxu1 %vm265_vm0, %v8113_v2  ;;  %v3410_v2 = vld [vmem:[#allocation2 + $0x30] sm:$0xff] }
 0x24a   : > { %8949 = vmatprep.mubr.f32.mxu0 %v23932_v63  ;;  %2681 = vmatprep.mubr.f32.mxu1 %v23932_v63 }
 0x24d   : > { %19404 = vmatmul.mubr.msk.f32.gmra.mrb[4].mxu0 %vm265_vm0, %v24240_v13  ;;  %19047 = vmatmul.mubr.msk.f32.gmra.mrb[60].mxu1 %vm265_vm0, %v8114_v0  ;;  %v9268_v0 = vld [vmem:[#allocation2 + $0xb0] sm:$0xff] }
 0x24e   : > { %8955 = vmatprep.mubr.f32.mxu0 %v23932_v63  ;;  %2687 = vmatprep.mubr.f32.mxu1 %v23932_v63 }
 0x251   : > { %19405 = vmatmul.mubr.msk.f32.gmra.mrb[6].mxu0 %vm265_vm0, %v24247_v14  ;;  %19048 = vmatmul.mubr.msk.f32.gmra.mrb[62].mxu1 %vm265_vm0, %v8115_v3  ;;  %v3411_v3 = vld [vmem:[#allocation2 + $0x38] sm:$0xff] }
 0x252   : > { %8961 = vmatprep.mubr.f32.mxu0 %v23932_v63  ;;  %3086 = vmatprep.mubr.f32.mxu1 %v23932_v63 }
 0x255   : > { %19406 = vmatmul.mubr.msk.f32.gmra.mrb[8].mxu0 %vm265_vm0, %v24254_v15  ;;  %19052 = vmatmul.mubr.msk.f32.vlgmr.msra.gmra.mrb[0].mxu1 %vm265_vm0, %v2822_v19  ;;  %v9283_v19 = vld [vmem:[#allocation2 + $0x168] sm:$0xff] }
 0x256   : > { %8967 = vmatprep.mubr.f32.mxu0 %v23932_v63  ;;  %3092 = vmatprep.mubr.f32.mxu1 %v23932_v63 }
 0x257   : > { %19086 = vmatpush1.msk.msra.mxu1 %vm677_vm2, %v19084_v18  ;;  %v9282_v18 = vld [vmem:[#allocation2 + $0x158] sm:$0xff] }
 0x258   : > { %19120 = vmatprep.subr.msk.mxu1 %vm677_vm2, %v4092_v61  ;;  %v9869_v61 = vld [vmem:[#allocation2 + $0x171] sm:$0xff] }
 0x259   : > { %19407 = vmatmul.mubr.msk.f32.gmra.mrb[10].mxu0 %vm265_vm0, %v24261_v16  ;;  %19053 = vmatmul.mubr.msk.f32.gmra.mrb[2].mxu1 %vm265_vm0, %v2823_v22  ;;  %v9286_v22 = vld [vmem:[#allocation2 + $0x188] sm:$0xff] }
 0x25a   : > { %8973 = vmatprep.mubr.f32.mxu0 %v23932_v63  ;;  %3098 = vmatprep.mubr.f32.mxu1 %v23932_v63 }
 0x25d   : > { %19408 = vmatmul.mubr.msk.f32.gmra.mrb[12].mxu0 %vm265_vm0, %v24268_v17  ;;  %19054 = vmatmul.mubr.msk.f32.gmra.mrb[4].mxu1 %vm265_vm0, %v2824_v24  ;;  %v9288_v24 = vld [vmem:[#allocation2 + $0x1a0] sm:$0xff] }
 0x25e   : > { %8979 = vmatprep.mubr.f32.mxu0 %v23932_v63  ;;  %3104 = vmatprep.mubr.f32.mxu1 %v23932_v63 }
 0x261   : > { %19409 = vmatmul.mubr.msk.f32.gmra.mrb[14].mxu0 %vm265_vm0, %v8680_v21  ;;  %19055 = vmatmul.mubr.msk.f32.gmra.mrb[6].mxu1 %vm265_vm0, %v2825_v26  ;;  %v9290_v26 = vld [vmem:[#allocation2 + $0x1b8] sm:$0xff] }
 0x262   : > { %8985 = vmatprep.mubr.f32.mxu0 %v23932_v63  ;;  %3110 = vmatprep.mubr.f32.mxu1 %v23932_v63 }
 0x265   : > { %19410 = vmatmul.mubr.msk.f32.gmra.mrb[16].mxu0 %vm265_vm0, %v8681_v23  ;;  %19056 = vmatmul.mubr.msk.f32.gmra.mrb[8].mxu1 %vm265_vm0, %v24216_v9  ;;  %v9273_v9 = vld [vmem:[#allocation2 + $0xf0] sm:$0xff] }
 0x266   : > { %8991 = vmatprep.mubr.f32.mxu0 %v23932_v63  ;;  %3116 = vmatprep.mubr.f32.mxu1 %v23932_v63 }
 0x269   : > { %19411 = vmatmul.mubr.msk.f32.gmra.mrb[18].mxu0 %vm265_vm0, %v8682_v25  ;;  %19057 = vmatmul.mubr.msk.f32.gmra.mrb[10].mxu1 %vm265_vm0, %v24232_v12  ;;  %v9276_v12 = vld [vmem:[#allocation2 + $0x110] sm:$0xff] }
 0x26a   : > { %8997 = vmatprep.mubr.f32.mxu0 %v23932_v63  ;;  %3122 = vmatprep.mubr.f32.mxu1 %v23932_v63 }
 0x26d   : > { %19412 = vmatmul.mubr.msk.f32.gmra.mrb[20].mxu0 %vm265_vm0, %v8683_v27  ;;  %19058 = vmatmul.mubr.msk.f32.gmra.mrb[12].mxu1 %vm265_vm0, %v24240_v13  ;;  %v9277_v13 = vld [vmem:[#allocation2 + $0x120] sm:$0xff] }
 0x26e   : > { %9003 = vmatprep.mubr.f32.mxu0 %v23932_v63  ;;  %3128 = vmatprep.mubr.f32.mxu1 %v23932_v63 }
 0x271   : > { %19413 = vmatmul.mubr.msk.f32.gmra.mrb[22].mxu0 %vm265_vm0, %v8684_v28  ;;  %19059 = vmatmul.mubr.msk.f32.gmra.mrb[14].mxu1 %vm265_vm0, %v24247_v14  ;;  %v9278_v14 = vld [vmem:[#allocation2 + $0x128] sm:$0xff] }
 0x272   : > { %9009 = vmatprep.mubr.f32.mxu0 %v23932_v63  ;;  %3134 = vmatprep.mubr.f32.mxu1 %v23932_v63 }
 0x275   : > { %19414 = vmatmul.mubr.msk.f32.gmra.mrb[24].mxu0 %vm265_vm0, %v8685_v29  ;;  %19060 = vmatmul.mubr.msk.f32.gmra.mrb[16].mxu1 %vm265_vm0, %v24254_v15  ;;  %v9279_v15 = vld [vmem:[#allocation2 + $0x138] sm:$0xff] }
 0x276   : > { %9015 = vmatprep.mubr.f32.mxu0 %v23932_v63  ;;  %3140 = vmatprep.mubr.f32.mxu1 %v23932_v63 }
 0x279   : > { %19415 = vmatmul.mubr.msk.f32.gmra.mrb[26].mxu0 %vm265_vm0, %v8686_v30  ;;  %19061 = vmatmul.mubr.msk.f32.gmra.mrb[18].mxu1 %vm265_vm0, %v24261_v16  ;;  %v9280_v16 = vld [vmem:[#allocation2 + $0x140] sm:$0xff] }
 0x27a   : > { %9021 = vmatprep.mubr.f32.mxu0 %v23932_v63  ;;  %3146 = vmatprep.mubr.f32.mxu1 %v23932_v63 }
 0x27d   : > { %19416 = vmatmul.mubr.msk.f32.gmra.mrb[28].mxu0 %vm265_vm0, %v8687_v31  ;;  %19062 = vmatmul.mubr.msk.f32.gmra.mrb[20].mxu1 %vm265_vm0, %v24268_v17  ;;  %v9281_v17 = vld [vmem:[#allocation2 + $0x150] sm:$0xff] }
 0x27e   : > { %9027 = vmatprep.mubr.f32.mxu0 %v23932_v63  ;;  %3152 = vmatprep.mubr.f32.mxu1 %v23932_v63 }
 0x281   : > { %19417 = vmatmul.mubr.msk.f32.gmra.mrb[30].mxu0 %vm265_vm0, %v8688_v32  ;;  %19063 = vmatmul.mubr.msk.f32.gmra.mrb[22].mxu1 %vm265_vm0, %v8680_v21  ;;  %v9285_v21 = vld [vmem:[#allocation2 + $0x180] sm:$0xff] }
 0x282   : > { %9033 = vmatprep.mubr.f32.mxu0 %v23932_v63  ;;  %3158 = vmatprep.mubr.f32.mxu1 %v23932_v63 }
 0x285   : > { %19418 = vmatmul.mubr.msk.f32.gmra.mrb[32].mxu0 %vm265_vm0, %v8689_v33  ;;  %19064 = vmatmul.mubr.msk.f32.gmra.mrb[24].mxu1 %vm265_vm0, %v8681_v23  ;;  %v9287_v23 = vld [vmem:[#allocation2 + $0x198] sm:$0xff] }
 0x286   : > { %9039 = vmatprep.mubr.f32.mxu0 %v23932_v63  ;;  %3164 = vmatprep.mubr.f32.mxu1 %v23932_v63 }
 0x289   : > { %19419 = vmatmul.mubr.msk.f32.gmra.mrb[34].mxu0 %vm265_vm0, %v8690_v34  ;;  %19065 = vmatmul.mubr.msk.f32.gmra.mrb[26].mxu1 %vm265_vm0, %v8682_v25  ;;  %v9289_v25 = vld [vmem:[#allocation2 + $0x1b0] sm:$0xff] }
 0x28a   : > { %9045 = vmatprep.mubr.f32.mxu0 %v23932_v63  ;;  %3170 = vmatprep.mubr.f32.mxu1 %v23932_v63 }
 0x28d   : > { %19420 = vmatmul.mubr.msk.f32.gmra.mrb[36].mxu0 %vm265_vm0, %v8691_v35  ;;  %19066 = vmatmul.mubr.msk.f32.gmra.mrb[28].mxu1 %vm265_vm0, %v8683_v27  ;;  %v24560_v27 = vld [vmem:[#allocation2 + $0x49] sm:$0xff] }
 0x28e   : > { %9051 = vmatprep.mubr.f32.mxu0 %v23932_v63  ;;  %3176 = vmatprep.mubr.f32.mxu1 %v23932_v63 }
 0x291   : > { %19421 = vmatmul.mubr.msk.f32.gmra.mrb[38].mxu0 %vm265_vm0, %v8692_v36  ;;  %19067 = vmatmul.mubr.msk.f32.gmra.mrb[30].mxu1 %vm265_vm0, %v8684_v28  ;;  %v24565_v28 = vld [vmem:[%s26644_s1 + $0x90] sm:$0xff] }
 0x292   : > { %9057 = vmatprep.mubr.f32.mxu0 %v23932_v63  ;;  %3182 = vmatprep.mubr.f32.mxu1 %v23932_v63 }
 0x295   : > { %19422 = vmatmul.mubr.msk.f32.gmra.mrb[40].mxu0 %vm265_vm0, %v8693_v37  ;;  %19068 = vmatmul.mubr.msk.f32.gmra.mrb[32].mxu1 %vm265_vm0, %v8685_v29  ;;  %v11113_v29 = vcombine.high %v24565_v28, %v24565_v28 }
 0x296   : > { %9063 = vmatprep.mubr.f32.mxu0 %v23932_v63  ;;  %3188 = vmatprep.mubr.f32.mxu1 %v23932_v63 }
 0x299   : > { %19423 = vmatmul.mubr.msk.f32.gmra.mrb[42].mxu0 %vm265_vm0, %v8694_v38  ;;  %19069 = vmatmul.mubr.msk.f32.gmra.mrb[34].mxu1 %vm265_vm0, %v8686_v30  ;;  %v24576_v30 = vld [vmem:[#allocation2 + $0x51] sm:$0xff] }
 0x29a   : > { %9069 = vmatprep.mubr.f32.mxu0 %v23932_v63  ;;  %3194 = vmatprep.mubr.f32.mxu1 %v23932_v63 }
 0x29d   : > { %19424 = vmatmul.mubr.msk.f32.gmra.mrb[44].mxu0 %vm265_vm0, %v8695_v39  ;;  %19070 = vmatmul.mubr.msk.f32.gmra.mrb[36].mxu1 %vm265_vm0, %v8687_v31  ;;  %v24584_v31 = vld [vmem:[#allocation2 + $0x61] sm:$0xff] }
 0x29e   : > { %9075 = vmatprep.mubr.f32.mxu0 %v23932_v63  ;;  %3200 = vmatprep.mubr.f32.mxu1 %v23932_v63 }
 0x2a1   : > { %19425 = vmatmul.mubr.msk.f32.gmra.mrb[46].mxu0 %vm265_vm0, %v8696_v40  ;;  %19071 = vmatmul.mubr.msk.f32.gmra.mrb[38].mxu1 %vm265_vm0, %v8688_v32  ;;  %v24591_v32 = vld [vmem:[#allocation2 + $0x69] sm:$0xff] }
 0x2a2   : > { %9081 = vmatprep.mubr.f32.mxu0 %v23932_v63  ;;  %3206 = vmatprep.mubr.f32.mxu1 %v23932_v63 }
 0x2a5   : > { %19426 = vmatmul.mubr.msk.f32.gmra.mrb[48].mxu0 %vm265_vm0, %v8697_v41  ;;  %19072 = vmatmul.mubr.msk.f32.gmra.mrb[40].mxu1 %vm265_vm0, %v8689_v33  ;;  %v24598_v33 = vld [vmem:[#allocation2 + $0x79] sm:$0xff] }
 0x2a6   : > { %9087 = vmatprep.mubr.f32.mxu0 %v23932_v63  ;;  %3212 = vmatprep.mubr.f32.mxu1 %v23932_v63 }
 0x2a9   : > { %19427 = vmatmul.mubr.msk.f32.gmra.mrb[50].mxu0 %vm265_vm0, %v8698_v42  ;;  %19073 = vmatmul.mubr.msk.f32.gmra.mrb[42].mxu1 %vm265_vm0, %v8690_v34  ;;  %v24605_v34 = vld [vmem:[#allocation2 + $0x81] sm:$0xff] }
 0x2aa   : > { %9093 = vmatprep.mubr.f32.mxu0 %v23932_v63  ;;  %3218 = vmatprep.mubr.f32.mxu1 %v23932_v63 }
 0x2ad   : > { %19428 = vmatmul.mubr.msk.f32.gmra.mrb[52].mxu0 %vm265_vm0, %v8699_v43  ;;  %19074 = vmatmul.mubr.msk.f32.gmra.mrb[44].mxu1 %vm265_vm0, %v8691_v35  ;;  %v24612_v35 = vld [vmem:[#allocation2 + $0x91] sm:$0xff] }
 0x2ae   : > { %9099 = vmatprep.mubr.f32.mxu0 %v23932_v63  ;;  %3224 = vmatprep.mubr.f32.mxu1 %v23932_v63 }
 0x2b1   : > { %19429 = vmatmul.mubr.msk.f32.gmra.mrb[54].mxu0 %vm265_vm0, %v8700_v44  ;;  %19075 = vmatmul.mubr.msk.f32.gmra.mrb[46].mxu1 %vm265_vm0, %v8692_v36  ;;  %v19154_v36 = vld [vmem:[%s26644_s1 + $0x38] sm:$0xff] }
 0x2b2   : > { %9105 = vmatprep.mubr.f32.mxu0 %v23932_v63  ;;  %3230 = vmatprep.mubr.f32.mxu1 %v23932_v63 }
 0x2b5   : > { %19430 = vmatmul.mubr.msk.f32.gmra.mrb[56].mxu0 %vm265_vm0, %v8701_v45  ;;  %19076 = vmatmul.mubr.msk.f32.gmra.mrb[48].mxu1 %vm265_vm0, %v8693_v37  ;;  %v3993_v37 = vld [vmem:[#allocation2 + $0x19] sm:$0xff]  ;;  %v9854_v45 = vld [vmem:[#allocation2 + $0xc1] sm:$0xff] }
 0x2b6   : > { %9111 = vmatprep.mubr.f32.mxu0 %v23932_v63  ;;  %3236 = vmatprep.mubr.f32.mxu1 %v23932_v63 }
 0x2b9   : > { %19431 = vmatmul.mubr.msk.f32.gmra.mrb[58].mxu0 %vm265_vm0, %v8702_v46  ;;  %19077 = vmatmul.mubr.msk.f32.gmra.mrb[50].mxu1 %vm265_vm0, %v8694_v38  ;;  %v4677_v38 = vcombine.high %v19154_v36, %v19154_v36  ;;  %v9855_v46 = vld [vmem:[#allocation2 + $0xc9] sm:$0xff] }
 0x2ba   : > { %9117 = vmatprep.mubr.f32.mxu0 %v23932_v63  ;;  %3242 = vmatprep.mubr.f32.mxu1 %v23932_v63 }
 0x2bd   : > { %19432 = vmatmul.mubr.msk.f32.gmra.mrb[60].mxu0 %vm265_vm0, %v8703_v47  ;;  %19078 = vmatmul.mubr.msk.f32.gmra.mrb[52].mxu1 %vm265_vm0, %v8695_v39  ;;  %v9851_v39 = vld [vmem:[#allocation2 + $0x99] sm:$0xff] }
 0x2be   : > { %9123 = vmatprep.mubr.f32.mxu0 %v23932_v63  ;;  %3248 = vmatprep.mubr.f32.mxu1 %v23932_v63  ;;  %v9856_v47 = vld [vmem:[#allocation2 + $0xd9] sm:$0xff] }
 0x2c1   : > { %19433 = vmatmul.mubr.msk.f32.gmra.mrb[62].mxu0 %vm265_vm0, %v8704_v48  ;;  %19079 = vmatmul.mubr.msk.f32.gmra.mrb[54].mxu1 %vm265_vm0, %v8696_v40  ;;  %v3994_v40 = vld [vmem:[#allocation2 + $0x21] sm:$0xff] }
 0x2c2   : > { %9523 = vmatprep.mubr.f32.mxu0 %v23932_v63  ;;  %3254 = vmatprep.mubr.f32.mxu1 %v23932_v63  ;;  %v9857_v48 = vld [vmem:[#allocation2 + $0xe1] sm:$0xff] }
 0x2c5   : > { %19437 = vmatmul.mubr.msk.f32.vlgmr.msra.gmra.mrb[0].mxu0 %vm265_vm0, %v24387_v49  ;;  %19080 = vmatmul.mubr.msk.f32.gmra.mrb[56].mxu1 %vm265_vm0, %v8697_v41  ;;  %v9852_v41 = vld [vmem:[#allocation2 + $0xa9] sm:$0xff] }
 0x2c6   : > { %19471 = vmatpush1.msk.msra.mxu0 %vm677_vm2, %v24221_v10  ;;  %9529 = vmatprep.mubr.f32.mxu0 %v23932_v63  ;;  %v9274_v10 = vld [vmem:[#allocation2 + $0xf8] sm:$0xff] }
 0x2c7   : > { %19505 = vmatprep.subr.msk.mxu0 %vm677_vm2, %v10528_v51  ;;  %3260 = vmatprep.mubr.f32.mxu1 %v23932_v63  ;;  %v9860_v51 = vld [vmem:[#allocation2 + $0x109] sm:$0xff] }
 0x2c9   : > { %19438 = vmatmul.mubr.msk.f32.gmra.mrb[2].mxu0 %vm265_vm0, %v24403_v52  ;;  %19081 = vmatmul.mubr.msk.f32.gmra.mrb[58].mxu1 %vm265_vm0, %v8698_v42  ;;  %v3995_v42 = vld [vmem:[#allocation2 + $0x31] sm:$0xff] }
 0x2ca   : > { %9535 = vmatprep.mubr.f32.mxu0 %v23932_v63  ;;  %3266 = vmatprep.mubr.f32.mxu1 %v23932_v63 }
 0x2cd   : > { %19439 = vmatmul.mubr.msk.f32.gmra.mrb[4].mxu0 %vm265_vm0, %v24411_v53  ;;  %19082 = vmatmul.mubr.msk.f32.gmra.mrb[60].mxu1 %vm265_vm0, %v8699_v43  ;;  %v9853_v43 = vld [vmem:[#allocation2 + $0xb1] sm:$0xff] }
 0x2ce   : > { %9541 = vmatprep.mubr.f32.mxu0 %v23932_v63  ;;  %3272 = vmatprep.mubr.f32.mxu1 %v23932_v63 }
 0x2d1   : > { %19440 = vmatmul.mubr.msk.f32.gmra.mrb[6].mxu0 %vm265_vm0, %v24418_v54  ;;  %19083 = vmatmul.mubr.msk.f32.gmra.mrb[62].mxu1 %vm265_vm0, %v8700_v44  ;;  %v3996_v44 = vld [vmem:[#allocation2 + $0x39] sm:$0xff] }
 0x2d2   : > { %9547 = vmatprep.mubr.f32.mxu0 %v23932_v63  ;;  %3672 = vmatprep.mubr.f32.mxu1 %v24447_v59 }
 0x2d5   : > { %19441 = vmatmul.mubr.msk.f32.gmra.mrb[8].mxu0 %vm265_vm0, %v24425_v55  ;;  %19087 = vmatmul.mubr.msk.f32.vlgmr.msra.gmra.mrb[0].mxu1 %vm265_vm0, %v3408_v60  ;;  %v9868_v60 = vld [vmem:[#allocation2 + $0x169] sm:$0xff] }
 0x2d6   : > { %9553 = vmatprep.mubr.f32.mxu0 %v23932_v63  ;;  %3678 = vmatprep.mubr.f32.mxu1 %v24447_v59 }
 0x2d7   : > { %19121 = vmatpush1.msk.msra.mxu1 %vm677_vm2, %v19119_v58  ;;  %v9867_v58 = vld [vmem:[#allocation2 + $0x159] sm:$0xff] }
 0x2d8   : > { %19155 = vmatprep.subr.msk.mxu1 %vm677_vm2, %v4677_v38  ;;  %v10454_v38 = vld [vmem:[#allocation2 + $0x172] sm:$0xff] }
 0x2d9   : > { %19442 = vmatmul.mubr.msk.f32.gmra.mrb[10].mxu0 %vm265_vm0, %v24432_v56  ;;  %19088 = vmatmul.mubr.msk.f32.gmra.mrb[2].mxu1 %vm265_vm0, %v3409_v62  ;;  %v9871_v62 = vld [vmem:[#allocation2 + $0x189] sm:$0xff] }
 0x2da   : > { %9559 = vmatprep.mubr.f32.mxu0 %v23932_v63  ;;  %v9266_v63 = vld [vmem:[#allocation2 + $0x98] sm:$0xff]  ;;  %3684 = vmatprep.mubr.f32.mxu1 %v24447_v59 }
 0x2dd   : > { %19443 = vmatmul.mubr.msk.f32.gmra.mrb[12].mxu0 %vm265_vm0, %v24439_v57  ;;  %19089 = vmatmul.mubr.msk.f32.gmra.mrb[4].mxu1 %vm265_vm0, %v3410_v2  ;;  %v9873_v2 = vld [vmem:[#allocation2 + $0x1a1] sm:$0xff] }
 0x2de   : > { %9565 = vmatprep.mubr.f32.mxu0 %v24447_v59  ;;  %3690 = vmatprep.mubr.f32.mxu1 %v24447_v59 }
 0x2e1   : > { %19444 = vmatmul.mubr.msk.f32.gmra.mrb[14].mxu0 %vm265_vm0, %v9266_v63  ;;  %19090 = vmatmul.mubr.msk.f32.gmra.mrb[6].mxu1 %vm265_vm0, %v3411_v3  ;;  %v9875_v3 = vld [vmem:[#allocation2 + $0x1b9] sm:$0xff] }
 0x2e2   : > { %9571 = vmatprep.mubr.f32.mxu0 %v24447_v59  ;;  %3696 = vmatprep.mubr.f32.mxu1 %v24447_v59 }
 0x2e5   : > { %19445 = vmatmul.mubr.msk.f32.gmra.mrb[16].mxu0 %vm265_vm0, %v9267_v1  ;;  %19091 = vmatmul.mubr.msk.f32.gmra.mrb[8].mxu1 %vm265_vm0, %v24387_v49  ;;  %v9858_v49 = vld [vmem:[#allocation2 + $0xf1] sm:$0xff] }
 0x2e6   : > { %9577 = vmatprep.mubr.f32.mxu0 %v24447_v59  ;;  %3702 = vmatprep.mubr.f32.mxu1 %v24447_v59 }
 0x2e9   : > { %19446 = vmatmul.mubr.msk.f32.gmra.mrb[18].mxu0 %vm265_vm0, %v9268_v0  ;;  %19092 = vmatmul.mubr.msk.f32.gmra.mrb[10].mxu1 %vm265_vm0, %v24403_v52  ;;  %v9861_v52 = vld [vmem:[#allocation2 + $0x111] sm:$0xff] }
 0x2ea   : > { %9583 = vmatprep.mubr.f32.mxu0 %v24447_v59  ;;  %3708 = vmatprep.mubr.f32.mxu1 %v24447_v59 }
 0x2ed   : > { %19447 = vmatmul.mubr.msk.f32.gmra.mrb[20].mxu0 %vm265_vm0, %v9269_v4  ;;  %19093 = vmatmul.mubr.msk.f32.gmra.mrb[12].mxu1 %vm265_vm0, %v24411_v53  ;;  %v9862_v53 = vld [vmem:[#allocation2 + $0x121] sm:$0xff] }
 0x2ee   : > { %9589 = vmatprep.mubr.f32.mxu0 %v24447_v59  ;;  %3714 = vmatprep.mubr.f32.mxu1 %v24447_v59 }
 0x2f1   : > { %19448 = vmatmul.mubr.msk.f32.gmra.mrb[22].mxu0 %vm265_vm0, %v9270_v6  ;;  %19094 = vmatmul.mubr.msk.f32.gmra.mrb[14].mxu1 %vm265_vm0, %v24418_v54  ;;  %v9863_v54 = vld [vmem:[#allocation2 + $0x129] sm:$0xff] }
 0x2f2   : > { %9595 = vmatprep.mubr.f32.mxu0 %v24447_v59  ;;  %3720 = vmatprep.mubr.f32.mxu1 %v24447_v59 }
 0x2f5   : > { %19449 = vmatmul.mubr.msk.f32.gmra.mrb[24].mxu0 %vm265_vm0, %v9271_v7  ;;  %19095 = vmatmul.mubr.msk.f32.gmra.mrb[16].mxu1 %vm265_vm0, %v24425_v55  ;;  %v9864_v55 = vld [vmem:[#allocation2 + $0x139] sm:$0xff] }
 0x2f6   : > { %9601 = vmatprep.mubr.f32.mxu0 %v24447_v59  ;;  %3726 = vmatprep.mubr.f32.mxu1 %v24447_v59 }
 0x2f9   : > { %19450 = vmatmul.mubr.msk.f32.gmra.mrb[26].mxu0 %vm265_vm0, %v9272_v8  ;;  %19096 = vmatmul.mubr.msk.f32.gmra.mrb[18].mxu1 %vm265_vm0, %v24432_v56  ;;  %v9865_v56 = vld [vmem:[#allocation2 + $0x141] sm:$0xff] }
 0x2fa   : > { %9607 = vmatprep.mubr.f32.mxu0 %v24447_v59  ;;  %3732 = vmatprep.mubr.f32.mxu1 %v24447_v59 }
 0x2fd   : > { %19451 = vmatmul.mubr.msk.f32.gmra.mrb[28].mxu0 %vm265_vm0, %v9273_v9  ;;  %19097 = vmatmul.mubr.msk.f32.gmra.mrb[20].mxu1 %vm265_vm0, %v24439_v57  ;;  %v9866_v57 = vld [vmem:[#allocation2 + $0x151] sm:$0xff] }
 0x2fe   : > { %9613 = vmatprep.mubr.f32.mxu0 %v24447_v59  ;;  %3738 = vmatprep.mubr.f32.mxu1 %v24447_v59 }
 0x301   : > { %19452 = vmatmul.mubr.msk.f32.gmra.mrb[30].mxu0 %vm265_vm0, %v9274_v10  ;;  %19098 = vmatmul.mubr.msk.f32.gmra.mrb[22].mxu1 %vm265_vm0, %v9266_v63  ;;  %v9870_v63 = vld [vmem:[#allocation2 + $0x181] sm:$0xff] }
 0x302   : > { %9619 = vmatprep.mubr.f32.mxu0 %v24447_v59  ;;  %3744 = vmatprep.mubr.f32.mxu1 %v24447_v59 }
 0x305   : > { %19453 = vmatmul.mubr.msk.f32.gmra.mrb[32].mxu0 %vm265_vm0, %v9275_v11  ;;  %19099 = vmatmul.mubr.msk.f32.gmra.mrb[24].mxu1 %vm265_vm0, %v9267_v1  ;;  %v9872_v1 = vld [vmem:[#allocation2 + $0x199] sm:$0xff] }
 0x306   : > { %9625 = vmatprep.mubr.f32.mxu0 %v24447_v59  ;;  %3750 = vmatprep.mubr.f32.mxu1 %v24447_v59 }
 0x309   : > { %19454 = vmatmul.mubr.msk.f32.gmra.mrb[34].mxu0 %vm265_vm0, %v9276_v12  ;;  %19100 = vmatmul.mubr.msk.f32.gmra.mrb[26].mxu1 %vm265_vm0, %v9268_v0  ;;  %v9874_v0 = vld [vmem:[#allocation2 + $0x1b1] sm:$0xff] }
 0x30a   : > { %9631 = vmatprep.mubr.f32.mxu0 %v24447_v59  ;;  %3756 = vmatprep.mubr.f32.mxu1 %v24447_v59 }
 0x30d   : > { %19455 = vmatmul.mubr.msk.f32.gmra.mrb[36].mxu0 %vm265_vm0, %v9277_v13  ;;  %19101 = vmatmul.mubr.msk.f32.gmra.mrb[28].mxu1 %vm265_vm0, %v9269_v4  ;;  %v24731_v4 = vld [vmem:[#allocation2 + $0x4a] sm:$0xff] }
 0x30e   : > { %9637 = vmatprep.mubr.f32.mxu0 %v24447_v59  ;;  %3762 = vmatprep.mubr.f32.mxu1 %v24447_v59 }
 0x311   : > { %19456 = vmatmul.mubr.msk.f32.gmra.mrb[38].mxu0 %vm265_vm0, %v9278_v14  ;;  %19102 = vmatmul.mubr.msk.f32.gmra.mrb[30].mxu1 %vm265_vm0, %v9270_v6  ;;  %v24736_v6 = vld [vmem:[%s26644_s1 + $0x98] sm:$0xff] }
 0x312   : > { %9643 = vmatprep.mubr.f32.mxu0 %v24447_v59  ;;  %3768 = vmatprep.mubr.f32.mxu1 %v24447_v59 }
 0x315   : > { %19457 = vmatmul.mubr.msk.f32.gmra.mrb[40].mxu0 %vm265_vm0, %v9279_v15  ;;  %19103 = vmatmul.mubr.msk.f32.gmra.mrb[32].mxu1 %vm265_vm0, %v9271_v7  ;;  %v11698_v7 = vcombine.high %v24736_v6, %v24736_v6 }
 0x316   : > { %9649 = vmatprep.mubr.f32.mxu0 %v24447_v59  ;;  %3774 = vmatprep.mubr.f32.mxu1 %v24447_v59 }
 0x319   : > { %19458 = vmatmul.mubr.msk.f32.gmra.mrb[42].mxu0 %vm265_vm0, %v9280_v16  ;;  %19104 = vmatmul.mubr.msk.f32.gmra.mrb[34].mxu1 %vm265_vm0, %v9272_v8  ;;  %v24747_v8 = vld [vmem:[#allocation2 + $0x52] sm:$0xff] }
 0x31a   : > { %9655 = vmatprep.mubr.f32.mxu0 %v24447_v59  ;;  %3780 = vmatprep.mubr.f32.mxu1 %v24447_v59 }
 0x31d   : > { %19459 = vmatmul.mubr.msk.f32.gmra.mrb[44].mxu0 %vm265_vm0, %v9281_v17  ;;  %19105 = vmatmul.mubr.msk.f32.gmra.mrb[36].mxu1 %vm265_vm0, %v9273_v9  ;;  %v24755_v9 = vld [vmem:[#allocation2 + $0x62] sm:$0xff] }
 0x31e   : > { %9661 = vmatprep.mubr.f32.mxu0 %v24447_v59  ;;  %3786 = vmatprep.mubr.f32.mxu1 %v24447_v59 }
 0x321   : > { %19460 = vmatmul.mubr.msk.f32.gmra.mrb[46].mxu0 %vm265_vm0, %v9282_v18  ;;  %19106 = vmatmul.mubr.msk.f32.gmra.mrb[38].mxu1 %vm265_vm0, %v9274_v10  ;;  %v24762_v10 = vld [vmem:[#allocation2 + $0x6a] sm:$0xff] }
 0x322   : > { %9667 = vmatprep.mubr.f32.mxu0 %v24447_v59  ;;  %3792 = vmatprep.mubr.f32.mxu1 %v24447_v59 }
 0x325   : > { %19461 = vmatmul.mubr.msk.f32.gmra.mrb[48].mxu0 %vm265_vm0, %v9283_v19  ;;  %19107 = vmatmul.mubr.msk.f32.gmra.mrb[40].mxu1 %vm265_vm0, %v9275_v11  ;;  %v24769_v11 = vld [vmem:[#allocation2 + $0x7a] sm:$0xff] }
 0x326   : > { %9673 = vmatprep.mubr.f32.mxu0 %v24447_v59  ;;  %3798 = vmatprep.mubr.f32.mxu1 %v24447_v59 }
 0x329   : > { %19462 = vmatmul.mubr.msk.f32.gmra.mrb[50].mxu0 %vm265_vm0, %v9284_v20  ;;  %19108 = vmatmul.mubr.msk.f32.gmra.mrb[42].mxu1 %vm265_vm0, %v9276_v12  ;;  %v24776_v12 = vld [vmem:[#allocation2 + $0x82] sm:$0xff] }
 0x32a   : > { %9679 = vmatprep.mubr.f32.mxu0 %v24447_v59  ;;  %3804 = vmatprep.mubr.f32.mxu1 %v24447_v59 }
 0x32d   : > { %19463 = vmatmul.mubr.msk.f32.gmra.mrb[52].mxu0 %vm265_vm0, %v9285_v21  ;;  %19109 = vmatmul.mubr.msk.f32.gmra.mrb[44].mxu1 %vm265_vm0, %v9277_v13  ;;  %v24783_v13 = vld [vmem:[#allocation2 + $0x92] sm:$0xff] }
 0x32e   : > { %9685 = vmatprep.mubr.f32.mxu0 %v24447_v59  ;;  %3810 = vmatprep.mubr.f32.mxu1 %v24447_v59 }
 0x331   : > { %19464 = vmatmul.mubr.msk.f32.gmra.mrb[54].mxu0 %vm265_vm0, %v9286_v22  ;;  %19110 = vmatmul.mubr.msk.f32.gmra.mrb[46].mxu1 %vm265_vm0, %v9278_v14  ;;  %v19189_v14 = vld [vmem:[%s26644_s1 + $0x40] sm:$0xff] }
 0x332   : > { %9691 = vmatprep.mubr.f32.mxu0 %v24447_v59  ;;  %3816 = vmatprep.mubr.f32.mxu1 %v24447_v59 }
 0x335   : > { %19465 = vmatmul.mubr.msk.f32.gmra.mrb[56].mxu0 %vm265_vm0, %v9287_v23  ;;  %19111 = vmatmul.mubr.msk.f32.gmra.mrb[48].mxu1 %vm265_vm0, %v9279_v15  ;;  %v4578_v15 = vld [vmem:[#allocation2 + $0x1a] sm:$0xff]  ;;  %v10439_v23 = vld [vmem:[#allocation2 + $0xc2] sm:$0xff] }
 0x336   : > { %9697 = vmatprep.mubr.f32.mxu0 %v24447_v59  ;;  %3822 = vmatprep.mubr.f32.mxu1 %v24447_v59 }
 0x339   : > { %19466 = vmatmul.mubr.msk.f32.gmra.mrb[58].mxu0 %vm265_vm0, %v9288_v24  ;;  %19112 = vmatmul.mubr.msk.f32.gmra.mrb[50].mxu1 %vm265_vm0, %v9280_v16  ;;  %v5262_v16 = vcombine.high %v19189_v14, %v19189_v14  ;;  %v10440_v24 = vld [vmem:[#allocation2 + $0xca] sm:$0xff] }
 0x33a   : > { %9703 = vmatprep.mubr.f32.mxu0 %v24447_v59  ;;  %3828 = vmatprep.mubr.f32.mxu1 %v24447_v59 }
 0x33d   : > { %19467 = vmatmul.mubr.msk.f32.gmra.mrb[60].mxu0 %vm265_vm0, %v9289_v25  ;;  %19113 = vmatmul.mubr.msk.f32.gmra.mrb[52].mxu1 %vm265_vm0, %v9281_v17  ;;  %v10436_v17 = vld [vmem:[#allocation2 + $0x9a] sm:$0xff] }
 0x33e   : > { %9709 = vmatprep.mubr.f32.mxu0 %v24447_v59  ;;  %3834 = vmatprep.mubr.f32.mxu1 %v24447_v59  ;;  %v10441_v25 = vld [vmem:[#allocation2 + $0xda] sm:$0xff] }
 0x341   : > { %19468 = vmatmul.mubr.msk.f32.gmra.mrb[62].mxu0 %vm265_vm0, %v9290_v26  ;;  %19114 = vmatmul.mubr.msk.f32.gmra.mrb[54].mxu1 %vm265_vm0, %v9282_v18  ;;  %v4579_v18 = vld [vmem:[#allocation2 + $0x22] sm:$0xff] }
 0x342   : > { %10108 = vmatprep.mubr.f32.mxu0 %v24447_v59  ;;  %3840 = vmatprep.mubr.f32.mxu1 %v24447_v59  ;;  %v10442_v26 = vld [vmem:[#allocation2 + $0xe2] sm:$0xff] }
 0x345   : > { %19472 = vmatmul.mubr.msk.f32.vlgmr.msra.gmra.mrb[0].mxu0 %vm265_vm0, %v24560_v27  ;;  %19115 = vmatmul.mubr.msk.f32.gmra.mrb[56].mxu1 %vm265_vm0, %v9283_v19  ;;  %v10437_v19 = vld [vmem:[#allocation2 + $0xaa] sm:$0xff] }
 0x346   : > { %19506 = vmatpush1.msk.msra.mxu0 %vm677_vm2, %v24392_v50  ;;  %10114 = vmatprep.mubr.f32.mxu0 %v24447_v59  ;;  %v9859_v50 = vld [vmem:[#allocation2 + $0xf9] sm:$0xff] }
 0x347   : > { %19540 = vmatprep.subr.msk.mxu0 %vm677_vm2, %v11113_v29  ;;  %3846 = vmatprep.mubr.f32.mxu1 %v24447_v59  ;;  %v10445_v29 = vld [vmem:[#allocation2 + $0x10a] sm:$0xff] }
 0x349   : > { %19473 = vmatmul.mubr.msk.f32.gmra.mrb[2].mxu0 %vm265_vm0, %v24576_v30  ;;  %19116 = vmatmul.mubr.msk.f32.gmra.mrb[58].mxu1 %vm265_vm0, %v9284_v20  ;;  %v4580_v20 = vld [vmem:[#allocation2 + $0x32] sm:$0xff] }
 0x34a   : > { %10120 = vmatprep.mubr.f32.mxu0 %v24447_v59  ;;  %3852 = vmatprep.mubr.f32.mxu1 %v24447_v59 }
 0x34d   : > { %19474 = vmatmul.mubr.msk.f32.gmra.mrb[4].mxu0 %vm265_vm0, %v24584_v31  ;;  %19117 = vmatmul.mubr.msk.f32.gmra.mrb[60].mxu1 %vm265_vm0, %v9285_v21  ;;  %v10438_v21 = vld [vmem:[#allocation2 + $0xb2] sm:$0xff] }
 0x34e   : > { %10126 = vmatprep.mubr.f32.mxu0 %v24447_v59  ;;  %3858 = vmatprep.mubr.f32.mxu1 %v24447_v59 }
 0x351   : > { %19475 = vmatmul.mubr.msk.f32.gmra.mrb[6].mxu0 %vm265_vm0, %v24591_v32  ;;  %19118 = vmatmul.mubr.msk.f32.gmra.mrb[62].mxu1 %vm265_vm0, %v9286_v22  ;;  %v4581_v22 = vld [vmem:[#allocation2 + $0x3a] sm:$0xff] }
 0x352   : > { %10132 = vmatprep.mubr.f32.mxu0 %v24447_v59  ;;  %4257 = vmatprep.mubr.f32.mxu1 %v24447_v59 }
 0x355   : > { %19476 = vmatmul.mubr.msk.f32.gmra.mrb[8].mxu0 %vm265_vm0, %v24598_v33  ;;  %19122 = vmatmul.mubr.msk.f32.vlgmr.msra.gmra.mrb[0].mxu1 %vm265_vm0, %v3993_v37  ;;  %v10453_v37 = vld [vmem:[#allocation2 + $0x16a] sm:$0xff] }
 0x356   : > { %10138 = vmatprep.mubr.f32.mxu0 %v24447_v59  ;;  %4263 = vmatprep.mubr.f32.mxu1 %v24447_v59 }
 0x357   : > { %19156 = vmatpush1.msk.msra.mxu1 %vm677_vm2, %v19154_v36  ;;  %v10452_v36 = vld [vmem:[#allocation2 + $0x15a] sm:$0xff] }
 0x358   : > { %19190 = vmatprep.subr.msk.mxu1 %vm677_vm2, %v5262_v16  ;;  %v11040_v16 = vld [vmem:[#allocation2 + $0x183] sm:$0xff] }
 0x359   : > { %19477 = vmatmul.mubr.msk.f32.gmra.mrb[10].mxu0 %vm265_vm0, %v24605_v34  ;;  %19123 = vmatmul.mubr.msk.f32.gmra.mrb[2].mxu1 %vm265_vm0, %v3994_v40  ;;  %v10456_v40 = vld [vmem:[#allocation2 + $0x18a] sm:$0xff] }
 0x35a   : > { %10144 = vmatprep.mubr.f32.mxu0 %v24447_v59  ;;  %4269 = vmatprep.mubr.f32.mxu1 %v24447_v59 }
 0x35d   : > { %19478 = vmatmul.mubr.msk.f32.gmra.mrb[12].mxu0 %vm265_vm0, %v24612_v35  ;;  %19124 = vmatmul.mubr.msk.f32.gmra.mrb[4].mxu1 %vm265_vm0, %v3995_v42  ;;  %v10458_v42 = vld [vmem:[#allocation2 + $0x1a2] sm:$0xff] }
 0x35e   : > { %10150 = vmatprep.mubr.f32.mxu0 %v24447_v59  ;;  %4275 = vmatprep.mubr.f32.mxu1 %v24447_v59 }
 0x361   : > { %19479 = vmatmul.mubr.msk.f32.gmra.mrb[14].mxu0 %vm265_vm0, %v9851_v39  ;;  %19125 = vmatmul.mubr.msk.f32.gmra.mrb[6].mxu1 %vm265_vm0, %v3996_v44  ;;  %v10460_v44 = vld [vmem:[#allocation2 + $0x1ba] sm:$0xff] }
 0x362   : > { %10156 = vmatprep.mubr.f32.mxu0 %v24447_v59  ;;  %4281 = vmatprep.mubr.f32.mxu1 %v24447_v59 }
 0x365   : > { %19480 = vmatmul.mubr.msk.f32.gmra.mrb[16].mxu0 %vm265_vm0, %v9852_v41  ;;  %19126 = vmatmul.mubr.msk.f32.gmra.mrb[8].mxu1 %vm265_vm0, %v24560_v27  ;;  %v10443_v27 = vld [vmem:[#allocation2 + $0xf2] sm:$0xff] }
 0x366   : > { %10162 = vmatprep.mubr.f32.mxu0 %v24447_v59  ;;  %4287 = vmatprep.mubr.f32.mxu1 %v24447_v59 }
 0x369   : > { %19481 = vmatmul.mubr.msk.f32.gmra.mrb[18].mxu0 %vm265_vm0, %v9853_v43  ;;  %19127 = vmatmul.mubr.msk.f32.gmra.mrb[10].mxu1 %vm265_vm0, %v24576_v30  ;;  %v10446_v30 = vld [vmem:[#allocation2 + $0x112] sm:$0xff] }
 0x36a   : > { %10168 = vmatprep.mubr.f32.mxu0 %v24447_v59  ;;  %4293 = vmatprep.mubr.f32.mxu1 %v24447_v59 }
 0x36d   : > { %19482 = vmatmul.mubr.msk.f32.gmra.mrb[20].mxu0 %vm265_vm0, %v9854_v45  ;;  %19128 = vmatmul.mubr.msk.f32.gmra.mrb[12].mxu1 %vm265_vm0, %v24584_v31  ;;  %v10447_v31 = vld [vmem:[#allocation2 + $0x122] sm:$0xff] }
 0x36e   : > { %10174 = vmatprep.mubr.f32.mxu0 %v24447_v59  ;;  %4299 = vmatprep.mubr.f32.mxu1 %v24447_v59 }
 0x371   : > { %19483 = vmatmul.mubr.msk.f32.gmra.mrb[22].mxu0 %vm265_vm0, %v9855_v46  ;;  %19129 = vmatmul.mubr.msk.f32.gmra.mrb[14].mxu1 %vm265_vm0, %v24591_v32  ;;  %v10448_v32 = vld [vmem:[#allocation2 + $0x12a] sm:$0xff] }
 0x372   : > { %10180 = vmatprep.mubr.f32.mxu0 %v24447_v59  ;;  %4305 = vmatprep.mubr.f32.mxu1 %v24447_v59 }
 0x375   : > { %19484 = vmatmul.mubr.msk.f32.gmra.mrb[24].mxu0 %vm265_vm0, %v9856_v47  ;;  %19130 = vmatmul.mubr.msk.f32.gmra.mrb[16].mxu1 %vm265_vm0, %v24598_v33  ;;  %v10449_v33 = vld [vmem:[#allocation2 + $0x13a] sm:$0xff] }
 0x376   : > { %10186 = vmatprep.mubr.f32.mxu0 %v24447_v59  ;;  %4311 = vmatprep.mubr.f32.mxu1 %v24447_v59 }
 0x379   : > { %19485 = vmatmul.mubr.msk.f32.gmra.mrb[26].mxu0 %vm265_vm0, %v9857_v48  ;;  %19131 = vmatmul.mubr.msk.f32.gmra.mrb[18].mxu1 %vm265_vm0, %v24605_v34  ;;  %v10450_v34 = vld [vmem:[#allocation2 + $0x142] sm:$0xff] }
 0x37a   : > { %10192 = vmatprep.mubr.f32.mxu0 %v24447_v59  ;;  %4317 = vmatprep.mubr.f32.mxu1 %v24447_v59 }
 0x37d   : > { %19486 = vmatmul.mubr.msk.f32.gmra.mrb[28].mxu0 %vm265_vm0, %v9858_v49  ;;  %19132 = vmatmul.mubr.msk.f32.gmra.mrb[20].mxu1 %vm265_vm0, %v24612_v35  ;;  %v10451_v35 = vld [vmem:[#allocation2 + $0x152] sm:$0xff] }
 0x37e   : > { %10198 = vmatprep.mubr.f32.mxu0 %v24447_v59  ;;  %4323 = vmatprep.mubr.f32.mxu1 %v24447_v59 }
 0x381   : > { %19487 = vmatmul.mubr.msk.f32.gmra.mrb[30].mxu0 %vm265_vm0, %v9859_v50  ;;  %19133 = vmatmul.mubr.msk.f32.gmra.mrb[22].mxu1 %vm265_vm0, %v9851_v39  ;;  %v10455_v39 = vld [vmem:[#allocation2 + $0x182] sm:$0xff] }
 0x382   : > { %10204 = vmatprep.mubr.f32.mxu0 %v24447_v59  ;;  %4329 = vmatprep.mubr.f32.mxu1 %v24447_v59 }
 0x385   : > { %19488 = vmatmul.mubr.msk.f32.gmra.mrb[32].mxu0 %vm265_vm0, %v9860_v51  ;;  %19134 = vmatmul.mubr.msk.f32.gmra.mrb[24].mxu1 %vm265_vm0, %v9852_v41  ;;  %v10457_v41 = vld [vmem:[#allocation2 + $0x19a] sm:$0xff] }
 0x386   : > { %10210 = vmatprep.mubr.f32.mxu0 %v24447_v59  ;;  %4335 = vmatprep.mubr.f32.mxu1 %v24447_v59 }
 0x389   : > { %19489 = vmatmul.mubr.msk.f32.gmra.mrb[34].mxu0 %vm265_vm0, %v9861_v52  ;;  %19135 = vmatmul.mubr.msk.f32.gmra.mrb[26].mxu1 %vm265_vm0, %v9853_v43  ;;  %v10459_v43 = vld [vmem:[#allocation2 + $0x1b2] sm:$0xff] }
 0x38a   : > { %10216 = vmatprep.mubr.f32.mxu0 %v24447_v59  ;;  %4341 = vmatprep.mubr.f32.mxu1 %v24447_v59 }
 0x38d   : > { %19490 = vmatmul.mubr.msk.f32.gmra.mrb[36].mxu0 %vm265_vm0, %v9862_v53  ;;  %19136 = vmatmul.mubr.msk.f32.gmra.mrb[28].mxu1 %vm265_vm0, %v9854_v45  ;;  %v24902_v45 = vld [vmem:[#allocation2 + $0x4b] sm:$0xff] }
 0x38e   : > { %10222 = vmatprep.mubr.f32.mxu0 %v24447_v59  ;;  %4347 = vmatprep.mubr.f32.mxu1 %v24447_v59 }
 0x391   : > { %19491 = vmatmul.mubr.msk.f32.gmra.mrb[38].mxu0 %vm265_vm0, %v9863_v54  ;;  %19137 = vmatmul.mubr.msk.f32.gmra.mrb[30].mxu1 %vm265_vm0, %v9855_v46  ;;  %v24907_v46 = vld [vmem:[%s26644_s1 + $0xa0] sm:$0xff] }
 0x392   : > { %10228 = vmatprep.mubr.f32.mxu0 %v24447_v59  ;;  %4353 = vmatprep.mubr.f32.mxu1 %v24447_v59 }
 0x395   : > { %19492 = vmatmul.mubr.msk.f32.gmra.mrb[40].mxu0 %vm265_vm0, %v9864_v55  ;;  %19138 = vmatmul.mubr.msk.f32.gmra.mrb[32].mxu1 %vm265_vm0, %v9856_v47  ;;  %v12284_v47 = vcombine.high %v24907_v46, %v24907_v46 }
 0x396   : > { %10234 = vmatprep.mubr.f32.mxu0 %v24447_v59  ;;  %4359 = vmatprep.mubr.f32.mxu1 %v24447_v59 }
 0x399   : > { %19493 = vmatmul.mubr.msk.f32.gmra.mrb[42].mxu0 %vm265_vm0, %v9865_v56  ;;  %19139 = vmatmul.mubr.msk.f32.gmra.mrb[34].mxu1 %vm265_vm0, %v9857_v48  ;;  %v24918_v48 = vld [vmem:[#allocation2 + $0x53] sm:$0xff] }
 0x39a   : > { %10240 = vmatprep.mubr.f32.mxu0 %v24447_v59  ;;  %4365 = vmatprep.mubr.f32.mxu1 %v24447_v59 }
 0x39d   : > { %19494 = vmatmul.mubr.msk.f32.gmra.mrb[44].mxu0 %vm265_vm0, %v9866_v57  ;;  %19140 = vmatmul.mubr.msk.f32.gmra.mrb[36].mxu1 %vm265_vm0, %v9858_v49  ;;  %v24926_v49 = vld [vmem:[#allocation2 + $0x63] sm:$0xff] }
 0x39e   : > { %10246 = vmatprep.mubr.f32.mxu0 %v24447_v59  ;;  %4371 = vmatprep.mubr.f32.mxu1 %v24447_v59 }
 0x3a1   : > { %19495 = vmatmul.mubr.msk.f32.gmra.mrb[46].mxu0 %vm265_vm0, %v9867_v58  ;;  %19141 = vmatmul.mubr.msk.f32.gmra.mrb[38].mxu1 %vm265_vm0, %v9859_v50  ;;  %v24933_v50 = vld [vmem:[#allocation2 + $0x6b] sm:$0xff] }
 0x3a2   : > { %10252 = vmatprep.mubr.f32.mxu0 %v24447_v59  ;;  %4377 = vmatprep.mubr.f32.mxu1 %v24447_v59 }
 0x3a5   : > { %19496 = vmatmul.mubr.msk.f32.gmra.mrb[48].mxu0 %vm265_vm0, %v9868_v60  ;;  %19142 = vmatmul.mubr.msk.f32.gmra.mrb[40].mxu1 %vm265_vm0, %v9860_v51  ;;  %v24940_v51 = vld [vmem:[#allocation2 + $0x7b] sm:$0xff] }
 0x3a6   : > { %10258 = vmatprep.mubr.f32.mxu0 %v24447_v59  ;;  %4383 = vmatprep.mubr.f32.mxu1 %v24447_v59 }
 0x3a9   : > { %19497 = vmatmul.mubr.msk.f32.gmra.mrb[50].mxu0 %vm265_vm0, %v9869_v61  ;;  %19143 = vmatmul.mubr.msk.f32.gmra.mrb[42].mxu1 %vm265_vm0, %v9861_v52  ;;  %v24947_v52 = vld [vmem:[#allocation2 + $0x83] sm:$0xff] }
 0x3aa   : > { %10264 = vmatprep.mubr.f32.mxu0 %v24447_v59  ;;  %4389 = vmatprep.mubr.f32.mxu1 %v24447_v59 }
 0x3ad   : > { %19498 = vmatmul.mubr.msk.f32.gmra.mrb[52].mxu0 %vm265_vm0, %v9870_v63  ;;  %19144 = vmatmul.mubr.msk.f32.gmra.mrb[44].mxu1 %vm265_vm0, %v9862_v53  ;;  %v24954_v53 = vld [vmem:[#allocation2 + $0x93] sm:$0xff] }
 0x3ae   : > { %10270 = vmatprep.mubr.f32.mxu0 %v24447_v59  ;;  %4395 = vmatprep.mubr.f32.mxu1 %v24447_v59 }
 0x3b1   : > { %19499 = vmatmul.mubr.msk.f32.gmra.mrb[54].mxu0 %vm265_vm0, %v9871_v62  ;;  %19145 = vmatmul.mubr.msk.f32.gmra.mrb[46].mxu1 %vm265_vm0, %v9863_v54  ;;  %v19224_v54 = vld [vmem:[%s26644_s1 + $0x48] sm:$0xff] }
 0x3b2   : > { %10276 = vmatprep.mubr.f32.mxu0 %v24447_v59  ;;  %4401 = vmatprep.mubr.f32.mxu1 %v24447_v59 }
 0x3b5   : > { %19500 = vmatmul.mubr.msk.f32.gmra.mrb[56].mxu0 %vm265_vm0, %v9872_v1  ;;  %19146 = vmatmul.mubr.msk.f32.gmra.mrb[48].mxu1 %vm265_vm0, %v9864_v55  ;;  %v24962_v55 = vld [vmem:[#allocation3] sm:$0xff]  ;;  %v11025_v1 = vld [vmem:[#allocation2 + $0xcb] sm:$0xff] }
 0x3b6   : > { %10282 = vmatprep.mubr.f32.mxu0 %v24447_v59  ;;  %4407 = vmatprep.mubr.f32.mxu1 %v24447_v59 }
 0x3b9   : > { %19501 = vmatmul.mubr.msk.f32.gmra.mrb[58].mxu0 %vm265_vm0, %v9873_v2  ;;  %19147 = vmatmul.mubr.msk.f32.gmra.mrb[50].mxu1 %vm265_vm0, %v9865_v56  ;;  %v5163_v56 = vld [vmem:[#allocation2 + $0x1b] sm:$0xff] }
 0x3ba   : > { %10288 = vmatprep.mubr.f32.mxu0 %v24447_v59  ;;  %4413 = vmatprep.mubr.f32.mxu1 %v24447_v59  ;;  %v11026_v2 = vld [vmem:[#allocation2 + $0xdb] sm:$0xff] }
 0x3bd   : > { %19502 = vmatmul.mubr.msk.f32.gmra.mrb[60].mxu0 %vm265_vm0, %v9874_v0  ;;  %19148 = vmatmul.mubr.msk.f32.gmra.mrb[52].mxu1 %vm265_vm0, %v9866_v57  ;;  %v5847_v57 = vcombine.high %v19224_v54, %v19224_v54  ;;  %v11027_v0 = vld [vmem:[#allocation2 + $0xe3] sm:$0xff] }
 0x3be   : > { %10294 = vmatprep.mubr.f32.mxu0 %v24447_v59  ;;  %4419 = vmatprep.mubr.f32.mxu1 %v24447_v59 }
 0x3c1   : > { %19503 = vmatmul.mubr.msk.f32.gmra.mrb[62].mxu0 %vm265_vm0, %v9875_v3  ;;  %19149 = vmatmul.mubr.msk.f32.gmra.mrb[54].mxu1 %vm265_vm0, %v9867_v58  ;;  %v5164_v58 = vld [vmem:[#allocation2 + $0x23] sm:$0xff]  ;;  %v11028_v3 = vld [vmem:[#allocation2 + $0xf3] sm:$0xff] }
 0x3c2   : > { %10693 = vmatprep.mubr.f32.mxu0 %v24447_v59  ;;  %4425 = vmatprep.mubr.f32.mxu1 %v24447_v59 }
 0x3c5   : > { %19507 = vmatmul.mubr.msk.f32.vlgmr.msra.gmra.mrb[0].mxu0 %vm265_vm0, %v24731_v4  ;;  %19150 = vmatmul.mubr.msk.f32.gmra.mrb[56].mxu1 %vm265_vm0, %v9868_v60  ;;  %v11022_v60 = vld [vmem:[#allocation2 + $0xab] sm:$0xff] }
 0x3c6   : > { %19541 = vmatpush1.msk.msra.mxu0 %vm677_vm2, %v24565_v28  ;;  %10699 = vmatprep.mubr.f32.mxu0 %v24447_v59  ;;  %v10444_v28 = vld [vmem:[#allocation2 + $0xfa] sm:$0xff] }
 0x3c7   : > { %19575 = vmatprep.subr.msk.mxu0 %vm677_vm2, %v11698_v7  ;;  %4431 = vmatprep.mubr.f32.mxu1 %v24447_v59  ;;  %v11031_v7 = vld [vmem:[#allocation2 + $0x113] sm:$0xff] }
 0x3c9   : > { %19508 = vmatmul.mubr.msk.f32.gmra.mrb[2].mxu0 %vm265_vm0, %v24747_v8  ;;  %19151 = vmatmul.mubr.msk.f32.gmra.mrb[58].mxu1 %vm265_vm0, %v9869_v61  ;;  %v5165_v61 = vld [vmem:[#allocation2 + $0x33] sm:$0xff] }
 0x3ca   : > { %10705 = vmatprep.mubr.f32.mxu0 %v24447_v59  ;;  %4437 = vmatprep.mubr.f32.mxu1 %v24447_v59 }
 0x3cd   : > { %19509 = vmatmul.mubr.msk.f32.gmra.mrb[4].mxu0 %vm265_vm0, %v24755_v9  ;;  %19152 = vmatmul.mubr.msk.f32.gmra.mrb[60].mxu1 %vm265_vm0, %v9870_v63  ;;  %v11023_v63 = vld [vmem:[#allocation2 + $0xb3] sm:$0xff] }
 0x3ce   : > { %10711 = vmatprep.mubr.f32.mxu0 %v24447_v59  ;;  %4443 = vmatprep.mubr.f32.mxu1 %v24447_v59 }
 0x3d1   : > { %19510 = vmatmul.mubr.msk.f32.gmra.mrb[6].mxu0 %vm265_vm0, %v24762_v10  ;;  %19153 = vmatmul.mubr.msk.f32.gmra.mrb[62].mxu1 %vm265_vm0, %v9871_v62  ;;  %v5166_v62 = vld [vmem:[#allocation2 + $0x3b] sm:$0xff] }
 0x3d2   : > { %10717 = vmatprep.mubr.f32.mxu0 %v24447_v59  ;;  %4842 = vmatprep.mubr.f32.mxu1 %v24447_v59 }
 0x3d5   : > { %19511 = vmatmul.mubr.msk.f32.gmra.mrb[8].mxu0 %vm265_vm0, %v24769_v11  ;;  %19157 = vmatmul.mubr.msk.f32.vlgmr.msra.gmra.mrb[0].mxu1 %vm265_vm0, %v4578_v15  ;;  %v11039_v15 = vld [vmem:[#allocation2 + $0x173] sm:$0xff] }
 0x3d6   : > { %10723 = vmatprep.mubr.f32.mxu0 %v24447_v59  ;;  %4848 = vmatprep.mubr.f32.mxu1 %v24447_v59 }
 0x3d7   : > { %19191 = vmatpush1.msk.msra.mxu1 %vm677_vm2, %v19189_v14  ;;  %v11038_v14 = vld [vmem:[#allocation2 + $0x16b] sm:$0xff] }
 0x3d8   : > { %19225 = vmatprep.subr.msk.mxu1 %vm677_vm2, %v5847_v57  ;;  %v11626_v57 = vld [vmem:[#allocation2 + $0x18c] sm:$0xff] }
 0x3d9   : > { %19512 = vmatmul.mubr.msk.f32.gmra.mrb[10].mxu0 %vm265_vm0, %v24776_v12  ;;  %19158 = vmatmul.mubr.msk.f32.gmra.mrb[2].mxu1 %vm265_vm0, %v4579_v18  ;;  %v11042_v18 = vld [vmem:[#allocation2 + $0x19b] sm:$0xff] }
 0x3da   : > { %10729 = vmatprep.mubr.f32.mxu0 %v24447_v59  ;;  %4854 = vmatprep.mubr.f32.mxu1 %v24447_v59 }
 0x3dd   : > { %19513 = vmatmul.mubr.msk.f32.gmra.mrb[12].mxu0 %vm265_vm0, %v24783_v13  ;;  %19159 = vmatmul.mubr.msk.f32.gmra.mrb[4].mxu1 %vm265_vm0, %v4580_v20  ;;  %v11044_v20 = vld [vmem:[#allocation2 + $0x1b3] sm:$0xff] }
 0x3de   : > { %10735 = vmatprep.mubr.f32.mxu0 %v24447_v59  ;;  %4860 = vmatprep.mubr.f32.mxu1 %v24447_v59 }
 0x3e1   : > { %19514 = vmatmul.mubr.msk.f32.gmra.mrb[14].mxu0 %vm265_vm0, %v10436_v17  ;;  %19160 = vmatmul.mubr.msk.f32.gmra.mrb[6].mxu1 %vm265_vm0, %v4581_v22  ;;  %v25077_v22 = vld [vmem:[#allocation2 + $0x4c] sm:$0xff] }
 0x3e2   : > { %10741 = vmatprep.mubr.f32.mxu0 %v24447_v59  ;;  %4866 = vmatprep.mubr.f32.mxu1 %v24447_v59 }
 0x3e5   : > { %19515 = vmatmul.mubr.msk.f32.gmra.mrb[16].mxu0 %vm265_vm0, %v10437_v19  ;;  %19161 = vmatmul.mubr.msk.f32.gmra.mrb[8].mxu1 %vm265_vm0, %v24731_v4  ;;  %v11029_v4 = vld [vmem:[#allocation2 + $0xfb] sm:$0xff] }
 0x3e6   : > { %10747 = vmatprep.mubr.f32.mxu0 %v24447_v59  ;;  %4872 = vmatprep.mubr.f32.mxu1 %v24447_v59 }
 0x3e9   : > { %19516 = vmatmul.mubr.msk.f32.gmra.mrb[18].mxu0 %vm265_vm0, %v10438_v21  ;;  %19162 = vmatmul.mubr.msk.f32.gmra.mrb[10].mxu1 %vm265_vm0, %v24747_v8  ;;  %v11032_v8 = vld [vmem:[#allocation2 + $0x123] sm:$0xff] }
 0x3ea   : > { %10753 = vmatprep.mubr.f32.mxu0 %v24447_v59  ;;  %4878 = vmatprep.mubr.f32.mxu1 %v24447_v59 }
 0x3ed   : > { %19517 = vmatmul.mubr.msk.f32.gmra.mrb[20].mxu0 %vm265_vm0, %v10439_v23  ;;  %19163 = vmatmul.mubr.msk.f32.gmra.mrb[12].mxu1 %vm265_vm0, %v24755_v9  ;;  %v11033_v9 = vld [vmem:[#allocation2 + $0x12b] sm:$0xff] }
 0x3ee   : > { %10759 = vmatprep.mubr.f32.mxu0 %v24447_v59  ;;  %4884 = vmatprep.mubr.f32.mxu1 %v24447_v59 }
 0x3f1   : > { %19518 = vmatmul.mubr.msk.f32.gmra.mrb[22].mxu0 %vm265_vm0, %v10440_v24  ;;  %19164 = vmatmul.mubr.msk.f32.gmra.mrb[14].mxu1 %vm265_vm0, %v24762_v10  ;;  %v11034_v10 = vld [vmem:[#allocation2 + $0x13b] sm:$0xff] }
 0x3f2   : > { %10765 = vmatprep.mubr.f32.mxu0 %v24447_v59  ;;  %4890 = vmatprep.mubr.f32.mxu1 %v24447_v59 }
 0x3f5   : > { %19519 = vmatmul.mubr.msk.f32.gmra.mrb[24].mxu0 %vm265_vm0, %v10441_v25  ;;  %19165 = vmatmul.mubr.msk.f32.gmra.mrb[16].mxu1 %vm265_vm0, %v24769_v11  ;;  %v11035_v11 = vld [vmem:[#allocation2 + $0x143] sm:$0xff] }
 0x3f6   : > { %10771 = vmatprep.mubr.f32.mxu0 %v24447_v59  ;;  %4896 = vmatprep.mubr.f32.mxu1 %v24447_v59 }
 0x3f9   : > { %19520 = vmatmul.mubr.msk.f32.gmra.mrb[26].mxu0 %vm265_vm0, %v10442_v26  ;;  %19166 = vmatmul.mubr.msk.f32.gmra.mrb[18].mxu1 %vm265_vm0, %v24776_v12  ;;  %v11036_v12 = vld [vmem:[#allocation2 + $0x153] sm:$0xff] }
 0x3fa   : > { %10777 = vmatprep.mubr.f32.mxu0 %v24447_v59  ;;  %4902 = vmatprep.mubr.f32.mxu1 %v24447_v59 }
 0x3fd   : > { %19521 = vmatmul.mubr.msk.f32.gmra.mrb[28].mxu0 %vm265_vm0, %v10443_v27  ;;  %19167 = vmatmul.mubr.msk.f32.gmra.mrb[20].mxu1 %vm265_vm0, %v24783_v13  ;;  %v11037_v13 = vld [vmem:[#allocation2 + $0x15b] sm:$0xff] }
 0x3fe   : > { %10783 = vmatprep.mubr.f32.mxu0 %v24447_v59  ;;  %4908 = vmatprep.mubr.f32.mxu1 %v24447_v59 }
 0x401   : > { %19522 = vmatmul.mubr.msk.f32.gmra.mrb[30].mxu0 %vm265_vm0, %v10444_v28  ;;  %19168 = vmatmul.mubr.msk.f32.gmra.mrb[22].mxu1 %vm265_vm0, %v10436_v17  ;;  %v11041_v17 = vld [vmem:[#allocation2 + $0x18b] sm:$0xff] }
 0x402   : > { %10789 = vmatprep.mubr.f32.mxu0 %v24447_v59  ;;  %4914 = vmatprep.mubr.f32.mxu1 %v24447_v59 }
 0x405   : > { %19523 = vmatmul.mubr.msk.f32.gmra.mrb[32].mxu0 %vm265_vm0, %v10445_v29  ;;  %19169 = vmatmul.mubr.msk.f32.gmra.mrb[24].mxu1 %vm265_vm0, %v10437_v19  ;;  %v11043_v19 = vld [vmem:[#allocation2 + $0x1a3] sm:$0xff] }
 0x406   : > { %10795 = vmatprep.mubr.f32.mxu0 %v24447_v59  ;;  %4920 = vmatprep.mubr.f32.mxu1 %v24447_v59 }
 0x409   : > { %19524 = vmatmul.mubr.msk.f32.gmra.mrb[34].mxu0 %vm265_vm0, %v10446_v30  ;;  %19170 = vmatmul.mubr.msk.f32.gmra.mrb[26].mxu1 %vm265_vm0, %v10438_v21  ;;  %v11045_v21 = vld [vmem:[#allocation2 + $0x1bb] sm:$0xff] }
 0x40a   : > { %10801 = vmatprep.mubr.f32.mxu0 %v24447_v59  ;;  %4926 = vmatprep.mubr.f32.mxu1 %v24447_v59 }
 0x40d   : > { %19525 = vmatmul.mubr.msk.f32.gmra.mrb[36].mxu0 %vm265_vm0, %v10447_v31  ;;  %19171 = vmatmul.mubr.msk.f32.gmra.mrb[28].mxu1 %vm265_vm0, %v10439_v23  ;;  %v25082_v23 = vld [vmem:[%s26644_s1 + $0xa8] sm:$0xff] }
 0x40e   : > { %10807 = vmatprep.mubr.f32.mxu0 %v24447_v59  ;;  %4932 = vmatprep.mubr.f32.mxu1 %v24447_v59 }
 0x411   : > { %19526 = vmatmul.mubr.msk.f32.gmra.mrb[38].mxu0 %vm265_vm0, %v10448_v32  ;;  %19172 = vmatmul.mubr.msk.f32.gmra.mrb[30].mxu1 %vm265_vm0, %v10440_v24  ;;  %v12869_v24 = vcombine.high %v25082_v23, %v25082_v23 }
 0x412   : > { %10813 = vmatprep.mubr.f32.mxu0 %v24447_v59  ;;  %4938 = vmatprep.mubr.f32.mxu1 %v24447_v59 }
 0x415   : > { %19527 = vmatmul.mubr.msk.f32.gmra.mrb[40].mxu0 %vm265_vm0, %v10449_v33  ;;  %19173 = vmatmul.mubr.msk.f32.gmra.mrb[32].mxu1 %vm265_vm0, %v10441_v25  ;;  %v25093_v25 = vld [vmem:[#allocation2 + $0x54] sm:$0xff] }
 0x416   : > { %10819 = vmatprep.mubr.f32.mxu0 %v24447_v59  ;;  %4944 = vmatprep.mubr.f32.mxu1 %v24447_v59 }
 0x419   : > { %19528 = vmatmul.mubr.msk.f32.gmra.mrb[42].mxu0 %vm265_vm0, %v10450_v34  ;;  %19174 = vmatmul.mubr.msk.f32.gmra.mrb[34].mxu1 %vm265_vm0, %v10442_v26  ;;  %v11601_v26 = vld [vmem:[#allocation2 + $0x64] sm:$0xff] }
 0x41a   : > { %10825 = vmatprep.mubr.f32.mxu0 %v24447_v59  ;;  %4950 = vmatprep.mubr.f32.mxu1 %v24447_v59 }
 0x41d   : > { %19529 = vmatmul.mubr.msk.f32.gmra.mrb[44].mxu0 %vm265_vm0, %v10451_v35  ;;  %19175 = vmatmul.mubr.msk.f32.gmra.mrb[36].mxu1 %vm265_vm0, %v10443_v27  ;;  %v11602_v27 = vld [vmem:[#allocation2 + $0x6c] sm:$0xff] }
 0x41e   : > { %10831 = vmatprep.mubr.f32.mxu0 %v24447_v59  ;;  %4956 = vmatprep.mubr.f32.mxu1 %v24447_v59 }
 0x421   : > { %19530 = vmatmul.mubr.msk.f32.gmra.mrb[46].mxu0 %vm265_vm0, %v10452_v36  ;;  %19176 = vmatmul.mubr.msk.f32.gmra.mrb[38].mxu1 %vm265_vm0, %v10444_v28  ;;  %v11603_v28 = vld [vmem:[#allocation2 + $0x7c] sm:$0xff] }
 0x422   : > { %10837 = vmatprep.mubr.f32.mxu0 %v24447_v59  ;;  %4962 = vmatprep.mubr.f32.mxu1 %v24447_v59 }
 0x425   : > { %19531 = vmatmul.mubr.msk.f32.gmra.mrb[48].mxu0 %vm265_vm0, %v10453_v37  ;;  %19177 = vmatmul.mubr.msk.f32.gmra.mrb[40].mxu1 %vm265_vm0, %v10445_v29  ;;  %v11604_v29 = vld [vmem:[#allocation2 + $0x84] sm:$0xff] }
 0x426   : > { %10843 = vmatprep.mubr.f32.mxu0 %v24447_v59  ;;  %4968 = vmatprep.mubr.f32.mxu1 %v24447_v59 }
 0x429   : > { %19532 = vmatmul.mubr.msk.f32.gmra.mrb[50].mxu0 %vm265_vm0, %v10454_v38  ;;  %19178 = vmatmul.mubr.msk.f32.gmra.mrb[42].mxu1 %vm265_vm0, %v10446_v30  ;;  %v11605_v30 = vld [vmem:[#allocation2 + $0x94] sm:$0xff] }
 0x42a   : > { %10849 = vmatprep.mubr.f32.mxu0 %v24447_v59  ;;  %4974 = vmatprep.mubr.f32.mxu1 %v24447_v59 }
 0x42d   : > { %19533 = vmatmul.mubr.msk.f32.gmra.mrb[52].mxu0 %vm265_vm0, %v10455_v39  ;;  %19179 = vmatmul.mubr.msk.f32.gmra.mrb[44].mxu1 %vm265_vm0, %v10447_v31  ;;  %v5748_v31 = vld [vmem:[#allocation2 + $0x1c] sm:$0xff] }
 0x42e   : > { %10855 = vmatprep.mubr.f32.mxu0 %v24447_v59  ;;  %4980 = vmatprep.mubr.f32.mxu1 %v24447_v59 }
 0x431   : > { %19534 = vmatmul.mubr.msk.f32.gmra.mrb[54].mxu0 %vm265_vm0, %v10456_v40  ;;  %19180 = vmatmul.mubr.msk.f32.gmra.mrb[46].mxu1 %vm265_vm0, %v10448_v32  ;;  %v11606_v32 = vld [vmem:[#allocation2 + $0x9c] sm:$0xff] }
 0x432   : > { %10861 = vmatprep.mubr.f32.mxu0 %v24447_v59  ;;  %4986 = vmatprep.mubr.f32.mxu1 %v24447_v59 }
 0x435   : > { %19535 = vmatmul.mubr.msk.f32.gmra.mrb[56].mxu0 %vm265_vm0, %v10457_v41  ;;  %19181 = vmatmul.mubr.msk.f32.gmra.mrb[48].mxu1 %vm265_vm0, %v10449_v33  ;;  %v5749_v33 = vld [vmem:[#allocation2 + $0x24] sm:$0xff]  ;;  %v11611_v41 = vld [vmem:[#allocation2 + $0xdc] sm:$0xff] }
 0x436   : > { %10867 = vmatprep.mubr.f32.mxu0 %v24447_v59  ;;  %4992 = vmatprep.mubr.f32.mxu1 %v24447_v59 }
 0x439   : > { %19536 = vmatmul.mubr.msk.f32.gmra.mrb[58].mxu0 %vm265_vm0, %v10458_v42  ;;  %19182 = vmatmul.mubr.msk.f32.gmra.mrb[50].mxu1 %vm265_vm0, %v10450_v34  ;;  %v11607_v34 = vld [vmem:[#allocation2 + $0xac] sm:$0xff]  ;;  %v11612_v42 = vld [vmem:[#allocation2 + $0xe4] sm:$0xff] }
 0x43a   : > { %10873 = vmatprep.mubr.f32.mxu0 %v24447_v59  ;;  %4998 = vmatprep.mubr.f32.mxu1 %v24447_v59 }
 0x43d   : > { %19537 = vmatmul.mubr.msk.f32.gmra.mrb[60].mxu0 %vm265_vm0, %v10459_v43  ;;  %19183 = vmatmul.mubr.msk.f32.gmra.mrb[52].mxu1 %vm265_vm0, %v10451_v35  ;;  %v23143_v35 = vld [vmem:[%s26644_s1 + $0x50] sm:$0xff] }
 0x43e   : > { %10879 = vmatprep.mubr.f32.mxu0 %v24447_v59  ;;  %5004 = vmatprep.mubr.f32.mxu1 %v24447_v59  ;;  %v11613_v43 = vld [vmem:[#allocation2 + $0xf4] sm:$0xff] }
 0x441   : > { %19538 = vmatmul.mubr.msk.f32.gmra.mrb[62].mxu0 %vm265_vm0, %v10460_v44  ;;  %19184 = vmatmul.mubr.msk.f32.gmra.mrb[54].mxu1 %vm265_vm0, %v10452_v36  ;;  %v5750_v36 = vld [vmem:[#allocation2 + $0x34] sm:$0xff]  ;;  %v11614_v44 = vld [vmem:[#allocation2 + $0xfc] sm:$0xff] }
 0x442   : > { %11278 = vmatprep.mubr.f32.mxu0 %v24447_v59  ;;  %5010 = vmatprep.mubr.f32.mxu1 %v24447_v59 }
 0x445   : > { %19542 = vmatmul.mubr.msk.f32.vlgmr.msra.gmra.mrb[0].mxu0 %vm265_vm0, %v24902_v45  ;;  %19185 = vmatmul.mubr.msk.f32.gmra.mrb[56].mxu1 %vm265_vm0, %v10453_v37  ;;  %v11608_v37 = vld [vmem:[#allocation2 + $0xb4] sm:$0xff] }
 0x446   : > { %19576 = vmatpush1.msk.msra.mxu0 %vm677_vm2, %v24736_v6  ;;  %11284 = vmatprep.mubr.f32.mxu0 %v24447_v59  ;;  %v11030_v6 = vld [vmem:[#allocation2 + $0x10b] sm:$0xff] }
 0x447   : > { %19610 = vmatprep.subr.msk.mxu0 %vm677_vm2, %v12284_v47  ;;  %5016 = vmatprep.mubr.f32.mxu1 %v24447_v59  ;;  %v11617_v47 = vld [vmem:[#allocation2 + $0x124] sm:$0xff] }
 0x449   : > { %19543 = vmatmul.mubr.msk.f32.gmra.mrb[2].mxu0 %vm265_vm0, %v24918_v48  ;;  %19186 = vmatmul.mubr.msk.f32.gmra.mrb[58].mxu1 %vm265_vm0, %v10454_v38  ;;  %v5751_v38 = vld [vmem:[#allocation2 + $0x3c] sm:$0xff] }
 0x44a   : > { %11290 = vmatprep.mubr.f32.mxu0 %v24447_v59  ;;  %5022 = vmatprep.mubr.f32.mxu1 %v24447_v59 }
 0x44d   : > { %19544 = vmatmul.mubr.msk.f32.gmra.mrb[4].mxu0 %vm265_vm0, %v24926_v49  ;;  %19187 = vmatmul.mubr.msk.f32.gmra.mrb[60].mxu1 %vm265_vm0, %v10455_v39  ;;  %v11609_v39 = vld [vmem:[#allocation2 + $0xc4] sm:$0xff] }
 0x44e   : > { %11296 = vmatprep.mubr.f32.mxu0 %v24447_v59  ;;  %5028 = vmatprep.mubr.f32.mxu1 %v24447_v59 }
 0x451   : > { %19545 = vmatmul.mubr.msk.f32.gmra.mrb[6].mxu0 %vm265_vm0, %v24933_v50  ;;  %19188 = vmatmul.mubr.msk.f32.gmra.mrb[62].mxu1 %vm265_vm0, %v10456_v40  ;;  %v11610_v40 = vld [vmem:[#allocation2 + $0xcc] sm:$0xff] }
 0x452   : > { %11302 = vmatprep.mubr.f32.mxu0 %v24447_v59  ;;  %5427 = vmatprep.mubr.f32.mxu1 %v24962_v55 }
 0x455   : > { %19546 = vmatmul.mubr.msk.f32.gmra.mrb[8].mxu0 %vm265_vm0, %v24940_v51  ;;  %19192 = vmatmul.mubr.msk.f32.vlgmr.msra.gmra.mrb[0].mxu1 %vm265_vm0, %v5163_v56  ;;  %v11625_v56 = vld [vmem:[#allocation2 + $0x184] sm:$0xff] }
 0x456   : > { %11308 = vmatprep.mubr.f32.mxu0 %v24447_v59  ;;  %5433 = vmatprep.mubr.f32.mxu1 %v24962_v55 }
 0x457   : > { %19226 = vmatpush1.msk.msra.mxu1 %vm677_vm2, %v19224_v54  ;;  %v11624_v54 = vld [vmem:[#allocation2 + $0x174] sm:$0xff] }
 0x458   : > { %21234 = vmatprep.subr.msk.mxu1 %vm677_vm2, %v23510_v5  ;;  %v11024_v5 = vld [vmem:[#allocation2 + $0xc3] sm:$0xff] }
 0x459   : > { %19547 = vmatmul.mubr.msk.f32.gmra.mrb[10].mxu0 %vm265_vm0, %v24947_v52  ;;  %19193 = vmatmul.mubr.msk.f32.gmra.mrb[2].mxu1 %vm265_vm0, %v5164_v58  ;;  %v11628_v58 = vld [vmem:[#allocation2 + $0x1a4] sm:$0xff] }
 0x45a   : > { %11314 = vmatprep.mubr.f32.mxu0 %v24447_v59  ;;  %v11021_v59 = vld [vmem:[#allocation2 + $0x9b] sm:$0xff]  ;;  %5439 = vmatprep.mubr.f32.mxu1 %v24962_v55 }
 0x45d   : > { %19548 = vmatmul.mubr.msk.f32.gmra.mrb[12].mxu0 %vm265_vm0, %v24954_v53  ;;  %19194 = vmatmul.mubr.msk.f32.gmra.mrb[4].mxu1 %vm265_vm0, %v5165_v61  ;;  %v11630_v61 = vld [vmem:[#allocation2 + $0x1bc] sm:$0xff] }
 0x45e   : > { %11320 = vmatprep.mubr.f32.mxu0 %v24962_v55  ;;  %5445 = vmatprep.mubr.f32.mxu1 %v24962_v55 }
 0x461   : > { %19549 = vmatmul.mubr.msk.f32.gmra.mrb[14].mxu0 %vm265_vm0, %v11021_v59  ;;  %19195 = vmatmul.mubr.msk.f32.gmra.mrb[6].mxu1 %vm265_vm0, %v5166_v62  ;;  %v25230_v62 = vld [vmem:[%s26644_s1 + $0xb0] sm:$0xff] }
 0x462   : > { %11326 = vmatprep.mubr.f32.mxu0 %v24962_v55  ;;  %5451 = vmatprep.mubr.f32.mxu1 %v24962_v55 }
 0x465   : > { %19550 = vmatmul.mubr.msk.f32.gmra.mrb[16].mxu0 %vm265_vm0, %v11022_v60  ;;  %19196 = vmatmul.mubr.msk.f32.gmra.mrb[8].mxu1 %vm265_vm0, %v24902_v45  ;;  %v11615_v45 = vld [vmem:[#allocation2 + $0x10c] sm:$0xff] }
 0x466   : > { %11332 = vmatprep.mubr.f32.mxu0 %v24962_v55  ;;  %5457 = vmatprep.mubr.f32.mxu1 %v24962_v55 }
 0x469   : > { %19551 = vmatmul.mubr.msk.f32.gmra.mrb[18].mxu0 %vm265_vm0, %v11023_v63  ;;  %19197 = vmatmul.mubr.msk.f32.gmra.mrb[10].mxu1 %vm265_vm0, %v24918_v48  ;;  %v11618_v48 = vld [vmem:[#allocation2 + $0x12c] sm:$0xff] }
 0x46a   : > { %11338 = vmatprep.mubr.f32.mxu0 %v24962_v55  ;;  %5463 = vmatprep.mubr.f32.mxu1 %v24962_v55 }
 0x46d   : > { %19552 = vmatmul.mubr.msk.f32.gmra.mrb[20].mxu0 %vm265_vm0, %v11024_v5  ;;  %19198 = vmatmul.mubr.msk.f32.gmra.mrb[12].mxu1 %vm265_vm0, %v24926_v49  ;;  %v11619_v49 = vld [vmem:[#allocation2 + $0x13c] sm:$0xff] }
 0x46e   : > { %11344 = vmatprep.mubr.f32.mxu0 %v24962_v55  ;;  %5469 = vmatprep.mubr.f32.mxu1 %v24962_v55 }
 0x471   : > { %19553 = vmatmul.mubr.msk.f32.gmra.mrb[22].mxu0 %vm265_vm0, %v11025_v1  ;;  %19199 = vmatmul.mubr.msk.f32.gmra.mrb[14].mxu1 %vm265_vm0, %v24933_v50  ;;  %v11620_v50 = vld [vmem:[#allocation2 + $0x144] sm:$0xff] }
 0x472   : > { %11350 = vmatprep.mubr.f32.mxu0 %v24962_v55  ;;  %5475 = vmatprep.mubr.f32.mxu1 %v24962_v55 }
 0x475   : > { %19554 = vmatmul.mubr.msk.f32.gmra.mrb[24].mxu0 %vm265_vm0, %v11026_v2  ;;  %19200 = vmatmul.mubr.msk.f32.gmra.mrb[16].mxu1 %vm265_vm0, %v24940_v51  ;;  %v11621_v51 = vld [vmem:[#allocation2 + $0x154] sm:$0xff] }
 0x476   : > { %11356 = vmatprep.mubr.f32.mxu0 %v24962_v55  ;;  %5481 = vmatprep.mubr.f32.mxu1 %v24962_v55 }
 0x479   : > { %19555 = vmatmul.mubr.msk.f32.gmra.mrb[26].mxu0 %vm265_vm0, %v11027_v0  ;;  %19201 = vmatmul.mubr.msk.f32.gmra.mrb[18].mxu1 %vm265_vm0, %v24947_v52  ;;  %v11622_v52 = vld [vmem:[#allocation2 + $0x15c] sm:$0xff] }
 0x47a   : > { %11362 = vmatprep.mubr.f32.mxu0 %v24962_v55  ;;  %5487 = vmatprep.mubr.f32.mxu1 %v24962_v55 }
 0x47d   : > { %19556 = vmatmul.mubr.msk.f32.gmra.mrb[28].mxu0 %vm265_vm0, %v11028_v3  ;;  %19202 = vmatmul.mubr.msk.f32.gmra.mrb[20].mxu1 %vm265_vm0, %v24954_v53  ;;  %v11623_v53 = vld [vmem:[#allocation2 + $0x16c] sm:$0xff] }
 0x47e   : > { %11368 = vmatprep.mubr.f32.mxu0 %v24962_v55  ;;  %5493 = vmatprep.mubr.f32.mxu1 %v24962_v55 }
 0x481   : > { %19557 = vmatmul.mubr.msk.f32.gmra.mrb[30].mxu0 %vm265_vm0, %v11029_v4  ;;  %19203 = vmatmul.mubr.msk.f32.gmra.mrb[22].mxu1 %vm265_vm0, %v11021_v59  ;;  %v11627_v59 = vld [vmem:[#allocation2 + $0x19c] sm:$0xff] }
 0x482   : > { %11374 = vmatprep.mubr.f32.mxu0 %v24962_v55  ;;  %5499 = vmatprep.mubr.f32.mxu1 %v24962_v55 }
 0x485   : > { %19558 = vmatmul.mubr.msk.f32.gmra.mrb[32].mxu0 %vm265_vm0, %v11030_v6  ;;  %19204 = vmatmul.mubr.msk.f32.gmra.mrb[24].mxu1 %vm265_vm0, %v11022_v60  ;;  %v11629_v60 = vld [vmem:[#allocation2 + $0x1b4] sm:$0xff] }
 0x486   : > { %11380 = vmatprep.mubr.f32.mxu0 %v24962_v55  ;;  %5505 = vmatprep.mubr.f32.mxu1 %v24962_v55 }
 0x489   : > { %19559 = vmatmul.mubr.msk.f32.gmra.mrb[34].mxu0 %vm265_vm0, %v11031_v7  ;;  %19205 = vmatmul.mubr.msk.f32.gmra.mrb[26].mxu1 %vm265_vm0, %v11023_v63  ;;  %v12185_v63 = vld [vmem:[#allocation2 + $0x60] sm:$0xff] }
 0x48a   : > { %11386 = vmatprep.mubr.f32.mxu0 %v24962_v55  ;;  %5511 = vmatprep.mubr.f32.mxu1 %v24962_v55 }
 0x48d   : > { %19560 = vmatmul.mubr.msk.f32.gmra.mrb[36].mxu0 %vm265_vm0, %v11032_v8  ;;  %19206 = vmatmul.mubr.msk.f32.gmra.mrb[28].mxu1 %vm265_vm0, %v11024_v5  ;;  %v13454_v5 = vcombine.high %v25230_v62, %v25230_v62 }
 0x48e   : > { %11392 = vmatprep.mubr.f32.mxu0 %v24962_v55  ;;  %5517 = vmatprep.mubr.f32.mxu1 %v24962_v55 }
 0x491   : > { %19561 = vmatmul.mubr.msk.f32.gmra.mrb[38].mxu0 %vm265_vm0, %v11033_v9  ;;  %19207 = vmatmul.mubr.msk.f32.gmra.mrb[30].mxu1 %vm265_vm0, %v11025_v1  ;;  %v12186_v1 = vld [vmem:[#allocation2 + $0x68] sm:$0xff] }
 0x492   : > { %11398 = vmatprep.mubr.f32.mxu0 %v24962_v55  ;;  %5523 = vmatprep.mubr.f32.mxu1 %v24962_v55 }
 0x495   : > { %19562 = vmatmul.mubr.msk.f32.gmra.mrb[40].mxu0 %vm265_vm0, %v11034_v10  ;;  %19208 = vmatmul.mubr.msk.f32.gmra.mrb[32].mxu1 %vm265_vm0, %v11026_v2  ;;  %v12187_v2 = vld [vmem:[#allocation2 + $0x78] sm:$0xff] }
 0x496   : > { %11404 = vmatprep.mubr.f32.mxu0 %v24962_v55  ;;  %5529 = vmatprep.mubr.f32.mxu1 %v24962_v55 }
 0x499   : > { %19563 = vmatmul.mubr.msk.f32.gmra.mrb[42].mxu0 %vm265_vm0, %v11035_v11  ;;  %19209 = vmatmul.mubr.msk.f32.gmra.mrb[34].mxu1 %vm265_vm0, %v11027_v0  ;;  %v12188_v0 = vld [vmem:[#allocation2 + $0x80] sm:$0xff] }
 0x49a   : > { %11410 = vmatprep.mubr.f32.mxu0 %v24962_v55  ;;  %5535 = vmatprep.mubr.f32.mxu1 %v24962_v55 }
 0x49d   : > { %19564 = vmatmul.mubr.msk.f32.gmra.mrb[44].mxu0 %vm265_vm0, %v11036_v12  ;;  %19210 = vmatmul.mubr.msk.f32.gmra.mrb[36].mxu1 %vm265_vm0, %v11028_v3  ;;  %v12189_v3 = vld [vmem:[#allocation2 + $0x90] sm:$0xff] }
 0x49e   : > { %11416 = vmatprep.mubr.f32.mxu0 %v24962_v55  ;;  %5541 = vmatprep.mubr.f32.mxu1 %v24962_v55 }
 0x4a1   : > { %19565 = vmatmul.mubr.msk.f32.gmra.mrb[46].mxu0 %vm265_vm0, %v11037_v13  ;;  %19211 = vmatmul.mubr.msk.f32.gmra.mrb[38].mxu1 %vm265_vm0, %v11029_v4  ;;  %v12190_v4 = vld [vmem:[#allocation2 + $0x98] sm:$0xff] }
 0x4a2   : > { %11422 = vmatprep.mubr.f32.mxu0 %v24962_v55  ;;  %5547 = vmatprep.mubr.f32.mxu1 %v24962_v55 }
 0x4a5   : > { %19566 = vmatmul.mubr.msk.f32.gmra.mrb[48].mxu0 %vm265_vm0, %v11038_v14  ;;  %19212 = vmatmul.mubr.msk.f32.gmra.mrb[40].mxu1 %vm265_vm0, %v11030_v6  ;;  %v12191_v6 = vld [vmem:[#allocation2 + $0xa8] sm:$0xff] }
 0x4a6   : > { %11428 = vmatprep.mubr.f32.mxu0 %v24962_v55  ;;  %5553 = vmatprep.mubr.f32.mxu1 %v24962_v55 }
 0x4a9   : > { %19567 = vmatmul.mubr.msk.f32.gmra.mrb[50].mxu0 %vm265_vm0, %v11039_v15  ;;  %19213 = vmatmul.mubr.msk.f32.gmra.mrb[42].mxu1 %vm265_vm0, %v11031_v7  ;;  %v25264_v7 = vld [vmem:[#allocation2 + $0x150] sm:$0xff] }
 0x4aa   : > { %11434 = vmatprep.mubr.f32.mxu0 %v24962_v55  ;;  %5559 = vmatprep.mubr.f32.mxu1 %v24962_v55 }
 0x4ad   : > { %19568 = vmatmul.mubr.msk.f32.gmra.mrb[52].mxu0 %vm265_vm0, %v11040_v16  ;;  %19214 = vmatmul.mubr.msk.f32.gmra.mrb[44].mxu1 %vm265_vm0, %v11032_v8  ;;  %v12192_v8 = vld [vmem:[#allocation2 + $0xb0] sm:$0xff] }
 0x4ae   : > { %11440 = vmatprep.mubr.f32.mxu0 %v24962_v55  ;;  %5565 = vmatprep.mubr.f32.mxu1 %v24962_v55 }
 0x4b1   : > { %19569 = vmatmul.mubr.msk.f32.gmra.mrb[54].mxu0 %vm265_vm0, %v11041_v17  ;;  %19215 = vmatmul.mubr.msk.f32.gmra.mrb[46].mxu1 %vm265_vm0, %v11033_v9  ;;  %v6358_v9 = vld [vmem:[#allocation2 + $0x158] sm:$0xff] }
 0x4b2   : > { %11446 = vmatprep.mubr.f32.mxu0 %v24962_v55  ;;  %5571 = vmatprep.mubr.f32.mxu1 %v24962_v55 }
 0x4b5   : > { %19570 = vmatmul.mubr.msk.f32.gmra.mrb[56].mxu0 %vm265_vm0, %v11042_v18  ;;  %19216 = vmatmul.mubr.msk.f32.gmra.mrb[48].mxu1 %vm265_vm0, %v11034_v10  ;;  %v12193_v10 = vld [vmem:[#allocation2 + $0xc0] sm:$0xff]  ;;  %v12197_v18 = vld [vmem:[#allocation2 + $0xf0] sm:$0xff] }
 0x4b6   : > { %11452 = vmatprep.mubr.f32.mxu0 %v24962_v55  ;;  %5577 = vmatprep.mubr.f32.mxu1 %v24962_v55 }
 0x4b9   : > { %19571 = vmatmul.mubr.msk.f32.gmra.mrb[58].mxu0 %vm265_vm0, %v11043_v19  ;;  %19217 = vmatmul.mubr.msk.f32.gmra.mrb[50].mxu1 %vm265_vm0, %v11035_v11  ;;  %v6359_v11 = vld [vmem:[#allocation2 + $0x168] sm:$0xff]  ;;  %v6363_v19 = vld [vmem:[#allocation2 + $0x198] sm:$0xff] }
 0x4ba   : > { %11458 = vmatprep.mubr.f32.mxu0 %v24962_v55  ;;  %5583 = vmatprep.mubr.f32.mxu1 %v24962_v55 }
 0x4bd   : > { %19572 = vmatmul.mubr.msk.f32.gmra.mrb[60].mxu0 %vm265_vm0, %v11044_v20  ;;  %19218 = vmatmul.mubr.msk.f32.gmra.mrb[52].mxu1 %vm265_vm0, %v11036_v12  ;;  %v12194_v12 = vld [vmem:[#allocation2 + $0xc8] sm:$0xff]  ;;  %v12198_v20 = vld [vmem:[#allocation2 + $0xf8] sm:$0xff] }
 0x4be   : > { %11464 = vmatprep.mubr.f32.mxu0 %v24962_v55  ;;  %5589 = vmatprep.mubr.f32.mxu1 %v24962_v55 }
 0x4c1   : > { %19573 = vmatmul.mubr.msk.f32.gmra.mrb[62].mxu0 %vm265_vm0, %v11045_v21  ;;  %19219 = vmatmul.mubr.msk.f32.gmra.mrb[54].mxu1 %vm265_vm0, %v11037_v13  ;;  %v6360_v13 = vld [vmem:[#allocation2 + $0x170] sm:$0xff]  ;;  %v6364_v21 = vld [vmem:[#allocation2 + $0x1a0] sm:$0xff] }
 0x4c2   : > { %11863 = vmatprep.mubr.f32.mxu0 %v24962_v55  ;;  %5595 = vmatprep.mubr.f32.mxu1 %v24962_v55 }
 0x4c5   : > { %19577 = vmatmul.mubr.msk.f32.vlgmr.msra.gmra.mrb[0].mxu0 %vm265_vm0, %v25077_v22  ;;  %19220 = vmatmul.mubr.msk.f32.gmra.mrb[56].mxu1 %vm265_vm0, %v11038_v14  ;;  %v12195_v14 = vld [vmem:[#allocation2 + $0xd8] sm:$0xff] }
 0x4c6   : > { %19611 = vmatpush1.msk.msra.mxu0 %vm677_vm2, %v24907_v46  ;;  %11869 = vmatprep.mubr.f32.mxu0 %v24962_v55  ;;  %v11616_v46 = vld [vmem:[#allocation2 + $0x114] sm:$0xff] }
 0x4c7   : > { %19645 = vmatprep.subr.msk.mxu0 %vm677_vm2, %v12869_v24  ;;  %5601 = vmatprep.mubr.f32.mxu1 %v24962_v55  ;;  %v12201_v24 = vld [vmem:[#allocation2 + $0x120] sm:$0xff] }
 0x4c9   : > { %19578 = vmatmul.mubr.msk.f32.gmra.mrb[2].mxu0 %vm265_vm0, %v25093_v25  ;;  %19221 = vmatmul.mubr.msk.f32.gmra.mrb[58].mxu1 %vm265_vm0, %v11039_v15  ;;  %v6361_v15 = vld [vmem:[#allocation2 + $0x180] sm:$0xff] }
 0x4ca   : > { %11875 = vmatprep.mubr.f32.mxu0 %v24962_v55  ;;  %5607 = vmatprep.mubr.f32.mxu1 %v24962_v55 }
 0x4cd   : > { %19579 = vmatmul.mubr.msk.f32.gmra.mrb[4].mxu0 %vm265_vm0, %v11601_v26  ;;  %19222 = vmatmul.mubr.msk.f32.gmra.mrb[60].mxu1 %vm265_vm0, %v11040_v16  ;;  %v12196_v16 = vld [vmem:[#allocation2 + $0xe0] sm:$0xff] }
 0x4ce   : > { %11881 = vmatprep.mubr.f32.mxu0 %v24962_v55  ;;  %5613 = vmatprep.mubr.f32.mxu1 %v24962_v55 }
 0x4d1   : > { %19580 = vmatmul.mubr.msk.f32.gmra.mrb[6].mxu0 %vm265_vm0, %v11602_v27  ;;  %19223 = vmatmul.mubr.msk.f32.gmra.mrb[62].mxu1 %vm265_vm0, %v11041_v17  ;;  %v6362_v17 = vld [vmem:[#allocation2 + $0x188] sm:$0xff] }
 0x4d2   : > { %11887 = vmatprep.mubr.f32.mxu0 %v24962_v55  ;;  %6012 = vmatprep.mubr.f32.mxu1 %v24962_v55 }
 0x4d5   : > { %19581 = vmatmul.mubr.msk.f32.gmra.mrb[8].mxu0 %vm265_vm0, %v11603_v28  ;;  %19227 = vmatmul.mubr.msk.f32.vlgmr.msra.gmra.mrb[0].mxu1 %vm265_vm0, %v5748_v31  ;;  %v12214_v31 = vld [vmem:[#allocation2 + $0x1b8] sm:$0xff] }
 0x4d6   : > { %11893 = vmatprep.mubr.f32.mxu0 %v24962_v55  ;;  %6018 = vmatprep.mubr.f32.mxu1 %v24962_v55 }
 0x4d7   : > { %21235 = vmatpush1.msk.msra.mxu1 %vm677_vm2, %v23143_v35 }
 0x4d9   : > { %19582 = vmatmul.mubr.msk.f32.gmra.mrb[10].mxu0 %vm265_vm0, %v11604_v29  ;;  %19228 = vmatmul.mubr.msk.f32.gmra.mrb[2].mxu1 %vm265_vm0, %v5749_v33 }
 0x4da   : > { %11899 = vmatprep.mubr.f32.mxu0 %v24962_v55  ;;  %6024 = vmatprep.mubr.f32.mxu1 %v24962_v55 }
 0x4dd   : > { %19583 = vmatmul.mubr.msk.f32.gmra.mrb[12].mxu0 %vm265_vm0, %v11605_v30  ;;  %19229 = vmatmul.mubr.msk.f32.gmra.mrb[4].mxu1 %vm265_vm0, %v5750_v36 }
 0x4de   : > { %11905 = vmatprep.mubr.f32.mxu0 %v24962_v55  ;;  %6030 = vmatprep.mubr.f32.mxu1 %v24962_v55 }
 0x4e1   : > { %19584 = vmatmul.mubr.msk.f32.gmra.mrb[14].mxu0 %vm265_vm0, %v11606_v32  ;;  %19230 = vmatmul.mubr.msk.f32.gmra.mrb[6].mxu1 %vm265_vm0, %v5751_v38 }
 0x4e2   : > { %11911 = vmatprep.mubr.f32.mxu0 %v24962_v55  ;;  %6036 = vmatprep.mubr.f32.mxu1 %v24962_v55 }
 0x4e5   : > { %19585 = vmatmul.mubr.msk.f32.gmra.mrb[16].mxu0 %vm265_vm0, %v11607_v34  ;;  %19231 = vmatmul.mubr.msk.f32.gmra.mrb[8].mxu1 %vm265_vm0, %v25077_v22  ;;  %v12199_v22 = vld [vmem:[#allocation2 + $0x108] sm:$0xff] }
 0x4e6   : > { %11917 = vmatprep.mubr.f32.mxu0 %v24962_v55  ;;  %6042 = vmatprep.mubr.f32.mxu1 %v24962_v55 }
 0x4e9   : > { %19586 = vmatmul.mubr.msk.f32.gmra.mrb[18].mxu0 %vm265_vm0, %v11608_v37  ;;  %19232 = vmatmul.mubr.msk.f32.gmra.mrb[10].mxu1 %vm265_vm0, %v25093_v25  ;;  %v12202_v25 = vld [vmem:[#allocation2 + $0x128] sm:$0xff] }
 0x4ea   : > { %11923 = vmatprep.mubr.f32.mxu0 %v24962_v55  ;;  %6048 = vmatprep.mubr.f32.mxu1 %v24962_v55 }
 0x4ed   : > { %19587 = vmatmul.mubr.msk.f32.gmra.mrb[20].mxu0 %vm265_vm0, %v11609_v39  ;;  %19233 = vmatmul.mubr.msk.f32.gmra.mrb[12].mxu1 %vm265_vm0, %v11601_v26  ;;  %v12203_v26 = vld [vmem:[#allocation2 + $0x138] sm:$0xff] }
 0x4ee   : > { %11929 = vmatprep.mubr.f32.mxu0 %v24962_v55  ;;  %6054 = vmatprep.mubr.f32.mxu1 %v24962_v55 }
 0x4f1   : > { %19588 = vmatmul.mubr.msk.f32.gmra.mrb[22].mxu0 %vm265_vm0, %v11610_v40  ;;  %19234 = vmatmul.mubr.msk.f32.gmra.mrb[14].mxu1 %vm265_vm0, %v11602_v27  ;;  %v12204_v27 = vld [vmem:[#allocation2 + $0x140] sm:$0xff] }
 0x4f2   : > { %11935 = vmatprep.mubr.f32.mxu0 %v24962_v55  ;;  %6060 = vmatprep.mubr.f32.mxu1 %v24962_v55 }
 0x4f5   : > { %19589 = vmatmul.mubr.msk.f32.gmra.mrb[24].mxu0 %vm265_vm0, %v11611_v41  ;;  %19235 = vmatmul.mubr.msk.f32.gmra.mrb[16].mxu1 %vm265_vm0, %v11603_v28  ;;  %v12213_v28 = vld [vmem:[#allocation2 + $0x1b0] sm:$0xff] }
 0x4f6   : > { %11941 = vmatprep.mubr.f32.mxu0 %v24962_v55  ;;  %6066 = vmatprep.mubr.f32.mxu1 %v24962_v55 }
 0x4f9   : > { %19590 = vmatmul.mubr.msk.f32.gmra.mrb[26].mxu0 %vm265_vm0, %v11612_v42  ;;  %19236 = vmatmul.mubr.msk.f32.gmra.mrb[18].mxu1 %vm265_vm0, %v11604_v29 }
 0x4fa   : > { %11947 = vmatprep.mubr.f32.mxu0 %v24962_v55  ;;  %6072 = vmatprep.mubr.f32.mxu1 %v24962_v55 }
 0x4fd   : > { %19591 = vmatmul.mubr.msk.f32.gmra.mrb[28].mxu0 %vm265_vm0, %v11613_v43  ;;  %19237 = vmatmul.mubr.msk.f32.gmra.mrb[20].mxu1 %vm265_vm0, %v11605_v30 }
 0x4fe   : > { %11953 = vmatprep.mubr.f32.mxu0 %v24962_v55  ;;  %6078 = vmatprep.mubr.f32.mxu1 %v24962_v55 }
 0x501   : > { %19592 = vmatmul.mubr.msk.f32.gmra.mrb[30].mxu0 %vm265_vm0, %v11614_v44  ;;  %19238 = vmatmul.mubr.msk.f32.gmra.mrb[22].mxu1 %vm265_vm0, %v11606_v32 }
 0x502   : > { %11959 = vmatprep.mubr.f32.mxu0 %v24962_v55  ;;  %6084 = vmatprep.mubr.f32.mxu1 %v24962_v55 }
 0x505   : > { %19593 = vmatmul.mubr.msk.f32.gmra.mrb[32].mxu0 %vm265_vm0, %v11615_v45  ;;  %19239 = vmatmul.mubr.msk.f32.gmra.mrb[24].mxu1 %vm265_vm0, %v11607_v34  ;;  %v12215_v34 = vld [vmem:[#allocation2 + $0x1c8] sm:$0xff] }
 0x506   : > { %11965 = vmatprep.mubr.f32.mxu0 %v24962_v55  ;;  %6090 = vmatprep.mubr.f32.mxu1 %v24962_v55 }
 0x509   : > { %19594 = vmatmul.mubr.msk.f32.gmra.mrb[34].mxu0 %vm265_vm0, %v11616_v46  ;;  %19240 = vmatmul.mubr.msk.f32.gmra.mrb[26].mxu1 %vm265_vm0, %v11608_v37  ;;  %v12216_v37 = vld [vmem:[#allocation2 + $0x1d0] sm:$0xff] }
 0x50a   : > { %11971 = vmatprep.mubr.f32.mxu0 %v24962_v55  ;;  %6096 = vmatprep.mubr.f32.mxu1 %v24962_v55 }
 0x50d   : > { %19595 = vmatmul.mubr.msk.f32.gmra.mrb[36].mxu0 %vm265_vm0, %v11617_v47  ;;  %19241 = vmatmul.mubr.msk.f32.gmra.mrb[28].mxu1 %vm265_vm0, %v11609_v39 }
 0x50e   : > { %11977 = vmatprep.mubr.f32.mxu0 %v24962_v55  ;;  %6102 = vmatprep.mubr.f32.mxu1 %v24962_v55 }
 0x511   : > { %19596 = vmatmul.mubr.msk.f32.gmra.mrb[38].mxu0 %vm265_vm0, %v11618_v48  ;;  %19242 = vmatmul.mubr.msk.f32.gmra.mrb[30].mxu1 %vm265_vm0, %v11610_v40  ;;  %v12770_v40 = vld [vmem:[#allocation2 + $0x61] sm:$0xff] }
 0x512   : > { %11983 = vmatprep.mubr.f32.mxu0 %v24962_v55  ;;  %6108 = vmatprep.mubr.f32.mxu1 %v24962_v55 }
 0x515   : > { %19597 = vmatmul.mubr.msk.f32.gmra.mrb[40].mxu0 %vm265_vm0, %v11619_v49  ;;  %19243 = vmatmul.mubr.msk.f32.gmra.mrb[32].mxu1 %vm265_vm0, %v11611_v41 }
 0x516   : > { %11989 = vmatprep.mubr.f32.mxu0 %v24962_v55  ;;  %6114 = vmatprep.mubr.f32.mxu1 %v24962_v55 }
 0x519   : > { %19598 = vmatmul.mubr.msk.f32.gmra.mrb[42].mxu0 %vm265_vm0, %v11620_v50  ;;  %19244 = vmatmul.mubr.msk.f32.gmra.mrb[34].mxu1 %vm265_vm0, %v11612_v42  ;;  %v25356_v42 = vld [vmem:[%s26644_s1 + $0xb8] sm:$0xff] }
 0x51a   : > { %11995 = vmatprep.mubr.f32.mxu0 %v24962_v55  ;;  %6120 = vmatprep.mubr.f32.mxu1 %v24962_v55 }
 0x51d   : > { %19599 = vmatmul.mubr.msk.f32.gmra.mrb[44].mxu0 %vm265_vm0, %v11621_v51  ;;  %19245 = vmatmul.mubr.msk.f32.gmra.mrb[36].mxu1 %vm265_vm0, %v11613_v43 }
 0x51e   : > { %12001 = vmatprep.mubr.f32.mxu0 %v24962_v55  ;;  %6126 = vmatprep.mubr.f32.mxu1 %v24962_v55 }
 0x521   : > { %19600 = vmatmul.mubr.msk.f32.gmra.mrb[46].mxu0 %vm265_vm0, %v11622_v52  ;;  %19246 = vmatmul.mubr.msk.f32.gmra.mrb[38].mxu1 %vm265_vm0, %v11614_v44  ;;  %v14039_v44 = vcombine.high %v25356_v42, %v25356_v42 }
 0x522   : > { %12007 = vmatprep.mubr.f32.mxu0 %v24962_v55  ;;  %6132 = vmatprep.mubr.f32.mxu1 %v24962_v55 }
 0x525   : > { %19601 = vmatmul.mubr.msk.f32.gmra.mrb[48].mxu0 %vm265_vm0, %v11623_v53  ;;  %19247 = vmatmul.mubr.msk.f32.gmra.mrb[40].mxu1 %vm265_vm0, %v11615_v45  ;;  %v12771_v45 = vld [vmem:[#allocation2 + $0x69] sm:$0xff] }
 0x526   : > { %12013 = vmatprep.mubr.f32.mxu0 %v24962_v55  ;;  %6138 = vmatprep.mubr.f32.mxu1 %v24962_v55 }
 0x529   : > { %19602 = vmatmul.mubr.msk.f32.gmra.mrb[50].mxu0 %vm265_vm0, %v11624_v54  ;;  %19248 = vmatmul.mubr.msk.f32.gmra.mrb[42].mxu1 %vm265_vm0, %v11616_v46 }
 0x52a   : > { %12019 = vmatprep.mubr.f32.mxu0 %v24962_v55  ;;  %6144 = vmatprep.mubr.f32.mxu1 %v24962_v55 }
 0x52d   : > { %19603 = vmatmul.mubr.msk.f32.gmra.mrb[52].mxu0 %vm265_vm0, %v11625_v56  ;;  %19249 = vmatmul.mubr.msk.f32.gmra.mrb[44].mxu1 %vm265_vm0, %v11617_v47 }
 0x52e   : > { %12025 = vmatprep.mubr.f32.mxu0 %v24962_v55  ;;  %6150 = vmatprep.mubr.f32.mxu1 %v24962_v55 }
 0x531   : > { %19604 = vmatmul.mubr.msk.f32.gmra.mrb[54].mxu0 %vm265_vm0, %v11626_v57  ;;  %19250 = vmatmul.mubr.msk.f32.gmra.mrb[46].mxu1 %vm265_vm0, %v11618_v48  ;;  %v12772_v48 = vld [vmem:[#allocation2 + $0x79] sm:$0xff] }
 0x532   : > { %12031 = vmatprep.mubr.f32.mxu0 %v24962_v55  ;;  %6156 = vmatprep.mubr.f32.mxu1 %v24962_v55 }
 0x535   : > { %19605 = vmatmul.mubr.msk.f32.gmra.mrb[56].mxu0 %vm265_vm0, %v11627_v59  ;;  %19251 = vmatmul.mubr.msk.f32.gmra.mrb[48].mxu1 %vm265_vm0, %v11619_v49  ;;  %v12775_v59 = vld [vmem:[#allocation2 + $0x99] sm:$0xff] }
 0x536   : > { %12037 = vmatprep.mubr.f32.mxu0 %v24962_v55  ;;  %6162 = vmatprep.mubr.f32.mxu1 %v24962_v55 }
 0x539   : > { %19606 = vmatmul.mubr.msk.f32.gmra.mrb[58].mxu0 %vm265_vm0, %v11628_v58  ;;  %19252 = vmatmul.mubr.msk.f32.gmra.mrb[50].mxu1 %vm265_vm0, %v11620_v50 }
 0x53a   : > { %12043 = vmatprep.mubr.f32.mxu0 %v24962_v55  ;;  %6168 = vmatprep.mubr.f32.mxu1 %v24962_v55 }
 0x53d   : > { %19607 = vmatmul.mubr.msk.f32.gmra.mrb[60].mxu0 %vm265_vm0, %v11629_v60  ;;  %19253 = vmatmul.mubr.msk.f32.gmra.mrb[52].mxu1 %vm265_vm0, %v11621_v51  ;;  %v12773_v51 = vld [vmem:[#allocation2 + $0x81] sm:$0xff] }
 0x53e   : > { %12049 = vmatprep.mubr.f32.mxu0 %v24962_v55  ;;  %6174 = vmatprep.mubr.f32.mxu1 %v24962_v55 }
 0x541   : > { %19608 = vmatmul.mubr.msk.f32.gmra.mrb[62].mxu0 %vm265_vm0, %v11630_v61  ;;  %19254 = vmatmul.mubr.msk.f32.gmra.mrb[54].mxu1 %vm265_vm0, %v11622_v52  ;;  %v12776_v61 = vld [vmem:[#allocation2 + $0xa9] sm:$0xff] }
 0x542   : > { %12449 = vmatprep.mubr.f32.mxu0 %v24962_v55  ;;  %6180 = vmatprep.mubr.f32.mxu1 %v24962_v55 }
 0x545   : > { %19612 = vmatmul.mubr.msk.f32.vlgmr.msra.gmra.mrb[0].mxu0 %vm265_vm0, %v12185_v63  ;;  %19255 = vmatmul.mubr.msk.f32.gmra.mrb[56].mxu1 %vm265_vm0, %v11623_v53 }
 0x546   : > { %19646 = vmatpush1.msk.msra.mxu0 %vm677_vm2, %v25082_v23  ;;  %12455 = vmatprep.mubr.f32.mxu0 %v24962_v55  ;;  %v12200_v23 = vld [vmem:[#allocation2 + $0x110] sm:$0xff] }
 0x547   : > { %19680 = vmatprep.subr.msk.mxu0 %vm677_vm2, %v13454_v5  ;;  %6186 = vmatprep.mubr.f32.mxu1 %v24962_v55  ;;  %v12777_v5 = vld [vmem:[#allocation2 + $0xb1] sm:$0xff] }
 0x549   : > { %19613 = vmatmul.mubr.msk.f32.gmra.mrb[2].mxu0 %vm265_vm0, %v12186_v1  ;;  %19256 = vmatmul.mubr.msk.f32.gmra.mrb[58].mxu1 %vm265_vm0, %v11624_v54  ;;  %v12774_v54 = vld [vmem:[#allocation2 + $0x91] sm:$0xff] }
 0x54a   : > { %12461 = vmatprep.mubr.f32.mxu0 %v24962_v55  ;;  %6192 = vmatprep.mubr.f32.mxu1 %v24962_v55 }
 0x54d   : > { %19614 = vmatmul.mubr.msk.f32.gmra.mrb[4].mxu0 %vm265_vm0, %v12187_v2  ;;  %19257 = vmatmul.mubr.msk.f32.gmra.mrb[60].mxu1 %vm265_vm0, %v11625_v56 }
 0x54e   : > { %12467 = vmatprep.mubr.f32.mxu0 %v24962_v55  ;;  %6198 = vmatprep.mubr.f32.mxu1 %v24962_v55 }
 0x551   : > { %19615 = vmatmul.mubr.msk.f32.gmra.mrb[6].mxu0 %vm265_vm0, %v12188_v0  ;;  %19258 = vmatmul.mubr.msk.f32.gmra.mrb[62].mxu1 %vm265_vm0, %v11626_v57  ;;  %v12778_v0 = vld [vmem:[#allocation2 + $0xc1] sm:$0xff] }
 0x552   : > { %12473 = vmatprep.mubr.f32.mxu0 %v24962_v55  ;;  %6741 = vmatprep.mubr.f32.mxu1 %v24962_v55 }
 0x555   : > { %19616 = vmatmul.mubr.msk.f32.gmra.mrb[8].mxu0 %vm265_vm0, %v12189_v3  ;;  %19286 = vmatmul.mubr.msk.f32.vlgmr.msra.gmra.mrb[48].mxu1 %vm265_vm0, %v25264_v7 }
 0x556   : > { %12479 = vmatprep.mubr.f32.mxu0 %v24962_v55  ;;  %6747 = vmatprep.mubr.f32.mxu1 %v24962_v55 }
 0x559   : > { %19617 = vmatmul.mubr.msk.f32.gmra.mrb[10].mxu0 %vm265_vm0, %v12190_v4  ;;  %19287 = vmatmul.mubr.msk.f32.gmra.mrb[50].mxu1 %vm265_vm0, %v6358_v9 }
 0x55a   : > { %12485 = vmatprep.mubr.f32.mxu0 %v24962_v55  ;;  %6753 = vmatprep.mubr.f32.mxu1 %v24962_v55 }
 0x55d   : > { %19618 = vmatmul.mubr.msk.f32.gmra.mrb[12].mxu0 %vm265_vm0, %v12191_v6  ;;  %19288 = vmatmul.mubr.msk.f32.gmra.mrb[52].mxu1 %vm265_vm0, %v6359_v11  ;;  %v12779_v6 = vld [vmem:[#allocation2 + $0xc9] sm:$0xff] }
 0x55e   : > { %12491 = vmatprep.mubr.f32.mxu0 %v24962_v55  ;;  %6759 = vmatprep.mubr.f32.mxu1 %v24962_v55 }
 0x561   : > { %19619 = vmatmul.mubr.msk.f32.gmra.mrb[14].mxu0 %vm265_vm0, %v12192_v8  ;;  %19289 = vmatmul.mubr.msk.f32.gmra.mrb[54].mxu1 %vm265_vm0, %v6360_v13 }
 0x562   : > { %12497 = vmatprep.mubr.f32.mxu0 %v24962_v55  ;;  %6765 = vmatprep.mubr.f32.mxu1 %v24962_v55 }
 0x565   : > { %19620 = vmatmul.mubr.msk.f32.gmra.mrb[16].mxu0 %vm265_vm0, %v12193_v10  ;;  %19290 = vmatmul.mubr.msk.f32.gmra.mrb[56].mxu1 %vm265_vm0, %v6361_v15 }
 0x566   : > { %12503 = vmatprep.mubr.f32.mxu0 %v24962_v55  ;;  %6771 = vmatprep.mubr.f32.mxu1 %v24962_v55 }
 0x569   : > { %19621 = vmatmul.mubr.msk.f32.gmra.mrb[18].mxu0 %vm265_vm0, %v12194_v12  ;;  %19291 = vmatmul.mubr.msk.f32.gmra.mrb[58].mxu1 %vm265_vm0, %v6362_v17  ;;  %v12781_v12 = vld [vmem:[#allocation2 + $0xe1] sm:$0xff] }
 0x56a   : > { %12509 = vmatprep.mubr.f32.mxu0 %v24962_v55  ;;  %6777 = vmatprep.mubr.f32.mxu1 %v24962_v55 }
 0x56d   : > { %19622 = vmatmul.mubr.msk.f32.gmra.mrb[20].mxu0 %vm265_vm0, %v12195_v14  ;;  %19292 = vmatmul.mubr.msk.f32.gmra.mrb[60].mxu1 %vm265_vm0, %v6363_v19 }
 0x56e   : > { %12515 = vmatprep.mubr.f32.mxu0 %v24962_v55  ;;  %6783 = vmatprep.mubr.f32.mxu1 %v24962_v55 }
 0x571   : > { %19623 = vmatmul.mubr.msk.f32.gmra.mrb[22].mxu0 %vm265_vm0, %v12196_v16  ;;  %19293 = vmatmul.mubr.msk.f32.gmra.mrb[62].mxu1 %vm265_vm0, %v6364_v21 }
 0x572   : > { %12521 = vmatprep.mubr.f32.mxu0 %v24962_v55  ;;  %20258 = vmatprep.mubr.f32.mxu1 %v24962_v55 }
 0x575   : > { %19624 = vmatmul.mubr.msk.f32.gmra.mrb[24].mxu0 %vm265_vm0, %v12197_v18  ;;  %v12783_v18 = vld [vmem:[#allocation2 + $0xf9] sm:$0xff] }
 0x576   : > { %12527 = vmatprep.mubr.f32.mxu0 %v24962_v55 }
 0x579   : > { %19625 = vmatmul.mubr.msk.f32.gmra.mrb[26].mxu0 %vm265_vm0, %v12198_v20 }
 0x57a   : > { %12533 = vmatprep.mubr.f32.mxu0 %v24962_v55 }
 0x57d   : > { %19626 = vmatmul.mubr.msk.f32.gmra.mrb[28].mxu0 %vm265_vm0, %v12199_v22  ;;  %v12784_v22 = vld [vmem:[#allocation2 + $0x109] sm:$0xff] }
 0x57e   : > { %12539 = vmatprep.mubr.f32.mxu0 %v24962_v55 }
 0x581   : > { %19627 = vmatmul.mubr.msk.f32.gmra.mrb[30].mxu0 %vm265_vm0, %v12200_v23 }
 0x582   : > { %12545 = vmatprep.mubr.f32.mxu0 %v24962_v55 }
 0x585   : > { %19628 = vmatmul.mubr.msk.f32.gmra.mrb[32].mxu0 %vm265_vm0, %v12201_v24 }
 0x586   : > { %12551 = vmatprep.mubr.f32.mxu0 %v24962_v55 }
 0x589   : > { %19629 = vmatmul.mubr.msk.f32.gmra.mrb[34].mxu0 %vm265_vm0, %v12202_v25 }
 0x58a   : > { %12557 = vmatprep.mubr.f32.mxu0 %v24962_v55 }
 0x58d   : > { %19630 = vmatmul.mubr.msk.f32.gmra.mrb[36].mxu0 %vm265_vm0, %v12203_v26 }
 0x58e   : > { %12563 = vmatprep.mubr.f32.mxu0 %v24962_v55 }
 0x591   : > { %19631 = vmatmul.mubr.msk.f32.gmra.mrb[38].mxu0 %vm265_vm0, %v12204_v27  ;;  %v12786_v27 = vld [vmem:[#allocation2 + $0x121] sm:$0xff] }
 0x592   : > { %12569 = vmatprep.mubr.f32.mxu0 %v24962_v55 }
 0x595   : > { %19632 = vmatmul.mubr.msk.f32.gmra.mrb[40].mxu0 %vm265_vm0, %v25264_v7 }
 0x596   : > { %12575 = vmatprep.mubr.f32.mxu0 %v24962_v55 }
 0x599   : > { %19633 = vmatmul.mubr.msk.f32.gmra.mrb[42].mxu0 %vm265_vm0, %v6358_v9  ;;  %v12780_v9 = vld [vmem:[#allocation2 + $0xd9] sm:$0xff] }
 0x59a   : > { %12581 = vmatprep.mubr.f32.mxu0 %v24962_v55 }
 0x59d   : > { %19634 = vmatmul.mubr.msk.f32.gmra.mrb[44].mxu0 %vm265_vm0, %v6359_v11 }
 0x59e   : > { %12587 = vmatprep.mubr.f32.mxu0 %v24962_v55 }
 0x5a1   : > { %19635 = vmatmul.mubr.msk.f32.gmra.mrb[46].mxu0 %vm265_vm0, %v6360_v13 }
 0x5a2   : > { %12593 = vmatprep.mubr.f32.mxu0 %v24962_v55 }
 0x5a5   : > { %19636 = vmatmul.mubr.msk.f32.gmra.mrb[48].mxu0 %vm265_vm0, %v6361_v15  ;;  %v12782_v15 = vld [vmem:[#allocation2 + $0xf1] sm:$0xff] }
 0x5a6   : > { %12599 = vmatprep.mubr.f32.mxu0 %v24962_v55 }
 0x5a8   : > { %v25327_v29 = vpop.f32.mrb[0].mxu1 }
 0x5a9   : > { %19637 = vmatmul.mubr.msk.f32.gmra.mrb[50].mxu0 %vm265_vm0, %v6362_v17  ;;  %v25329_v30 = vpop.f32.mrb[1].mxu1 }
 0x5aa   : > { %12605 = vmatprep.mubr.f32.mxu0 %v24962_v55 }
 0x5ac   : > { %v25333_v32 = vpop.f32.mrb[2].mxu1 }
 0x5ad   : > { %19638 = vmatmul.mubr.msk.f32.gmra.mrb[52].mxu0 %vm265_vm0, %v6363_v19  ;;  %v25335_v33 = vpop.f32.mrb[3].mxu1 }
 0x5ae   : > { %12611 = vmatprep.mubr.f32.mxu0 %v24962_v55 }
 0x5b0   : > { %v25339_v35 = vpop.f32.mrb[4].mxu1 }
 0x5b1   : > { %19639 = vmatmul.mubr.msk.f32.gmra.mrb[54].mxu0 %vm265_vm0, %v6364_v21  ;;  %v25341_v36 = vpop.f32.mrb[5].mxu1  ;;  %v25444_v21 = vld [vmem:[#allocation3] sm:$0xff] }
 0x5b2   : > { %12617 = vmatprep.mubr.f32.mxu0 %v24962_v55 }
 0x5b4   : > { %v25345_v38 = vpop.f32.mrb[6].mxu1 }
 0x5b5   : > { %19640 = vmatmul.mubr.msk.f32.gmra.mrb[56].mxu0 %vm265_vm0, %v12213_v28  ;;  %v25347_v39 = vpop.f32.mrb[7].mxu1 }
 0x5b6   : > { %12623 = vmatprep.mubr.f32.mxu0 %v24962_v55 }
 0x5b8   : > { %v25351_v41 = vpop.f32.mrb[8].mxu1 }
 0x5b9   : > { %19641 = vmatmul.mubr.msk.f32.gmra.mrb[58].mxu0 %vm265_vm0, %v12214_v31  ;;  %v25358_v43 = vpop.f32.mrb[9].mxu1 }
 0x5ba   : > { %12629 = vmatprep.mubr.f32.mxu0 %v24962_v55 }
 0x5bc   : > { %v25366_v46 = vpop.f32.mrb[10].mxu1 }
 0x5bd   : > { %19642 = vmatmul.mubr.msk.f32.gmra.mrb[60].mxu0 %vm265_vm0, %v12215_v34  ;;  %v25369_v47 = vpop.f32.mrb[11].mxu1  ;;  %v12787_v34 = vld [vmem:[#allocation2 + $0x129] sm:$0xff] }
 0x5be   : > { %12635 = vmatprep.mubr.f32.mxu0 %v24962_v55 }
 0x5c0   : > { %v25373_v49 = vpop.f32.mrb[12].mxu1 }
 0x5c1   : > { %19643 = vmatmul.mubr.msk.f32.gmra.mrb[62].mxu0 %vm265_vm0, %v12216_v37  ;;  %v25375_v50 = vpop.f32.mrb[13].mxu1 }
 0x5c2   : > { %13034 = vmatprep.mubr.f32.mxu0 %v24962_v55 }
 0x5c4   : > { %v25379_v52 = vpop.f32.mrb[14].mxu1 }
 0x5c5   : > { %19647 = vmatmul.mubr.msk.f32.vlgmr.msra.gmra.mrb[0].mxu0 %vm265_vm0, %v12770_v40  ;;  %v25381_v53 = vpop.f32.mrb[15].mxu1 }
 0x5c6   : > { %19681 = vmatpush1.msk.msra.mxu0 %vm677_vm2, %v25230_v62  ;;  %13040 = vmatprep.mubr.f32.mxu0 %v24962_v55 }
 0x5c7   : > { %19715 = vmatprep.subr.msk.mxu0 %vm677_vm2, %v14039_v44  ;;  %v12788_v44 = vld [vmem:[#allocation2 + $0x139] sm:$0xff] }
 0x5c8   : > { %v25385_v56 = vpop.f32.mrb[16].mxu1 }
 0x5c9   : > { %19648 = vmatmul.mubr.msk.f32.gmra.mrb[2].mxu0 %vm265_vm0, %v12771_v45  ;;  %v25387_v57 = vpop.f32.mrb[17].mxu1 }
 0x5ca   : > { %13046 = vmatprep.mubr.f32.mxu0 %v24962_v55 }
 0x5cc   : > { %v25391_v58 = vpop.f32.mrb[18].mxu1 }
 0x5cd   : > { %19649 = vmatmul.mubr.msk.f32.gmra.mrb[4].mxu0 %vm265_vm0, %v12772_v48  ;;  %v25393_v60 = vpop.f32.mrb[19].mxu1 }
 0x5ce   : > { %13052 = vmatprep.mubr.f32.mxu0 %v24962_v55 }
 0x5d0   : > { %v25397_v63 = vpop.f32.mrb[20].mxu1 }
 0x5d1   : > { %19650 = vmatmul.mubr.msk.f32.gmra.mrb[6].mxu0 %vm265_vm0, %v12773_v51  ;;  %v25399_v62 = vpop.f32.mrb[21].mxu1  ;;  %v12789_v51 = vld [vmem:[#allocation2 + $0x141] sm:$0xff] }
 0x5d2   : > { %13058 = vmatprep.mubr.f32.mxu0 %v24962_v55 }
 0x5d4   : > { %v25403_v1 = vpop.f32.mrb[22].mxu1 }
 0x5d5   : > { %19651 = vmatmul.mubr.msk.f32.gmra.mrb[8].mxu0 %vm265_vm0, %v12774_v54  ;;  %v25405_v2 = vpop.f32.mrb[23].mxu1 }
 0x5d6   : > { %13064 = vmatprep.mubr.f32.mxu0 %v24962_v55 }
 0x5d8   : > { %v25409_v3 = vpop.f32.mrb[24].mxu1 }
 0x5d9   : > { %19652 = vmatmul.mubr.msk.f32.gmra.mrb[10].mxu0 %vm265_vm0, %v12775_v59  ;;  %v25411_v4 = vpop.f32.mrb[25].mxu1 }
 0x5da   : > { %13070 = vmatprep.mubr.f32.mxu0 %v24962_v55 }
 0x5dc   : > { %v25415_v7 = vpop.f32.mrb[26].mxu1 }
 0x5dd   : > { %19653 = vmatmul.mubr.msk.f32.gmra.mrb[12].mxu0 %vm265_vm0, %v12776_v61  ;;  %v25417_v8 = vpop.f32.mrb[27].mxu1  ;;  %v12790_v61 = vld [vmem:[#allocation2 + $0x151] sm:$0xff] }
 0x5de   : > { %13076 = vmatprep.mubr.f32.mxu0 %v24962_v55 }
 0x5e0   : > { %v25421_v10 = vpop.f32.mrb[28].mxu1 }
 0x5e1   : > { %19654 = vmatmul.mubr.msk.f32.gmra.mrb[14].mxu0 %vm265_vm0, %v12777_v5  ;;  %v25423_v11 = vpop.f32.mrb[29].mxu1  ;;  %v12791_v5 = vld [vmem:[#allocation2 + $0x159] sm:$0xff] }
 0x5e2   : > { %13082 = vmatprep.mubr.f32.mxu0 %v24962_v55 }
 0x5e4   : > { %v25427_v13 = vpop.f32.mrb[30].mxu1 }
 0x5e5   : > { %19655 = vmatmul.mubr.msk.f32.gmra.mrb[16].mxu0 %vm265_vm0, %v12778_v0  ;;  %v25429_v14 = vpop.f32.mrb[31].mxu1  ;;  %v12792_v0 = vld [vmem:[#allocation2 + $0x169] sm:$0xff] }
 0x5e6   : > { %13088 = vmatprep.mubr.f32.mxu0 %v24962_v55 }
 0x5e8   : > { %v25433_v16 = vpop.f32.mrb[32].mxu1 }
 0x5e9   : > { %19656 = vmatmul.mubr.msk.f32.gmra.mrb[18].mxu0 %vm265_vm0, %v12779_v6  ;;  %v25435_v17 = vpop.f32.mrb[33].mxu1  ;;  %v12793_v6 = vld [vmem:[#allocation2 + $0x171] sm:$0xff] }
 0x5ea   : > { %13094 = vmatprep.mubr.f32.mxu0 %v24962_v55 }
 0x5ec   : > { %v25439_v19 = vpop.f32.mrb[34].mxu1 }
 0x5ed   : > { %19657 = vmatmul.mubr.msk.f32.gmra.mrb[20].mxu0 %vm265_vm0, %v12780_v9  ;;  %v25441_v20 = vpop.f32.mrb[35].mxu1  ;;  %v12794_v9 = vld [vmem:[#allocation2 + $0x181] sm:$0xff] }
 0x5ee   : > { %13100 = vmatprep.mubr.f32.mxu0 %v24962_v55 }
 0x5f0   : > { %v25447_v23 = vpop.f32.mrb[36].mxu1 }
 0x5f1   : > { %19658 = vmatmul.mubr.msk.f32.gmra.mrb[22].mxu0 %vm265_vm0, %v12781_v12  ;;  %v25449_v24 = vpop.f32.mrb[37].mxu1  ;;  %v12795_v12 = vld [vmem:[#allocation2 + $0x189] sm:$0xff] }
 0x5f2   : > { %13106 = vmatprep.mubr.f32.mxu0 %v24962_v55 }
 0x5f4   : > { %v25453_v25 = vpop.f32.mrb[38].mxu1 }
 0x5f5   : > { %19659 = vmatmul.mubr.msk.f32.gmra.mrb[24].mxu0 %vm265_vm0, %v12782_v15  ;;  %v25455_v26 = vpop.f32.mrb[39].mxu1  ;;  %v12796_v15 = vld [vmem:[#allocation2 + $0x199] sm:$0xff] }
 0x5f6   : > { %13112 = vmatprep.mubr.f32.mxu0 %v24962_v55  ;;  %v12785_v55 = vld [vmem:[#allocation2 + $0x111] sm:$0xff] }
 0x5f8   : > { %v25459_v28 = vpop.f32.mrb[40].mxu1 }
 0x5f9   : > { %19660 = vmatmul.mubr.msk.f32.gmra.mrb[26].mxu0 %vm265_vm0, %v12783_v18  ;;  %v25461_v31 = vpop.f32.mrb[41].mxu1  ;;  %v12797_v18 = vld [vmem:[#allocation2 + $0x1a1] sm:$0xff] }
 0x5fa   : > { %13118 = vmatprep.mubr.f32.mxu0 %v25444_v21 }
 0x5fc   : > { %v25465_v37 = vpop.f32.mrb[42].mxu1 }
 0x5fd   : > { %19661 = vmatmul.mubr.msk.f32.gmra.mrb[28].mxu0 %vm265_vm0, %v12784_v22  ;;  %v25467_v40 = vpop.f32.mrb[43].mxu1  ;;  %v12798_v22 = vld [vmem:[#allocation2 + $0x1b1] sm:$0xff] }
 0x5fe   : > { %13124 = vmatprep.mubr.f32.mxu0 %v25444_v21 }
 0x600   : > { %v25471_v45 = vpop.f32.mrb[44].mxu1 }
 0x601   : > { %19662 = vmatmul.mubr.msk.f32.gmra.mrb[30].mxu0 %vm265_vm0, %v12785_v55  ;;  %v25473_v48 = vpop.f32.mrb[45].mxu1 }
 0x602   : > { %13130 = vmatprep.mubr.f32.mxu0 %v25444_v21 }
 0x604   : > { %v25477_v54 = vpop.f32.mrb[46].mxu1 }
 0x605   : > { %19663 = vmatmul.mubr.msk.f32.gmra.mrb[32].mxu0 %vm265_vm0, %v12786_v27  ;;  %v25479_v59 = vpop.f32.mrb[47].mxu1 }
 0x606   : > { %13136 = vmatprep.mubr.f32.mxu0 %v25444_v21 }
 0x609   : > { %19664 = vmatmul.mubr.msk.f32.gmra.mrb[34].mxu0 %vm265_vm0, %v12787_v34  ;;  %v12799_v34 = vld [vmem:[#allocation2 + $0x1b9] sm:$0xff] }
 0x60a   : > { %13142 = vmatprep.mubr.f32.mxu0 %v25444_v21 }
 0x60d   : > { %19665 = vmatmul.mubr.msk.f32.gmra.mrb[36].mxu0 %vm265_vm0, %v12788_v44 }
 0x60e   : > { %13148 = vmatprep.mubr.f32.mxu0 %v25444_v21 }
 0x611   : > { %19666 = vmatmul.mubr.msk.f32.gmra.mrb[38].mxu0 %vm265_vm0, %v12789_v51 }
 0x612   : > { %13154 = vmatprep.mubr.f32.mxu0 %v25444_v21 }
 0x615   : > { %19667 = vmatmul.mubr.msk.f32.gmra.mrb[40].mxu0 %vm265_vm0, %v12790_v61  ;;  %v12800_v61 = vld [vmem:[#allocation2 + $0x1c9] sm:$0xff] }
 0x616   : > { %13160 = vmatprep.mubr.f32.mxu0 %v25444_v21 }
 0x619   : > { %19668 = vmatmul.mubr.msk.f32.gmra.mrb[42].mxu0 %vm265_vm0, %v12791_v5 }
 0x61a   : > { %13166 = vmatprep.mubr.f32.mxu0 %v25444_v21 }
 0x61d   : > { %19669 = vmatmul.mubr.msk.f32.gmra.mrb[44].mxu0 %vm265_vm0, %v12792_v0 }
 0x61e   : > { %13172 = vmatprep.mubr.f32.mxu0 %v25444_v21 }
 0x621   : > { %19670 = vmatmul.mubr.msk.f32.gmra.mrb[46].mxu0 %vm265_vm0, %v12793_v6  ;;  %v12801_v6 = vld [vmem:[#allocation2 + $0x1d1] sm:$0xff] }
 0x622   : > { %13178 = vmatprep.mubr.f32.mxu0 %v25444_v21 }
 0x625   : > { %19671 = vmatmul.mubr.msk.f32.gmra.mrb[48].mxu0 %vm265_vm0, %v12794_v9 }
 0x626   : > { %13184 = vmatprep.mubr.f32.mxu0 %v25444_v21 }
 0x628   : > { %v25499_v55 = vpop.f32.mrb[48].mxu1 }
 0x629   : > { %19672 = vmatmul.mubr.msk.f32.gmra.mrb[50].mxu0 %vm265_vm0, %v12795_v12  ;;  %26699 = vst [vmem:[#allocation11_spill] sm:$0xff] %v25499_v55  ;;  %v25501_v27 = vpop.f32.mrb[49].mxu1 }
 0x62a   : > { %13190 = vmatprep.mubr.f32.mxu0 %v25444_v21  ;;  %26700 = vst [vmem:[#allocation12_spill] sm:$0xff] %v25501_v27 }
 0x62c   : > { %v25505_v44 = vpop.f32.mrb[50].mxu1 }
 0x62d   : > { %19673 = vmatmul.mubr.msk.f32.gmra.mrb[52].mxu0 %vm265_vm0, %v12796_v15  ;;  %26701 = vst [vmem:[#allocation13_spill] sm:$0xff] %v25505_v44  ;;  %v25507_v51 = vpop.f32.mrb[51].mxu1  ;;  %v13355_v15 = vld [vmem:[#allocation2 + $0x62] sm:$0xff] }
 0x62e   : > { %13196 = vmatprep.mubr.f32.mxu0 %v25444_v21  ;;  %26702 = vst [vmem:[#allocation14_spill] sm:$0xff] %v25507_v51  ;;  %v15354_v51 = vld [vmem:[#allocation5 + $0x30] sm:$0xff]  ;;  %v15355_v44 = vld [vmem:[#allocation5 + $0x38] sm:$0xff] }
 0x630   : > { %v25511_v5 = vpop.f32.mrb[52].mxu1 }
 0x631   : > { %19674 = vmatmul.mubr.msk.f32.gmra.mrb[54].mxu0 %vm265_vm0, %v12797_v18  ;;  %26703 = vst [vmem:[#allocation15_spill] sm:$0xff] %v25511_v5  ;;  %v25513_v0 = vpop.f32.mrb[53].mxu1  ;;  %v25526_v18 = vld [vmem:[%s26644_s1 + $0xc0] sm:$0xff]  ;;  %v15353_v5 = vld [vmem:[#allocation5 + $0x28] sm:$0xff] }
 0x632   : > { %13202 = vmatprep.mubr.f32.mxu0 %v25444_v21  ;;  %26704 = vst [vmem:[#allocation16_spill] sm:$0xff] %v25513_v0 }
 0x634   : > { %v25517_v9 = vpop.f32.mrb[54].mxu1 }
 0x635   : > { %19675 = vmatmul.mubr.msk.f32.gmra.mrb[56].mxu0 %vm265_vm0, %v12798_v22  ;;  %26705 = vst [vmem:[#allocation17_spill] sm:$0xff] %v25517_v9  ;;  %v25519_v12 = vpop.f32.mrb[55].mxu1 }
 0x636   : > { %13208 = vmatprep.mubr.f32.mxu0 %v25444_v21  ;;  %26706 = vst [vmem:[#allocation18_spill] sm:$0xff] %v25519_v12 }
 0x638   : > { %v25528_v22 = vpop.f32.mrb[56].mxu1 }
 0x639   : > { %19676 = vmatmul.mubr.msk.f32.gmra.mrb[58].mxu0 %vm265_vm0, %v12799_v34  ;;  %26707 = vst [vmem:[#allocation19_spill] sm:$0xff] %v25528_v22  ;;  %v14624_v34 = vcombine.high %v25526_v18, %v25526_v18  ;;  %v13357_v22 = vld [vmem:[#allocation2 + $0x7a] sm:$0xff] }
 0x63a   : > { %13214 = vmatprep.mubr.f32.mxu0 %v25444_v21 }
 0x63d   : > { %19677 = vmatmul.mubr.msk.f32.gmra.mrb[60].mxu0 %vm265_vm0, %v12800_v61  ;;  %v25532_v61 = vpop.f32.mrb[57].mxu1 }
 0x63e   : > { %13220 = vmatprep.mubr.f32.mxu0 %v25444_v21  ;;  %26708 = vst [vmem:[#allocation20_spill] sm:$0xff] %v25532_v61  ;;  %v25538_v12 = vpop.f32.mrb[58].mxu1 }
 0x63f   : > { %26709 = vst [vmem:[#allocation21_spill] sm:$0xff] %v25538_v12  ;;  %v25541_v9 = vpop.f32.mrb[59].mxu1 }
 0x640   : > { %26710 = vst [vmem:[#allocation22_spill] sm:$0xff] %v25541_v9  ;;  %v25545_v61 = vpop.f32.mrb[60].mxu1 }
 0x641   : > { %19678 = vmatmul.mubr.msk.f32.gmra.mrb[62].mxu0 %vm265_vm0, %v12801_v6  ;;  %v13356_v6 = vld [vmem:[#allocation2 + $0x6a] sm:$0xff]  ;;  %26711 = vst [vmem:[#allocation23_spill] sm:$0xff] %v25545_v61 }
 0x642   : > { %13619 = vmatprep.mubr.f32.mxu0 %v25444_v21  ;;  %v15351_v61 = vld [vmem:[#allocation5 + $0x18] sm:$0xff] }
 0x645   : > { %19682 = vmatmul.mubr.msk.f32.vlgmr.msra.gmra.mrb[0].mxu0 %vm265_vm0, %v13355_v15  ;;  %v25547_v15 = vpop.f32.mrb[61].mxu1 }
 0x646   : > { %19716 = vmatpush1.msk.msra.mxu0 %vm677_vm2, %v25356_v42  ;;  %13625 = vmatprep.mubr.f32.mxu0 %v25444_v21  ;;  %26712 = vst [vmem:[#allocation24_spill] sm:$0xff] %v25547_v15  ;;  %v13358_v42 = vld [vmem:[#allocation2 + $0x82] sm:$0xff]  ;;  %v25551_v0 = vpop.f32.mrb[62].mxu1 }
 0x647   : > { %19750 = vmatprep.subr.msk.mxu0 %vm677_vm2, %v14624_v34  ;;  %26713 = vst [vmem:[#allocation25_spill] sm:$0xff] %v25551_v0  ;;  %v25553_v12 = vpop.f32.mrb[63].mxu1  ;;  %v13359_v34 = vld [vmem:[#allocation2 + $0x92] sm:$0xff]  ;;  %v15350_v0 = vld [vmem:[#allocation5 + $0x10] sm:$0xff] }
 0x648   : > { %26714 = vst [vmem:[#allocation26_spill] sm:$0xff] %v25553_v12  ;;  %v13362_v12 = vld [vmem:[#allocation2 + $0xb2] sm:$0xff]  ;;  %v20950_v9 = vpack.c.bf16 %v15351_v61, %v15350_v0  ;;  %v20958_v0 = vpack.c.bf16 %v15355_v44, %v15354_v51  ;;  %v14530_v44 = vld [vmem:[#allocation2 + $0x9c] sm:$0xff] }
 0x649   : > { %19683 = vmatmul.mubr.msk.f32.gmra.mrb[2].mxu0 %vm265_vm0, %v13356_v6  ;;  %v13360_v6 = vld [vmem:[#allocation2 + $0x9a] sm:$0xff]  ;;  %v15356_v61 = vld [vmem:[#allocation5 + $0x40] sm:$0xff] }
 0x64a   : > { %13631 = vmatprep.mubr.f32.mxu0 %v25444_v21  ;;  %v14531_v51 = vld [vmem:[#allocation2 + $0xac] sm:$0xff] }
 0x64d   : > { %19684 = vmatmul.mubr.msk.f32.gmra.mrb[4].mxu0 %vm265_vm0, %v13357_v22  ;;  %v13361_v22 = vld [vmem:[#allocation2 + $0xaa] sm:$0xff] }
 0x64e   : > { %13637 = vmatprep.mubr.f32.mxu0 %v25444_v21 }
 0x651   : > { %19685 = vmatmul.mubr.msk.f32.gmra.mrb[6].mxu0 %vm265_vm0, %v13358_v42  ;;  %v13363_v42 = vld [vmem:[#allocation2 + $0xc2] sm:$0xff] }
 0x652   : > { %13643 = vmatprep.mubr.f32.mxu0 %v25444_v21 }
 0x655   : > { %19686 = vmatmul.mubr.msk.f32.gmra.mrb[8].mxu0 %vm265_vm0, %v13359_v34  ;;  %v13364_v34 = vld [vmem:[#allocation2 + $0xca] sm:$0xff] }
 0x656   : > { %13649 = vmatprep.mubr.f32.mxu0 %v25444_v21 }
 0x659   : > { %19687 = vmatmul.mubr.msk.f32.gmra.mrb[10].mxu0 %vm265_vm0, %v13360_v6  ;;  %v13365_v6 = vld [vmem:[#allocation2 + $0xda] sm:$0xff] }
 0x65a   : > { %13655 = vmatprep.mubr.f32.mxu0 %v25444_v21 }
 0x65d   : > { %19688 = vmatmul.mubr.msk.f32.gmra.mrb[12].mxu0 %vm265_vm0, %v13361_v22  ;;  %v13366_v22 = vld [vmem:[#allocation2 + $0xe2] sm:$0xff] }
 0x65e   : > { %13661 = vmatprep.mubr.f32.mxu0 %v25444_v21 }
 0x661   : > { %19689 = vmatmul.mubr.msk.f32.gmra.mrb[14].mxu0 %vm265_vm0, %v13362_v12  ;;  %v13367_v12 = vld [vmem:[#allocation2 + $0xf2] sm:$0xff] }
 0x662   : > { %13667 = vmatprep.mubr.f32.mxu0 %v25444_v21 }
 0x665   : > { %19690 = vmatmul.mubr.msk.f32.gmra.mrb[16].mxu0 %vm265_vm0, %v13363_v42  ;;  %v13368_v42 = vld [vmem:[#allocation2 + $0xfa] sm:$0xff] }
 0x666   : > { %13673 = vmatprep.mubr.f32.mxu0 %v25444_v21 }
 0x669   : > { %19691 = vmatmul.mubr.msk.f32.gmra.mrb[18].mxu0 %vm265_vm0, %v13364_v34  ;;  %v13369_v34 = vld [vmem:[#allocation2 + $0x10a] sm:$0xff] }
 0x66a   : > { %13679 = vmatprep.mubr.f32.mxu0 %v25444_v21 }
 0x66d   : > { %19692 = vmatmul.mubr.msk.f32.gmra.mrb[20].mxu0 %vm265_vm0, %v13365_v6  ;;  %v13370_v6 = vld [vmem:[#allocation2 + $0x112] sm:$0xff] }
 0x66e   : > { %13685 = vmatprep.mubr.f32.mxu0 %v25444_v21 }
 0x671   : > { %19693 = vmatmul.mubr.msk.f32.gmra.mrb[22].mxu0 %vm265_vm0, %v13366_v22  ;;  %v13371_v22 = vld [vmem:[#allocation2 + $0x122] sm:$0xff] }
 0x672   : > { %13691 = vmatprep.mubr.f32.mxu0 %v25444_v21 }
 0x675   : > { %19694 = vmatmul.mubr.msk.f32.gmra.mrb[24].mxu0 %vm265_vm0, %v13367_v12  ;;  %v13372_v12 = vld [vmem:[#allocation2 + $0x12a] sm:$0xff] }
 0x676   : > { %13697 = vmatprep.mubr.f32.mxu0 %v25444_v21 }
 0x679   : > { %19695 = vmatmul.mubr.msk.f32.gmra.mrb[26].mxu0 %vm265_vm0, %v13368_v42  ;;  %v13373_v42 = vld [vmem:[#allocation2 + $0x13a] sm:$0xff] }
 0x67a   : > { %13703 = vmatprep.mubr.f32.mxu0 %v25444_v21 }
 0x67d   : > { %19696 = vmatmul.mubr.msk.f32.gmra.mrb[28].mxu0 %vm265_vm0, %v13369_v34  ;;  %v13374_v34 = vld [vmem:[#allocation2 + $0x142] sm:$0xff] }
 0x67e   : > { %13709 = vmatprep.mubr.f32.mxu0 %v25444_v21 }
 0x681   : > { %19697 = vmatmul.mubr.msk.f32.gmra.mrb[30].mxu0 %vm265_vm0, %v13370_v6  ;;  %v13375_v6 = vld [vmem:[#allocation2 + $0x152] sm:$0xff] }
 0x682   : > { %13715 = vmatprep.mubr.f32.mxu0 %v25444_v21 }
 0x685   : > { %19698 = vmatmul.mubr.msk.f32.gmra.mrb[32].mxu0 %vm265_vm0, %v13371_v22  ;;  %v13376_v22 = vld [vmem:[#allocation2 + $0x15a] sm:$0xff] }
 0x686   : > { %13721 = vmatprep.mubr.f32.mxu0 %v25444_v21 }
 0x689   : > { %19699 = vmatmul.mubr.msk.f32.gmra.mrb[34].mxu0 %vm265_vm0, %v13372_v12  ;;  %v13377_v12 = vld [vmem:[#allocation2 + $0x16a] sm:$0xff] }
 0x68a   : > { %13727 = vmatprep.mubr.f32.mxu0 %v25444_v21 }
 0x68d   : > { %19700 = vmatmul.mubr.msk.f32.gmra.mrb[36].mxu0 %vm265_vm0, %v13373_v42  ;;  %v13378_v42 = vld [vmem:[#allocation2 + $0x172] sm:$0xff] }
 0x68e   : > { %13733 = vmatprep.mubr.f32.mxu0 %v25444_v21 }
 0x691   : > { %19701 = vmatmul.mubr.msk.f32.gmra.mrb[38].mxu0 %vm265_vm0, %v13374_v34  ;;  %v13379_v34 = vld [vmem:[#allocation2 + $0x182] sm:$0xff] }
 0x692   : > { %13739 = vmatprep.mubr.f32.mxu0 %v25444_v21 }
 0x695   : > { %19702 = vmatmul.mubr.msk.f32.gmra.mrb[40].mxu0 %vm265_vm0, %v13375_v6  ;;  %v13380_v6 = vld [vmem:[#allocation2 + $0x18a] sm:$0xff] }
 0x696   : > { %13745 = vmatprep.mubr.f32.mxu0 %v25444_v21 }
 0x699   : > { %19703 = vmatmul.mubr.msk.f32.gmra.mrb[42].mxu0 %vm265_vm0, %v13376_v22  ;;  %v13381_v22 = vld [vmem:[#allocation2 + $0x19a] sm:$0xff] }
 0x69a   : > { %13751 = vmatprep.mubr.f32.mxu0 %v25444_v21 }
 0x69d   : > { %19704 = vmatmul.mubr.msk.f32.gmra.mrb[44].mxu0 %vm265_vm0, %v13377_v12  ;;  %v13382_v12 = vld [vmem:[#allocation2 + $0x1a2] sm:$0xff] }
 0x69e   : > { %13757 = vmatprep.mubr.f32.mxu0 %v25444_v21 }
 0x6a1   : > { %19705 = vmatmul.mubr.msk.f32.gmra.mrb[46].mxu0 %vm265_vm0, %v13378_v42  ;;  %v13383_v42 = vld [vmem:[#allocation2 + $0x1b2] sm:$0xff] }
 0x6a2   : > { %13763 = vmatprep.mubr.f32.mxu0 %v25444_v21 }
 0x6a5   : > { %19706 = vmatmul.mubr.msk.f32.gmra.mrb[48].mxu0 %vm265_vm0, %v13379_v34  ;;  %v13384_v34 = vld [vmem:[#allocation2 + $0x1ba] sm:$0xff] }
 0x6a6   : > { %13769 = vmatprep.mubr.f32.mxu0 %v25444_v21 }
 0x6a9   : > { %19707 = vmatmul.mubr.msk.f32.gmra.mrb[50].mxu0 %vm265_vm0, %v13380_v6  ;;  %v13385_v6 = vld [vmem:[#allocation2 + $0x1ca] sm:$0xff] }
 0x6aa   : > { %13775 = vmatprep.mubr.f32.mxu0 %v25444_v21 }
 0x6ad   : > { %19708 = vmatmul.mubr.msk.f32.gmra.mrb[52].mxu0 %vm265_vm0, %v13381_v22  ;;  %v13386_v22 = vld [vmem:[#allocation2 + $0x1d2] sm:$0xff] }
 0x6ae   : > { %13781 = vmatprep.mubr.f32.mxu0 %v25444_v21 }
 0x6b1   : > { %19709 = vmatmul.mubr.msk.f32.gmra.mrb[54].mxu0 %vm265_vm0, %v13382_v12  ;;  %v13940_v12 = vld [vmem:[#allocation2 + $0x63] sm:$0xff] }
 0x6b2   : > { %13787 = vmatprep.mubr.f32.mxu0 %v25444_v21 }
 0x6b5   : > { %19710 = vmatmul.mubr.msk.f32.gmra.mrb[56].mxu0 %vm265_vm0, %v13383_v42  ;;  %v13941_v42 = vld [vmem:[#allocation2 + $0x6b] sm:$0xff] }
 0x6b6   : > { %13793 = vmatprep.mubr.f32.mxu0 %v25444_v21 }
 0x6b9   : > { %19711 = vmatmul.mubr.msk.f32.gmra.mrb[58].mxu0 %vm265_vm0, %v13384_v34  ;;  %v13942_v34 = vld [vmem:[#allocation2 + $0x7b] sm:$0xff] }
 0x6ba   : > { %13799 = vmatprep.mubr.f32.mxu0 %v25444_v21 }
 0x6bd   : > { %19712 = vmatmul.mubr.msk.f32.gmra.mrb[60].mxu0 %vm265_vm0, %v13385_v6  ;;  %v13943_v6 = vld [vmem:[#allocation2 + $0x83] sm:$0xff] }
 0x6be   : > { %13805 = vmatprep.mubr.f32.mxu0 %v25444_v21 }
 0x6c1   : > { %19713 = vmatmul.mubr.msk.f32.gmra.mrb[62].mxu0 %vm265_vm0, %v13386_v22  ;;  %v13944_v22 = vld [vmem:[#allocation2 + $0x93] sm:$0xff] }
 0x6c2   : > { %14204 = vmatprep.mubr.f32.mxu0 %v25444_v21 }
 0x6c5   : > { %19717 = vmatmul.mubr.msk.f32.vlgmr.msra.gmra.mrb[0].mxu0 %vm265_vm0, %v13940_v12  ;;  %v13946_v12 = vld [vmem:[#allocation2 + $0xab] sm:$0xff] }
 0x6c6   : > { %19751 = vmatpush1.msk.msra.mxu0 %vm677_vm2, %v25526_v18  ;;  %14210 = vmatprep.mubr.f32.mxu0 %v25444_v21  ;;  %v13945_v18 = vld [vmem:[#allocation2 + $0x9b] sm:$0xff] }
 0x6c9   : > { %19718 = vmatmul.mubr.msk.f32.gmra.mrb[2].mxu0 %vm265_vm0, %v13941_v42  ;;  %v13947_v42 = vld [vmem:[#allocation2 + $0xb3] sm:$0xff] }
 0x6ca   : > { %14216 = vmatprep.mubr.f32.mxu0 %v25444_v21 }
 0x6cd   : > { %19719 = vmatmul.mubr.msk.f32.gmra.mrb[4].mxu0 %vm265_vm0, %v13942_v34  ;;  %v13948_v34 = vld [vmem:[#allocation2 + $0xc3] sm:$0xff] }
 0x6ce   : > { %14222 = vmatprep.mubr.f32.mxu0 %v25444_v21 }
 0x6d1   : > { %19720 = vmatmul.mubr.msk.f32.gmra.mrb[6].mxu0 %vm265_vm0, %v13943_v6  ;;  %v13949_v6 = vld [vmem:[#allocation2 + $0xcb] sm:$0xff] }
 0x6d2   : > { %14228 = vmatprep.mubr.f32.mxu0 %v25444_v21 }
 0x6d5   : > { %19721 = vmatmul.mubr.msk.f32.gmra.mrb[8].mxu0 %vm265_vm0, %v13944_v22  ;;  %v13950_v22 = vld [vmem:[#allocation2 + $0xdb] sm:$0xff] }
 0x6d6   : > { %14234 = vmatprep.mubr.f32.mxu0 %v25444_v21 }
 0x6d9   : > { %19722 = vmatmul.mubr.msk.f32.gmra.mrb[10].mxu0 %vm265_vm0, %v13945_v18  ;;  %v13951_v18 = vld [vmem:[#allocation2 + $0xe3] sm:$0xff] }
 0x6da   : > { %14240 = vmatprep.mubr.f32.mxu0 %v25444_v21 }
 0x6dd   : > { %19723 = vmatmul.mubr.msk.f32.gmra.mrb[12].mxu0 %vm265_vm0, %v13946_v12  ;;  %v13952_v12 = vld [vmem:[#allocation2 + $0xf3] sm:$0xff] }
 0x6de   : > { %14246 = vmatprep.mubr.f32.mxu0 %v25444_v21 }
 0x6e1   : > { %19724 = vmatmul.mubr.msk.f32.gmra.mrb[14].mxu0 %vm265_vm0, %v13947_v42  ;;  %v13953_v42 = vld [vmem:[#allocation2 + $0xfb] sm:$0xff] }
 0x6e2   : > { %14252 = vmatprep.mubr.f32.mxu0 %v25444_v21 }
 0x6e5   : > { %19725 = vmatmul.mubr.msk.f32.gmra.mrb[16].mxu0 %vm265_vm0, %v13948_v34  ;;  %v13954_v34 = vld [vmem:[#allocation2 + $0x10b] sm:$0xff] }
 0x6e6   : > { %14258 = vmatprep.mubr.f32.mxu0 %v25444_v21 }
 0x6e9   : > { %19726 = vmatmul.mubr.msk.f32.gmra.mrb[18].mxu0 %vm265_vm0, %v13949_v6  ;;  %v13955_v6 = vld [vmem:[#allocation2 + $0x113] sm:$0xff] }
 0x6ea   : > { %14264 = vmatprep.mubr.f32.mxu0 %v25444_v21 }
 0x6ed   : > { %19727 = vmatmul.mubr.msk.f32.gmra.mrb[20].mxu0 %vm265_vm0, %v13950_v22  ;;  %v13956_v22 = vld [vmem:[#allocation2 + $0x123] sm:$0xff] }
 0x6ee   : > { %14270 = vmatprep.mubr.f32.mxu0 %v25444_v21 }
 0x6f1   : > { %19728 = vmatmul.mubr.msk.f32.gmra.mrb[22].mxu0 %vm265_vm0, %v13951_v18  ;;  %v13957_v18 = vld [vmem:[#allocation2 + $0x12b] sm:$0xff] }
 0x6f2   : > { %14276 = vmatprep.mubr.f32.mxu0 %v25444_v21 }
 0x6f5   : > { %19729 = vmatmul.mubr.msk.f32.gmra.mrb[24].mxu0 %vm265_vm0, %v13952_v12  ;;  %v13958_v12 = vld [vmem:[#allocation2 + $0x13b] sm:$0xff] }
 0x6f6   : > { %14282 = vmatprep.mubr.f32.mxu0 %v25444_v21 }
 0x6f9   : > { %19730 = vmatmul.mubr.msk.f32.gmra.mrb[26].mxu0 %vm265_vm0, %v13953_v42  ;;  %v13959_v42 = vld [vmem:[#allocation2 + $0x143] sm:$0xff] }
 0x6fa   : > { %14288 = vmatprep.mubr.f32.mxu0 %v25444_v21 }
 0x6fd   : > { %19731 = vmatmul.mubr.msk.f32.gmra.mrb[28].mxu0 %vm265_vm0, %v13954_v34  ;;  %v13960_v34 = vld [vmem:[#allocation2 + $0x153] sm:$0xff] }
 0x6fe   : > { %14294 = vmatprep.mubr.f32.mxu0 %v25444_v21 }
 0x701   : > { %19732 = vmatmul.mubr.msk.f32.gmra.mrb[30].mxu0 %vm265_vm0, %v13955_v6  ;;  %v13961_v6 = vld [vmem:[#allocation2 + $0x15b] sm:$0xff] }
 0x702   : > { %14300 = vmatprep.mubr.f32.mxu0 %v25444_v21 }
 0x705   : > { %19733 = vmatmul.mubr.msk.f32.gmra.mrb[32].mxu0 %vm265_vm0, %v13956_v22  ;;  %v13962_v22 = vld [vmem:[#allocation2 + $0x16b] sm:$0xff] }
 0x706   : > { %14306 = vmatprep.mubr.f32.mxu0 %v25444_v21 }
 0x709   : > { %19734 = vmatmul.mubr.msk.f32.gmra.mrb[34].mxu0 %vm265_vm0, %v13957_v18  ;;  %v13963_v18 = vld [vmem:[#allocation2 + $0x173] sm:$0xff] }
 0x70a   : > { %14312 = vmatprep.mubr.f32.mxu0 %v25444_v21 }
 0x70d   : > { %19735 = vmatmul.mubr.msk.f32.gmra.mrb[36].mxu0 %vm265_vm0, %v13958_v12  ;;  %v13964_v12 = vld [vmem:[#allocation2 + $0x183] sm:$0xff] }
 0x70e   : > { %14318 = vmatprep.mubr.f32.mxu0 %v25444_v21 }
 0x711   : > { %19736 = vmatmul.mubr.msk.f32.gmra.mrb[38].mxu0 %vm265_vm0, %v13959_v42  ;;  %v13965_v42 = vld [vmem:[#allocation2 + $0x18b] sm:$0xff] }
 0x712   : > { %14324 = vmatprep.mubr.f32.mxu0 %v25444_v21 }
 0x715   : > { %19737 = vmatmul.mubr.msk.f32.gmra.mrb[40].mxu0 %vm265_vm0, %v13960_v34  ;;  %v13966_v34 = vld [vmem:[#allocation2 + $0x19b] sm:$0xff] }
 0x716   : > { %14330 = vmatprep.mubr.f32.mxu0 %v25444_v21 }
 0x719   : > { %19738 = vmatmul.mubr.msk.f32.gmra.mrb[42].mxu0 %vm265_vm0, %v13961_v6  ;;  %v13967_v6 = vld [vmem:[#allocation2 + $0x1a3] sm:$0xff] }
 0x71a   : > { %14336 = vmatprep.mubr.f32.mxu0 %v25444_v21 }
 0x71d   : > { %19739 = vmatmul.mubr.msk.f32.gmra.mrb[44].mxu0 %vm265_vm0, %v13962_v22  ;;  %v13968_v22 = vld [vmem:[#allocation2 + $0x1b3] sm:$0xff] }
 0x71e   : > { %14342 = vmatprep.mubr.f32.mxu0 %v25444_v21 }
 0x721   : > { %19740 = vmatmul.mubr.msk.f32.gmra.mrb[46].mxu0 %vm265_vm0, %v13963_v18  ;;  %v13969_v18 = vld [vmem:[#allocation2 + $0x1bb] sm:$0xff] }
 0x722   : > { %14348 = vmatprep.mubr.f32.mxu0 %v25444_v21 }
 0x725   : > { %19741 = vmatmul.mubr.msk.f32.gmra.mrb[48].mxu0 %vm265_vm0, %v13964_v12  ;;  %v13970_v12 = vld [vmem:[#allocation2 + $0x1cb] sm:$0xff] }
 0x726   : > { %14354 = vmatprep.mubr.f32.mxu0 %v25444_v21 }
 0x729   : > { %19742 = vmatmul.mubr.msk.f32.gmra.mrb[50].mxu0 %vm265_vm0, %v13965_v42  ;;  %v13971_v42 = vld [vmem:[#allocation2 + $0x1d3] sm:$0xff] }
 0x72a   : > { %14360 = vmatprep.mubr.f32.mxu0 %v25444_v21 }
 0x72d   : > { %19743 = vmatmul.mubr.msk.f32.gmra.mrb[52].mxu0 %vm265_vm0, %v13966_v34  ;;  %v15348_v34 = vld [vmem:[#allocation5] sm:$0xff] }
 0x72e   : > { %14366 = vmatprep.mubr.f32.mxu0 %v25444_v21 }
 0x731   : > { %19744 = vmatmul.mubr.msk.f32.gmra.mrb[54].mxu0 %vm265_vm0, %v13967_v6  ;;  %v15349_v6 = vld [vmem:[#allocation5 + $0x8] sm:$0xff] }
 0x732   : > { %14372 = vmatprep.mubr.f32.mxu0 %v25444_v21  ;;  %v20946_v15 = vpack.c.bf16 %v15349_v6, %v15348_v34  ;;  %v14527_v34 = vld [vmem:[#allocation2 + $0x7c] sm:$0xff] }
 0x733   : > { %v15357_v6 = vld [vmem:[#allocation5 + $0x48] sm:$0xff] }
 0x734   : > { %20947 = vmatprep.subr.bf16.mxu1 %v20946_v15 }
 0x735   : > { %19745 = vmatmul.mubr.msk.f32.gmra.mrb[56].mxu0 %vm265_vm0, %v13968_v22  ;;  %v14525_v22 = vld [vmem:[#allocation2 + $0x64] sm:$0xff]  ;;  %20949 = vmatpush3.bf16.msra.mxu1 %v20946_v15 }
 0x736   : > { %14378 = vmatprep.mubr.f32.mxu0 %v25444_v21  ;;  %20951 = vmatprep.subr.bf16.mxu1 %v20950_v9  ;;  %v14528_v15 = vld [vmem:[#allocation2 + $0x84] sm:$0xff] }
 0x739   : > { %19746 = vmatmul.mubr.msk.f32.gmra.mrb[58].mxu0 %vm265_vm0, %v13969_v18  ;;  %v15352_v18 = vld [vmem:[#allocation5 + $0x20] sm:$0xff]  ;;  %20953 = vmatpush3.bf16.msra.mxu1 %v20950_v9 }
 0x73a   : > { %14384 = vmatprep.mubr.f32.mxu0 %v25444_v21  ;;  %v14529_v9 = vld [vmem:[#allocation2 + $0x94] sm:$0xff] }
 0x73d   : > { %19747 = vmatmul.mubr.msk.f32.gmra.mrb[60].mxu0 %vm265_vm0, %v13970_v12  ;;  %v14526_v12 = vld [vmem:[#allocation2 + $0x6c] sm:$0xff] }
 0x73e   : > { %14390 = vmatprep.mubr.f32.mxu0 %v25444_v21 }
 0x741   : > { %19748 = vmatmul.mubr.msk.f32.gmra.mrb[62].mxu0 %vm265_vm0, %v13971_v42  ;;  %v20954_v42 = vpack.c.bf16 %v15353_v5, %v15352_v18  ;;  %v20962_v5 = vpack.c.bf16 %v15357_v6, %v15356_v61  ;;  %v14533_v18 = vld [vmem:[#allocation2 + $0xc4] sm:$0xff]  ;;  %v14538_v61 = vld [vmem:[#allocation2 + $0xfc] sm:$0xff]  ;;  %v14539_v6 = vld [vmem:[#allocation2 + $0x10c] sm:$0xff] }
 0x742   : > { %14789 = vmatprep.mubr.f32.mxu0 %v25444_v21 }
 0x743   : > { %20955 = vmatprep.subr.bf16.mxu1 %v20954_v42 }
 0x744   : > { %20957 = vmatpush3.bf16.msra.mxu1 %v20954_v42  ;;  %v14535_v42 = vld [vmem:[#allocation2 + $0xdc] sm:$0xff] }
 0x745   : > { %19752 = vmatmul.mubr.msk.f32.vlgmr.msra.gmra.mrb[0].mxu0 %vm265_vm0, %v14525_v22  ;;  %20959 = vmatprep.subr.bf16.mxu1 %v20958_v0  ;;  %v14532_v22 = vld [vmem:[#allocation2 + $0xb4] sm:$0xff] }
 0x746   : > { %14795 = vmatprep.mubr.f32.mxu0 %v25444_v21 }
 0x748   : > { %20961 = vmatpush3.bf16.msra.mxu1 %v20958_v0  ;;  %v14537_v0 = vld [vmem:[#allocation2 + $0xf4] sm:$0xff] }
 0x749   : > { %19753 = vmatmul.mubr.msk.f32.gmra.mrb[2].mxu0 %vm265_vm0, %v14526_v12  ;;  %20963 = vmatprep.subr.bf16.mxu1 %v20962_v5  ;;  %v14534_v12 = vld [vmem:[#allocation2 + $0xcc] sm:$0xff] }
 0x74a   : > { %14801 = vmatprep.mubr.f32.mxu0 %v25444_v21 }
 0x74c   : > { %20965 = vmatpush3.bf16.msra.mxu1 %v20962_v5  ;;  %v14541_v5 = vld [vmem:[#allocation2 + $0x124] sm:$0xff] }
 0x74d   : > { %19754 = vmatmul.mubr.msk.f32.gmra.mrb[4].mxu0 %vm265_vm0, %v14527_v34  ;;  %v14536_v34 = vld [vmem:[#allocation2 + $0xe4] sm:$0xff] }
 0x74e   : > { %14807 = vmatprep.mubr.f32.mxu0 %v25444_v21 }
 0x751   : > { %19755 = vmatmul.mubr.msk.f32.gmra.mrb[6].mxu0 %vm265_vm0, %v14528_v15  ;;  %v14540_v15 = vld [vmem:[#allocation2 + $0x114] sm:$0xff] }
 0x752   : > { %14813 = vmatprep.mubr.f32.mxu0 %v25444_v21 }
 0x755   : > { %19756 = vmatmul.mubr.msk.f32.gmra.mrb[8].mxu0 %vm265_vm0, %v14529_v9  ;;  %v14542_v9 = vld [vmem:[#allocation2 + $0x12c] sm:$0xff] }
 0x756   : > { %14819 = vmatprep.mubr.f32.mxu0 %v25444_v21 }
 0x759   : > { %19757 = vmatmul.mubr.msk.f32.gmra.mrb[10].mxu0 %vm265_vm0, %v14530_v44  ;;  %v14543_v44 = vld [vmem:[#allocation2 + $0x13c] sm:$0xff] }
 0x75a   : > { %14825 = vmatprep.mubr.f32.mxu0 %v25444_v21 }
 0x75d   : > { %19758 = vmatmul.mubr.msk.f32.gmra.mrb[12].mxu0 %vm265_vm0, %v14531_v51  ;;  %v14544_v51 = vld [vmem:[#allocation2 + $0x144] sm:$0xff] }
 0x75e   : > { %14831 = vmatprep.mubr.f32.mxu0 %v25444_v21 }
 0x761   : > { %19759 = vmatmul.mubr.msk.f32.gmra.mrb[14].mxu0 %vm265_vm0, %v14532_v22  ;;  %v14545_v22 = vld [vmem:[#allocation2 + $0x154] sm:$0xff] }
 0x762   : > { %14837 = vmatprep.mubr.f32.mxu0 %v25444_v21 }
 0x765   : > { %19760 = vmatmul.mubr.msk.f32.gmra.mrb[16].mxu0 %vm265_vm0, %v14533_v18  ;;  %v14546_v18 = vld [vmem:[#allocation2 + $0x15c] sm:$0xff] }
 0x766   : > { %14843 = vmatprep.mubr.f32.mxu0 %v25444_v21 }
 0x769   : > { %19761 = vmatmul.mubr.msk.f32.gmra.mrb[18].mxu0 %vm265_vm0, %v14534_v12  ;;  %v15358_v12 = vld [vmem:[#allocation5 + $0x50] sm:$0xff] }
 0x76a   : > { %14849 = vmatprep.mubr.f32.mxu0 %v25444_v21 }
 0x76d   : > { %19762 = vmatmul.mubr.msk.f32.gmra.mrb[20].mxu0 %vm265_vm0, %v14535_v42  ;;  %v15359_v42 = vld [vmem:[#allocation5 + $0x58] sm:$0xff] }
 0x76e   : > { %14855 = vmatprep.mubr.f32.mxu0 %v25444_v21 }
 0x771   : > { %19763 = vmatmul.mubr.msk.f32.gmra.mrb[22].mxu0 %vm265_vm0, %v14536_v34  ;;  %v20966_v34 = vpack.c.bf16 %v15359_v42, %v15358_v12  ;;  %v14551_v12 = vld [vmem:[#allocation2 + $0x19c] sm:$0xff]  ;;  %v14552_v42 = vld [vmem:[#allocation2 + $0x1a4] sm:$0xff] }
 0x772   : > { %14861 = vmatprep.mubr.f32.mxu0 %v25444_v21 }
 0x773   : > { %20967 = vmatprep.subr.bf16.mxu1 %v20966_v34 }
 0x774   : > { %20969 = vmatpush3.bf16.msra.mxu1 %v20966_v34  ;;  %v14553_v34 = vld [vmem:[#allocation2 + $0x1b4] sm:$0xff] }
 0x775   : > { %19764 = vmatmul.mubr.msk.f32.gmra.mrb[24].mxu0 %vm265_vm0, %v14537_v0  ;;  %v14547_v0 = vld [vmem:[#allocation2 + $0x16c] sm:$0xff] }
 0x776   : > { %14867 = vmatprep.mubr.f32.mxu0 %v25444_v21 }
 0x779   : > { %19765 = vmatmul.mubr.msk.f32.gmra.mrb[26].mxu0 %vm265_vm0, %v14538_v61  ;;  %v15360_v61 = vld [vmem:[#allocation5 + $0x60] sm:$0xff] }
 0x77a   : > { %14873 = vmatprep.mubr.f32.mxu0 %v25444_v21 }
 0x77d   : > { %19766 = vmatmul.mubr.msk.f32.gmra.mrb[28].mxu0 %vm265_vm0, %v14539_v6  ;;  %v15361_v6 = vld [vmem:[#allocation5 + $0x68] sm:$0xff] }
 0x77e   : > { %14879 = vmatprep.mubr.f32.mxu0 %v25444_v21 }
 0x781   : > { %19767 = vmatmul.mubr.msk.f32.gmra.mrb[30].mxu0 %vm265_vm0, %v14540_v15  ;;  %v20970_v15 = vpack.c.bf16 %v15361_v6, %v15360_v61  ;;  %v14555_v61 = vld [vmem:[#allocation2 + $0x1cc] sm:$0xff]  ;;  %v14556_v6 = vld [vmem:[#allocation2 + $0x1d4] sm:$0xff] }
 0x782   : > { %14885 = vmatprep.mubr.f32.mxu0 %v25444_v21 }
 0x783   : > { %20971 = vmatprep.subr.bf16.mxu1 %v20970_v15 }
 0x784   : > { %20973 = vmatpush3.bf16.msra.mxu1 %v20970_v15  ;;  %v15718_v15 = vld [vmem:[#allocation5 + $0x80] sm:$0xff] }
 0x785   : > { %19768 = vmatmul.mubr.msk.f32.gmra.mrb[32].mxu0 %vm265_vm0, %v14541_v5  ;;  %v14548_v5 = vld [vmem:[#allocation2 + $0x174] sm:$0xff] }
 0x786   : > { %14891 = vmatprep.mubr.f32.mxu0 %v25444_v21 }
 0x789   : > { %19769 = vmatmul.mubr.msk.f32.gmra.mrb[34].mxu0 %vm265_vm0, %v14542_v9  ;;  %v15362_v9 = vld [vmem:[#allocation5 + $0x70] sm:$0xff] }
 0x78a   : > { %14897 = vmatprep.mubr.f32.mxu0 %v25444_v21 }
 0x78d   : > { %19770 = vmatmul.mubr.msk.f32.gmra.mrb[36].mxu0 %vm265_vm0, %v14543_v44  ;;  %v15363_v44 = vld [vmem:[#allocation5 + $0x78] sm:$0xff] }
 0x78e   : > { %14903 = vmatprep.mubr.f32.mxu0 %v25444_v21 }
 0x791   : > { %19771 = vmatmul.mubr.msk.f32.gmra.mrb[38].mxu0 %vm265_vm0, %v14544_v51  ;;  %v20974_v51 = vpack.c.bf16 %v15363_v44, %v15362_v9  ;;  %v15720_v44 = vld [vmem:[#allocation5 + $0x90] sm:$0xff] }
 0x792   : > { %14909 = vmatprep.mubr.f32.mxu0 %v25444_v21 }
 0x793   : > { %20975 = vmatprep.subr.bf16.mxu1 %v20974_v51 }
 0x794   : > { %20977 = vmatpush3.bf16.msra.mxu1 %v20974_v51  ;;  %v15721_v51 = vld [vmem:[#allocation5 + $0x98] sm:$0xff] }
 0x795   : > { %19772 = vmatmul.mubr.msk.f32.gmra.mrb[40].mxu0 %vm265_vm0, %v14545_v22  ;;  %v14549_v22 = vld [vmem:[#allocation2 + $0x184] sm:$0xff] }
 0x796   : > { %14915 = vmatprep.mubr.f32.mxu0 %v25444_v21 }
 0x797   : > { %20259 = vmatmul.mubr.f32.vlgmr.msra.gmra.mrb[64].mxu1 %v25444_v21 }
 0x799   : > { %19773 = vmatmul.mubr.msk.f32.gmra.mrb[42].mxu0 %vm265_vm0, %v14546_v18  ;;  %v14550_v18 = vld [vmem:[#allocation2 + $0x18c] sm:$0xff] }
 0x79a   : > { %14921 = vmatprep.mubr.f32.mxu0 %v25444_v21 }
 0x79d   : > { %19774 = vmatmul.mubr.msk.f32.gmra.mrb[44].mxu0 %vm265_vm0, %v14547_v0  ;;  %v14554_v0 = vld [vmem:[#allocation2 + $0x1bc] sm:$0xff] }
 0x79e   : > { %14927 = vmatprep.mubr.f32.mxu0 %v25444_v21 }
 0x7a1   : > { %19775 = vmatmul.mubr.msk.f32.gmra.mrb[46].mxu0 %vm265_vm0, %v14548_v5  ;;  %v15719_v5 = vld [vmem:[#allocation5 + $0x88] sm:$0xff] }
 0x7a2   : > { %14933 = vmatprep.mubr.f32.mxu0 %v25444_v21  ;;  %v20978_v9 = vpack.c.bf16 %v15719_v5, %v15718_v15  ;;  %v15728_v5 = vld [vmem:[#allocation5 + $0xd0] sm:$0xff] }
 0x7a4   : > { %20979 = vmatprep.subr.bf16.mxu1 %v20978_v9 }
 0x7a5   : > { %19776 = vmatmul.mubr.msk.f32.gmra.mrb[48].mxu0 %vm265_vm0, %v14549_v22  ;;  %20981 = vmatpush3.bf16.msra.mxu1 %v20978_v9  ;;  %v20982_v22 = vpack.c.bf16 %v15721_v51, %v15720_v44  ;;  %v15729_v9 = vld [vmem:[#allocation5 + $0xd8] sm:$0xff]  ;;  %v15730_v51 = vld [vmem:[#allocation5 + $0xe0] sm:$0xff] }
 0x7a6   : > { %14939 = vmatprep.mubr.f32.mxu0 %v25444_v21  ;;  %v20998_v44 = vpack.c.bf16 %v15729_v9, %v15728_v5 }
 0x7a7   : > { %20983 = vmatprep.subr.bf16.mxu1 %v20982_v22 }
 0x7a9   : > { %19777 = vmatmul.mubr.msk.f32.gmra.mrb[50].mxu0 %vm265_vm0, %v14550_v18  ;;  %20985 = vmatpush3.bf16.msra.mxu1 %v20982_v22  ;;  %v15722_v18 = vld [vmem:[#allocation5 + $0xa0] sm:$0xff]  ;;  %v15731_v22 = vld [vmem:[#allocation5 + $0xe8] sm:$0xff] }
 0x7aa   : > { %14945 = vmatprep.mubr.f32.mxu0 %v25444_v21 }
 0x7ad   : > { %19778 = vmatmul.mubr.msk.f32.gmra.mrb[52].mxu0 %vm265_vm0, %v14551_v12  ;;  %v15723_v12 = vld [vmem:[#allocation5 + $0xa8] sm:$0xff] }
 0x7ae   : > { %14951 = vmatprep.mubr.f32.mxu0 %v25444_v21 }
 0x7b1   : > { %19779 = vmatmul.mubr.msk.f32.gmra.mrb[54].mxu0 %vm265_vm0, %v14552_v42  ;;  %v20986_v42 = vpack.c.bf16 %v15723_v12, %v15722_v18  ;;  %v21002_v18 = vpack.c.bf16 %v15731_v22, %v15730_v51  ;;  %v16089_v51 = vld [vmem:[#allocation5 + $0x108] sm:$0xff] }
 0x7b2   : > { %14957 = vmatprep.mubr.f32.mxu0 %v25444_v21 }
 0x7b3   : > { %20987 = vmatprep.subr.bf16.mxu1 %v20986_v42 }
 0x7b4   : > { %20989 = vmatpush3.bf16.msra.mxu1 %v20986_v42  ;;  %v25746_v42 = vld [vmem:[%s26645_s2] ss:$0 sm:$0xff] }
 0x7b5   : > { %19780 = vmatmul.mubr.msk.f32.gmra.mrb[56].mxu0 %vm265_vm0, %v14553_v34  ;;  %v15724_v34 = vld [vmem:[#allocation5 + $0xb0] sm:$0xff] }
 0x7b6   : > { %14963 = vmatprep.mubr.f32.mxu0 %v25444_v21 }
 0x7b9   : > { %19781 = vmatmul.mubr.msk.f32.gmra.mrb[58].mxu0 %vm265_vm0, %v14554_v0 }
 0x7ba   : > { %14969 = vmatprep.mubr.f32.mxu0 %v25444_v21 }
 0x7bd   : > { %19782 = vmatmul.mubr.msk.f32.gmra.mrb[60].mxu0 %vm265_vm0, %v14555_v61  ;;  %v15726_v61 = vld [vmem:[#allocation5 + $0xc0] sm:$0xff] }
 0x7be   : > { %14975 = vmatprep.mubr.f32.mxu0 %v25444_v21  ;;  %v15725_v21 = vld [vmem:[#allocation5 + $0xb8] sm:$0xff] }
 0x7bf   : > { %v20990_v0 = vpack.c.bf16 %v15725_v21, %v15724_v34  ;;  %v15732_v34 = vld [vmem:[#allocation5 + $0xf0] sm:$0xff]  ;;  %v15733_v21 = vld [vmem:[#allocation5 + $0xf8] sm:$0xff] }
 0x7c1   : > { %19783 = vmatmul.mubr.msk.f32.gmra.mrb[62].mxu0 %vm265_vm0, %v14556_v6  ;;  %20991 = vmatprep.subr.bf16.mxu1 %v20990_v0  ;;  %v15727_v6 = vld [vmem:[#allocation5 + $0xc8] sm:$0xff] }
 0x7c2   : > { %20993 = vmatpush3.bf16.msra.mxu1 %v20990_v0  ;;  %v20994_v15 = vpack.c.bf16 %v15727_v6, %v15726_v61  ;;  %v21006_v6 = vpack.c.bf16 %v15733_v21, %v15732_v34 }
 0x7c4   : > { %20995 = vmatprep.subr.bf16.mxu1 %v20994_v15 }
 0x7c6   : > { %20997 = vmatpush3.bf16.msra.mxu1 %v20994_v15 }
 0x7c7   : > { %20999 = vmatprep.subr.bf16.mxu1 %v20998_v44 }
 0x7ca   : > { %21001 = vmatpush3.bf16.msra.mxu1 %v20998_v44  ;;  %v16088_v44 = vld [vmem:[#allocation5 + $0x100] sm:$0xff] }
 0x7cb   : > { %21003 = vmatprep.subr.bf16.mxu1 %v21002_v18  ;;  %v25757_v55 = vpack.c.bf16 %v16089_v51, %v16088_v44 }
 0x7ce   : > { %21005 = vmatpush3.bf16.msra.mxu1 %v21002_v18 }
 0x7cf   : > { %21007 = vmatprep.subr.bf16.mxu1 %v21006_v6 }
 0x7d2   : > { %21009 = vmatpush3.bf16.msra.mxu1 %v21006_v6 }
 0x7d3   : > { %21011 = vmatprep.subr.bf16.mxu1 %v25757_v55 }
 0x818   : > { %v14791_v12 = vpop.f32.mrb[0].mxu0 }
 0x819   : > { %v21236_v0 = vadd.f32 %v14791_v12, %v25327_v29  ;;  %v14793_v61 = vpop.f32.mrb[1].mxu0 }
 0x81a   : > { %v25750_v15 = vadd.f32 %v14793_v61, %v25329_v30 }
 0x81b   : > { %v25753_v5 = vadd.f32 %v21236_v0, %v25746_v42 }
 0x81c   : > { %26715 = vst [vmem:[#allocation27_spill] sm:$0xff] %v25750_v15  ;;  %v14797_v9 = vpop.f32.mrb[2].mxu0  ;;  %v26754_v15 = vld [vmem:[#allocation20_spill] sm:$0xff] }
 0x81d   : > { %v26662_v22 = vmax.f32 %v25753_v5, 0.0  ;;  %v21238_v18 = vadd.f32 %v14797_v9, %v25333_v32  ;;  %v14799_v27 = vpop.f32.mrb[3].mxu0 }
 0x81e   : > { %v25760_v29 = vadd.f32 %v14799_v27, %v25335_v33 }
 0x81f   : > { %15213 = vst [vmem:[#allocation3 + $0x19] sm:$0xff] %v26662_v22  ;;  %v25765_v30 = vadd.f32 %v21238_v18, %v25746_v42 }
 0x820   : > { %26716 = vst [vmem:[#allocation28_spill] sm:$0xff] %v25760_v29  ;;  %v14803_v12 = vpop.f32.mrb[4].mxu0 }
 0x821   : > { %v26660_v34 = vmax.f32 %v25765_v30, 0.0  ;;  %v21240_v21 = vadd.f32 %v14803_v12, %v25339_v35  ;;  %v14805_v32 = vpop.f32.mrb[5].mxu0 }
 0x822   : > { %v25771_v0 = vadd.f32 %v14805_v32, %v25341_v36 }
 0x823   : > { %15214 = vst [vmem:[#allocation3 + $0x21] sm:$0xff] %v26660_v34  ;;  %v25776_v33 = vadd.f32 %v21240_v21, %v25746_v42 }
 0x824   : > { %26717 = vst [vmem:[#allocation29_spill] sm:$0xff] %v25771_v0  ;;  %v14809_v27 = vpop.f32.mrb[6].mxu0  ;;  %v26750_v0 = vld [vmem:[#allocation18_spill] sm:$0xff] }
 0x825   : > { %v26658_v61 = vmax.f32 %v25776_v33, 0.0  ;;  %v21242_v6 = vadd.f32 %v14809_v27, %v25345_v38  ;;  %v14811_v9 = vpop.f32.mrb[7].mxu0 }
 0x826   : > { %v25781_v44 = vadd.f32 %v14811_v9, %v25347_v39  ;;  %v15286_v35 = vld [vmem:[#allocation3 + $0x18] sm:$0xff] }
 0x827   : > { %15215 = vst [vmem:[#allocation3 + $0x31] sm:$0xff] %v26658_v61  ;;  %v25786_v36 = vadd.f32 %v21242_v6, %v25746_v42  ;;  %20261 = vmatprep.mubr.f32.mxu1 %v15286_v35 }
 0x828   : > { %26718 = vst [vmem:[#allocation30_spill] sm:$0xff] %v25781_v44  ;;  %v14815_v51 = vpop.f32.mrb[8].mxu0 }
 0x829   : > { %v26653_v18 = vmax.f32 %v25786_v36, 0.0  ;;  %v21244_v12 = vadd.f32 %v14815_v51, %v25351_v41  ;;  %v14817_v21 = vpop.f32.mrb[9].mxu0 }
 0x82a   : > { %v25791_v38 = vadd.f32 %v14817_v21, %v25358_v43  ;;  %v15287_v32 = vld [vmem:[#allocation3 + $0x20] sm:$0xff] }
 0x82b   : > { %15216 = vst [vmem:[#allocation3 + $0x39] sm:$0xff] %v26653_v18  ;;  %v25796_v39 = vadd.f32 %v21244_v12, %v25746_v42  ;;  %20262 = vmatmul.mubr.f32.gmra.mrb[66].mxu1 %v15287_v32 }
 0x82c   : > { %26719 = vst [vmem:[#allocation31_spill] sm:$0xff] %v25791_v38  ;;  %v14821_v27 = vpop.f32.mrb[10].mxu0  ;;  %v26746_v38 = vld [vmem:[#allocation16_spill] sm:$0xff] }
 0x82d   : > { %v26654_v6 = vmax.f32 %v25796_v39, 0.0  ;;  %v21246_v9 = vadd.f32 %v14821_v27, %v25366_v46  ;;  %v14823_v35 = vpop.f32.mrb[11].mxu0 }
 0x82e   : > { %v25801_v41 = vadd.f32 %v14823_v35, %v25369_v47  ;;  %v15288_v51 = vld [vmem:[#allocation3 + $0x30] sm:$0xff] }
 0x82f   : > { %15217 = vst [vmem:[#allocation3 + $0x49] sm:$0xff] %v26654_v6  ;;  %v25806_v43 = vadd.f32 %v21246_v9, %v25746_v42  ;;  %20264 = vmatprep.mubr.f32.mxu1 %v15288_v51 }
 0x830   : > { %26720 = vst [vmem:[#allocation32_spill] sm:$0xff] %v25801_v41  ;;  %v14827_v12 = vpop.f32.mrb[12].mxu0 }
 0x831   : > { %v26656_v21 = vmax.f32 %v25806_v43, 0.0  ;;  %v21248_v32 = vadd.f32 %v14827_v12, %v25373_v49  ;;  %v14829_v18 = vpop.f32.mrb[13].mxu0 }
 0x832   : > { %v25811_v46 = vadd.f32 %v14829_v18, %v25375_v50  ;;  %v15289_v27 = vld [vmem:[#allocation3 + $0x38] sm:$0xff] }
 0x833   : > { %15218 = vst [vmem:[#allocation3 + $0x51] sm:$0xff] %v26656_v21  ;;  %v25816_v47 = vadd.f32 %v21248_v32, %v25746_v42  ;;  %20265 = vmatmul.mubr.f32.gmra.mrb[68].mxu1 %v15289_v27 }
 0x834   : > { %26721 = vst [vmem:[#allocation33_spill] sm:$0xff] %v25811_v46  ;;  %v14833_v9 = vpop.f32.mrb[14].mxu0  ;;  %v26743_v46 = vld [vmem:[#allocation14_spill] sm:$0xff] }
 0x835   : > { %v26655_v35 = vmax.f32 %v25816_v47, 0.0  ;;  %v21250_v51 = vadd.f32 %v14833_v9, %v25379_v52  ;;  %v14835_v6 = vpop.f32.mrb[15].mxu0 }
 0x836   : > { %v25821_v49 = vadd.f32 %v14835_v6, %v25381_v53  ;;  %v25823_v12 = vld [vmem:[#allocation3 + $0x48] sm:$0xff] }
 0x837   : > { %15219 = vst [vmem:[#allocation3 + $0x61] sm:$0xff] %v26655_v35  ;;  %v25828_v50 = vadd.f32 %v21250_v51, %v25746_v42  ;;  %20267 = vmatprep.mubr.f32.mxu1 %v25823_v12 }
 0x838   : > { %26722 = vst [vmem:[#allocation34_spill] sm:$0xff] %v25821_v49  ;;  %v14839_v18 = vpop.f32.mrb[16].mxu0 }
 0x839   : > { %v26657_v32 = vmax.f32 %v25828_v50, 0.0  ;;  %v21252_v27 = vadd.f32 %v14839_v18, %v25385_v56  ;;  %v14841_v52 = vpop.f32.mrb[17].mxu0 }
 0x83a   : > { %v25834_v9 = vadd.f32 %v14841_v52, %v25387_v57  ;;  %v25836_v53 = vld [vmem:[#allocation3 + $0x50] sm:$0xff] }
 0x83b   : > { %15220 = vst [vmem:[#allocation3 + $0x69] sm:$0xff] %v26657_v32  ;;  %v25841_v6 = vadd.f32 %v21252_v27, %v25746_v42  ;;  %20268 = vmatmul.mubr.f32.gmra.mrb[70].mxu1 %v25836_v53 }
 0x83c   : > { %26723 = vst [vmem:[#allocation35_spill] sm:$0xff] %v25834_v9  ;;  %v14845_v51 = vpop.f32.mrb[18].mxu0  ;;  %v26740_v9 = vld [vmem:[#allocation12_spill] sm:$0xff] }
 0x83d   : > { %v26659_v35 = vmax.f32 %v25841_v6, 0.0  ;;  %v21254_v21 = vadd.f32 %v14845_v51, %v25391_v58  ;;  %v14847_v56 = vpop.f32.mrb[19].mxu0 }
 0x83e   : > { %v25847_v18 = vadd.f32 %v14847_v56, %v25393_v60  ;;  %v25849_v57 = vld [vmem:[#allocation3 + $0x60] sm:$0xff] }
 0x83f   : > { %15221 = vst [vmem:[#allocation3 + $0x79] sm:$0xff] %v26659_v35  ;;  %v25854_v52 = vadd.f32 %v21254_v21, %v25746_v42  ;;  %20270 = vmatprep.mubr.f32.mxu1 %v25849_v57 }
 0x840   : > { %26724 = vst [vmem:[#allocation36_spill] sm:$0xff] %v25847_v18  ;;  %v14851_v27 = vpop.f32.mrb[20].mxu0 }
 0x841   : > { %v26661_v32 = vmax.f32 %v25854_v52, 0.0  ;;  %v21256_v61 = vadd.f32 %v14851_v27, %v25397_v63  ;;  %v14853_v58 = vpop.f32.mrb[21].mxu0 }
 0x842   : > { %v25860_v51 = vadd.f32 %v14853_v58, %v25399_v62  ;;  %v25862_v60 = vld [vmem:[#allocation3 + $0x68] sm:$0xff] }
 0x843   : > { %15222 = vst [vmem:[#allocation3 + $0x81] sm:$0xff] %v26661_v32  ;;  %v25867_v56 = vadd.f32 %v21256_v61, %v25746_v42  ;;  %20271 = vmatmul.mubr.f32.gmra.mrb[72].mxu1 %v25862_v60 }
 0x844   : > { %26725 = vst [vmem:[#allocation37_spill] sm:$0xff] %v25860_v51  ;;  %v14857_v21 = vpop.f32.mrb[22].mxu0 }
 0x845   : > { %v26663_v35 = vmax.f32 %v25867_v56, 0.0  ;;  %v21258_v34 = vadd.f32 %v14857_v21, %v25403_v1  ;;  %v14859_v63 = vpop.f32.mrb[23].mxu0 }
 0x846   : > { %v25873_v27 = vadd.f32 %v14859_v63, %v25405_v2  ;;  %v25875_v62 = vld [vmem:[#allocation3 + $0x78] sm:$0xff] }
 0x847   : > { %15223 = vst [vmem:[#allocation3 + $0x91] sm:$0xff] %v26663_v35  ;;  %v25880_v58 = vadd.f32 %v21258_v34, %v25746_v42  ;;  %20273 = vmatprep.mubr.f32.mxu1 %v25875_v62 }
 0x848   : > { %26726 = vst [vmem:[#allocation38_spill] sm:$0xff] %v25873_v27  ;;  %v14863_v61 = vpop.f32.mrb[24].mxu0 }
 0x849   : > { %v26664_v32 = vmax.f32 %v25880_v58, 0.0  ;;  %v21260_v22 = vadd.f32 %v14863_v61, %v25409_v3  ;;  %v14865_v1 = vpop.f32.mrb[25].mxu0 }
 0x84a   : > { %v25886_v21 = vadd.f32 %v14865_v1, %v25411_v4  ;;  %v25888_v2 = vld [vmem:[#allocation3 + $0x80] sm:$0xff] }
 0x84b   : > { %15224 = vst [vmem:[#allocation3 + $0x99] sm:$0xff] %v26664_v32  ;;  %v25893_v63 = vadd.f32 %v21260_v22, %v25746_v42  ;;  %20274 = vmatmul.mubr.f32.gmra.mrb[74].mxu1 %v25888_v2 }
 0x84c   : > { %26727 = vst [vmem:[#allocation39_spill] sm:$0xff] %v25886_v21  ;;  %v14869_v34 = vpop.f32.mrb[26].mxu0 }
 0x84d   : > { %v26665_v35 = vmax.f32 %v25893_v63, 0.0  ;;  %v21262_v51 = vadd.f32 %v14869_v34, %v25415_v7  ;;  %v14871_v3 = vpop.f32.mrb[27].mxu0 }
 0x84e   : > { %v25899_v61 = vadd.f32 %v14871_v3, %v25417_v8  ;;  %v25901_v4 = vld [vmem:[#allocation3 + $0x90] sm:$0xff] }
 0x84f   : > { %15225 = vst [vmem:[#allocation3 + $0xa9] sm:$0xff] %v26665_v35  ;;  %v25906_v1 = vadd.f32 %v21262_v51, %v25746_v42  ;;  %20276 = vmatprep.mubr.f32.mxu1 %v25901_v4 }
 0x850   : > { %26728 = vst [vmem:[#allocation40_spill] sm:$0xff] %v25899_v61  ;;  %v14875_v22 = vpop.f32.mrb[28].mxu0 }
 0x851   : > { %v26666_v32 = vmax.f32 %v25906_v1, 0.0  ;;  %v21264_v21 = vadd.f32 %v14875_v22, %v25421_v10  ;;  %v14877_v7 = vpop.f32.mrb[29].mxu0 }
 0x852   : > { %v25912_v34 = vadd.f32 %v14877_v7, %v25423_v11  ;;  %v25914_v8 = vld [vmem:[#allocation3 + $0x98] sm:$0xff] }
 0x853   : > { %15226 = vst [vmem:[#allocation3 + $0xb1] sm:$0xff] %v26666_v32  ;;  %v25919_v3 = vadd.f32 %v21264_v21, %v25746_v42  ;;  %20277 = vmatmul.mubr.f32.gmra.mrb[76].mxu1 %v25914_v8 }
 0x854   : > { %26729 = vst [vmem:[#allocation41_spill] sm:$0xff] %v25912_v34  ;;  %v14881_v51 = vpop.f32.mrb[30].mxu0 }
 0x855   : > { %v26667_v35 = vmax.f32 %v25919_v3, 0.0  ;;  %v21266_v61 = vadd.f32 %v14881_v51, %v25427_v13  ;;  %v14883_v10 = vpop.f32.mrb[31].mxu0 }
 0x856   : > { %v25925_v22 = vadd.f32 %v14883_v10, %v25429_v14  ;;  %v25927_v11 = vld [vmem:[#allocation3 + $0xa8] sm:$0xff] }
 0x857   : > { %15227 = vst [vmem:[#allocation3 + $0xc1] sm:$0xff] %v26667_v35  ;;  %v25932_v7 = vadd.f32 %v21266_v61, %v25746_v42  ;;  %20279 = vmatprep.mubr.f32.mxu1 %v25927_v11 }
 0x858   : > { %26730 = vst [vmem:[#allocation42_spill] sm:$0xff] %v25925_v22  ;;  %v14887_v21 = vpop.f32.mrb[32].mxu0 }
 0x859   : > { %v26668_v32 = vmax.f32 %v25932_v7, 0.0  ;;  %v21268_v34 = vadd.f32 %v14887_v21, %v25433_v16  ;;  %v14889_v13 = vpop.f32.mrb[33].mxu0 }
 0x85a   : > { %v25938_v51 = vadd.f32 %v14889_v13, %v25435_v17  ;;  %v25940_v14 = vld [vmem:[#allocation3 + $0xb0] sm:$0xff] }
 0x85b   : > { %15228 = vst [vmem:[#allocation3 + $0xc9] sm:$0xff] %v26668_v32  ;;  %v25945_v10 = vadd.f32 %v21268_v34, %v25746_v42  ;;  %20280 = vmatmul.mubr.f32.gmra.mrb[78].mxu1 %v25940_v14 }
 0x85c   : > { %26731 = vst [vmem:[#allocation43_spill] sm:$0xff] %v25938_v51  ;;  %v14893_v61 = vpop.f32.mrb[34].mxu0 }
 0x85d   : > { %v26669_v35 = vmax.f32 %v25945_v10, 0.0  ;;  %v21270_v22 = vadd.f32 %v14893_v61, %v25439_v19  ;;  %v14895_v16 = vpop.f32.mrb[35].mxu0 }
 0x85e   : > { %v25951_v21 = vadd.f32 %v14895_v16, %v25441_v20  ;;  %v25953_v17 = vld [vmem:[#allocation3 + $0xc0] sm:$0xff] }
 0x85f   : > { %15229 = vst [vmem:[#allocation3 + $0xd9] sm:$0xff] %v26669_v35  ;;  %v25958_v13 = vadd.f32 %v21270_v22, %v25746_v42  ;;  %20282 = vmatprep.mubr.f32.mxu1 %v25953_v17 }
 0x860   : > { %26732 = vst [vmem:[#allocation44_spill] sm:$0xff] %v25951_v21  ;;  %v14899_v34 = vpop.f32.mrb[36].mxu0 }
 0x861   : > { %v26670_v32 = vmax.f32 %v25958_v13, 0.0  ;;  %v21272_v51 = vadd.f32 %v14899_v34, %v25447_v23  ;;  %v14901_v19 = vpop.f32.mrb[37].mxu0 }
 0x862   : > { %v25964_v61 = vadd.f32 %v14901_v19, %v25449_v24  ;;  %v25966_v20 = vld [vmem:[#allocation3 + $0xc8] sm:$0xff] }
 0x863   : > { %15230 = vst [vmem:[#allocation3 + $0xe1] sm:$0xff] %v26670_v32  ;;  %v25971_v16 = vadd.f32 %v21272_v51, %v25746_v42  ;;  %20283 = vmatmul.mubr.f32.gmra.mrb[80].mxu1 %v25966_v20 }
 0x864   : > { %26733 = vst [vmem:[#allocation45_spill] sm:$0xff] %v25964_v61  ;;  %v14905_v22 = vpop.f32.mrb[38].mxu0 }
 0x865   : > { %v26671_v35 = vmax.f32 %v25971_v16, 0.0  ;;  %v21274_v21 = vadd.f32 %v14905_v22, %v25453_v25  ;;  %v14907_v23 = vpop.f32.mrb[39].mxu0 }
 0x866   : > { %v25977_v34 = vadd.f32 %v14907_v23, %v25455_v26  ;;  %v25979_v24 = vld [vmem:[#allocation3 + $0xd8] sm:$0xff] }
 0x867   : > { %15231 = vst [vmem:[#allocation3 + $0xf1] sm:$0xff] %v26671_v35  ;;  %v25984_v19 = vadd.f32 %v21274_v21, %v25746_v42  ;;  %20285 = vmatprep.mubr.f32.mxu1 %v25979_v24 }
 0x868   : > { %26734 = vst [vmem:[#allocation46_spill] sm:$0xff] %v25977_v34  ;;  %v14911_v51 = vpop.f32.mrb[40].mxu0 }
 0x869   : > { %v26672_v32 = vmax.f32 %v25984_v19, 0.0  ;;  %v21276_v61 = vadd.f32 %v14911_v51, %v25459_v28  ;;  %v14913_v25 = vpop.f32.mrb[41].mxu0 }
 0x86a   : > { %v25990_v22 = vadd.f32 %v14913_v25, %v25461_v31  ;;  %v25992_v26 = vld [vmem:[#allocation3 + $0xe0] sm:$0xff] }
 0x86b   : > { %15232 = vst [vmem:[#allocation3 + $0xf9] sm:$0xff] %v26672_v32  ;;  %v25997_v23 = vadd.f32 %v21276_v61, %v25746_v42  ;;  %20286 = vmatmul.mubr.f32.gmra.mrb[82].mxu1 %v25992_v26 }
 0x86c   : > { %26735 = vst [vmem:[#allocation47_spill] sm:$0xff] %v25990_v22  ;;  %v14917_v21 = vpop.f32.mrb[42].mxu0 }
 0x86d   : > { %v26673_v35 = vmax.f32 %v25997_v23, 0.0  ;;  %v21278_v34 = vadd.f32 %v14917_v21, %v25465_v37  ;;  %v14919_v28 = vpop.f32.mrb[43].mxu0 }
 0x86e   : > { %v26003_v51 = vadd.f32 %v14919_v28, %v25467_v40  ;;  %v26005_v31 = vld [vmem:[#allocation3 + $0xf0] sm:$0xff] }
 0x86f   : > { %15233 = vst [vmem:[#allocation3 + $0x109] sm:$0xff] %v26673_v35  ;;  %v26010_v25 = vadd.f32 %v21278_v34, %v25746_v42  ;;  %20288 = vmatprep.mubr.f32.mxu1 %v26005_v31 }
 0x870   : > { %26736 = vst [vmem:[#allocation48_spill] sm:$0xff] %v26003_v51  ;;  %v14923_v61 = vpop.f32.mrb[44].mxu0 }
 0x871   : > { %v26674_v32 = vmax.f32 %v26010_v25, 0.0  ;;  %v21280_v22 = vadd.f32 %v14923_v61, %v25471_v45  ;;  %v14925_v37 = vpop.f32.mrb[45].mxu0 }
 0x872   : > { %v26016_v21 = vadd.f32 %v14925_v37, %v25473_v48  ;;  %v26018_v40 = vld [vmem:[#allocation3 + $0xf8] sm:$0xff] }
 0x873   : > { %15234 = vst [vmem:[#allocation3 + $0x111] sm:$0xff] %v26674_v32  ;;  %v15171_v28 = vadd.f32 %v21280_v22, %v25746_v42  ;;  %20289 = vmatmul.mubr.f32.gmra.mrb[84].mxu1 %v26018_v40  ;;  %v26739_v32 = vld [vmem:[#allocation11_spill] sm:$0xff] }
 0x874   : > { %26737 = vst [vmem:[#allocation49_spill] sm:$0xff] %v26016_v21  ;;  %v14929_v34 = vpop.f32.mrb[46].mxu0 }
 0x875   : > { %v26024_v35 = vmax.f32 %v15171_v28, 0.0  ;;  %v21282_v51 = vadd.f32 %v14929_v34, %v25477_v54  ;;  %v14931_v27 = vpop.f32.mrb[47].mxu0 }
 0x876   : > { %v26028_v45 = vadd.f32 %v14931_v27, %v25479_v59  ;;  %v26030_v48 = vld [vmem:[#allocation3 + $0x108] sm:$0xff] }
 0x877   : > { %15235 = vst [vmem:[#allocation3 + $0x121] sm:$0xff] %v26024_v35  ;;  %v15172_v61 = vadd.f32 %v21282_v51, %v25746_v42  ;;  %20291 = vmatprep.mubr.f32.mxu1 %v26030_v48 }
 0x878   : > { %26738 = vst [vmem:[#allocation50_spill] sm:$0xff] %v26028_v45  ;;  %v14935_v22 = vpop.f32.mrb[48].mxu0  ;;  %v26742_v45 = vld [vmem:[#allocation13_spill] sm:$0xff] }
 0x879   : > { %v26035_v37 = vmax.f32 %v15172_v61, 0.0  ;;  %v21284_v28 = vadd.f32 %v14935_v22, %v26739_v32  ;;  %v14937_v21 = vpop.f32.mrb[49].mxu0 }
 0x87a   : > { %v26039_v54 = vadd.f32 %v14937_v21, %v26740_v9  ;;  %v26041_v34 = vld [vmem:[#allocation3 + $0x110] sm:$0xff] }
 0x87b   : > { %15236 = vst [vmem:[#allocation3 + $0x129] sm:$0xff] %v26035_v37  ;;  %v15173_v59 = vadd.f32 %v21284_v28, %v25746_v42  ;;  %20292 = vmatmul.mubr.f32.gmra.mrb[86].mxu1 %v26041_v34 }
 0x87c   : > { %26741 = vst [vmem:[#allocation11_spill] sm:$0xff] %v26039_v54  ;;  %v14941_v27 = vpop.f32.mrb[50].mxu0  ;;  %v26745_v54 = vld [vmem:[#allocation15_spill] sm:$0xff] }
 0x87d   : > { %v26046_v51 = vmax.f32 %v15173_v59, 0.0  ;;  %v21286_v61 = vadd.f32 %v14941_v27, %v26742_v45  ;;  %v14943_v18 = vpop.f32.mrb[51].mxu0 }
 0x87e   : > { %v26050_v32 = vadd.f32 %v14943_v18, %v26743_v46  ;;  %v26052_v22 = vld [vmem:[#allocation3 + $0x120] sm:$0xff] }
 0x87f   : > { %15237 = vst [vmem:[#allocation3 + $0x139] sm:$0xff] %v26046_v51  ;;  %v15174_v9 = vadd.f32 %v21286_v61, %v25746_v42  ;;  %20294 = vmatprep.mubr.f32.mxu1 %v26052_v22 }
 0x880   : > { %26744 = vst [vmem:[#allocation12_spill] sm:$0xff] %v26050_v32  ;;  %v14947_v21 = vpop.f32.mrb[52].mxu0  ;;  %v26749_v32 = vld [vmem:[#allocation17_spill] sm:$0xff] }
 0x881   : > { %v26057_v28 = vmax.f32 %v15174_v9, 0.0  ;;  %v21288_v59 = vadd.f32 %v14947_v21, %v26745_v54  ;;  %v14949_v49 = vpop.f32.mrb[53].mxu0 }
 0x882   : > { %v26061_v45 = vadd.f32 %v14949_v49, %v26746_v38  ;;  %v26063_v27 = vld [vmem:[#allocation3 + $0x128] sm:$0xff] }
 0x883   : > { %26748 = vst [vmem:[#allocation14_spill] sm:$0xff] %v26063_v27  ;;  %15238 = vst [vmem:[#allocation3 + $0x141] sm:$0xff] %v26057_v28  ;;  %v15175_v46 = vadd.f32 %v21288_v59, %v25746_v42  ;;  %20295 = vmatmul.mubr.f32.gmra.mrb[88].mxu1 %v26063_v27  ;;  %v26762_v27 = vld [vmem:[#allocation24_spill] sm:$0xff] }
 0x884   : > { %26747 = vst [vmem:[#allocation13_spill] sm:$0xff] %v26061_v45  ;;  %v14953_v18 = vpop.f32.mrb[54].mxu0  ;;  %v26753_v45 = vld [vmem:[#allocation19_spill] sm:$0xff] }
 0x885   : > { %v26068_v61 = vmax.f32 %v15175_v46, 0.0  ;;  %v21290_v9 = vadd.f32 %v14953_v18, %v26749_v32  ;;  %v14955_v41 = vpop.f32.mrb[55].mxu0 }
 0x886   : > { %v26072_v54 = vadd.f32 %v14955_v41, %v26750_v0  ;;  %v26074_v21 = vld [vmem:[#allocation3 + $0x138] sm:$0xff] }
 0x887   : > { %26752 = vst [vmem:[#allocation16_spill] sm:$0xff] %v26074_v21  ;;  %15239 = vst [vmem:[#allocation3 + $0x151] sm:$0xff] %v26068_v61  ;;  %v15176_v38 = vadd.f32 %v21290_v9, %v25746_v42  ;;  %20297 = vmatprep.mubr.f32.mxu1 %v26074_v21  ;;  %v26758_v21 = vld [vmem:[#allocation22_spill] sm:$0xff] }
 0x888   : > { %26751 = vst [vmem:[#allocation15_spill] sm:$0xff] %v26072_v54  ;;  %v14959_v49 = vpop.f32.mrb[56].mxu0  ;;  %v26757_v54 = vld [vmem:[#allocation21_spill] sm:$0xff] }
 0x889   : > { %v26079_v59 = vmax.f32 %v15176_v38, 0.0  ;;  %v21292_v46 = vadd.f32 %v14959_v49, %v26753_v45  ;;  %v14961_v44 = vpop.f32.mrb[57].mxu0 }
 0x88a   : > { %v26083_v32 = vadd.f32 %v14961_v44, %v26754_v15  ;;  %v26085_v18 = vld [vmem:[#allocation3 + $0x140] sm:$0xff] }
 0x88b   : > { %26756 = vst [vmem:[#allocation18_spill] sm:$0xff] %v26085_v18  ;;  %15240 = vst [vmem:[#allocation3 + $0x159] sm:$0xff] %v26079_v59  ;;  %v15177_v0 = vadd.f32 %v21292_v46, %v25746_v42  ;;  %20298 = vmatmul.mubr.f32.gmra.mrb[90].mxu1 %v26085_v18 }
 0x88c   : > { %26755 = vst [vmem:[#allocation17_spill] sm:$0xff] %v26083_v32  ;;  %v14965_v41 = vpop.f32.mrb[58].mxu0  ;;  %v26761_v32 = vld [vmem:[#allocation23_spill] sm:$0xff] }
 0x88d   : > { %v26090_v9 = vmax.f32 %v15177_v0, 0.0  ;;  %v21294_v38 = vadd.f32 %v14965_v41, %v26757_v54  ;;  %v14967_v29 = vpop.f32.mrb[59].mxu0 }
 0x88e   : > { %v26094_v45 = vadd.f32 %v14967_v29, %v26758_v21  ;;  %v26096_v49 = vld [vmem:[#allocation3 + $0x150] sm:$0xff] }
 0x88f   : > { %26760 = vst [vmem:[#allocation20_spill] sm:$0xff] %v26096_v49  ;;  %15241 = vst [vmem:[#allocation3 + $0x169] sm:$0xff] %v26090_v9  ;;  %v15178_v15 = vadd.f32 %v21294_v38, %v25746_v42  ;;  %20300 = vmatprep.mubr.f32.mxu1 %v26096_v49 }
 0x890   : > { %26759 = vst [vmem:[#allocation19_spill] sm:$0xff] %v26094_v45  ;;  %v14971_v44 = vpop.f32.mrb[60].mxu0 }
 0x891   : > { %v26101_v46 = vmax.f32 %v15178_v15, 0.0  ;;  %v21296_v0 = vadd.f32 %v14971_v44, %v26761_v32  ;;  %v14973_v18 = vpop.f32.mrb[61].mxu0  ;;  %v26766_v15 = vld [vmem:[#allocation25_spill] sm:$0xff]  ;;  %v26767_v32 = vld [vmem:[#allocation26_spill] sm:$0xff] }
 0x892   : > { %v26105_v54 = vadd.f32 %v14973_v18, %v26762_v27  ;;  %v26107_v41 = vld [vmem:[#allocation3 + $0x158] sm:$0xff] }
 0x893   : > { %26764 = vst [vmem:[#allocation22_spill] sm:$0xff] %v26107_v41  ;;  %15242 = vst [vmem:[#allocation3 + $0x171] sm:$0xff] %v26101_v46  ;;  %v26111_v29 = vadd.f32 %v21296_v0, %v25746_v42  ;;  %20301 = vmatmul.mubr.f32.gmra.mrb[92].mxu1 %v26107_v41 }
 0x894   : > { %26763 = vst [vmem:[#allocation21_spill] sm:$0xff] %v26105_v54  ;;  %v14977_v21 = vpop.f32.mrb[62].mxu0  ;;  %v15653_v54 = vld [vmem:[#allocation3 + $0x1] sm:$0xff] }
 0x895   : > { %26765 = vst [vmem:[#allocation23_spill] sm:$0xff] %v26111_v29  ;;  %v26680_v38 = vmax.f32 %v26111_v29, 0.0  ;;  %v21298_v45 = vadd.f32 %v14977_v21, %v26766_v15  ;;  %v14979_v49 = vpop.f32.mrb[63].mxu0  ;;  %v16090_v21 = vld [vmem:[#allocation5 + $0x110] sm:$0xff]  ;;  %v16091_v15 = vld [vmem:[#allocation5 + $0x118] sm:$0xff] }
 0x896   : > { %v26117_v44 = vadd.f32 %v14979_v49, %v26767_v32  ;;  %v26119_v27 = vld [vmem:[#allocation3 + $0x168] sm:$0xff]  ;;  %v21014_v32 = vpack.c.bf16 %v16091_v15, %v16090_v21  ;;  %v16094_v29 = vld [vmem:[#allocation5 + $0x130] sm:$0xff]  ;;  %v16096_v21 = vld [vmem:[#allocation5 + $0x140] sm:$0xff] }
 0x897   : > { %26769 = vst [vmem:[#allocation25_spill] sm:$0xff] %v26119_v27  ;;  %15243 = vst [vmem:[#allocation3 + $0x181] sm:$0xff] %v26680_v38  ;;  %v26124_v18 = vadd.f32 %v21298_v45, %v25746_v42  ;;  %20303 = vmatprep.mubr.f32.mxu1 %v26119_v27  ;;  %v15654_v49 = vld [vmem:[#allocation3 + $0x9] sm:$0xff]  ;;  %v16093_v42 = vld [vmem:[#allocation5 + $0x128] sm:$0xff]  ;;  %v26771_v45 = vmax.f32 %v25753_v5, 0.0  ;;  %v26775_v5 = vmax.f32 %v25796_v39, 0.0 }
 0x898   : > { %26768 = vst [vmem:[#allocation24_spill] sm:$0xff] %v26117_v44  ;;  %v16092_v38 = vld [vmem:[#allocation5 + $0x120] sm:$0xff]  ;;  %v16095_v27 = vld [vmem:[#allocation5 + $0x138] sm:$0xff]  ;;  %v16097_v15 = vld [vmem:[#allocation5 + $0x148] sm:$0xff]  ;;  %v26779_v39 = vmax.f32 %v25841_v6, 0.0  ;;  %v26783_v6 = vmax.f32 %v25893_v63, 0.0 }
 0x899   : > { %26770 = vst [vmem:[#allocation26_spill] sm:$0xff] %v26124_v18  ;;  %v26684_v0 = vmax.f32 %v26124_v18, 0.0  ;;  %v21018_v44 = vpack.c.bf16 %v16093_v42, %v16092_v38  ;;  %v26772_v18 = vmax.f32 %v25765_v30, 0.0  ;;  %v21026_v38 = vpack.c.bf16 %v16097_v15, %v16096_v21  ;;  %v16099_v30 = vld [vmem:[#allocation5 + $0x158] sm:$0xff] }
 0x89a   : > { %v26128_v41 = vld [vmem:[#allocation3 + $0x170] sm:$0xff]  ;;  %v26780_v42 = vmax.f32 %v25854_v52, 0.0  ;;  %v26782_v21 = vmax.f32 %v25880_v58, 0.0  ;;  %v26784_v52 = vmax.f32 %v25906_v1, 0.0  ;;  %v26787_v58 = vmax.f32 %v25945_v10, 0.0  ;;  %v16460_v10 = vld [vmem:[#allocation5 + $0x190] sm:$0xff] }
 0x89b   : > { %15244 = vst [vmem:[#allocation3 + $0x189] sm:$0xff] %v26684_v0  ;;  %20304 = vmatmul.mubr.f32.gmra.mrb[94].mxu1 %v26128_v41  ;;  %v26773_v0 = vmax.f32 %v25776_v33, 0.0  ;;  %v26777_v33 = vmax.f32 %v25816_v47, 0.0  ;;  %v26781_v47 = vmax.f32 %v25867_v56, 0.0  ;;  %v26785_v56 = vmax.f32 %v25919_v3, 0.0 }
 0x89c   : > { %20338 = vmatprep.mubr.f32.mxu1 %v15653_v54  ;;  %v21022_v54 = vpack.c.bf16 %v16095_v27, %v16094_v29  ;;  %v16100_v27 = vld [vmem:[#allocation5 + $0x160] sm:$0xff]  ;;  %v26788_v63 = vmax.f32 %v25958_v13, 0.0  ;;  %v26790_v1 = vmax.f32 %v25984_v19, 0.0  ;;  %v26791_v3 = vmax.f32 %v25997_v23, 0.0  ;;  %v16461_v13 = vld [vmem:[#allocation5 + $0x198] sm:$0xff] }
 0x89d   : > { %v21046_v19 = vpack.c.bf16 %v16461_v13, %v16460_v10  ;;  %v16462_v23 = vld [vmem:[#allocation5 + $0x1a0] sm:$0xff] }
 0x89e   : > { %v26222_v10 = vld [vmem:[#allocation3 + $0xaa] sm:$0xff] }
 0x89f   : > { %20339 = vmatmul.mubr.f32.vlgmr.msra.gmra.mrb[64].mxu1 %v15654_v49  ;;  %v16098_v49 = vld [vmem:[#allocation5 + $0x150] sm:$0xff] }
 0x8a0   : > { %21013 = vmatpush3.bf16.msra.mxu1 %v25757_v55  ;;  %20341 = vmatprep.mubr.f32.mxu1 %v26771_v45  ;;  %v26774_v55 = vmax.f32 %v25786_v36, 0.0  ;;  %v21030_v29 = vpack.c.bf16 %v16099_v30, %v16098_v49  ;;  %v16101_v36 = vld [vmem:[#allocation5 + $0x168] sm:$0xff] }
 0x8a1   : > { %21015 = vmatprep.subr.bf16.mxu1 %v21014_v32  ;;  %v26186_v49 = vld [vmem:[#allocation3 + $0x1a] sm:$0xff] }
 0x8a3   : > { %20342 = vmatmul.mubr.f32.gmra.mrb[66].mxu1 %v26772_v18  ;;  %v26776_v18 = vmax.f32 %v25806_v43, 0.0  ;;  %v16103_v43 = vld [vmem:[#allocation5 + $0x178] sm:$0xff] }
 0x8a4   : > { %20344 = vmatprep.mubr.f32.mxu1 %v26773_v0  ;;  %21017 = vmatpush3.bf16.msra.mxu1 %v21014_v32  ;;  %v26778_v0 = vmax.f32 %v25828_v50, 0.0  ;;  %v16102_v32 = vld [vmem:[#allocation5 + $0x170] sm:$0xff]  ;;  %v16459_v50 = vld [vmem:[#allocation5 + $0x188] sm:$0xff] }
 0x8a5   : > { %21019 = vmatprep.subr.bf16.mxu1 %v21018_v44  ;;  %v21038_v45 = vpack.c.bf16 %v16103_v43, %v16102_v32  ;;  %v26198_v32 = vld [vmem:[#allocation3 + $0x4a] sm:$0xff] }
 0x8a7   : > { %20345 = vmatmul.mubr.f32.gmra.mrb[68].mxu1 %v26774_v55  ;;  %v26786_v55 = vmax.f32 %v25932_v7, 0.0  ;;  %v16023_v7 = vld [vmem:[#allocation3 + $0x2] sm:$0xff] }
 0x8a8   : > { %20347 = vmatprep.mubr.f32.mxu1 %v26775_v5  ;;  %21021 = vmatpush3.bf16.msra.mxu1 %v21018_v44  ;;  %v21034_v44 = vpack.c.bf16 %v16101_v36, %v16100_v27  ;;  %v26789_v5 = vmax.f32 %v25971_v16, 0.0  ;;  %v16024_v16 = vld [vmem:[#allocation3 + $0xa] sm:$0xff]  ;;  %v26192_v27 = vld [vmem:[#allocation3 + $0x32] sm:$0xff] }
 0x8a9   : > { %21023 = vmatprep.subr.bf16.mxu1 %v21022_v54 }
 0x8ab   : > { %20348 = vmatmul.mubr.f32.gmra.mrb[70].mxu1 %v26776_v18  ;;  %v26189_v18 = vld [vmem:[#allocation3 + $0x22] sm:$0xff] }
 0x8ac   : > { %20350 = vmatprep.mubr.f32.mxu1 %v26777_v33  ;;  %21025 = vmatpush3.bf16.msra.mxu1 %v21022_v54  ;;  %v16458_v54 = vld [vmem:[#allocation5 + $0x180] sm:$0xff]  ;;  %v16464_v33 = vld [vmem:[#allocation5 + $0x1b0] sm:$0xff] }
 0x8ad   : > { %21027 = vmatprep.subr.bf16.mxu1 %v21026_v38  ;;  %v21042_v15 = vpack.c.bf16 %v16459_v50, %v16458_v54  ;;  %v26204_v54 = vld [vmem:[#allocation3 + $0x62] sm:$0xff] }
 0x8af   : > { %20351 = vmatmul.mubr.f32.gmra.mrb[72].mxu1 %v26778_v0  ;;  %v26195_v0 = vld [vmem:[#allocation3 + $0x3a] sm:$0xff] }
 0x8b0   : > { %20353 = vmatprep.mubr.f32.mxu1 %v26779_v39  ;;  %21029 = vmatpush3.bf16.msra.mxu1 %v21026_v38  ;;  %v26792_v38 = vmax.f32 %v26010_v25, 0.0  ;;  %v16463_v25 = vld [vmem:[#allocation5 + $0x1a8] sm:$0xff]  ;;  %v16466_v39 = vld [vmem:[#allocation5 + $0x1c0] sm:$0xff] }
 0x8b1   : > { %21031 = vmatprep.subr.bf16.mxu1 %v21030_v29  ;;  %v21050_v30 = vpack.c.bf16 %v16463_v25, %v16462_v23  ;;  %v26231_v23 = vld [vmem:[#allocation3 + $0xca] sm:$0xff]  ;;  %v26234_v25 = vld [vmem:[#allocation3 + $0xda] sm:$0xff] }
 0x8b3   : > { %20354 = vmatmul.mubr.f32.gmra.mrb[74].mxu1 %v26780_v42  ;;  %v26201_v42 = vld [vmem:[#allocation3 + $0x52] sm:$0xff] }
 0x8b4   : > { %20356 = vmatprep.mubr.f32.mxu1 %v26781_v47  ;;  %21033 = vmatpush3.bf16.msra.mxu1 %v21030_v29  ;;  %v16465_v29 = vld [vmem:[#allocation5 + $0x1b8] sm:$0xff]  ;;  %v16468_v47 = vld [vmem:[#allocation5 + $0x1d0] sm:$0xff] }
 0x8b5   : > { %21035 = vmatprep.subr.bf16.mxu1 %v21034_v44  ;;  %v21054_v36 = vpack.c.bf16 %v16465_v29, %v16464_v33  ;;  %v26240_v33 = vld [vmem:[#allocation3 + $0xf2] sm:$0xff]  ;;  %v26243_v29 = vld [vmem:[#allocation3 + $0xfa] sm:$0xff] }
 0x8b7   : > { %20357 = vmatmul.mubr.f32.gmra.mrb[76].mxu1 %v26782_v21  ;;  %v26207_v21 = vld [vmem:[#allocation3 + $0x6a] sm:$0xff] }
 0x8b8   : > { %20359 = vmatprep.mubr.f32.mxu1 %v26783_v6  ;;  %21037 = vmatpush3.bf16.msra.mxu1 %v21034_v44  ;;  %v16467_v44 = vld [vmem:[#allocation5 + $0x1c8] sm:$0xff]  ;;  %v16470_v6 = vld [vmem:[#allocation5 + $0x1e0] sm:$0xff] }
 0x8b9   : > { %21039 = vmatprep.subr.bf16.mxu1 %v21038_v45  ;;  %v21058_v43 = vpack.c.bf16 %v16467_v44, %v16466_v39  ;;  %v26249_v39 = vld [vmem:[#allocation3 + $0x112] sm:$0xff]  ;;  %v26252_v44 = vld [vmem:[#allocation3 + $0x122] sm:$0xff] }
 0x8ba   : > { %26793 = vst [vmem:[#allocation51_spill] sm:$0xff] %v26252_v44 }
 0x8bb   : > { %20360 = vmatmul.mubr.f32.gmra.mrb[78].mxu1 %v26784_v52  ;;  %v26210_v52 = vld [vmem:[#allocation3 + $0x7a] sm:$0xff] }
 0x8bc   : > { %20362 = vmatprep.mubr.f32.mxu1 %v26785_v56  ;;  %21041 = vmatpush3.bf16.msra.mxu1 %v21038_v45  ;;  %v16469_v45 = vld [vmem:[#allocation5 + $0x1d8] sm:$0xff] }
 0x8bd   : > { %21043 = vmatprep.subr.bf16.mxu1 %v21042_v15  ;;  %v21062_v50 = vpack.c.bf16 %v16469_v45, %v16468_v47  ;;  %v26258_v47 = vld [vmem:[#allocation3 + $0x13a] sm:$0xff]  ;;  %v26261_v45 = vld [vmem:[#allocation3 + $0x142] sm:$0xff] }
 0x8be   : > { %26795 = vst [vmem:[#allocation53_spill] sm:$0xff] %v26258_v47  ;;  %26796 = vst [vmem:[#allocation54_spill] sm:$0xff] %v26261_v45 }
 0x8bf   : > { %20363 = vmatmul.mubr.f32.gmra.mrb[80].mxu1 %v26786_v55  ;;  %v26213_v55 = vld [vmem:[#allocation3 + $0x82] sm:$0xff] }
 0x8c0   : > { %20365 = vmatprep.mubr.f32.mxu1 %v26787_v58  ;;  %v16472_v58 = vld [vmem:[#allocation5 + $0x1f0] sm:$0xff] }
 0x8c3   : > { %20366 = vmatmul.mubr.f32.gmra.mrb[82].mxu1 %v26788_v63  ;;  %v16473_v63 = vld [vmem:[#allocation5 + $0x1f8] sm:$0xff] }
 0x8c4   : > { %20368 = vmatprep.mubr.f32.mxu1 %v26789_v5  ;;  %v26216_v5 = vld [vmem:[#allocation3 + $0x92] sm:$0xff] }
 0x8c7   : > { %20369 = vmatmul.mubr.f32.gmra.mrb[84].mxu1 %v26790_v1  ;;  %v21070_v1 = vpack.c.bf16 %v16473_v63, %v16472_v58  ;;  %v16830_v58 = vld [vmem:[#allocation5 + $0x210] sm:$0xff]  ;;  %v16831_v63 = vld [vmem:[#allocation5 + $0x218] sm:$0xff] }
 0x8c8   : > { %20371 = vmatprep.mubr.f32.mxu1 %v26791_v3  ;;  %v26219_v3 = vld [vmem:[#allocation3 + $0x9a] sm:$0xff] }
 0x8cb   : > { %20372 = vmatmul.mubr.f32.gmra.mrb[86].mxu1 %v26792_v38  ;;  %v16828_v38 = vld [vmem:[#allocation5 + $0x200] sm:$0xff] }
 0x8cc   : > { %20374 = vmatprep.mubr.f32.mxu1 %v26024_v35 }
 0x8cf   : > { %20375 = vmatmul.mubr.f32.gmra.mrb[88].mxu1 %v26035_v37 }
 0x8d0   : > { %20377 = vmatprep.mubr.f32.mxu1 %v26046_v51 }
 0x8d3   : > { %20378 = vmatmul.mubr.f32.gmra.mrb[90].mxu1 %v26057_v28 }
 0x8d4   : > { %20380 = vmatprep.mubr.f32.mxu1 %v26068_v61 }
 0x8d7   : > { %20381 = vmatmul.mubr.f32.gmra.mrb[92].mxu1 %v26079_v59 }
 0x8d8   : > { %20383 = vmatprep.mubr.f32.mxu1 %v26090_v9 }
 0x8db   : > { %20384 = vmatmul.mubr.f32.gmra.mrb[94].mxu1 %v26101_v46 }
 0x8dc   : > { %20418 = vmatprep.mubr.f32.mxu1 %v16023_v7  ;;  %v16829_v7 = vld [vmem:[#allocation5 + $0x208] sm:$0xff] }
 0x8dd   : > { %v21074_v13 = vpack.c.bf16 %v16829_v7, %v16828_v38  ;;  %v21078_v38 = vpack.c.bf16 %v16831_v63, %v16830_v58  ;;  %v16394_v7 = vld [vmem:[#allocation3 + $0x20] sm:$0xff]  ;;  %v16836_v63 = vld [vmem:[#allocation5 + $0x240] sm:$0xff] }
 0x8df   : > { %20419 = vmatmul.mubr.f32.vlgmr.msra.gmra.mrb[64].mxu1 %v16024_v16  ;;  %v26225_v16 = vld [vmem:[#allocation3 + $0xb2] sm:$0xff] }
 0x8e0   : > { %21045 = vmatpush3.bf16.msra.mxu1 %v21042_v15  ;;  %20421 = vmatprep.mubr.f32.mxu1 %v26186_v49  ;;  %v16471_v15 = vld [vmem:[#allocation5 + $0x1e8] sm:$0xff] }
 0x8e1   : > { %21047 = vmatprep.subr.bf16.mxu1 %v21046_v19  ;;  %v21066_v56 = vpack.c.bf16 %v16471_v15, %v16470_v6  ;;  %v26267_v6 = vld [vmem:[#allocation3 + $0x15a] sm:$0xff]  ;;  %v26270_v15 = vld [vmem:[#allocation3 + $0x16a] sm:$0xff] }
 0x8e2   : > { %26798 = vst [vmem:[#allocation56_spill] sm:$0xff] %v26267_v6  ;;  %26799 = vst [vmem:[#allocation57_spill] sm:$0xff] %v26270_v15 }
 0x8e3   : > { %20422 = vmatmul.mubr.f32.gmra.mrb[66].mxu1 %v26189_v18 }
 0x8e4   : > { %20424 = vmatprep.mubr.f32.mxu1 %v26192_v27  ;;  %21049 = vmatpush3.bf16.msra.mxu1 %v21046_v19  ;;  %v26228_v19 = vld [vmem:[#allocation3 + $0xc2] sm:$0xff] }
 0x8e5   : > { %21051 = vmatprep.subr.bf16.mxu1 %v21050_v30 }
 0x8e7   : > { %20425 = vmatmul.mubr.f32.gmra.mrb[68].mxu1 %v26195_v0 }
 0x8e8   : > { %20427 = vmatprep.mubr.f32.mxu1 %v26198_v32  ;;  %21053 = vmatpush3.bf16.msra.mxu1 %v21050_v30  ;;  %v26237_v30 = vld [vmem:[#allocation3 + $0xe2] sm:$0xff] }
 0x8e9   : > { %21055 = vmatprep.subr.bf16.mxu1 %v21054_v36 }
 0x8eb   : > { %20428 = vmatmul.mubr.f32.gmra.mrb[70].mxu1 %v26201_v42 }
 0x8ec   : > { %20430 = vmatprep.mubr.f32.mxu1 %v26204_v54  ;;  %21057 = vmatpush3.bf16.msra.mxu1 %v21054_v36  ;;  %v26246_v36 = vld [vmem:[#allocation3 + $0x10a] sm:$0xff] }
 0x8ed   : > { %21059 = vmatprep.subr.bf16.mxu1 %v21058_v43 }
 0x8ef   : > { %20431 = vmatmul.mubr.f32.gmra.mrb[72].mxu1 %v26207_v21 }
 0x8f0   : > { %20433 = vmatprep.mubr.f32.mxu1 %v26210_v52  ;;  %21061 = vmatpush3.bf16.msra.mxu1 %v21058_v43  ;;  %v26255_v43 = vld [vmem:[#allocation3 + $0x12a] sm:$0xff] }
 0x8f1   : > { %21063 = vmatprep.subr.bf16.mxu1 %v21062_v50  ;;  %26794 = vst [vmem:[#allocation52_spill] sm:$0xff] %v26255_v43 }
 0x8f3   : > { %20434 = vmatmul.mubr.f32.gmra.mrb[74].mxu1 %v26213_v55 }
 0x8f4   : > { %20436 = vmatprep.mubr.f32.mxu1 %v26216_v5  ;;  %21065 = vmatpush3.bf16.msra.mxu1 %v21062_v50  ;;  %v26264_v50 = vld [vmem:[#allocation3 + $0x152] sm:$0xff] }
 0x8f5   : > { %21067 = vmatprep.subr.bf16.mxu1 %v21066_v56  ;;  %26797 = vst [vmem:[#allocation55_spill] sm:$0xff] %v26264_v50 }
 0x8f7   : > { %20437 = vmatmul.mubr.f32.gmra.mrb[76].mxu1 %v26219_v3 }
 0x8f8   : > { %20439 = vmatprep.mubr.f32.mxu1 %v26222_v10  ;;  %21069 = vmatpush3.bf16.msra.mxu1 %v21066_v56  ;;  %v26273_v56 = vld [vmem:[#allocation3 + $0x172] sm:$0xff] }
 0x8f9   : > { %21071 = vmatprep.subr.bf16.mxu1 %v21070_v1 }
 0x8fb   : > { %20440 = vmatmul.mubr.f32.gmra.mrb[78].mxu1 %v26225_v16 }
 0x8fc   : > { %20442 = vmatprep.mubr.f32.mxu1 %v26228_v19  ;;  %21073 = vmatpush3.bf16.msra.mxu1 %v21070_v1  ;;  %v16393_v1 = vld [vmem:[#allocation3 + $0x18] sm:$0xff] }
 0x8fd   : > { %21075 = vmatprep.subr.bf16.mxu1 %v21074_v13 }
 0x8ff   : > { %20443 = vmatmul.mubr.f32.gmra.mrb[80].mxu1 %v26231_v23 }
 0x900   : > { %20445 = vmatprep.mubr.f32.mxu1 %v26234_v25 }
 0x903   : > { %20446 = vmatmul.mubr.f32.gmra.mrb[82].mxu1 %v26237_v30 }
 0x904   : > { %20448 = vmatprep.mubr.f32.mxu1 %v26240_v33 }
 0x907   : > { %20449 = vmatmul.mubr.f32.gmra.mrb[84].mxu1 %v26243_v29 }
 0x908   : > { %20451 = vmatprep.mubr.f32.mxu1 %v26246_v36 }
 0x90b   : > { %20452 = vmatmul.mubr.f32.gmra.mrb[86].mxu1 %v26249_v39 }
 0x90c   : > { %20454 = vmatprep.mubr.f32.mxu1 %v26252_v44  ;;  %v16835_v44 = vld [vmem:[#allocation5 + $0x238] sm:$0xff] }
 0x90f   : > { %20455 = vmatmul.mubr.f32.gmra.mrb[88].mxu1 %v26255_v43  ;;  %v16834_v43 = vld [vmem:[#allocation5 + $0x230] sm:$0xff] }
 0x910   : > { %20457 = vmatprep.mubr.f32.mxu1 %v26258_v47  ;;  %v26276_v47 = vld [vmem:[#allocation3 + $0x30] sm:$0xff]  ;;  %v21086_v58 = vpack.c.bf16 %v16835_v44, %v16834_v43  ;;  %v16841_v44 = vld [vmem:[#allocation5 + $0x268] sm:$0xff]  ;;  %v16843_v43 = vld [vmem:[#allocation5 + $0x278] sm:$0xff] }
 0x913   : > { %20458 = vmatmul.mubr.f32.gmra.mrb[90].mxu1 %v26261_v45  ;;  %v16832_v45 = vld [vmem:[#allocation5 + $0x220] sm:$0xff] }
 0x914   : > { %20460 = vmatprep.mubr.f32.mxu1 %v26264_v50  ;;  %v16833_v50 = vld [vmem:[#allocation5 + $0x228] sm:$0xff] }
 0x917   : > { %20461 = vmatmul.mubr.f32.gmra.mrb[92].mxu1 %v26267_v6  ;;  %v26279_v6 = vld [vmem:[#allocation3 + $0x38] sm:$0xff] }
 0x918   : > { %20463 = vmatprep.mubr.f32.mxu1 %v26270_v15  ;;  %v21082_v15 = vpack.c.bf16 %v16833_v50, %v16832_v45  ;;  %v16838_v45 = vld [vmem:[#allocation5 + $0x250] sm:$0xff]  ;;  %v16839_v50 = vld [vmem:[#allocation5 + $0x258] sm:$0xff] }
 0x91b   : > { %20464 = vmatmul.mubr.f32.gmra.mrb[94].mxu1 %v26273_v56 }
 0x91c   : > { %20498 = vmatprep.mubr.f32.mxu1 %v16393_v1  ;;  %v16837_v1 = vld [vmem:[#allocation5 + $0x248] sm:$0xff] }
 0x91f   : > { %20499 = vmatmul.mubr.f32.vlgmr.msra.gmra.mrb[64].mxu1 %v16394_v7  ;;  %v17202_v7 = vld [vmem:[#allocation5 + $0x2a0] sm:$0xff] }
 0x920   : > { %21077 = vmatpush3.bf16.msra.mxu1 %v21074_v13  ;;  %20501 = vmatprep.mubr.f32.mxu1 %v26276_v47  ;;  %v21090_v13 = vpack.c.bf16 %v16837_v1, %v16836_v63  ;;  %v26314_v63 = vld [vmem:[#allocation3 + $0x31] sm:$0xff]  ;;  %v26317_v1 = vld [vmem:[#allocation3 + $0x39] sm:$0xff] }
 0x921   : > { %21079 = vmatprep.subr.bf16.mxu1 %v21078_v38 }
 0x923   : > { %20502 = vmatmul.mubr.f32.gmra.mrb[66].mxu1 %v26279_v6 }
 0x924   : > { %20504 = vmatprep.mubr.f32.mxu1 %v25823_v12  ;;  %21081 = vmatpush3.bf16.msra.mxu1 %v21078_v38  ;;  %v21094_v12 = vpack.c.bf16 %v16839_v50, %v16838_v45  ;;  %v16840_v38 = vld [vmem:[#allocation5 + $0x260] sm:$0xff]  ;;  %v17205_v45 = vld [vmem:[#allocation5 + $0x2b8] sm:$0xff] }
 0x925   : > { %21083 = vmatprep.subr.bf16.mxu1 %v21082_v15  ;;  %v26320_v50 = vld [vmem:[#allocation3 + $0x49] sm:$0xff] }
 0x927   : > { %20505 = vmatmul.mubr.f32.gmra.mrb[68].mxu1 %v25836_v53  ;;  %v21098_v53 = vpack.c.bf16 %v16841_v44, %v16840_v38  ;;  %v26323_v38 = vld [vmem:[#allocation3 + $0x51] sm:$0xff] }
 0x928   : > { %20507 = vmatprep.mubr.f32.mxu1 %v25849_v57  ;;  %21085 = vmatpush3.bf16.msra.mxu1 %v21082_v15  ;;  %v16842_v57 = vld [vmem:[#allocation5 + $0x270] sm:$0xff]  ;;  %v17199_v15 = vld [vmem:[#allocation5 + $0x288] sm:$0xff]  ;;  %v17206_v44 = vld [vmem:[#allocation5 + $0x2c0] sm:$0xff] }
 0x929   : > { %21087 = vmatprep.subr.bf16.mxu1 %v21086_v58 }
 0x92b   : > { %20508 = vmatmul.mubr.f32.gmra.mrb[70].mxu1 %v25862_v60  ;;  %v21102_v60 = vpack.c.bf16 %v16843_v43, %v16842_v57  ;;  %v26326_v57 = vld [vmem:[#allocation3 + $0x61] sm:$0xff] }
 0x92c   : > { %20510 = vmatprep.mubr.f32.mxu1 %v25875_v62  ;;  %21089 = vmatpush3.bf16.msra.mxu1 %v21086_v58  ;;  %v17198_v62 = vld [vmem:[#allocation5 + $0x280] sm:$0xff]  ;;  %v17203_v58 = vld [vmem:[#allocation5 + $0x2a8] sm:$0xff] }
 0x92d   : > { %21091 = vmatprep.subr.bf16.mxu1 %v21090_v13 }
 0x92f   : > { %20511 = vmatmul.mubr.f32.gmra.mrb[72].mxu1 %v25888_v2  ;;  %v21106_v2 = vpack.c.bf16 %v17199_v15, %v17198_v62  ;;  %v17208_v62 = vld [vmem:[#allocation5 + $0x2d0] sm:$0xff]  ;;  %v17209_v15 = vld [vmem:[#allocation5 + $0x2d8] sm:$0xff] }
 0x930   : > { %20513 = vmatprep.mubr.f32.mxu1 %v25901_v4  ;;  %21093 = vmatpush3.bf16.msra.mxu1 %v21090_v13  ;;  %v26800_v4 = vld [vmem:[#allocation14_spill] sm:$0xff]  ;;  %v17204_v13 = vld [vmem:[#allocation5 + $0x2b0] sm:$0xff] }
 0x931   : > { %21095 = vmatprep.subr.bf16.mxu1 %v21094_v12 }
 0x933   : > { %20514 = vmatmul.mubr.f32.gmra.mrb[74].mxu1 %v25914_v8  ;;  %v26801_v8 = vld [vmem:[#allocation16_spill] sm:$0xff] }
 0x934   : > { %20516 = vmatprep.mubr.f32.mxu1 %v25927_v11  ;;  %21097 = vmatpush3.bf16.msra.mxu1 %v21094_v12  ;;  %v26802_v11 = vld [vmem:[#allocation18_spill] sm:$0xff]  ;;  %v21118_v12 = vpack.c.bf16 %v17205_v45, %v17204_v13 }
 0x935   : > { %21099 = vmatprep.subr.bf16.mxu1 %v21098_v53  ;;  %v26350_v13 = vld [vmem:[#allocation3 + $0xc1] sm:$0xff] }
 0x937   : > { %20517 = vmatmul.mubr.f32.gmra.mrb[76].mxu1 %v25940_v14  ;;  %v26803_v14 = vld [vmem:[#allocation20_spill] sm:$0xff] }
 0x938   : > { %20519 = vmatprep.mubr.f32.mxu1 %v25953_v17  ;;  %21101 = vmatpush3.bf16.msra.mxu1 %v21098_v53  ;;  %v26804_v17 = vld [vmem:[#allocation22_spill] sm:$0xff]  ;;  %v17207_v53 = vld [vmem:[#allocation5 + $0x2c8] sm:$0xff] }
 0x939   : > { %21103 = vmatprep.subr.bf16.mxu1 %v21102_v60  ;;  %v21122_v43 = vpack.c.bf16 %v17207_v53, %v17206_v44  ;;  %v26356_v44 = vld [vmem:[#allocation3 + $0xd9] sm:$0xff]  ;;  %v26359_v53 = vld [vmem:[#allocation3 + $0xe1] sm:$0xff] }
 0x93b   : > { %20520 = vmatmul.mubr.f32.gmra.mrb[78].mxu1 %v25966_v20  ;;  %v26805_v20 = vld [vmem:[#allocation25_spill] sm:$0xff] }
 0x93c   : > { %20522 = vmatprep.mubr.f32.mxu1 %v25979_v24  ;;  %21105 = vmatpush3.bf16.msra.mxu1 %v21102_v60  ;;  %v26308_v24 = vld [vmem:[#allocation3 + $0x180] sm:$0xff]  ;;  %v26329_v60 = vld [vmem:[#allocation3 + $0x69] sm:$0xff] }
 0x93d   : > { %21107 = vmatprep.subr.bf16.mxu1 %v21106_v2 }
 0x93f   : > { %20523 = vmatmul.mubr.f32.gmra.mrb[80].mxu1 %v25992_v26  ;;  %v26311_v26 = vld [vmem:[#allocation3 + $0x188] sm:$0xff] }
 0x940   : > { %20525 = vmatprep.mubr.f32.mxu1 %v26005_v31  ;;  %v17200_v31 = vld [vmem:[#allocation5 + $0x290] sm:$0xff] }
 0x943   : > { %20526 = vmatmul.mubr.f32.gmra.mrb[82].mxu1 %v26018_v40  ;;  %v17201_v40 = vld [vmem:[#allocation5 + $0x298] sm:$0xff] }
 0x944   : > { %20528 = vmatprep.mubr.f32.mxu1 %v26030_v48  ;;  %v16763_v48 = vld [vmem:[#allocation3 + $0x19] sm:$0xff] }
 0x947   : > { %20529 = vmatmul.mubr.f32.gmra.mrb[84].mxu1 %v26041_v34  ;;  %v21110_v34 = vpack.c.bf16 %v17201_v40, %v17200_v31  ;;  %v26341_v31 = vld [vmem:[#allocation3 + $0x99] sm:$0xff] }
 0x948   : > { %20531 = vmatprep.mubr.f32.mxu1 %v26052_v22  ;;  %v16764_v22 = vld [vmem:[#allocation3 + $0x21] sm:$0xff] }
 0x949   : > { %v17212_v40 = vld [vmem:[#allocation5 + $0x2f0] sm:$0xff] }
 0x94b   : > { %20532 = vmatmul.mubr.f32.gmra.mrb[86].mxu1 %v26800_v4  ;;  %v21126_v4 = vpack.c.bf16 %v17209_v15, %v17208_v62  ;;  %v26365_v62 = vld [vmem:[#allocation3 + $0xf9] sm:$0xff]  ;;  %v26368_v15 = vld [vmem:[#allocation3 + $0x109] sm:$0xff] }
 0x94c   : > { %20534 = vmatprep.mubr.f32.mxu1 %v26801_v8  ;;  %v26335_v8 = vld [vmem:[#allocation3 + $0x81] sm:$0xff] }
 0x94f   : > { %20535 = vmatmul.mubr.f32.gmra.mrb[88].mxu1 %v26802_v11  ;;  %v17210_v11 = vld [vmem:[#allocation5 + $0x2e0] sm:$0xff] }
 0x950   : > { %20537 = vmatprep.mubr.f32.mxu1 %v26803_v14  ;;  %v17211_v14 = vld [vmem:[#allocation5 + $0x2e8] sm:$0xff] }
 0x953   : > { %20538 = vmatmul.mubr.f32.gmra.mrb[90].mxu1 %v26804_v17  ;;  %v26338_v17 = vld [vmem:[#allocation3 + $0x91] sm:$0xff] }
 0x954   : > { %20540 = vmatprep.mubr.f32.mxu1 %v26805_v20  ;;  %v21130_v20 = vpack.c.bf16 %v17211_v14, %v17210_v11  ;;  %v26806_v11 = vld [vmem:[#allocation23_spill] sm:$0xff] }
 0x955   : > { %v26807_v14 = vmax.f32 %v26806_v11, 0.0  ;;  %v17940_v11 = vld [vmem:[#allocation5 + $0x388] sm:$0xff] }
 0x957   : > { %20541 = vmatmul.mubr.f32.gmra.mrb[92].mxu1 %v26128_v41  ;;  %v21114_v41 = vpack.c.bf16 %v17203_v58, %v17202_v7  ;;  %v26347_v7 = vld [vmem:[#allocation3 + $0xb1] sm:$0xff] }
 0x958   : > { %20543 = vmatprep.mubr.f32.mxu1 %v26308_v24  ;;  %v17569_v58 = vld [vmem:[#allocation5 + $0x300] sm:$0xff] }
 0x95b   : > { %20544 = vmatmul.mubr.f32.gmra.mrb[94].mxu1 %v26311_v26 }
 0x95c   : > { %20578 = vmatprep.mubr.f32.mxu1 %v16763_v48  ;;  %v17213_v48 = vld [vmem:[#allocation5 + $0x2f8] sm:$0xff] }
 0x95f   : > { %20579 = vmatmul.mubr.f32.vlgmr.msra.gmra.mrb[64].mxu1 %v16764_v22  ;;  %v21134_v22 = vpack.c.bf16 %v17213_v48, %v17212_v40  ;;  %v17572_v40 = vld [vmem:[#allocation5 + $0x318] sm:$0xff] }
 0x960   : > { %21109 = vmatpush3.bf16.msra.mxu1 %v21106_v2  ;;  %20581 = vmatprep.mubr.f32.mxu1 %v26314_v63  ;;  %v26332_v2 = vld [vmem:[#allocation3 + $0x79] sm:$0xff] }
 0x961   : > { %21111 = vmatprep.subr.bf16.mxu1 %v21110_v34 }
 0x963   : > { %20582 = vmatmul.mubr.f32.gmra.mrb[66].mxu1 %v26317_v1 }
 0x964   : > { %20584 = vmatprep.mubr.f32.mxu1 %v26320_v50  ;;  %21113 = vmatpush3.bf16.msra.mxu1 %v21110_v34  ;;  %v26344_v34 = vld [vmem:[#allocation3 + $0xa9] sm:$0xff] }
 0x965   : > { %21115 = vmatprep.subr.bf16.mxu1 %v21114_v41 }
 0x967   : > { %20585 = vmatmul.mubr.f32.gmra.mrb[68].mxu1 %v26323_v38 }
 0x968   : > { %20587 = vmatprep.mubr.f32.mxu1 %v26326_v57  ;;  %21117 = vmatpush3.bf16.msra.mxu1 %v21114_v41  ;;  %v17570_v41 = vld [vmem:[#allocation5 + $0x308] sm:$0xff] }
 0x969   : > { %21119 = vmatprep.subr.bf16.mxu1 %v21118_v12  ;;  %v21138_v45 = vpack.c.bf16 %v17570_v41, %v17569_v58  ;;  %v17580_v58 = vld [vmem:[#allocation5 + $0x358] sm:$0xff]  ;;  %v17582_v41 = vld [vmem:[#allocation5 + $0x368] sm:$0xff] }
 0x96b   : > { %20588 = vmatmul.mubr.f32.gmra.mrb[70].mxu1 %v26329_v60 }
 0x96c   : > { %20590 = vmatprep.mubr.f32.mxu1 %v26332_v2  ;;  %21121 = vmatpush3.bf16.msra.mxu1 %v21118_v12  ;;  %v26353_v12 = vld [vmem:[#allocation3 + $0xc9] sm:$0xff] }
 0x96d   : > { %21123 = vmatprep.subr.bf16.mxu1 %v21122_v43 }
 0x96f   : > { %20591 = vmatmul.mubr.f32.gmra.mrb[72].mxu1 %v26335_v8 }
 0x970   : > { %20593 = vmatprep.mubr.f32.mxu1 %v26338_v17  ;;  %21125 = vmatpush3.bf16.msra.mxu1 %v21122_v43  ;;  %v26362_v43 = vld [vmem:[#allocation3 + $0xf1] sm:$0xff] }
 0x971   : > { %21127 = vmatprep.subr.bf16.mxu1 %v21126_v4 }
 0x973   : > { %20594 = vmatmul.mubr.f32.gmra.mrb[74].mxu1 %v26341_v31 }
 0x974   : > { %20596 = vmatprep.mubr.f32.mxu1 %v26344_v34  ;;  %21129 = vmatpush3.bf16.msra.mxu1 %v21126_v4  ;;  %v26371_v4 = vld [vmem:[#allocation3 + $0x111] sm:$0xff] }
 0x975   : > { %21131 = vmatprep.subr.bf16.mxu1 %v21130_v20 }
 0x977   : > { %20597 = vmatmul.mubr.f32.gmra.mrb[76].mxu1 %v26347_v7 }
 0x978   : > { %20599 = vmatprep.mubr.f32.mxu1 %v26350_v13  ;;  %21133 = vmatpush3.bf16.msra.mxu1 %v21130_v20  ;;  %v17571_v20 = vld [vmem:[#allocation5 + $0x310] sm:$0xff] }
 0x979   : > { %21135 = vmatprep.subr.bf16.mxu1 %v21134_v22 }
 0x97b   : > { %20600 = vmatmul.mubr.f32.gmra.mrb[78].mxu1 %v26353_v12 }
 0x97c   : > { %20602 = vmatprep.mubr.f32.mxu1 %v26356_v44  ;;  %21137 = vmatpush3.bf16.msra.mxu1 %v21134_v22  ;;  %v17578_v22 = vld [vmem:[#allocation5 + $0x348] sm:$0xff] }
 0x97d   : > { %21139 = vmatprep.subr.bf16.mxu1 %v21138_v45 }
 0x97f   : > { %20603 = vmatmul.mubr.f32.gmra.mrb[80].mxu1 %v26359_v53 }
 0x980   : > { %20605 = vmatprep.mubr.f32.mxu1 %v26362_v43 }
 0x983   : > { %20606 = vmatmul.mubr.f32.gmra.mrb[82].mxu1 %v26365_v62 }
 0x984   : > { %20608 = vmatprep.mubr.f32.mxu1 %v26368_v15 }
 0x987   : > { %20609 = vmatmul.mubr.f32.gmra.mrb[84].mxu1 %v26371_v4 }
 0x988   : > { %20611 = vmatprep.mubr.f32.mxu1 %v26024_v35  ;;  %v26808_v35 = vld [vmem:[#allocation26_spill] sm:$0xff] }
 0x989   : > { %v26809_v48 = vmax.f32 %v26808_v35, 0.0  ;;  %v17507_v35 = vld [vmem:[#allocation3 + $0x50] sm:$0xff] }
 0x98b   : > { %20612 = vmatmul.mubr.f32.gmra.mrb[86].mxu1 %v26035_v37  ;;  %v21142_v37 = vpack.c.bf16 %v17572_v40, %v17571_v20  ;;  %v17944_v20 = vld [vmem:[#allocation5 + $0x3a8] sm:$0xff]  ;;  %v17506_v40 = vld [vmem:[#allocation3 + $0x48] sm:$0xff] }
 0x98c   : > { %20614 = vmatprep.mubr.f32.mxu1 %v26046_v51  ;;  %v17573_v51 = vld [vmem:[#allocation5 + $0x320] sm:$0xff] }
 0x98f   : > { %20615 = vmatmul.mubr.f32.gmra.mrb[88].mxu1 %v26057_v28  ;;  %v17574_v28 = vld [vmem:[#allocation5 + $0x328] sm:$0xff] }
 0x990   : > { %20617 = vmatprep.mubr.f32.mxu1 %v26068_v61  ;;  %v21146_v61 = vpack.c.bf16 %v17574_v28, %v17573_v51  ;;  %v17508_v51 = vld [vmem:[#allocation3 + $0x60] sm:$0xff] }
 0x993   : > { %20618 = vmatmul.mubr.f32.gmra.mrb[90].mxu1 %v26079_v59  ;;  %v17575_v59 = vld [vmem:[#allocation5 + $0x330] sm:$0xff] }
 0x994   : > { %20620 = vmatprep.mubr.f32.mxu1 %v26090_v9  ;;  %v17576_v9 = vld [vmem:[#allocation5 + $0x338] sm:$0xff] }
 0x997   : > { %20621 = vmatmul.mubr.f32.gmra.mrb[92].mxu1 %v26101_v46  ;;  %v21150_v46 = vpack.c.bf16 %v17576_v9, %v17575_v59  ;;  %v17948_v59 = vld [vmem:[#allocation5 + $0x3c8] sm:$0xff] }
 0x998   : > { %20623 = vmatprep.mubr.f32.mxu1 %v26807_v14  ;;  %v17943_v14 = vld [vmem:[#allocation5 + $0x3a0] sm:$0xff]  ;;  %v17510_v9 = vld [vmem:[#allocation3 + $0x78] sm:$0xff] }
 0x99b   : > { %20624 = vmatmul.mubr.f32.gmra.mrb[94].mxu1 %v26809_v48  ;;  %v17945_v48 = vld [vmem:[#allocation5 + $0x3b0] sm:$0xff] }
 0x99c   : > { %20658 = vmatprep.mubr.f32.mxu1 %v26186_v49  ;;  %v17577_v49 = vld [vmem:[#allocation5 + $0x340] sm:$0xff] }
 0x99f   : > { %20659 = vmatmul.mubr.f32.vlgmr.msra.gmra.mrb[64].mxu1 %v26189_v18  ;;  %v21154_v18 = vpack.c.bf16 %v17578_v22, %v17577_v49  ;;  %v17949_v49 = vld [vmem:[#allocation5 + $0x3d0] sm:$0xff]  ;;  %v17950_v22 = vld [vmem:[#allocation5 + $0x3d8] sm:$0xff] }
 0x9a0   : > { %21141 = vmatpush3.bf16.msra.mxu1 %v21138_v45  ;;  %20661 = vmatprep.mubr.f32.mxu1 %v26192_v27  ;;  %v17579_v27 = vld [vmem:[#allocation5 + $0x350] sm:$0xff]  ;;  %v17584_v45 = vld [vmem:[#allocation5 + $0x378] sm:$0xff] }
 0x9a1   : > { %21143 = vmatprep.subr.bf16.mxu1 %v21142_v37 }
 0x9a3   : > { %20662 = vmatmul.mubr.f32.gmra.mrb[66].mxu1 %v26195_v0  ;;  %v21158_v0 = vpack.c.bf16 %v17580_v58, %v17579_v27  ;;  %v21190_v27 = vpack.c.bf16 %v17950_v22, %v17949_v49  ;;  %v17513_v58 = vld [vmem:[#allocation3 + $0x98] sm:$0xff]  ;;  %v18320_v22 = vld [vmem:[#allocation5 + $0x458] sm:$0xff] }
 0x9a4   : > { %20664 = vmatprep.mubr.f32.mxu1 %v26198_v32  ;;  %21145 = vmatpush3.bf16.msra.mxu1 %v21142_v37  ;;  %v17581_v32 = vld [vmem:[#allocation5 + $0x360] sm:$0xff]  ;;  %v17946_v37 = vld [vmem:[#allocation5 + $0x3b8] sm:$0xff]  ;;  %v18318_v49 = vld [vmem:[#allocation5 + $0x448] sm:$0xff] }
 0x9a5   : > { %21147 = vmatprep.subr.bf16.mxu1 %v21146_v61  ;;  %v21182_v28 = vpack.c.bf16 %v17946_v37, %v17945_v48  ;;  %v17530_v48 = vld [vmem:[#allocation3 + $0x168] sm:$0xff]  ;;  %v17531_v37 = vld [vmem:[#allocation3 + $0x170] sm:$0xff] }
 0x9a7   : > { %20665 = vmatmul.mubr.f32.gmra.mrb[68].mxu1 %v26201_v42  ;;  %v21162_v42 = vpack.c.bf16 %v17582_v41, %v17581_v32  ;;  %v17952_v32 = vld [vmem:[#allocation5 + $0x3e8] sm:$0xff]  ;;  %v17514_v41 = vld [vmem:[#allocation3 + $0xa8] sm:$0xff] }
 0x9a8   : > { %20667 = vmatprep.mubr.f32.mxu1 %v26204_v54  ;;  %21149 = vmatpush3.bf16.msra.mxu1 %v21146_v61  ;;  %v17583_v54 = vld [vmem:[#allocation5 + $0x370] sm:$0xff]  ;;  %v17947_v61 = vld [vmem:[#allocation5 + $0x3c0] sm:$0xff] }
 0x9a9   : > { %21151 = vmatprep.subr.bf16.mxu1 %v21150_v46 }
 0x9ab   : > { %20668 = vmatmul.mubr.f32.gmra.mrb[70].mxu1 %v26207_v21  ;;  %v21166_v21 = vpack.c.bf16 %v17584_v45, %v17583_v54  ;;  %v17515_v54 = vld [vmem:[#allocation3 + $0xb0] sm:$0xff]  ;;  %v17953_v45 = vld [vmem:[#allocation5 + $0x3f0] sm:$0xff] }
 0x9ac   : > { %20670 = vmatprep.mubr.f32.mxu1 %v26210_v52  ;;  %21153 = vmatpush3.bf16.msra.mxu1 %v21150_v46  ;;  %v17939_v52 = vld [vmem:[#allocation5 + $0x380] sm:$0xff]  ;;  %v17511_v46 = vld [vmem:[#allocation3 + $0x80] sm:$0xff] }
 0x9ad   : > { %21155 = vmatprep.subr.bf16.mxu1 %v21154_v18 }
 0x9af   : > { %20671 = vmatmul.mubr.f32.gmra.mrb[72].mxu1 %v26213_v55  ;;  %v21170_v55 = vpack.c.bf16 %v17940_v11, %v17939_v52  ;;  %v17516_v52 = vld [vmem:[#allocation3 + $0xc0] sm:$0xff] }
 0x9b0   : > { %20673 = vmatprep.mubr.f32.mxu1 %v26216_v5  ;;  %21157 = vmatpush3.bf16.msra.mxu1 %v21154_v18  ;;  %v26810_v5 = vld [vmem:[#allocation51_spill] sm:$0xff] }
 0x9b1   : > { %21159 = vmatprep.subr.bf16.mxu1 %v21158_v0  ;;  %v17512_v18 = vld [vmem:[#allocation3 + $0x90] sm:$0xff] }
 0x9b3   : > { %20674 = vmatmul.mubr.f32.gmra.mrb[74].mxu1 %v26219_v3  ;;  %v26811_v3 = vld [vmem:[#allocation52_spill] sm:$0xff] }
 0x9b4   : > { %20676 = vmatprep.mubr.f32.mxu1 %v26222_v10  ;;  %21161 = vmatpush3.bf16.msra.mxu1 %v21158_v0  ;;  %v26812_v10 = vld [vmem:[#allocation53_spill] sm:$0xff]  ;;  %v17951_v0 = vld [vmem:[#allocation5 + $0x3e0] sm:$0xff] }
 0x9b5   : > { %21163 = vmatprep.subr.bf16.mxu1 %v21162_v42 }
 0x9b7   : > { %20677 = vmatmul.mubr.f32.gmra.mrb[76].mxu1 %v26225_v16  ;;  %v26813_v16 = vld [vmem:[#allocation54_spill] sm:$0xff] }
 0x9b8   : > { %20679 = vmatprep.mubr.f32.mxu1 %v26228_v19  ;;  %21165 = vmatpush3.bf16.msra.mxu1 %v21162_v42  ;;  %v26814_v19 = vld [vmem:[#allocation55_spill] sm:$0xff]  ;;  %v21194_v42 = vpack.c.bf16 %v17952_v32, %v17951_v0  ;;  %v18245_v0 = vld [vmem:[#allocation3 + $0x3a] sm:$0xff] }
 0x9b9   : > { %21167 = vmatprep.subr.bf16.mxu1 %v21166_v21  ;;  %v18246_v32 = vld [vmem:[#allocation3 + $0x4a] sm:$0xff] }
 0x9bb   : > { %20680 = vmatmul.mubr.f32.gmra.mrb[78].mxu1 %v26231_v23  ;;  %v26815_v23 = vld [vmem:[#allocation56_spill] sm:$0xff] }
 0x9bc   : > { %20682 = vmatprep.mubr.f32.mxu1 %v26234_v25  ;;  %21169 = vmatpush3.bf16.msra.mxu1 %v21166_v21  ;;  %v26816_v25 = vld [vmem:[#allocation57_spill] sm:$0xff]  ;;  %v17954_v21 = vld [vmem:[#allocation5 + $0x3f8] sm:$0xff] }
 0x9bd   : > { %21171 = vmatprep.subr.bf16.mxu1 %v21170_v55  ;;  %v21198_v11 = vpack.c.bf16 %v17954_v21, %v17953_v45  ;;  %v18250_v45 = vld [vmem:[#allocation3 + $0x7a] sm:$0xff]  ;;  %v18251_v21 = vld [vmem:[#allocation3 + $0x82] sm:$0xff] }
 0x9bf   : > { %20683 = vmatmul.mubr.f32.gmra.mrb[80].mxu1 %v26237_v30  ;;  %v26416_v30 = vld [vmem:[#allocation3 + $0x182] sm:$0xff] }
 0x9c0   : > { %20685 = vmatprep.mubr.f32.mxu1 %v26240_v33  ;;  %v26419_v33 = vld [vmem:[#allocation3 + $0x18a] sm:$0xff] }
 0x9c3   : > { %20686 = vmatmul.mubr.f32.gmra.mrb[82].mxu1 %v26243_v29  ;;  %v17941_v29 = vld [vmem:[#allocation5 + $0x390] sm:$0xff] }
 0x9c4   : > { %20688 = vmatprep.mubr.f32.mxu1 %v26246_v36  ;;  %v17942_v36 = vld [vmem:[#allocation5 + $0x398] sm:$0xff] }
 0x9c7   : > { %20689 = vmatmul.mubr.f32.gmra.mrb[84].mxu1 %v26249_v39  ;;  %v21174_v39 = vpack.c.bf16 %v17942_v36, %v17941_v29  ;;  %v17522_v29 = vld [vmem:[#allocation3 + $0x108] sm:$0xff]  ;;  %v17523_v36 = vld [vmem:[#allocation3 + $0x110] sm:$0xff] }
 0x9c8   : > { %20691 = vmatprep.mubr.f32.mxu1 %v26810_v5  ;;  %v18309_v5 = vld [vmem:[#allocation5 + $0x400] sm:$0xff] }
 0x9cb   : > { %20692 = vmatmul.mubr.f32.gmra.mrb[86].mxu1 %v26811_v3  ;;  %v18310_v3 = vld [vmem:[#allocation5 + $0x408] sm:$0xff] }
 0x9cc   : > { %20694 = vmatprep.mubr.f32.mxu1 %v26812_v10  ;;  %v17518_v10 = vld [vmem:[#allocation3 + $0xd8] sm:$0xff] }
 0x9cf   : > { %20695 = vmatmul.mubr.f32.gmra.mrb[88].mxu1 %v26813_v16  ;;  %v21202_v16 = vpack.c.bf16 %v18310_v3, %v18309_v5  ;;  %v18255_v5 = vld [vmem:[#allocation3 + $0xb2] sm:$0xff]  ;;  %v18256_v3 = vld [vmem:[#allocation3 + $0xc2] sm:$0xff] }
 0x9d0   : > { %20697 = vmatprep.mubr.f32.mxu1 %v26814_v19  ;;  %v17519_v19 = vld [vmem:[#allocation3 + $0xe0] sm:$0xff] }
 0x9d3   : > { %20698 = vmatmul.mubr.f32.gmra.mrb[90].mxu1 %v26815_v23  ;;  %v17520_v23 = vld [vmem:[#allocation3 + $0xf0] sm:$0xff] }
 0x9d4   : > { %20700 = vmatprep.mubr.f32.mxu1 %v26816_v25  ;;  %v17521_v25 = vld [vmem:[#allocation3 + $0xf8] sm:$0xff] }
 0x9d7   : > { %20701 = vmatmul.mubr.f32.gmra.mrb[92].mxu1 %v26273_v56  ;;  %v21178_v56 = vpack.c.bf16 %v17944_v20, %v17943_v14  ;;  %v17525_v14 = vld [vmem:[#allocation3 + $0x128] sm:$0xff]  ;;  %v17526_v20 = vld [vmem:[#allocation3 + $0x138] sm:$0xff] }
 0x9d8   : > { %20703 = vmatprep.mubr.f32.mxu1 %v26416_v30 }
 0x9db   : > { %20704 = vmatmul.mubr.f32.gmra.mrb[94].mxu1 %v26419_v33 }
 0x9dc   : > { %20738 = vmatprep.mubr.f32.mxu1 %v26276_v47  ;;  %v17509_v47 = vld [vmem:[#allocation3 + $0x68] sm:$0xff] }
 0x9df   : > { %20739 = vmatmul.mubr.f32.vlgmr.msra.gmra.mrb[64].mxu1 %v26279_v6  ;;  %v21186_v6 = vpack.c.bf16 %v17948_v59, %v17947_v61  ;;  %v18313_v59 = vld [vmem:[#allocation5 + $0x420] sm:$0xff] }
 0x9e0   : > { %21173 = vmatpush3.bf16.msra.mxu1 %v21170_v55  ;;  %20741 = vmatprep.mubr.f32.mxu1 %v17506_v40  ;;  %v17517_v55 = vld [vmem:[#allocation3 + $0xc8] sm:$0xff]  ;;  %v17527_v40 = vld [vmem:[#allocation3 + $0x140] sm:$0xff] }
 0x9e1   : > { %21175 = vmatprep.subr.bf16.mxu1 %v21174_v39 }
 0x9e3   : > { %20742 = vmatmul.mubr.f32.gmra.mrb[66].mxu1 %v17507_v35  ;;  %v17529_v35 = vld [vmem:[#allocation3 + $0x158] sm:$0xff] }
 0x9e4   : > { %20744 = vmatprep.mubr.f32.mxu1 %v17508_v51  ;;  %21177 = vmatpush3.bf16.msra.mxu1 %v21174_v39  ;;  %v17524_v39 = vld [vmem:[#allocation3 + $0x120] sm:$0xff] }
 0x9e5   : > { %21179 = vmatprep.subr.bf16.mxu1 %v21178_v56  ;;  %v23145_v51 = vld [vmem:[#allocation3] sm:$0xff] }
 0x9e7   : > { %20745 = vmatmul.mubr.f32.gmra.mrb[68].mxu1 %v17509_v47  ;;  %v18312_v47 = vld [vmem:[#allocation5 + $0x418] sm:$0xff] }
 0x9e8   : > { %20747 = vmatprep.mubr.f32.mxu1 %v17510_v9  ;;  %21181 = vmatpush3.bf16.msra.mxu1 %v21178_v56  ;;  %v17528_v56 = vld [vmem:[#allocation3 + $0x150] sm:$0xff]  ;;  %v18314_v9 = vld [vmem:[#allocation5 + $0x428] sm:$0xff] }
 0x9e9   : > { %21183 = vmatprep.subr.bf16.mxu1 %v21182_v28 }
 0x9eb   : > { %20748 = vmatmul.mubr.f32.gmra.mrb[70].mxu1 %v17511_v46  ;;  %v18316_v46 = vld [vmem:[#allocation5 + $0x438] sm:$0xff] }
 0x9ec   : > { %20750 = vmatprep.mubr.f32.mxu1 %v17512_v18  ;;  %21185 = vmatpush3.bf16.msra.mxu1 %v21182_v28  ;;  %v18311_v28 = vld [vmem:[#allocation5 + $0x410] sm:$0xff]  ;;  %v18322_v18 = vld [vmem:[#allocation5 + $0x468] sm:$0xff] }
 0x9ed   : > { %21187 = vmatprep.subr.bf16.mxu1 %v21186_v6  ;;  %v21206_v61 = vpack.c.bf16 %v18312_v47, %v18311_v28  ;;  %v18275_v28 = vld [vmem:[#allocation3 + $0x1a2] sm:$0xff]  ;;  %v26452_v47 = vld [vmem:[%s26647_s4] ss:$0 sm:$0xff] }
 0x9ef   : > { %20751 = vmatmul.mubr.f32.gmra.mrb[72].mxu1 %v17513_v58  ;;  %v18244_v58 = vld [vmem:[#allocation3 + $0x32] sm:$0xff] }
 0x9f0   : > { %20753 = vmatprep.mubr.f32.mxu1 %v17514_v41  ;;  %21189 = vmatpush3.bf16.msra.mxu1 %v21186_v6  ;;  %v21210_v6 = vpack.c.bf16 %v18314_v9, %v18313_v59  ;;  %v18247_v41 = vld [vmem:[#allocation3 + $0x52] sm:$0xff] }
 0x9f1   : > { %21191 = vmatprep.subr.bf16.mxu1 %v21190_v27 }
 0x9f3   : > { %20754 = vmatmul.mubr.f32.gmra.mrb[74].mxu1 %v17515_v54  ;;  %v18249_v54 = vld [vmem:[#allocation3 + $0x6a] sm:$0xff] }
 0x9f4   : > { %20756 = vmatprep.mubr.f32.mxu1 %v17516_v52  ;;  %21193 = vmatpush3.bf16.msra.mxu1 %v21190_v27  ;;  %v18324_v27 = vld [vmem:[#allocation5 + $0x478] sm:$0xff]  ;;  %v18252_v52 = vld [vmem:[#allocation3 + $0x92] sm:$0xff] }
 0x9f5   : > { %21195 = vmatprep.subr.bf16.mxu1 %v21194_v42 }
 0x9f7   : > { %20757 = vmatmul.mubr.f32.gmra.mrb[76].mxu1 %v17517_v55  ;;  %v18254_v55 = vld [vmem:[#allocation3 + $0xaa] sm:$0xff] }
 0x9f8   : > { %20759 = vmatprep.mubr.f32.mxu1 %v17518_v10  ;;  %21197 = vmatpush3.bf16.msra.mxu1 %v21194_v42  ;;  %v18248_v42 = vld [vmem:[#allocation3 + $0x62] sm:$0xff]  ;;  %v18257_v10 = vld [vmem:[#allocation3 + $0xca] sm:$0xff] }
 0x9f9   : > { %21199 = vmatprep.subr.bf16.mxu1 %v21198_v11 }
 0x9fb   : > { %20760 = vmatmul.mubr.f32.gmra.mrb[78].mxu1 %v17519_v19  ;;  %v18259_v19 = vld [vmem:[#allocation3 + $0xe2] sm:$0xff] }
 0x9fc   : > { %20762 = vmatprep.mubr.f32.mxu1 %v17520_v23  ;;  %21201 = vmatpush3.bf16.msra.mxu1 %v21198_v11  ;;  %v18253_v11 = vld [vmem:[#allocation3 + $0x9a] sm:$0xff]  ;;  %v18260_v23 = vld [vmem:[#allocation3 + $0xf2] sm:$0xff] }
 0x9fd   : > { %21203 = vmatprep.subr.bf16.mxu1 %v21202_v16 }
 0x9ff   : > { %20763 = vmatmul.mubr.f32.gmra.mrb[80].mxu1 %v17521_v25  ;;  %v18261_v25 = vld [vmem:[#allocation3 + $0xfa] sm:$0xff] }
 0xa00   : > { %20765 = vmatprep.mubr.f32.mxu1 %v17522_v29  ;;  %v18262_v29 = vld [vmem:[#allocation3 + $0x10a] sm:$0xff] }
 0xa03   : > { %20766 = vmatmul.mubr.f32.gmra.mrb[82].mxu1 %v17523_v36  ;;  %v18263_v36 = vld [vmem:[#allocation3 + $0x112] sm:$0xff] }
 0xa04   : > { %20768 = vmatprep.mubr.f32.mxu1 %v17524_v39  ;;  %v18264_v39 = vld [vmem:[#allocation3 + $0x122] sm:$0xff] }
 0xa07   : > { %20769 = vmatmul.mubr.f32.gmra.mrb[84].mxu1 %v17525_v14  ;;  %v18265_v14 = vld [vmem:[#allocation3 + $0x12a] sm:$0xff] }
 0xa08   : > { %20771 = vmatprep.mubr.f32.mxu1 %v17526_v20  ;;  %v18266_v20 = vld [vmem:[#allocation3 + $0x13a] sm:$0xff] }
 0xa0b   : > { %20772 = vmatmul.mubr.f32.gmra.mrb[86].mxu1 %v17527_v40  ;;  %v18267_v40 = vld [vmem:[#allocation3 + $0x142] sm:$0xff] }
 0xa0c   : > { %20774 = vmatprep.mubr.f32.mxu1 %v17528_v56  ;;  %v18268_v56 = vld [vmem:[#allocation3 + $0x152] sm:$0xff] }
 0xa0f   : > { %20775 = vmatmul.mubr.f32.gmra.mrb[88].mxu1 %v17529_v35  ;;  %v18269_v35 = vld [vmem:[#allocation3 + $0x15a] sm:$0xff] }
 0xa10   : > { %20777 = vmatprep.mubr.f32.mxu1 %v17530_v48  ;;  %v18270_v48 = vld [vmem:[#allocation3 + $0x16a] sm:$0xff] }
 0xa13   : > { %20778 = vmatmul.mubr.f32.gmra.mrb[90].mxu1 %v17531_v37  ;;  %v18271_v37 = vld [vmem:[#allocation3 + $0x172] sm:$0xff] }
 0xa14   : > { %20780 = vmatprep.mubr.f32.mxu1 %v26308_v24  ;;  %v18315_v24 = vld [vmem:[#allocation5 + $0x430] sm:$0xff] }
 0xa17   : > { %20781 = vmatmul.mubr.f32.gmra.mrb[92].mxu1 %v26311_v26  ;;  %v21214_v26 = vpack.c.bf16 %v18316_v46, %v18315_v24  ;;  %v26818_v24 = vld [vmem:[#allocation27_spill] sm:$0xff] }
 0xa18   : > { %20783 = vmatprep.mubr.f32.mxu1 %v23145_v51 }
 0xa1b   : > { %20784 = vmatmul.mubr.f32.gmra.mrb[94].mxu1 %v23145_v51  ;;  %v18274_v51 = vld [vmem:[#allocation3 + $0x19a] sm:$0xff] }
 0xa1c   : > { %20818 = vmatprep.mubr.f32.mxu1 %v26314_v63  ;;  %v18317_v63 = vld [vmem:[#allocation5 + $0x440] sm:$0xff] }
 0xa1f   : > { %20819 = vmatmul.mubr.f32.vlgmr.msra.gmra.mrb[64].mxu1 %v26317_v1  ;;  %v21218_v1 = vpack.c.bf16 %v18318_v49, %v18317_v63 }
 0xa20   : > { %21205 = vmatpush3.bf16.msra.mxu1 %v21202_v16  ;;  %20821 = vmatprep.mubr.f32.mxu1 %v26320_v50  ;;  %v18319_v50 = vld [vmem:[#allocation5 + $0x450] sm:$0xff] }
 0xa21   : > { %21207 = vmatprep.subr.bf16.mxu1 %v21206_v61  ;;  %v18258_v16 = vld [vmem:[#allocation3 + $0xda] sm:$0xff] }
 0xa23   : > { %20822 = vmatmul.mubr.f32.gmra.mrb[66].mxu1 %v26323_v38  ;;  %v21222_v38 = vpack.c.bf16 %v18320_v22, %v18319_v50  ;;  %v26819_v50 = vld [vmem:[#allocation30_spill] sm:$0xff] }
 0xa24   : > { %20824 = vmatprep.mubr.f32.mxu1 %v26326_v57  ;;  %21209 = vmatpush3.bf16.msra.mxu1 %v21206_v61  ;;  %v18321_v57 = vld [vmem:[#allocation5 + $0x460] sm:$0xff]  ;;  %v26457_v61 = vld [vmem:[%s26648_s5] ss:$0 sm:$0xff] }
 0xa25   : > { %21211 = vmatprep.subr.bf16.mxu1 %v21210_v6  ;;  %v18685_v46 = vadd.f32 %v26818_v24, %v26457_v61  ;;  %v18688_v22 = vadd.f32 %v26819_v50, %v26457_v61 }
 0xa27   : > { %20825 = vmatmul.mubr.f32.gmra.mrb[68].mxu1 %v26329_v60  ;;  %v21226_v60 = vpack.c.bf16 %v18322_v18, %v18321_v57 }
 0xa28   : > { %20827 = vmatprep.mubr.f32.mxu1 %v26332_v2  ;;  %21213 = vmatpush3.bf16.msra.mxu1 %v21210_v6  ;;  %v18323_v2 = vld [vmem:[#allocation5 + $0x470] sm:$0xff] }
 0xa29   : > { %21215 = vmatprep.subr.bf16.mxu1 %v21214_v26 }
 0xa2b   : > { %20828 = vmatmul.mubr.f32.gmra.mrb[70].mxu1 %v26335_v8  ;;  %v21230_v8 = vpack.c.bf16 %v18324_v27, %v18323_v2 }
 0xa2c   : > { %20830 = vmatprep.mubr.f32.mxu1 %v26338_v17  ;;  %21217 = vmatpush3.bf16.msra.mxu1 %v21214_v26  ;;  %v17894_v17 = vld [vmem:[#allocation3 + $0x121] sm:$0xff] }
 0xa2d   : > { %21219 = vmatprep.subr.bf16.mxu1 %v21218_v1 }
 0xa2f   : > { %20831 = vmatmul.mubr.f32.gmra.mrb[72].mxu1 %v26341_v31  ;;  %v17895_v31 = vld [vmem:[#allocation3 + $0x129] sm:$0xff] }
 0xa30   : > { %20833 = vmatprep.mubr.f32.mxu1 %v26344_v34  ;;  %21221 = vmatpush3.bf16.msra.mxu1 %v21218_v1  ;;  %v17896_v34 = vld [vmem:[#allocation3 + $0x139] sm:$0xff] }
 0xa31   : > { %21223 = vmatprep.subr.bf16.mxu1 %v21222_v38 }
 0xa33   : > { %20834 = vmatmul.mubr.f32.gmra.mrb[74].mxu1 %v26347_v7  ;;  %v17897_v7 = vld [vmem:[#allocation3 + $0x141] sm:$0xff] }
 0xa34   : > { %20836 = vmatprep.mubr.f32.mxu1 %v26350_v13  ;;  %21225 = vmatpush3.bf16.msra.mxu1 %v21222_v38  ;;  %v17898_v13 = vld [vmem:[#allocation3 + $0x151] sm:$0xff] }
 0xa35   : > { %21227 = vmatprep.subr.bf16.mxu1 %v21226_v60 }
 0xa37   : > { %20837 = vmatmul.mubr.f32.gmra.mrb[76].mxu1 %v26353_v12  ;;  %v17899_v12 = vld [vmem:[#allocation3 + $0x159] sm:$0xff] }
 0xa38   : > { %20839 = vmatprep.mubr.f32.mxu1 %v26356_v44  ;;  %21229 = vmatpush3.bf16.msra.mxu1 %v21226_v60  ;;  %v17900_v44 = vld [vmem:[#allocation3 + $0x169] sm:$0xff]  ;;  %v26820_v60 = vld [vmem:[#allocation29_spill] sm:$0xff] }
 0xa39   : > { %21231 = vmatprep.subr.bf16.mxu1 %v21230_v8  ;;  %v18687_v2 = vadd.f32 %v26820_v60, %v26457_v61 }
 0xa3b   : > { %20840 = vmatmul.mubr.f32.gmra.mrb[78].mxu1 %v26359_v53  ;;  %v17901_v53 = vld [vmem:[#allocation3 + $0x171] sm:$0xff] }
 0xa3c   : > { %20842 = vmatprep.mubr.f32.mxu1 %v26362_v43  ;;  %21233 = vmatpush3.bf16.msra.mxu1 %v21230_v8  ;;  %v17902_v43 = vld [vmem:[#allocation3 + $0x181] sm:$0xff] }
 0xa3f   : > { %20843 = vmatmul.mubr.f32.gmra.mrb[80].mxu1 %v26365_v62  ;;  %v17904_v62 = vld [vmem:[#allocation3 + $0x199] sm:$0xff] }
 0xa40   : > { %20845 = vmatprep.mubr.f32.mxu1 %v26368_v15  ;;  %v17903_v15 = vld [vmem:[#allocation3 + $0x189] sm:$0xff] }
 0xa43   : > { %20846 = vmatmul.mubr.f32.gmra.mrb[82].mxu1 %v26371_v4  ;;  %v17905_v4 = vld [vmem:[#allocation3 + $0x1a1] sm:$0xff] }
 0xa44   : > { %20848 = vmatprep.mubr.f32.mxu1 %v17894_v17 }
 0xa47   : > { %20849 = vmatmul.mubr.f32.gmra.mrb[84].mxu1 %v17895_v31 }
 0xa48   : > { %20851 = vmatprep.mubr.f32.mxu1 %v17896_v34 }
 0xa4b   : > { %20852 = vmatmul.mubr.f32.gmra.mrb[86].mxu1 %v17897_v7  ;;  %v26821_v7 = vld [vmem:[#allocation32_spill] sm:$0xff] }
 0xa4c   : > { %20854 = vmatprep.mubr.f32.mxu1 %v17898_v13  ;;  %v18690_v13 = vadd.f32 %v26821_v7, %v26457_v61 }
 0xa4f   : > { %20855 = vmatmul.mubr.f32.gmra.mrb[88].mxu1 %v17899_v12 }
 0xa50   : > { %20857 = vmatprep.mubr.f32.mxu1 %v17900_v44 }
 0xa53   : > { %20858 = vmatmul.mubr.f32.gmra.mrb[90].mxu1 %v17901_v53 }
 0xa54   : > { %20860 = vmatprep.mubr.f32.mxu1 %v17902_v43  ;;  %v26822_v43 = vld [vmem:[#allocation31_spill] sm:$0xff] }
 0xa57   : > { %20861 = vmatmul.mubr.f32.gmra.mrb[92].mxu1 %v17903_v15 }
 0xa58   : > { %20863 = vmatprep.mubr.f32.mxu1 %v17904_v62  ;;  %v18689_v62 = vadd.f32 %v26822_v43, %v26457_v61 }
 0xa5b   : > { %20864 = vmatmul.mubr.f32.gmra.mrb[94].mxu1 %v17905_v4 }
 0xa5c   : > { %20898 = vmatprep.mubr.f32.mxu1 %v18244_v58 }
 0xa5f   : > { %20899 = vmatmul.mubr.f32.vlgmr.msra.gmra.mrb[64].mxu1 %v18245_v0 }
 0xa60   : > { %20901 = vmatprep.mubr.f32.mxu1 %v18246_v32 }
 0xa63   : > { %20902 = vmatmul.mubr.f32.gmra.mrb[66].mxu1 %v18247_v41  ;;  %v26823_v41 = vld [vmem:[#allocation34_spill] sm:$0xff] }
 0xa64   : > { %20904 = vmatprep.mubr.f32.mxu1 %v18248_v42  ;;  %v18692_v42 = vadd.f32 %v26823_v41, %v26457_v61 }
 0xa67   : > { %20905 = vmatmul.mubr.f32.gmra.mrb[68].mxu1 %v18249_v54 }
 0xa68   : > { %20907 = vmatprep.mubr.f32.mxu1 %v18250_v45 }
 0xa6b   : > { %20908 = vmatmul.mubr.f32.gmra.mrb[70].mxu1 %v18251_v21 }
 0xa6c   : > { %20910 = vmatprep.mubr.f32.mxu1 %v18252_v52  ;;  %v26824_v52 = vld [vmem:[#allocation33_spill] sm:$0xff] }
 0xa6f   : > { %20911 = vmatmul.mubr.f32.gmra.mrb[72].mxu1 %v18253_v11  ;;  %v18691_v11 = vadd.f32 %v26824_v52, %v26457_v61 }
 0xa70   : > { %20913 = vmatprep.mubr.f32.mxu1 %v18254_v55 }
 0xa73   : > { %20914 = vmatmul.mubr.f32.gmra.mrb[74].mxu1 %v18255_v5 }
 0xa74   : > { %20916 = vmatprep.mubr.f32.mxu1 %v18256_v3 }
 0xa77   : > { %20917 = vmatmul.mubr.f32.gmra.mrb[76].mxu1 %v18257_v10 }
 0xa78   : > { %20919 = vmatprep.mubr.f32.mxu1 %v18258_v16 }
 0xa7b   : > { %20920 = vmatmul.mubr.f32.gmra.mrb[78].mxu1 %v18259_v19  ;;  %v26825_v19 = vld [vmem:[#allocation36_spill] sm:$0xff] }
 0xa7c   : > { %20922 = vmatprep.mubr.f32.mxu1 %v18260_v23  ;;  %v18694_v23 = vadd.f32 %v26825_v19, %v26457_v61 }
 0xa7f   : > { %20923 = vmatmul.mubr.f32.gmra.mrb[80].mxu1 %v18261_v25 }
 0xa80   : > { %20925 = vmatprep.mubr.f32.mxu1 %v18262_v29 }
 0xa83   : > { %20926 = vmatmul.mubr.f32.gmra.mrb[82].mxu1 %v18263_v36 }
 0xa84   : > { %20928 = vmatprep.mubr.f32.mxu1 %v18264_v39  ;;  %v26826_v39 = vld [vmem:[#allocation35_spill] sm:$0xff] }
 0xa87   : > { %20929 = vmatmul.mubr.f32.gmra.mrb[84].mxu1 %v18265_v14  ;;  %v18693_v14 = vadd.f32 %v26826_v39, %v26457_v61 }
 0xa88   : > { %20931 = vmatprep.mubr.f32.mxu1 %v18266_v20 }
 0xa8b   : > { %20932 = vmatmul.mubr.f32.gmra.mrb[86].mxu1 %v18267_v40 }
 0xa8c   : > { %20934 = vmatprep.mubr.f32.mxu1 %v18268_v56 }
 0xa8f   : > { %20935 = vmatmul.mubr.f32.gmra.mrb[88].mxu1 %v18269_v35 }
 0xa90   : > { %20937 = vmatprep.mubr.f32.mxu1 %v18270_v48 }
 0xa93   : > { %20938 = vmatmul.mubr.f32.gmra.mrb[90].mxu1 %v18271_v37  ;;  %v26827_v37 = vld [vmem:[#allocation38_spill] sm:$0xff] }
 0xa94   : > { %20940 = vmatprep.mubr.f32.mxu1 %v26416_v30  ;;  %v26817_v30 = vld [vmem:[#allocation28_spill] sm:$0xff] }
 0xa95   : > { %v18686_v9 = vadd.f32 %v26817_v30, %v26457_v61 }
 0xa97   : > { %20941 = vmatmul.mubr.f32.gmra.mrb[92].mxu1 %v26419_v33 }
 0xa98   : > { %20943 = vmatprep.mubr.f32.mxu1 %v18274_v51  ;;  %v18696_v51 = vadd.f32 %v26827_v37, %v26457_v61 }
 0xa9b   : > { %20944 = vmatmul.mubr.f32.gmra.mrb[94].mxu1 %v18275_v28 }
 0xb32   : > { %v20900_v59 = vpop.f32.mrb[64].mxu1 }
 0xb33   : > { %v21300_v33 = vadd.f32 %v20900_v59, %v26452_v47  ;;  %v18391_v6 = vpop.f32.mrb[65].mxu1 }
 0xb34   : > { %v21301_v26 = vadd.f32 %v26452_v47, %v18391_v6 }
 0xb35   : > { %v18718_v63 = vadd.f32 %v21300_v33, %v18686_v9  ;;  %v26828_v9 = vld [vmem:[#allocation37_spill] sm:$0xff] }
 0xb36   : > { %v18717_v49 = vadd.f32 %v21301_v26, %v18685_v46  ;;  %v20903_v1 = vpop.f32.mrb[66].mxu1  ;;  %v18695_v33 = vadd.f32 %v26828_v9, %v26457_v61 }
 0xb37   : > { %v18750_v38 = vmax.f32 %v18718_v63, 0.0  ;;  %v21302_v57 = vadd.f32 %v20903_v1, %v26452_v47  ;;  %v18401_v18 = vpop.f32.mrb[67].mxu1 }
 0xb38   : > { %v18749_v27 = vmax.f32 %v18717_v49, 0.0  ;;  %v21303_v8 = vadd.f32 %v26452_v47, %v18401_v18  ;;  %v26829_v49 = vld [vmem:[#allocation40_spill] sm:$0xff] }
 0xb39   : > { %18782 = vst [vmem:[%s26473_s15 + $0x8] sm:$0xff] %v18750_v38  ;;  %v18720_v17 = vadd.f32 %v21302_v57, %v18688_v22  ;;  %v18698_v1 = vadd.f32 %v26829_v49, %v26457_v61  ;;  %v26830_v57 = vld [vmem:[#allocation39_spill] sm:$0xff] }
 0xb3a   : > { %18781 = vst [vmem:[%s26473_s15] sm:$0xff] %v18749_v27  ;;  %v18719_v31 = vadd.f32 %v21303_v8, %v18687_v2  ;;  %v20906_v34 = vpop.f32.mrb[68].mxu1  ;;  %v18697_v18 = vadd.f32 %v26830_v57, %v26457_v61 }
 0xb3b   : > { %v18752_v12 = vmax.f32 %v18720_v17, 0.0  ;;  %v21304_v44 = vadd.f32 %v20906_v34, %v26452_v47  ;;  %v18411_v53 = vpop.f32.mrb[69].mxu1 }
 0xb3c   : > { %v18751_v15 = vmax.f32 %v18719_v31, 0.0  ;;  %v21305_v4 = vadd.f32 %v26452_v47, %v18411_v53  ;;  %v26831_v31 = vld [vmem:[#allocation42_spill] sm:$0xff] }
 0xb3d   : > { %18784 = vst [vmem:[%s26473_s15 + $0x18] sm:$0xff] %v18752_v12  ;;  %v18722_v58 = vadd.f32 %v21304_v44, %v18690_v13  ;;  %v18700_v34 = vadd.f32 %v26831_v31, %v26457_v61  ;;  %v26832_v44 = vld [vmem:[#allocation41_spill] sm:$0xff] }
 0xb3e   : > { %18783 = vst [vmem:[%s26473_s15 + $0x10] sm:$0xff] %v18751_v15  ;;  %v18721_v0 = vadd.f32 %v21305_v4, %v18689_v62  ;;  %v20909_v32 = vpop.f32.mrb[70].mxu1  ;;  %v18699_v53 = vadd.f32 %v26832_v44, %v26457_v61 }
 0xb3f   : > { %v18754_v54 = vmax.f32 %v18722_v58, 0.0  ;;  %v21306_v45 = vadd.f32 %v20909_v32, %v26452_v47  ;;  %v18421_v21 = vpop.f32.mrb[71].mxu1 }
 0xb40   : > { %v18753_v55 = vmax.f32 %v18721_v0, 0.0  ;;  %v21307_v5 = vadd.f32 %v26452_v47, %v18421_v21  ;;  %v26833_v0 = vld [vmem:[#allocation44_spill] sm:$0xff] }
 0xb41   : > { %18786 = vst [vmem:[%s26473_s15 + $0x28] sm:$0xff] %v18754_v54  ;;  %v18724_v3 = vadd.f32 %v21306_v45, %v18692_v42  ;;  %v18702_v32 = vadd.f32 %v26833_v0, %v26457_v61  ;;  %v26834_v45 = vld [vmem:[#allocation43_spill] sm:$0xff] }
 0xb42   : > { %18785 = vst [vmem:[%s26473_s15 + $0x20] sm:$0xff] %v18753_v55  ;;  %v18723_v10 = vadd.f32 %v21307_v5, %v18691_v11  ;;  %v20912_v16 = vpop.f32.mrb[72].mxu1  ;;  %v18701_v21 = vadd.f32 %v26834_v45, %v26457_v61 }
 0xb43   : > { %v18756_v25 = vmax.f32 %v18724_v3, 0.0  ;;  %v21308_v29 = vadd.f32 %v20912_v16, %v26452_v47  ;;  %v18431_v36 = vpop.f32.mrb[73].mxu1 }
 0xb44   : > { %v18755_v20 = vmax.f32 %v18723_v10, 0.0  ;;  %v21309_v40 = vadd.f32 %v26452_v47, %v18431_v36  ;;  %v26835_v10 = vld [vmem:[#allocation46_spill] sm:$0xff] }
 0xb45   : > { %18788 = vst [vmem:[%s26473_s15 + $0x38] sm:$0xff] %v18756_v25  ;;  %v18726_v56 = vadd.f32 %v21308_v29, %v18694_v23  ;;  %v18704_v16 = vadd.f32 %v26835_v10, %v26457_v61  ;;  %v26836_v29 = vld [vmem:[#allocation45_spill] sm:$0xff] }
 0xb46   : > { %18787 = vst [vmem:[%s26473_s15 + $0x30] sm:$0xff] %v18755_v20  ;;  %v18725_v35 = vadd.f32 %v21309_v40, %v18693_v14  ;;  %v20915_v48 = vpop.f32.mrb[74].mxu1  ;;  %v18703_v36 = vadd.f32 %v26836_v29, %v26457_v61 }
 0xb47   : > { %v18758_v28 = vmax.f32 %v18726_v56, 0.0  ;;  %v21310_v59 = vadd.f32 %v20915_v48, %v26452_v47  ;;  %v18441_v30 = vpop.f32.mrb[75].mxu1 }
 0xb48   : > { %v18757_v6 = vmax.f32 %v18725_v35, 0.0  ;;  %v21311_v24 = vadd.f32 %v26452_v47, %v18441_v30  ;;  %v26837_v35 = vld [vmem:[#allocation48_spill] sm:$0xff] }
 0xb49   : > { %18790 = vst [vmem:[%s26473_s15 + $0x48] sm:$0xff] %v18758_v28  ;;  %v18728_v46 = vadd.f32 %v21310_v59, %v18696_v51  ;;  %v18706_v48 = vadd.f32 %v26837_v35, %v26457_v61  ;;  %v26838_v59 = vld [vmem:[#allocation47_spill] sm:$0xff] }
 0xb4a   : > { %18789 = vst [vmem:[%s26473_s15 + $0x40] sm:$0xff] %v18757_v6  ;;  %v18727_v26 = vadd.f32 %v21311_v24, %v18695_v33  ;;  %v20918_v63 = vpop.f32.mrb[76].mxu1  ;;  %v18705_v30 = vadd.f32 %v26838_v59, %v26457_v61 }
 0xb4b   : > { %v18760_v50 = vmax.f32 %v18728_v46, 0.0  ;;  %v21312_v22 = vadd.f32 %v20918_v63, %v26452_v47  ;;  %v18451_v38 = vpop.f32.mrb[77].mxu1 }
 0xb4c   : > { %v18759_v60 = vmax.f32 %v18727_v26, 0.0  ;;  %v21313_v2 = vadd.f32 %v26452_v47, %v18451_v38  ;;  %v26839_v26 = vld [vmem:[#allocation50_spill] sm:$0xff] }
 0xb4d   : > { %18792 = vst [vmem:[%s26473_s15 + $0x58] sm:$0xff] %v18760_v50  ;;  %v18730_v27 = vadd.f32 %v21312_v22, %v18698_v1  ;;  %v18708_v63 = vadd.f32 %v26839_v26, %v26457_v61  ;;  %v26840_v22 = vld [vmem:[#allocation49_spill] sm:$0xff] }
 0xb4e   : > { %18791 = vst [vmem:[%s26473_s15 + $0x50] sm:$0xff] %v18759_v60  ;;  %v18729_v8 = vadd.f32 %v21313_v2, %v18697_v18  ;;  %v20921_v17 = vpop.f32.mrb[78].mxu1  ;;  %v18707_v38 = vadd.f32 %v26840_v22, %v26457_v61 }
 0xb4f   : > { %v18762_v7 = vmax.f32 %v18730_v27, 0.0  ;;  %v21314_v13 = vadd.f32 %v20921_v17, %v26452_v47  ;;  %v18461_v12 = vpop.f32.mrb[79].mxu1 }
 0xb50   : > { %v18761_v43 = vmax.f32 %v18729_v8, 0.0  ;;  %v21315_v62 = vadd.f32 %v26452_v47, %v18461_v12  ;;  %v26841_v8 = vld [vmem:[#allocation12_spill] sm:$0xff] }
 0xb51   : > { %18794 = vst [vmem:[%s26473_s15 + $0x68] sm:$0xff] %v18762_v7  ;;  %v18732_v15 = vadd.f32 %v21314_v13, %v18700_v34  ;;  %v18710_v17 = vadd.f32 %v26841_v8, %v26457_v61  ;;  %v26842_v13 = vld [vmem:[#allocation11_spill] sm:$0xff] }
 0xb52   : > { %18793 = vst [vmem:[%s26473_s15 + $0x60] sm:$0xff] %v18761_v43  ;;  %v18731_v4 = vadd.f32 %v21315_v62, %v18699_v53  ;;  %v20924_v58 = vpop.f32.mrb[80].mxu1  ;;  %v18709_v12 = vadd.f32 %v26842_v13, %v26457_v61 }
 0xb53   : > { %v18764_v41 = vmax.f32 %v18732_v15, 0.0  ;;  %v21316_v42 = vadd.f32 %v20924_v58, %v26452_v47  ;;  %v18471_v54 = vpop.f32.mrb[81].mxu1 }
 0xb54   : > { %v18763_v52 = vmax.f32 %v18731_v4, 0.0  ;;  %v21317_v11 = vadd.f32 %v26452_v47, %v18471_v54  ;;  %v26843_v4 = vld [vmem:[#allocation15_spill] sm:$0xff] }
 0xb55   : > { %18796 = vst [vmem:[%s26473_s15 + $0x78] sm:$0xff] %v18764_v41  ;;  %v18734_v55 = vadd.f32 %v21316_v42, %v18702_v32  ;;  %v18712_v58 = vadd.f32 %v26843_v4, %v26457_v61  ;;  %v26844_v42 = vld [vmem:[#allocation13_spill] sm:$0xff] }
 0xb56   : > { %18795 = vst [vmem:[%s26473_s15 + $0x70] sm:$0xff] %v18763_v52  ;;  %v18733_v5 = vadd.f32 %v21317_v11, %v18701_v21  ;;  %v20927_v3 = vpop.f32.mrb[82].mxu1  ;;  %v18711_v54 = vadd.f32 %v26844_v42, %v26457_v61 }
 0xb57   : > { %v18766_v19 = vmax.f32 %v18734_v55, 0.0  ;;  %v21318_v23 = vadd.f32 %v20927_v3, %v26452_v47  ;;  %v18481_v25 = vpop.f32.mrb[83].mxu1 }
 0xb58   : > { %v18765_v39 = vmax.f32 %v18733_v5, 0.0  ;;  %v21319_v14 = vadd.f32 %v26452_v47, %v18481_v25  ;;  %v26845_v5 = vld [vmem:[#allocation19_spill] sm:$0xff] }
 0xb59   : > { %18798 = vst [vmem:[%s26473_s15 + $0x88] sm:$0xff] %v18766_v19  ;;  %v18736_v20 = vadd.f32 %v21318_v23, %v18704_v16  ;;  %v18714_v3 = vadd.f32 %v26845_v5, %v26457_v61  ;;  %v26846_v23 = vld [vmem:[#allocation17_spill] sm:$0xff] }
 0xb5a   : > { %18797 = vst [vmem:[%s26473_s15 + $0x80] sm:$0xff] %v18765_v39  ;;  %v18735_v40 = vadd.f32 %v21319_v14, %v18703_v36  ;;  %v20930_v56 = vpop.f32.mrb[84].mxu1  ;;  %v18713_v25 = vadd.f32 %v26846_v23, %v26457_v61 }
 0xb5b   : > { %v18768_v37 = vmax.f32 %v18736_v20, 0.0  ;;  %v21320_v51 = vadd.f32 %v20930_v56, %v26452_v47  ;;  %v18491_v28 = vpop.f32.mrb[85].mxu1 }
 0xb5c   : > { %v18767_v9 = vmax.f32 %v18735_v40, 0.0  ;;  %v21321_v33 = vadd.f32 %v26452_v47, %v18491_v28  ;;  %v26847_v40 = vld [vmem:[#allocation24_spill] sm:$0xff] }
 0xb5d   : > { %18800 = vst [vmem:[%s26473_s15 + $0x98] sm:$0xff] %v18768_v37  ;;  %v18738_v6 = vadd.f32 %v21320_v51, %v18706_v48  ;;  %v18716_v56 = vadd.f32 %v26847_v40, %v26457_v61  ;;  %v26848_v51 = vld [vmem:[#allocation21_spill] sm:$0xff] }
 0xb5e   : > { %18799 = vst [vmem:[%s26473_s15 + $0x90] sm:$0xff] %v18767_v9  ;;  %v18737_v24 = vadd.f32 %v21321_v33, %v18705_v30  ;;  %v20933_v46 = vpop.f32.mrb[86].mxu1  ;;  %v18715_v28 = vadd.f32 %v26848_v51, %v26457_v61 }
 0xb5f   : > { %v18770_v49 = vmax.f32 %v18738_v6, 0.0  ;;  %v21322_v1 = vadd.f32 %v20933_v46, %v26452_v47  ;;  %v18501_v50 = vpop.f32.mrb[87].mxu1 }
 0xb60   : > { %v18769_v57 = vmax.f32 %v18737_v24, 0.0  ;;  %v21323_v18 = vadd.f32 %v26452_v47, %v18501_v50 }
 0xb61   : > { %18802 = vst [vmem:[%s26473_s15 + $0xa8] sm:$0xff] %v18770_v49  ;;  %v18740_v60 = vadd.f32 %v21322_v1, %v18708_v63 }
 0xb62   : > { %18801 = vst [vmem:[%s26473_s15 + $0xa0] sm:$0xff] %v18769_v57  ;;  %v18739_v2 = vadd.f32 %v21323_v18, %v18707_v38  ;;  %v20936_v27 = vpop.f32.mrb[88].mxu1 }
 0xb63   : > { %v18772_v31 = vmax.f32 %v18740_v60, 0.0  ;;  %v21324_v34 = vadd.f32 %v20936_v27, %v26452_v47  ;;  %v18511_v7 = vpop.f32.mrb[89].mxu1 }
 0xb64   : > { %v18771_v44 = vmax.f32 %v18739_v2, 0.0  ;;  %v21325_v53 = vadd.f32 %v26452_v47, %v18511_v7 }
 0xb65   : > { %18804 = vst [vmem:[%s26473_s15 + $0xb8] sm:$0xff] %v18772_v31  ;;  %v18742_v43 = vadd.f32 %v21324_v34, %v18710_v17 }
 0xb66   : > { %18803 = vst [vmem:[%s26473_s15 + $0xb0] sm:$0xff] %v18771_v44  ;;  %v18741_v62 = vadd.f32 %v21325_v53, %v18709_v12  ;;  %v20939_v15 = vpop.f32.mrb[90].mxu1 }
 0xb67   : > { %v18774_v0 = vmax.f32 %v18742_v43, 0.0  ;;  %v21326_v32 = vadd.f32 %v20939_v15, %v26452_v47  ;;  %v18521_v41 = vpop.f32.mrb[91].mxu1 }
 0xb68   : > { %v18773_v45 = vmax.f32 %v18741_v62, 0.0  ;;  %v21327_v21 = vadd.f32 %v26452_v47, %v18521_v41 }
 0xb69   : > { %18806 = vst [vmem:[%s26473_s15 + $0xc8] sm:$0xff] %v18774_v0  ;;  %v18744_v52 = vadd.f32 %v21326_v32, %v18712_v58 }
 0xb6a   : > { %18805 = vst [vmem:[%s26473_s15 + $0xc0] sm:$0xff] %v18773_v45  ;;  %v18743_v11 = vadd.f32 %v21327_v21, %v18711_v54  ;;  %v20942_v55 = vpop.f32.mrb[92].mxu1 }
 0xb6b   : > { %v18776_v10 = vmax.f32 %v18744_v52, 0.0  ;;  %v21328_v16 = vadd.f32 %v20942_v55, %v26452_v47  ;;  %v18531_v19 = vpop.f32.mrb[93].mxu1 }
 0xb6c   : > { %v18775_v29 = vmax.f32 %v18743_v11, 0.0  ;;  %v21329_v36 = vadd.f32 %v26452_v47, %v18531_v19 }
 0xb6d   : > { %18808 = vst [vmem:[%s26473_s15 + $0xd8] sm:$0xff] %v18776_v10  ;;  %v18746_v39 = vadd.f32 %v21328_v16, %v18714_v3 }
 0xb6e   : > { %18807 = vst [vmem:[%s26473_s15 + $0xd0] sm:$0xff] %v18775_v29  ;;  %v18745_v14 = vadd.f32 %v21329_v36, %v18713_v25  ;;  %v20945_v20 = vpop.f32.mrb[94].mxu1 }
 0xb6f   : > { %v18778_v35 = vmax.f32 %v18746_v39, 0.0  ;;  %v21330_v48 = vadd.f32 %v20945_v20, %v26452_v47  ;;  %v18541_v37 = vpop.f32.mrb[95].mxu1 }
 0xb70   : > { %v18777_v59 = vmax.f32 %v18745_v14, 0.0  ;;  %v21331_v30 = vadd.f32 %v26452_v47, %v18541_v37 }
 0xb71   : > { %18810 = vst [vmem:[%s26473_s15 + $0xe8] sm:$0xff] %v18778_v35  ;;  %v18748_v9 = vadd.f32 %v21330_v48, %v18716_v56 }
 0xb72   : > { %18809 = vst [vmem:[%s26473_s15 + $0xe0] sm:$0xff] %v18777_v59  ;;  %v18747_v33 = vadd.f32 %v21331_v30, %v18715_v28 }
 0xb73   : > { %v18780_v6 = vmax.f32 %v18748_v9, 0.0 }
 0xb74   : > { %v18779_v61 = vmax.f32 %v18747_v33, 0.0 }
 0xb75   : > { %18812 = vst [vmem:[%s26473_s15 + $0xf8] sm:$0xff] %v18780_v6 }
 0xb76   : > { %18811 = vst [vmem:[%s26473_s15 + $0xf0] sm:$0xff] %v18779_v61 }
 0xb77   : > { %23187 = shalt.err (!%p23184_p7)
}
 0xb78   : > { %s23188_s10 = scalar_lea.hbm %s26594_s20, 4096  ;;  %s23192_s13 = scalar_lea.hbm %s26649_s6, 8192 }
 0xb79   : > { %p23189_p8 = scmp.ne.s32.totalorder %s26594_s20, %s23188_s10  ;;  %p23193_p1 = scmp.lt.u32.totalorder %s26594_s20, %s26649_s6 }
 0xb7a   : > { %p23194_p0 = scmp.lt.u32.totalorder %s23192_s13, %s23188_s10  ;;  %p23196_p6 = scmp.lt.u32.totalorder %s23188_s10, %s26594_s20 }
 0xb7b   : > { %p23190_p11 = pnand %p23189_p8, %p26849_p9 }
 0xb7c   : > { %p23195_p5 = por %p23194_p0, %p23193_p1 }
 0xb7d   : > { %p23191_p13 = pneg %p23190_p11 }
 0xb7e   : > { %p23197_p10 = por %p23196_p6, %p23195_p5 }
 0xb80   : > { %p23198_p12 = pnand %p23197_p10, %p23191_p13 }
 0xb82   : > { %23201 = shalt.err (!%p23198_p12)
}
 0xb83   : > { %s23247_s16 = smov 128   ;;  %s23248_s18 = smov 8  }
 0xb84   : > { %23064 = dma.vmem_to_hbm [thread:$0]  (%p26849_p9), %s26596_s17, 4096, %s26594_s20, %s26602_s25, %s23247_s16, %s23247_s16, %s23248_s18  }
 0xb85 PF: > { %p23076_p2 = scmp.ge.s32.totalorder %s23240_s24, 2  ;;  %s18842_s19 = sand.u32 1, %s23228_s21  }
 0xb86   : > { %p26850_p3 = scmp.ne.s32.totalorder %s26693_s8, 0  ;;  %s18843_s26 = scalar_lea.sflag [#allocation7], %s18842_s19 }
 0xb88   : > { %p23071_p4 = pnand %p23076_p2, %p26850_p3 }
 0xb8a   : > { %23223 = dma.done.wait (!%p23071_p4), %s18843_s26, 4096  }
 0xb8b   : > { %23225 = vsyncadd (!%p23071_p4), %s18843_s26, 4294963200  ;;  %p17_p7 = scmp.ge.s32.totalorder %s23309_s27, 4   ;;  %s26851_s21 = smov %s23232_s22 }
 0xb8c   : > { %s26852_s22 = smov %s23236_s23  ;;  %s26853_s23 = smov %s23320_s30 }
 0xb8d   : > { %s26854_s24 = smov %s23309_s27  ;;  %19 = sbr.rel (!%p17_p7) target bundleno = 4 (0x4), region = 124 }
 0xb94   :  { %18848 = vsyncpa [#allocation6], 1 }
 0xb95   :  { %18850 = vsyncpa [#allocation6 + $0x1], 1 }
 0xb96   :  { %18851 = vsyncpa [#allocation7], 1 }
 0xb97   :  { %18853 = vsyncpa [#allocation7 + $0x1], 1 }

</bundles_post_ra>
